<compile_context>
chip_gen: v7x
topology: tpu7x:2x2x1
jax: 0.10.0
libtpu: 0.0.40
codegen_flags: <defaults>
</compile_context>

<pallas_src>
import jax
import jax.numpy as jnp
from jax import lax
from jax.experimental import pallas as pl
from jax.experimental.pallas import tpu as pltpu


CP = 128  # lane-dense channel padding (TPU lane width)


# ------------------------------ fused kernel --------------------------------

def _make_c2_kernel(H, W, nblocks, shortcut):
    HW = H * W

    def _silu(y):
        # sigmoid = 1 / (1 + exp(-y)); exp + approx reciprocal run on EUP slots.
        return y * pl.reciprocal(1.0 + jnp.exp(-y), approx=True)

    def _conv3x3(m, w, s, b, xpad_ref):
        # m: (HW, CP) f32.  Write into the centre of the zero-bordered halo
        # buffer, then build one lane-aligned im2col operand and do a single
        # (HW, 9*CP) x (9*CP, CP) bf16 matmul.
        xpad_ref[1:H + 1, 1:W + 1, :] = m.reshape(H, W, CP)
        taps = [xpad_ref[dy:dy + H, dx:dx + W, :].reshape(HW, CP)
                for dy in range(3) for dx in range(3)]
        patches = jnp.concatenate(taps, axis=-1).astype(jnp.bfloat16)  # (HW, 9*CP)
        y = jnp.dot(patches, w, preferred_element_type=jnp.float32)
        return _silu(y * s + b)

    def kernel(x_ref, w1_ref, s1_ref, b1_ref, wm_ref, sm_ref, bm_ref,
               w2_ref, s2_ref, b2_ref, o_ref, xpad_ref):
        # Zero the halo buffer once per image (borders stay zero afterwards).
        xpad_ref[...] = jnp.zeros_like(xpad_ref)

        # cv1: 1x1 conv + BN + SiLU.  Output half "a" occupies lanes [0, CP),
        # half "b" occupies lanes [CP, 2*CP) — both lane-aligned.
        x = x_ref[0].astype(jnp.bfloat16)                       # (HW, c1)
        y = jnp.dot(x, w1_ref[...], preferred_element_type=jnp.float32)
        y = _silu(y * s1_ref[...] + b1_ref[...])                # (HW, 2*CP)
        m = y[:, :CP]
        b = y[:, CP:]

        # n x Bottleneck: two 3x3 conv+BN+SiLU, optional residual.
        for blk in range(nblocks):
            t = _conv3x3(m, wm_ref[2 * blk], sm_ref[2 * blk],
                         bm_ref[2 * blk], xpad_ref)
            t = _conv3x3(t, wm_ref[2 * blk + 1], sm_ref[2 * blk + 1],
                         bm_ref[2 * blk + 1], xpad_ref)
            m = m + t if shortcut else t

        # cv2: 1x1 conv over concat(m, b) done entirely in VMEM.
        cat = jnp.concatenate([m, b], axis=-1).astype(jnp.bfloat16)  # (HW, 2*CP)
        z = jnp.dot(cat, w2_ref[...], preferred_element_type=jnp.float32)
        o_ref[0] = _silu(z * s2_ref[...] + b2_ref[...]).astype(o_ref.dtype)

    return kernel


def c2_forward(x_nchw, params, shortcut=True):
    """x_nchw: (N, c1, H, W) f32 -> (N, c2, H, W) f32."""
    N, c1, H, W = x_nchw.shape
    c2 = params["c2"]
    nblocks = params["n"]
    HW = H * W
    p = params["packed"]

    x = jnp.transpose(x_nchw, (0, 2, 3, 1)).reshape(N, HW, c1)  # NCHW -> (N, HW, C)

    kernel = _make_c2_kernel(H, W, nblocks, shortcut)
    out = pl.pallas_call(
        kernel,
        out_shape=jax.ShapeDtypeStruct((N, HW, CP), jnp.float32),
        grid=(N,),
        in_specs=[
            pl.BlockSpec((1, HW, c1), lambda n: (n, 0, 0)),
            pl.BlockSpec((c1, 2 * CP), lambda n: (0, 0)),
            pl.BlockSpec((1, 2 * CP), lambda n: (0, 0)),
            pl.BlockSpec((1, 2 * CP), lambda n: (0, 0)),
            pl.BlockSpec((2 * nblocks, 9 * CP, CP), lambda n: (0, 0, 0)),
            pl.BlockSpec((2 * nblocks, 1, CP), lambda n: (0, 0, 0)),
            pl.BlockSpec((2 * nblocks, 1, CP), lambda n: (0, 0, 0)),
            pl.BlockSpec((2 * CP, CP), lambda n: (0, 0)),
            pl.BlockSpec((1, CP), lambda n: (0, 0)),
            pl.BlockSpec((1, CP), lambda n: (0, 0)),
        ],
        out_specs=pl.BlockSpec((1, HW, CP), lambda n: (n, 0, 0)),
        scratch_shapes=[pltpu.VMEM((H + 2, W + 2, CP), jnp.float32)],
        compiler_params=pltpu.CompilerParams(
            dimension_semantics=("parallel",)),
    )(x, p["w1"], p["s1"], p["b1"], p["wm"], p["sm"], p["bm"],
      p["w2"], p["s2"], p["b2"])

    y = out[:, :, :c2].reshape(N, H, W, c2)
    return jnp.transpose(y, (0, 3, 1, 2))                       # NHWC -> NCHW


# --------------------------- parameter creation ------------------------------

def _fold_bn(key, c, eps=1e-5):
    k1, k2, k3, k4 = jax.random.split(key, 4)
    gamma = 1.0 + 0.1 * jax.random.normal(k1, (c,), jnp.float32)
    beta = 0.1 * jax.random.normal(k2, (c,), jnp.float32)
    mean = 0.1 * jax.random.normal(k3, (c,), jnp.float32)
    var = jnp.abs(jax.random.normal(k4, (c,), jnp.float32)) + 0.5
    scale = gamma / jnp.sqrt(var + eps)
    bias = beta - mean * scale
    return scale, bias


def _init_conv(key, c_in, c_out, k):
    kw, kb = jax.random.split(key)
    w_t = 0.1 * jax.random.normal(kw, (c_out, c_in, k, k), jnp.float32)  # OIHW
    scale, bias = _fold_bn(kb, c_out)
    return {"w_torch": w_t, "scale": scale, "bias": bias}


def _pack_cv1(conv, c):
    """1x1 conv producing 2c channels; split output into two 128-lane blocks."""
    w = conv["w_torch"][:, :, 0, 0]                     # (2c, c1)
    c_in = w.shape[1]
    w1 = jnp.zeros((c_in, 2 * CP), jnp.float32)
    w1 = w1.at[:, :c].set(w[:c].T).at[:, CP:CP + c].set(w[c:].T)
    s = jnp.zeros((1, 2 * CP), jnp.float32)
    s = s.at[0, :c].set(conv["scale"][:c]).at[0, CP:CP + c].set(conv["scale"][c:])
    b = jnp.zeros((1, 2 * CP), jnp.float32)
    b = b.at[0, :c].set(conv["bias"][:c]).at[0, CP:CP + c].set(conv["bias"][c:])
    return w1.astype(jnp.bfloat16), s, b


def _pack_k3(conv):
    """3x3 conv in im2col layout: (9*CP, CP), zero-padded channels."""
    w_t = conv["w_torch"]                               # (cout, cin, 3, 3)
    c_out, c_in = w_t.shape[0], w_t.shape[1]
    w = jnp.zeros((9 * CP, CP), jnp.float32)
    for dy in range(3):
        for dx in range(3):
            t = dy * 3 + dx
            w = w.at[t * CP:t * CP + c_in, :c_out].set(w_t[:, :, dy, dx].T)
    s = jnp.zeros((1, CP), jnp.float32).at[0, :c_out].set(conv["scale"])
    b = jnp.zeros((1, CP), jnp.float32).at[0, :c_out].set(conv["bias"])
    return w.astype(jnp.bfloat16), s, b


def _pack_cv2(conv, c):
    """1x1 conv over concat(m, b): m channels map to rows [0,c), b to [CP,CP+c)."""
    w = conv["w_torch"][:, :, 0, 0]                     # (c2, 2c)
    c_out = w.shape[0]
    w2 = jnp.zeros((2 * CP, CP), jnp.float32)
    w2 = w2.at[:c, :c_out].set(w[:, :c].T).at[CP:CP + c, :c_out].set(w[:, c:].T)
    s = jnp.zeros((1, CP), jnp.float32).at[0, :c_out].set(conv["scale"])
    b = jnp.zeros((1, CP), jnp.float32).at[0, :c_out].set(conv["bias"])
    return w2.astype(jnp.bfloat16), s, b


def init_c2_params(key, c1, c2, n=1, e=0.5):
    c = int(c2 * e)
    keys = jax.random.split(key, 2 + 2 * n)
    cv1 = _init_conv(keys[0], c1, 2 * c, 1)
    cv2 = _init_conv(keys[1], 2 * c, c2, 1)
    m = [{"cv1": _init_conv(keys[2 + 2 * i], c, c, 3),
          "cv2": _init_conv(keys[3 + 2 * i], c, c, 3)} for i in range(n)]

    w1, s1, b1 = _pack_cv1(cv1, c)
    w2, s2, b2 = _pack_cv2(cv2, c)
    wm, sm, bm = [], [], []
    for blk in m:
        for conv in (blk["cv1"], blk["cv2"]):
            w, s, b = _pack_k3(conv)
            wm.append(w); sm.append(s); bm.append(b)

    packed = {"w1": w1, "s1": s1, "b1": b1,
              "wm": jnp.stack(wm), "sm": jnp.stack(sm), "bm": jnp.stack(bm),
              "w2": w2, "s2": s2, "b2": b2}
    return {"c": c, "c2": c2, "n": n, "cv1": cv1, "cv2": cv2, "m": m,
            "packed": packed}


# ---------------------- pure-JAX reference (for check) -----------------------

def _ref_conv(x, conv):
    w = jnp.transpose(conv["w_torch"], (2, 3, 1, 0))    # OIHW -> HWIO
    y = lax.conv_general_dilated(x, w, (1, 1), "SAME",
                                 dimension_numbers=("NHWC", "HWIO", "NHWC"))
    y = y * conv["scale"] + conv["bias"]
    return y * jax.nn.sigmoid(y)


def c2_ref(x_nchw, params, shortcut=True):
    c = params["c"]
    x = jnp.transpose(x_nchw, (0, 2, 3, 1))
    y = _ref_conv(x, params["cv1"])
    a, b = y[..., :c], y[..., c:]
    m = a
    for blk in params["m"]:
        t = _ref_conv(m, blk["cv1"])
        t = _ref_conv(t, blk["cv2"])
        m = m + t if shortcut else t
    y2 = _ref_conv(jnp.concatenate([m, b], axis=-1), params["cv2"])
    return jnp.transpose(y2, (0, 3, 1, 2))


# ---------------------------------- main --------------------------------------

if __name__ == "__main__":
    key = jax.random.PRNGKey(0)
    kx, kp = jax.random.split(key)

    # C2(c1=8, c2=8, n=1, shortcut=True) -> hidden c = 4
    c1, c2_ch, n = 8, 8, 1
    x = jax.random.normal(kx, (2, c1, 16, 16), jnp.float32)    # NCHW input
    params = init_c2_params(kp, c1, c2_ch, n=n, e=0.5)

    out = jax.block_until_ready(c2_forward(x, params, shortcut=True))
    ref = jax.block_until_ready(c2_ref(x, params, shortcut=True))

    assert out.shape == (2, c2_ch, 16, 16)
    err = float(jnp.max(jnp.abs(out - ref)))
    # bf16 matmul operands + approx reciprocal vs. f32 reference.
    assert err < 3e-2, f"max abs err = {err}"
    print("KERNEL_OK")
</pallas_src>

<mosaic_0001>
module attributes {stable_mosaic.version = 11 : i64} {
  func.func @kernel(%arg0: i32, %arg1: memref<1x256x8xf32, #tpu.memory_space<vmem>>, %arg2: memref<8x256xbf16, #tpu.memory_space<vmem>>, %arg3: memref<1x256xf32, #tpu.memory_space<vmem>>, %arg4: memref<1x256xf32, #tpu.memory_space<vmem>>, %arg5: memref<2x1152x128xbf16, #tpu.memory_space<vmem>>, %arg6: memref<2x1x128xf32, #tpu.memory_space<vmem>>, %arg7: memref<2x1x128xf32, #tpu.memory_space<vmem>>, %arg8: memref<256x128xbf16, #tpu.memory_space<vmem>>, %arg9: memref<1x128xf32, #tpu.memory_space<vmem>>, %arg10: memref<1x128xf32, #tpu.memory_space<vmem>>, %arg11: memref<1x256x128xf32, #tpu.memory_space<vmem>>, %arg12: memref<18x18x128xf32, #tpu.memory_space<vmem>>) attributes {dimension_semantics = [#tpu.dimension_semantics<parallel>], iteration_bounds = array<i64: 2>, scalar_prefetch = 0 : i64, scratch_operands = 1 : i64, tpu.core_type = #tpu.core_type<tc>, window_params = [{transform_indices = @transform_0, window_bounds = array<i64: 1, 256, 8>}, {pipeline_mode = #tpu.pipeline_mode<synchronous>, transform_indices = @transform_1, window_bounds = array<i64: 8, 256>}, {pipeline_mode = #tpu.pipeline_mode<synchronous>, transform_indices = @transform_2, window_bounds = array<i64: 1, 256>}, {pipeline_mode = #tpu.pipeline_mode<synchronous>, transform_indices = @transform_3, window_bounds = array<i64: 1, 256>}, {pipeline_mode = #tpu.pipeline_mode<synchronous>, transform_indices = @transform_4, window_bounds = array<i64: 2, 1152, 128>}, {pipeline_mode = #tpu.pipeline_mode<synchronous>, transform_indices = @transform_5, window_bounds = array<i64: 2, 1, 128>}, {pipeline_mode = #tpu.pipeline_mode<synchronous>, transform_indices = @transform_6, window_bounds = array<i64: 2, 1, 128>}, {pipeline_mode = #tpu.pipeline_mode<synchronous>, transform_indices = @transform_7, window_bounds = array<i64: 256, 128>}, {pipeline_mode = #tpu.pipeline_mode<synchronous>, transform_indices = @transform_8, window_bounds = array<i64: 1, 128>}, {pipeline_mode = #tpu.pipeline_mode<synchronous>, transform_indices = @transform_9, window_bounds = array<i64: 1, 128>}, {transform_indices = @transform_10, window_bounds = array<i64: 1, 256, 128>}]} {
    %cst = arith.constant 0.000000e+00 : f32
    %0 = vector.broadcast %cst : f32 to vector<18x18x128xf32>
    %c0 = arith.constant 0 : index
    %c0_0 = arith.constant 0 : index
    %c0_1 = arith.constant 0 : index
    %1 = vector.load %arg12[%c0, %c0_0, %c0_1] : memref<18x18x128xf32, #tpu.memory_space<vmem>>, vector<18x18x128xf32>
    tpu.vector_store %arg12[%c0, %c0_0, %c0_1], %0 {strides = array<i32>} : memref<18x18x128xf32, #tpu.memory_space<vmem>>, vector<18x18x128xf32>,
    %c0_2 = arith.constant 0 : index
    %c0_3 = arith.constant 0 : index
    %c0_4 = arith.constant 0 : index
    %2 = vector.load %arg1[%c0_2, %c0_3, %c0_4] : memref<1x256x8xf32, #tpu.memory_space<vmem>>, vector<1x256x8xf32>
    %3 = vector.shape_cast %2 : vector<1x256x8xf32> to vector<256x8xf32>
    %4 = arith.truncf %3 : vector<256x8xf32> to vector<256x8xbf16>
    %c0_5 = arith.constant 0 : index
    %c0_6 = arith.constant 0 : index
    %5 = vector.load %arg2[%c0_5, %c0_6] : memref<8x256xbf16, #tpu.memory_space<vmem>>, vector<8x256xbf16>
    %cst_7 = arith.constant dense<0.000000e+00> : vector<256x256xf32>
    %6 = tpu.matmul %4, %5, %cst_7 {dimension_numbers = #tpu.dot_dimension_numbers<[1], [0], [0], [1], [0, 0, 1, 1], [], []>} : vector<256x8xbf16>, vector<8x256xbf16>, vector<256x256xf32> -> vector<256x256xf32>
    %c0_8 = arith.constant 0 : index
    %c0_9 = arith.constant 0 : index
    %7 = vector.load %arg3[%c0_8, %c0_9] : memref<1x256xf32, #tpu.memory_space<vmem>>, vector<1x256xf32>
    %8 = vector.broadcast %7 : vector<1x256xf32> to vector<256x256xf32>
    %9 = arith.mulf %6, %8 : vector<256x256xf32>
    %c0_10 = arith.constant 0 : index
    %c0_11 = arith.constant 0 : index
    %10 = vector.load %arg4[%c0_10, %c0_11] : memref<1x256xf32, #tpu.memory_space<vmem>>, vector<1x256xf32>
    %11 = vector.broadcast %10 : vector<1x256xf32> to vector<256x256xf32>
    %12 = arith.addf %9, %11 : vector<256x256xf32>
    %cst_12 = arith.constant 0.000000e+00 : f32
    %13 = vector.broadcast %cst_12 : f32 to vector<256x256xf32>
    %14 = arith.subf %13, %12 : vector<256x256xf32>
    %15 = math.exp %14 : vector<256x256xf32>
    %cst_13 = arith.constant 1.000000e+00 : f32
    %16 = vector.broadcast %cst_13 : f32 to vector<256x256xf32>
    %17 = arith.addf %16, %15 : vector<256x256xf32>
    %18 = tpu.reciprocal %17 {approx = true} : vector<256x256xf32> -> vector<256x256xf32>
    %19 = arith.mulf %12, %18 : vector<256x256xf32>
    %20 = vector.extract_strided_slice %19 {offsets = [0, 0], sizes = [256, 128], strides = [1, 1]} : vector<256x256xf32> to vector<256x128xf32>
    %21 = vector.extract_strided_slice %19 {offsets = [0, 128], sizes = [256, 128], strides = [1, 1]} : vector<256x256xf32> to vector<256x128xf32>
    %c0_14 = arith.constant 0 : index
    %c0_15 = arith.constant 0 : index
    %c0_16 = arith.constant 0 : index
    %22 = vector.load %arg5[%c0_14, %c0_15, %c0_16] : memref<2x1152x128xbf16, #tpu.memory_space<vmem>>, vector<1x1152x128xbf16>
    %23 = vector.shape_cast %22 : vector<1x1152x128xbf16> to vector<1152x128xbf16>
    %c0_17 = arith.constant 0 : index
    %c0_18 = arith.constant 0 : index
    %c0_19 = arith.constant 0 : index
    %24 = vector.load %arg6[%c0_17, %c0_18, %c0_19] : memref<2x1x128xf32, #tpu.memory_space<vmem>>, vector<1x1x128xf32>
    %25 = vector.shape_cast %24 : vector<1x1x128xf32> to vector<1x128xf32>
    %c0_20 = arith.constant 0 : index
    %c0_21 = arith.constant 0 : index
    %c0_22 = arith.constant 0 : index
    %26 = vector.load %arg7[%c0_20, %c0_21, %c0_22] : memref<2x1x128xf32, #tpu.memory_space<vmem>>, vector<1x1x128xf32>
    %27 = vector.shape_cast %26 : vector<1x1x128xf32> to vector<1x128xf32>
    %28 = vector.shape_cast %20 : vector<256x128xf32> to vector<16x16x128xf32>
    %c1 = arith.constant 1 : index
    %c1_23 = arith.constant 1 : index
    %c0_24 = arith.constant 0 : index
    %29 = vector.load %arg12[%c1, %c1_23, %c0_24] : memref<18x18x128xf32, #tpu.memory_space<vmem>>, vector<16x16x128xf32>
    tpu.vector_store %arg12[%c1, %c1_23, %c0_24], %28 {strides = array<i32>} : memref<18x18x128xf32, #tpu.memory_space<vmem>>, vector<16x16x128xf32>,
    %c0_25 = arith.constant 0 : index
    %c0_26 = arith.constant 0 : index
    %c0_27 = arith.constant 0 : index
    %30 = vector.load %arg12[%c0_25, %c0_26, %c0_27] : memref<18x18x128xf32, #tpu.memory_space<vmem>>, vector<16x16x128xf32>
    %31 = vector.shape_cast %30 : vector<16x16x128xf32> to vector<256x128xf32>
    %c0_28 = arith.constant 0 : index
    %c1_29 = arith.constant 1 : index
    %c0_30 = arith.constant 0 : index
    %32 = vector.load %arg12[%c0_28, %c1_29, %c0_30] : memref<18x18x128xf32, #tpu.memory_space<vmem>>, vector<16x16x128xf32>
    %33 = vector.shape_cast %32 : vector<16x16x128xf32> to vector<256x128xf32>
    %c0_31 = arith.constant 0 : index
    %c2 = arith.constant 2 : index
    %c0_32 = arith.constant 0 : index
    %34 = vector.load %arg12[%c0_31, %c2, %c0_32] : memref<18x18x128xf32, #tpu.memory_space<vmem>>, vector<16x16x128xf32>
    %35 = vector.shape_cast %34 : vector<16x16x128xf32> to vector<256x128xf32>
    %c1_33 = arith.constant 1 : index
    %c0_34 = arith.constant 0 : index
    %c0_35 = arith.constant 0 : index
    %36 = vector.load %arg12[%c1_33, %c0_34, %c0_35] : memref<18x18x128xf32, #tpu.memory_space<vmem>>, vector<16x16x128xf32>
    %37 = vector.shape_cast %36 : vector<16x16x128xf32> to vector<256x128xf32>
    %c1_36 = arith.constant 1 : index
    %c1_37 = arith.constant 1 : index
    %c0_38 = arith.constant 0 : index
    %38 = vector.load %arg12[%c1_36, %c1_37, %c0_38] : memref<18x18x128xf32, #tpu.memory_space<vmem>>, vector<16x16x128xf32>
    %39 = vector.shape_cast %38 : vector<16x16x128xf32> to vector<256x128xf32>
    %c1_39 = arith.constant 1 : index
    %c2_40 = arith.constant 2 : index
    %c0_41 = arith.constant 0 : index
    %40 = vector.load %arg12[%c1_39, %c2_40, %c0_41] : memref<18x18x128xf32, #tpu.memory_space<vmem>>, vector<16x16x128xf32>
    %41 = vector.shape_cast %40 : vector<16x16x128xf32> to vector<256x128xf32>
    %c2_42 = arith.constant 2 : index
    %c0_43 = arith.constant 0 : index
    %c0_44 = arith.constant 0 : index
    %42 = vector.load %arg12[%c2_42, %c0_43, %c0_44] : memref<18x18x128xf32, #tpu.memory_space<vmem>>, vector<16x16x128xf32>
    %43 = vector.shape_cast %42 : vector<16x16x128xf32> to vector<256x128xf32>
    %c2_45 = arith.constant 2 : index
    %c1_46 = arith.constant 1 : index
    %c0_47 = arith.constant 0 : index
    %44 = vector.load %arg12[%c2_45, %c1_46, %c0_47] : memref<18x18x128xf32, #tpu.memory_space<vmem>>, vector<16x16x128xf32>
    %45 = vector.shape_cast %44 : vector<16x16x128xf32> to vector<256x128xf32>
    %c2_48 = arith.constant 2 : index
    %c2_49 = arith.constant 2 : index
    %c0_50 = arith.constant 0 : index
    %46 = vector.load %arg12[%c2_48, %c2_49, %c0_50] : memref<18x18x128xf32, #tpu.memory_space<vmem>>, vector<16x16x128xf32>
    %47 = vector.shape_cast %46 : vector<16x16x128xf32> to vector<256x128xf32>
    %48 = tpu.concatenate %31, %33, %35, %37, %39, %41, %43, %45, %47 in 1 : vector<256x128xf32>, vector<256x128xf32>, vector<256x128xf32>, vector<256x128xf32>, vector<256x128xf32>, vector<256x128xf32>, vector<256x128xf32>, vector<256x128xf32>, vector<256x128xf32> -> vector<256x1152xf32>
    %49 = arith.truncf %48 : vector<256x1152xf32> to vector<256x1152xbf16>
    %cst_51 = arith.constant dense<0.000000e+00> : vector<256x128xf32>
    %50 = tpu.matmul %49, %23, %cst_51 {dimension_numbers = #tpu.dot_dimension_numbers<[1], [0], [0], [1], [0, 0, 1, 1], [], []>} : vector<256x1152xbf16>, vector<1152x128xbf16>, vector<256x128xf32> -> vector<256x128xf32>
    %51 = vector.broadcast %25 : vector<1x128xf32> to vector<256x128xf32>
    %52 = arith.mulf %50, %51 : vector<256x128xf32>
    %53 = vector.broadcast %27 : vector<1x128xf32> to vector<256x128xf32>
    %54 = arith.addf %52, %53 : vector<256x128xf32>
    %cst_52 = arith.constant 0.000000e+00 : f32
    %55 = vector.broadcast %cst_52 : f32 to vector<256x128xf32>
    %56 = arith.subf %55, %54 : vector<256x128xf32>
    %57 = math.exp %56 : vector<256x128xf32>
    %cst_53 = arith.constant 1.000000e+00 : f32
    %58 = vector.broadcast %cst_53 : f32 to vector<256x128xf32>
    %59 = arith.addf %58, %57 : vector<256x128xf32>
    %60 = tpu.reciprocal %59 {approx = true} : vector<256x128xf32> -> vector<256x128xf32>
    %61 = arith.mulf %54, %60 : vector<256x128xf32>
    %c1_54 = arith.constant 1 : index
    %c0_55 = arith.constant 0 : index
    %c0_56 = arith.constant 0 : index
    %62 = vector.load %arg5[%c1_54, %c0_55, %c0_56] : memref<2x1152x128xbf16, #tpu.memory_space<vmem>>, vector<1x1152x128xbf16>
    %63 = vector.shape_cast %62 : vector<1x1152x128xbf16> to vector<1152x128xbf16>
    %c1_57 = arith.constant 1 : index
    %c0_58 = arith.constant 0 : index
    %c0_59 = arith.constant 0 : index
    %64 = vector.load %arg6[%c1_57, %c0_58, %c0_59] : memref<2x1x128xf32, #tpu.memory_space<vmem>>, vector<1x1x128xf32>
    %65 = vector.shape_cast %64 : vector<1x1x128xf32> to vector<1x128xf32>
    %c1_60 = arith.constant 1 : index
    %c0_61 = arith.constant 0 : index
    %c0_62 = arith.constant 0 : index
    %66 = vector.load %arg7[%c1_60, %c0_61, %c0_62] : memref<2x1x128xf32, #tpu.memory_space<vmem>>, vector<1x1x128xf32>
    %67 = vector.shape_cast %66 : vector<1x1x128xf32> to vector<1x128xf32>
    %68 = vector.shape_cast %61 : vector<256x128xf32> to vector<16x16x128xf32>
    %c1_63 = arith.constant 1 : index
    %c1_64 = arith.constant 1 : index
    %c0_65 = arith.constant 0 : index
    %69 = vector.load %arg12[%c1_63, %c1_64, %c0_65] : memref<18x18x128xf32, #tpu.memory_space<vmem>>, vector<16x16x128xf32>
    tpu.vector_store %arg12[%c1_63, %c1_64, %c0_65], %68 {strides = array<i32>} : memref<18x18x128xf32, #tpu.memory_space<vmem>>, vector<16x16x128xf32>,
    %c0_66 = arith.constant 0 : index
    %c0_67 = arith.constant 0 : index
    %c0_68 = arith.constant 0 : index
    %70 = vector.load %arg12[%c0_66, %c0_67, %c0_68] : memref<18x18x128xf32, #tpu.memory_space<vmem>>, vector<16x16x128xf32>
    %71 = vector.shape_cast %70 : vector<16x16x128xf32> to vector<256x128xf32>
    %c0_69 = arith.constant 0 : index
    %c1_70 = arith.constant 1 : index
    %c0_71 = arith.constant 0 : index
    %72 = vector.load %arg12[%c0_69, %c1_70, %c0_71] : memref<18x18x128xf32, #tpu.memory_space<vmem>>, vector<16x16x128xf32>
    %73 = vector.shape_cast %72 : vector<16x16x128xf32> to vector<256x128xf32>
    %c0_72 = arith.constant 0 : index
    %c2_73 = arith.constant 2 : index
    %c0_74 = arith.constant 0 : index
    %74 = vector.load %arg12[%c0_72, %c2_73, %c0_74] : memref<18x18x128xf32, #tpu.memory_space<vmem>>, vector<16x16x128xf32>
    %75 = vector.shape_cast %74 : vector<16x16x128xf32> to vector<256x128xf32>
    %c1_75 = arith.constant 1 : index
    %c0_76 = arith.constant 0 : index
    %c0_77 = arith.constant 0 : index
    %76 = vector.load %arg12[%c1_75, %c0_76, %c0_77] : memref<18x18x128xf32, #tpu.memory_space<vmem>>, vector<16x16x128xf32>
    %77 = vector.shape_cast %76 : vector<16x16x128xf32> to vector<256x128xf32>
    %c1_78 = arith.constant 1 : index
    %c1_79 = arith.constant 1 : index
    %c0_80 = arith.constant 0 : index
    %78 = vector.load %arg12[%c1_78, %c1_79, %c0_80] : memref<18x18x128xf32, #tpu.memory_space<vmem>>, vector<16x16x128xf32>
    %79 = vector.shape_cast %78 : vector<16x16x128xf32> to vector<256x128xf32>
    %c1_81 = arith.constant 1 : index
    %c2_82 = arith.constant 2 : index
    %c0_83 = arith.constant 0 : index
    %80 = vector.load %arg12[%c1_81, %c2_82, %c0_83] : memref<18x18x128xf32, #tpu.memory_space<vmem>>, vector<16x16x128xf32>
    %81 = vector.shape_cast %80 : vector<16x16x128xf32> to vector<256x128xf32>
    %c2_84 = arith.constant 2 : index
    %c0_85 = arith.constant 0 : index
    %c0_86 = arith.constant 0 : index
    %82 = vector.load %arg12[%c2_84, %c0_85, %c0_86] : memref<18x18x128xf32, #tpu.memory_space<vmem>>, vector<16x16x128xf32>
    %83 = vector.shape_cast %82 : vector<16x16x128xf32> to vector<256x128xf32>
    %c2_87 = arith.constant 2 : index
    %c1_88 = arith.constant 1 : index
    %c0_89 = arith.constant 0 : index
    %84 = vector.load %arg12[%c2_87, %c1_88, %c0_89] : memref<18x18x128xf32, #tpu.memory_space<vmem>>, vector<16x16x128xf32>
    %85 = vector.shape_cast %84 : vector<16x16x128xf32> to vector<256x128xf32>
    %c2_90 = arith.constant 2 : index
    %c2_91 = arith.constant 2 : index
    %c0_92 = arith.constant 0 : index
    %86 = vector.load %arg12[%c2_90, %c2_91, %c0_92] : memref<18x18x128xf32, #tpu.memory_space<vmem>>, vector<16x16x128xf32>
    %87 = vector.shape_cast %86 : vector<16x16x128xf32> to vector<256x128xf32>
    %88 = tpu.concatenate %71, %73, %75, %77, %79, %81, %83, %85, %87 in 1 : vector<256x128xf32>, vector<256x128xf32>, vector<256x128xf32>, vector<256x128xf32>, vector<256x128xf32>, vector<256x128xf32>, vector<256x128xf32>, vector<256x128xf32>, vector<256x128xf32> -> vector<256x1152xf32>
    %89 = arith.truncf %88 : vector<256x1152xf32> to vector<256x1152xbf16>
    %cst_93 = arith.constant dense<0.000000e+00> : vector<256x128xf32>
    %90 = tpu.matmul %89, %63, %cst_93 {dimension_numbers = #tpu.dot_dimension_numbers<[1], [0], [0], [1], [0, 0, 1, 1], [], []>} : vector<256x1152xbf16>, vector<1152x128xbf16>, vector<256x128xf32> -> vector<256x128xf32>
    %91 = vector.broadcast %65 : vector<1x128xf32> to vector<256x128xf32>
    %92 = arith.mulf %90, %91 : vector<256x128xf32>
    %93 = vector.broadcast %67 : vector<1x128xf32> to vector<256x128xf32>
    %94 = arith.addf %92, %93 : vector<256x128xf32>
    %cst_94 = arith.constant 0.000000e+00 : f32
    %95 = vector.broadcast %cst_94 : f32 to vector<256x128xf32>
    %96 = arith.subf %95, %94 : vector<256x128xf32>
    %97 = math.exp %96 : vector<256x128xf32>
    %cst_95 = arith.constant 1.000000e+00 : f32
    %98 = vector.broadcast %cst_95 : f32 to vector<256x128xf32>
    %99 = arith.addf %98, %97 : vector<256x128xf32>
    %100 = tpu.reciprocal %99 {approx = true} : vector<256x128xf32> -> vector<256x128xf32>
    %101 = arith.mulf %94, %100 : vector<256x128xf32>
    %102 = arith.addf %20, %101 : vector<256x128xf32>
    %103 = tpu.concatenate %102, %21 in 1 : vector<256x128xf32>, vector<256x128xf32> -> vector<256x256xf32>
    %104 = arith.truncf %103 : vector<256x256xf32> to vector<256x256xbf16>
    %c0_96 = arith.constant 0 : index
    %c0_97 = arith.constant 0 : index
    %105 = vector.load %arg8[%c0_96, %c0_97] : memref<256x128xbf16, #tpu.memory_space<vmem>>, vector<256x128xbf16>
    %cst_98 = arith.constant dense<0.000000e+00> : vector<256x128xf32>
    %106 = tpu.matmul %104, %105, %cst_98 {dimension_numbers = #tpu.dot_dimension_numbers<[1], [0], [0], [1], [0, 0, 1, 1], [], []>} : vector<256x256xbf16>, vector<256x128xbf16>, vector<256x128xf32> -> vector<256x128xf32>
    %c0_99 = arith.constant 0 : index
    %c0_100 = arith.constant 0 : index
    %107 = vector.load %arg9[%c0_99, %c0_100] : memref<1x128xf32, #tpu.memory_space<vmem>>, vector<1x128xf32>
    %108 = vector.broadcast %107 : vector<1x128xf32> to vector<256x128xf32>
    %109 = arith.mulf %106, %108 : vector<256x128xf32>
    %c0_101 = arith.constant 0 : index
    %c0_102 = arith.constant 0 : index
    %110 = vector.load %arg10[%c0_101, %c0_102] : memref<1x128xf32, #tpu.memory_space<vmem>>, vector<1x128xf32>
    %111 = vector.broadcast %110 : vector<1x128xf32> to vector<256x128xf32>
    %112 = arith.addf %109, %111 : vector<256x128xf32>
    %cst_103 = arith.constant 0.000000e+00 : f32
    %113 = vector.broadcast %cst_103 : f32 to vector<256x128xf32>
    %114 = arith.subf %113, %112 : vector<256x128xf32>
    %115 = math.exp %114 : vector<256x128xf32>
    %cst_104 = arith.constant 1.000000e+00 : f32
    %116 = vector.broadcast %cst_104 : f32 to vector<256x128xf32>
    %117 = arith.addf %116, %115 : vector<256x128xf32>
    %118 = tpu.reciprocal %117 {approx = true} : vector<256x128xf32> -> vector<256x128xf32>
    %119 = arith.mulf %112, %118 : vector<256x128xf32>
    %c0_105 = arith.constant 0 : index
    %c0_106 = arith.constant 0 : index
    %c0_107 = arith.constant 0 : index
    %120 = vector.load %arg11[%c0_105, %c0_106, %c0_107] : memref<1x256x128xf32, #tpu.memory_space<vmem>>, vector<1x256x128xf32>
    %121 = vector.shape_cast %120 : vector<1x256x128xf32> to vector<256x128xf32>
    %122 = vector.shape_cast %119 : vector<256x128xf32> to vector<1x256x128xf32>
    tpu.vector_store %arg11[%c0_105, %c0_106, %c0_107], %122 {strides = array<i32>} : memref<1x256x128xf32, #tpu.memory_space<vmem>>, vector<1x256x128xf32>,
    return
  }
  func.func @transform_0(%arg0: i32) -> (i32, i32, i32) {
    %c0_i32 = arith.constant 0 : i32
    %c0_i32_0 = arith.constant 0 : i32
    %c0_i32_1 = arith.constant 0 : i32
    return %arg0, %c0_i32, %c0_i32_0 : i32, i32, i32
  }
  func.func @transform_1(%arg0: i32) -> (i32, i32) {
    %c0_i32 = arith.constant 0 : i32
    %c0_i32_0 = arith.constant 0 : i32
    %c0_i32_1 = arith.constant 0 : i32
    return %c0_i32, %c0_i32_0 : i32, i32
  }
  func.func @transform_2(%arg0: i32) -> (i32, i32) {
    %c0_i32 = arith.constant 0 : i32
    %c0_i32_0 = arith.constant 0 : i32
    %c0_i32_1 = arith.constant 0 : i32
    return %c0_i32, %c0_i32_0 : i32, i32
  }
  func.func @transform_3(%arg0: i32) -> (i32, i32) {
    %c0_i32 = arith.constant 0 : i32
    %c0_i32_0 = arith.constant 0 : i32
    %c0_i32_1 = arith.constant 0 : i32
    return %c0_i32, %c0_i32_0 : i32, i32
  }
  func.func @transform_4(%arg0: i32) -> (i32, i32, i32) {
    %c0_i32 = arith.constant 0 : i32
    %c0_i32_0 = arith.constant 0 : i32
    %c0_i32_1 = arith.constant 0 : i32
    %c0_i32_2 = arith.constant 0 : i32
    return %c0_i32, %c0_i32_0, %c0_i32_1 : i32, i32, i32
  }
  func.func @transform_5(%arg0: i32) -> (i32, i32, i32) {
    %c0_i32 = arith.constant 0 : i32
    %c0_i32_0 = arith.constant 0 : i32
    %c0_i32_1 = arith.constant 0 : i32
    %c0_i32_2 = arith.constant 0 : i32
    return %c0_i32, %c0_i32_0, %c0_i32_1 : i32, i32, i32
  }
  func.func @transform_6(%arg0: i32) -> (i32, i32, i32) {
    %c0_i32 = arith.constant 0 : i32
    %c0_i32_0 = arith.constant 0 : i32
    %c0_i32_1 = arith.constant 0 : i32
    %c0_i32_2 = arith.constant 0 : i32
    return %c0_i32, %c0_i32_0, %c0_i32_1 : i32, i32, i32
  }
  func.func @transform_7(%arg0: i32) -> (i32, i32) {
    %c0_i32 = arith.constant 0 : i32
    %c0_i32_0 = arith.constant 0 : i32
    %c0_i32_1 = arith.constant 0 : i32
    return %c0_i32, %c0_i32_0 : i32, i32
  }
  func.func @transform_8(%arg0: i32) -> (i32, i32) {
    %c0_i32 = arith.constant 0 : i32
    %c0_i32_0 = arith.constant 0 : i32
    %c0_i32_1 = arith.constant 0 : i32
    return %c0_i32, %c0_i32_0 : i32, i32
  }
  func.func @transform_9(%arg0: i32) -> (i32, i32) {
    %c0_i32 = arith.constant 0 : i32
    %c0_i32_0 = arith.constant 0 : i32
    %c0_i32_1 = arith.constant 0 : i32
    return %c0_i32, %c0_i32_0 : i32, i32
  }
  func.func @transform_10(%arg0: i32) -> (i32, i32, i32) {
    %c0_i32 = arith.constant 0 : i32
    %c0_i32_0 = arith.constant 0 : i32
    %c0_i32_1 = arith.constant 0 : i32
    return %arg0, %c0_i32, %c0_i32_0 : i32, i32, i32
  }
}

</mosaic_0001>

<bundles_post_ra>
// kernel: tpu_custom_call.1
= control target key start
LH: loop header
LB: loop body
LE: loop exit
PB: predicated region body
PF: predicated region fallthrough
CT: control target
= control target key end

     0   :  { %15 = vsyncpa [#allocation4], 0  ;;  %s11348_s0 = inlined_call_operand.vmem [shape: f32[2,256,8], index: 0, kind: input, shape index: {}]   ;;  %s11349_s1 = inlined_call_operand.vmem [shape: bf16[8,256], index: 1, kind: input, shape index: {}]   ;;  %s11350_s2 = inlined_call_operand.vmem [shape: f32[1,256], index: 2, kind: input, shape index: {}]   ;;  %s11351_s3 = inlined_call_operand.vmem [shape: f32[1,256], index: 3, kind: input, shape index: {}]   ;;  %s11352_s4 = inlined_call_operand.hbm [shape: bf16[2,1152,128], index: 4, kind: input, shape index: {}]   ;;  %s11353_s5 = inlined_call_operand.vmem [shape: f32[2,1,128], index: 5, kind: input, shape index: {}]   ;;  %s11354_s6 = inlined_call_operand.vmem [shape: f32[2,1,128], index: 6, kind: input, shape index: {}]   ;;  %s11355_s7 = inlined_call_operand.vmem [shape: bf16[256,128], index: 7, kind: input, shape index: {}]   ;;  %s11356_s8 = inlined_call_operand.vmem [shape: f32[1,128], index: 8, kind: input, shape index: {}]   ;;  %s11357_s9 = inlined_call_operand.vmem [shape: f32[1,128], index: 9, kind: input, shape index: {}]   ;;  %s11358_s10 = inlined_call_operand.hbm [shape: f32[2,256,128], index: 10, kind: output, shape index: {}]  }
   0x1   :  { %16 = vsyncpa [#allocation5], 0 }
   0x2   :  { %18 = vsyncpa [#allocation5 + $0x1], 0  ;;  %s8623_s13 = smov 0   ;;  %s8625_s14 = smov 0  }
   0x3   :  { %s8627_s15 = smov 0   ;;  %s8629_s16 = smov 0  }
   0x4 LB: > { %s8644_s17 = sadd.s32 4294967295, %s8558_s16   ;;  %s6245_s18 = sadd.s32 4294967294, %s8558_s16   ;;  %s8558_s16 = sphi %s8629_s16, %s11694_s16   ;;  %s8554_s15 = sphi %s8627_s15, %s11693_s15   ;;  %s8550_s14 = sphi %s8625_s14, %s11692_s14   ;;  %s8546_s13 = sphi %s8623_s13, %s11691_s13  }
   0x5   : > { %s8648_s19 = sadd.s32 1, %s8558_s16   ;;  %s246_s20 = sadd.s32 1, %s8554_s15 }
   0x6   : > { %s243_s21 = ssub.s32 %s8558_s16, %s8648_s19  ;;  %p256_p0 = scmp.ne.s32.totalorder %s8554_s15, %s8550_s14 }
   0x7   : > { %p244_p1 = scmp.eq.s32.totalorder %s243_s21, 0  ;;  %p257_p2 = scmp.eq.s32.totalorder %s8644_s17, 1 }
   0x8   : > { %p262_p3 = scmp.ne.s32.totalorder %s8550_s14, %s8546_s13  ;;  %p263_p4 = scmp.eq.s32.totalorder %s6245_s18, 1 }
   0x9   : > { %s8659_s22 = scalar_select %p244_p1, %s8554_s15, %s246_s20  }
   0xa   : > { %p8661_p5 = por %p257_p2, %p256_p0  ;;  %p8665_p6 = por %p263_p4, %p262_p3 }
   0xb   : > { %p6246_p7 = scmp.ge.s32.totalorder %s8558_s16, 1  ;;  %p270_p8 = scmp.lt.s32.totalorder %s8558_s16, 3 }
   0xc   : > { %s11453_s23 = scalar_select %p8661_p5, 1, 0 }
   0xd   : > { %s11454_s24 = scalar_select %p8665_p6, 1, 0 }
   0xe   : > { %p11359_p9 = scmp.eq.s32.totalorder %s8644_s17, 0  ;;  %p8672_p10 = pnand %p6246_p7, %p270_p8 }
   0xf   : > { %s8560_s26 = smov [#allocation3]   ;;  %s8464_s11 = scalar_lea.hbm %s11352_s4, 18432 }
  0x10   : > { %s11455_s25 = scalar_select %p8672_p10, 1, 0 }
  0x11   : > { %s291_s27 = sshll.u32 %s8560_s26, 4  ;;  %p7608_p11 = pneg %p8672_p10  ;;  %s292_s27 = int_to_ptr.vmem [resolvable:$true] %s291_s27 }
  0x12   : > { %p8465_p13 = scmp.ne.s32.totalorder %s11352_s4, %s8464_s11  ;;  %p8471_p3 = scmp.lt.u32.totalorder %s8464_s11, %s11352_s4 }
  0x13   : > { %p8680_p12 = pnand %p11359_p9, %p7608_p11 }
  0x15   : > { %p8466_p0 = pneg %p8680_p12 }
  0x17   : > { %p8467_p1 = pnand %p8466_p0, %p8465_p13 }
  0x19   : > { %p8468_p2 = pneg %p8467_p1 }
  0x1b   : > { %p8473_p4 = pnand %p8471_p3, %p8468_p2 }
  0x1d   : > { %8476 = shalt.err (!%p8473_p4)
}
  0x1e   : > { %s8477_s26 = scalar_lea.vmem %s292_s27, 18432  ;;  %p8485_p9 = scmp.lt.s32.totalorder %s292_s27, %s292_s27 }
  0x1f   : > { %p8478_p7 = scmp.ne.s32.totalorder %s292_s27, %s8477_s26  ;;  %p8486_p6 = scmp.lt.s32.totalorder %s8477_s26, %s8477_s26 }
  0x21   : > { %p8480_p8 = pnand %p8478_p7, %p8466_p0  ;;  %p8487_p5 = por %p8486_p6, %p8485_p9 }
  0x23   : > { %p8481_p11 = pneg %p8480_p8 }
  0x25   : > { %p8488_p10 = pnand %p8487_p5, %p8481_p11 }
  0x27   : > { %8491 = shalt.err (!%p8488_p10)
}
  0x28   : > { %s8561_s29 = smov 64   ;;  %s8562_s30 = smov 4  }
  0x29   : > { %7611 = dma.hbm_to_vmem [thread:$0]  (!%p8680_p12), %s11352_s4, 18432, %s292_s27, [#allocation4], %s8561_s29, %s8561_s29, %s8562_s30  }
  0x2a   : > { %p11457_p13 = scmp.ne.s32.totalorder %s11455_s25, 0 }
  0x2c   : > { %330 = sbr.rel (%p11457_p13) target bundleno = 1756 (0x6dc), region = 60 }
  0x33   : > { %p11458_p1 = scmp.eq.s32.totalorder %s8644_s17, 0 }
  0x35   : > { %8537 = dma.done.wait (%p11458_p1), [#allocation4], 18432   ;;  %p11459_p0 = pmov %p11458_p1 }
  0x36   : > { %p368_p5 = scmp.lt.s32.totalorder %s8644_s17, 1  ;;  %v8563_v0 = vmov 0   ;;  %v8564_v1 = vmov 0.0   ;;  %v476_v2 = vld [vmem:[%s11349_s1] sm:$0xff]  ;;  %vm531_vm0 = vcmask 1043456   ;;  %vm482_vm1 = vcmask 64512  }
  0x37   : > { %8539 = vsyncadd (%p11459_p0), [#allocation4], 4294948864  ;;  %570 = vmatprep.mubr.bf16.mxu0 %v8563_v0  ;;  %650 = vmatprep.mubr.bf16.mxu1 %v8563_v0  ;;  %377 = vst [vmem:[#allocation2 + $0x18] sm:$0xff] %v8564_v1  ;;  %v6255_v5 = vcombine.high %v476_v2, %v476_v2  ;;  %v6254_v6 = vcombine.low %v476_v2, %v476_v2  ;;  %v7660_v18 = vld [vmem:[#allocation3 + $0x40] sm:$0xff]   ;;  %v7662_v20 = vld [vmem:[#allocation3 + $0x48] sm:$0xff]   ;;  %v733_v61 = vlaneseq  ;;  %s6447_s11 = sshll.u32 %s8644_s17, 12 }
  0x38   : > { %s8710_s28 = scalar_select %p368_p5, %s8644_s17, 1  ;;  %378 = vst [vmem:[#allocation2 + $0x20] sm:$0xff] %v8564_v1  ;;  %374 = vst [vmem:[#allocation2] sm:$0xff] %v8564_v1  ;;  %v7661_v19 = vld [vmem:[#allocation3] sm:$0xff]   ;;  %v7663_v24 = vld [vmem:[#allocation3 + $0x8] sm:$0xff]  }
  0x39   : > { %375 = vst [vmem:[#allocation2 + $0x8] sm:$0xff] %v8564_v1  ;;  %376 = vst [vmem:[#allocation2 + $0x10] sm:$0x3] %v8564_v1  ;;  %6256 = vmatprep.subr.msk.bf16.mxu0 %vm531_vm0, %v6255_v5  ;;  %v533_v7 = vsel %vm531_vm0, %v6254_v6, 0  ;;  %7600 = vmatprep.subr.msk.bf16.mxu1 %vm531_vm0, %v6255_v5  ;;  %v7664_v25 = vld [vmem:[#allocation3 + $0x50] sm:$0xff]   ;;  %v7666_v30 = vld [vmem:[#allocation3 + $0x58] sm:$0xff]   ;;  %s11299_s29 = scalar_lea.hbm %s11358_s10, %s6447_s11 }
  0x3a   : > { %379 = vst [vmem:[#allocation2 + $0x28] sm:$0x3] %v8564_v1  ;;  %380 = vst [vmem:[#allocation2 + $0x30] sm:$0xff] %v8564_v1  ;;  %s6446_s25 = sshll.u32 %s8710_s28, 8  ;;  %539 = vmatpush1.bf16.msra.mxu0 %v533_v7  ;;  %7601 = vmatpush1.bf16.msra.mxu1 %v533_v7  ;;  %v7665_v27 = vld [vmem:[#allocation3 + $0x10] sm:$0xff]   ;;  %v8783_v62 = vshrl.u32 %v733_v61, 7 }
  0x3b   : > { %381 = vst [vmem:[#allocation2 + $0x38] sm:$0xff] %v8564_v1  ;;  %382 = vst [vmem:[#allocation2 + $0x40] sm:$0x3] %v8564_v1  ;;  %s8716_s20 = scalar_lea.vmem %s11348_s0, %s6446_s25  ;;  %6448 = vmatprep.subr.bf16.mxu1 %v7660_v18  ;;  %v8788_v63 = vld [vmem:[%s11350_s2] sm:$0x3]  ;;  %v7672_v5 = vld [vmem:[#allocation3 + $0xc0] sm:$0xff]  }
  0x3c   : > { %383 = vst [vmem:[#allocation2 + $0x48] sm:$0xff] %v8564_v1  ;;  %384 = vst [vmem:[#allocation2 + $0x50] sm:$0xff] %v8564_v1  ;;  %v428_v3 = vld [vmem:[%s8716_s20] sm:$0xff]  ;;  %v429_v4 = vld [vmem:[%s8716_s20 + $0x8] sm:$0xff]  ;;  %6560 = vmatprep.subr.bf16.mxu0 %v7672_v5  ;;  %s365_s28 = sand.u32 1, %s8550_s14   ;;  %p11689_p9 = scmp.ne.s32.totalorder %s11453_s23, 0 }
  0x3d   : > { %385 = vst [vmem:[#allocation2 + $0x58] sm:$0x3] %v8564_v1  ;;  %386 = vst [vmem:[#allocation2 + $0x60] sm:$0xff] %v8564_v1  ;;  %v460_v8 = vpack.c.bf16 %v429_v4, %v428_v3  ;;  %v444_v9 = vld [vmem:[%s8716_s20 + $0x80] sm:$0xff]  ;;  %v445_v10 = vld [vmem:[%s8716_s20 + $0x88] sm:$0xff]  ;;  %s6251_s25 = sshll.u32 %s365_s28, 8 }
  0x3e   : > { %387 = vst [vmem:[#allocation2 + $0x68] sm:$0xff] %v8564_v1  ;;  %388 = vst [vmem:[#allocation2 + $0x70] sm:$0x3] %v8564_v1  ;;  %v468_v11 = vpack.c.bf16 %v445_v10, %v444_v9  ;;  %v430_v12 = vld [vmem:[%s8716_s20 + $0x10] sm:$0xff]  ;;  %v431_v13 = vld [vmem:[%s8716_s20 + $0x18] sm:$0xff]  ;;  %s11120_s27 = scalar_lea.vmem [#allocation6], %s6251_s25 }
  0x3f   : > { %389 = vst [vmem:[#allocation2 + $0x78] sm:$0xff] %v8564_v1  ;;  %390 = vst [vmem:[#allocation2 + $0x80] sm:$0xff] %v8564_v1  ;;  %6257 = vmatmul.mubr.msk.bf16.vlgmr.msra.gmra.mrb[0].mxu0 %vm482_vm1, %v460_v8  ;;  %v446_v14 = vld [vmem:[%s8716_s20 + $0x90] sm:$0xff]  ;;  %v447_v15 = vld [vmem:[%s8716_s20 + $0x98] sm:$0xff]  ;;  %v461_v16 = vpack.c.bf16 %v431_v13, %v430_v12  ;;  %s11307_s30 = scalar_lea.sflag [#allocation5], %s365_s28  ;;  %s8565_s12 = smov [#allocation6]  }
  0x40   : > { %391 = vst [vmem:[#allocation2 + $0x88] sm:$0x3] %v8564_v1  ;;  %392 = vst [vmem:[#allocation2 + $0x90] sm:$0xff] %v8564_v1  ;;  %6265 = vmatmul.mubr.msk.bf16.vlgmr.msra.gmra.mrb[0].mxu1 %vm482_vm1, %v468_v11  ;;  %580 = vmatprep.mubr.bf16.mxu0 %v8563_v0  ;;  %v469_v17 = vpack.c.bf16 %v447_v15, %v446_v14  ;;  %v432_v21 = vld [vmem:[%s8716_s20 + $0x20] sm:$0xff]  ;;  %v433_v22 = vld [vmem:[%s8716_s20 + $0x28] sm:$0xff]  ;;  %s8496_s18 = sshll.u32 %s8565_s12, 4  ;;  %s8497_s18 = int_to_ptr.vmem [resolvable:$false] %s8496_s18 }
  0x41   : > { %393 = vst [vmem:[#allocation2 + $0x98] sm:$0xff] %v8564_v1  ;;  %394 = vst [vmem:[#allocation2 + $0xa0] sm:$0x3] %v8564_v1  ;;  %660 = vmatprep.mubr.bf16.mxu1 %v8563_v0  ;;  %v448_v23 = vld [vmem:[%s8716_s20 + $0xa0] sm:$0xff]  ;;  %6449 = vmatpush3.bf16.msra.mxu1 %v7661_v19  ;;  %v449_v26 = vld [vmem:[%s8716_s20 + $0xa8] sm:$0xff]  ;;  %v462_v28 = vpack.c.bf16 %v433_v22, %v432_v21  ;;  %s8498_s25 = scalar_lea.vmem %s8497_s18, 8192 }
  0x42   : > { %395 = vst [vmem:[#allocation2 + $0xa8] sm:$0xff] %v8564_v1  ;;  %396 = vst [vmem:[#allocation2 + $0xb0] sm:$0xff] %v8564_v1  ;;  %6450 = vmatprep.subr.bf16.mxu1 %v7662_v20  ;;  %v470_v29 = vpack.c.bf16 %v449_v26, %v448_v23  ;;  %v434_v31 = vld [vmem:[%s8716_s20 + $0x30] sm:$0xff]  ;;  %v435_v32 = vld [vmem:[%s8716_s20 + $0x38] sm:$0xff] }
  0x43   : > { %397 = vst [vmem:[#allocation2 + $0xb8] sm:$0x3] %v8564_v1  ;;  %398 = vst [vmem:[#allocation2 + $0xc0] sm:$0xff] %v8564_v1  ;;  %v450_v33 = vld [vmem:[%s8716_s20 + $0xb0] sm:$0xff]  ;;  %v451_v34 = vld [vmem:[%s8716_s20 + $0xb8] sm:$0xff]  ;;  %v463_v35 = vpack.c.bf16 %v435_v32, %v434_v31 }
  0x44   : > { %399 = vst [vmem:[#allocation2 + $0xc8] sm:$0xff] %v8564_v1  ;;  %400 = vst [vmem:[#allocation2 + $0xd0] sm:$0x3] %v8564_v1  ;;  %v471_v36 = vpack.c.bf16 %v451_v34, %v450_v33  ;;  %v436_v37 = vld [vmem:[%s8716_s20 + $0x40] sm:$0xff]  ;;  %v437_v38 = vld [vmem:[%s8716_s20 + $0x48] sm:$0xff] }
  0x45   : > { %401 = vst [vmem:[#allocation2 + $0xd8] sm:$0xff] %v8564_v1  ;;  %402 = vst [vmem:[#allocation2 + $0xe0] sm:$0xff] %v8564_v1  ;;  %6451 = vmatpush3.bf16.msra.mxu1 %v7663_v24  ;;  %v452_v39 = vld [vmem:[%s8716_s20 + $0xc0] sm:$0xff]  ;;  %v453_v40 = vld [vmem:[%s8716_s20 + $0xc8] sm:$0xff]  ;;  %v464_v41 = vpack.c.bf16 %v437_v38, %v436_v37  ;;  %v735_v38 = vsub.s32 0, %v8783_v62 }
  0x46   : > { %403 = vst [vmem:[#allocation2 + $0xe8] sm:$0x3] %v8564_v1  ;;  %404 = vst [vmem:[#allocation2 + $0xf0] sm:$0xff] %v8564_v1  ;;  %6452 = vmatprep.subr.bf16.mxu1 %v7664_v25  ;;  %v472_v42 = vpack.c.bf16 %v453_v40, %v452_v39  ;;  %v438_v43 = vld [vmem:[%s8716_s20 + $0x50] sm:$0xff]  ;;  %v439_v44 = vld [vmem:[%s8716_s20 + $0x58] sm:$0xff] }
  0x47   : > { %405 = vst [vmem:[#allocation2 + $0xf8] sm:$0xff] %v8564_v1  ;;  %406 = vst [vmem:[#allocation2 + $0x100] sm:$0x3] %v8564_v1  ;;  %6258 = vmatmul.mubr.msk.bf16.gmra.mrb[4].mxu0 %vm482_vm1, %v461_v16  ;;  %v454_v45 = vld [vmem:[%s8716_s20 + $0xd0] sm:$0xff]  ;;  %v455_v46 = vld [vmem:[%s8716_s20 + $0xd8] sm:$0xff]  ;;  %v465_v47 = vpack.c.bf16 %v439_v44, %v438_v43  ;;  %v8804_v39 = vrot.slane %v8788_v63, %v735_v38 }
  0x48   : > { %407 = vst [vmem:[#allocation2 + $0x108] sm:$0xff] %v8564_v1  ;;  %408 = vst [vmem:[#allocation2 + $0x110] sm:$0xff] %v8564_v1  ;;  %6266 = vmatmul.mubr.msk.bf16.gmra.mrb[4].mxu1 %vm482_vm1, %v469_v17  ;;  %590 = vmatprep.mubr.bf16.mxu0 %v8563_v0  ;;  %v473_v48 = vpack.c.bf16 %v455_v46, %v454_v45  ;;  %v440_v49 = vld [vmem:[%s8716_s20 + $0x60] sm:$0xff]  ;;  %v441_v50 = vld [vmem:[%s8716_s20 + $0x68] sm:$0xff] }
  0x49   : > { %409 = vst [vmem:[#allocation2 + $0x118] sm:$0x3] %v8564_v1  ;;  %410 = vst [vmem:[#allocation2 + $0x120] sm:$0xff] %v8564_v1  ;;  %670 = vmatprep.mubr.bf16.mxu1 %v8563_v0  ;;  %6453 = vmatpush3.bf16.msra.mxu1 %v7665_v27  ;;  %v456_v51 = vld [vmem:[%s8716_s20 + $0xe0] sm:$0xff]  ;;  %v457_v52 = vld [vmem:[%s8716_s20 + $0xe8] sm:$0xff]  ;;  %v466_v53 = vpack.c.bf16 %v441_v50, %v440_v49 }
  0x4a   : > { %411 = vst [vmem:[#allocation2 + $0x128] sm:$0xff] %v8564_v1  ;;  %412 = vst [vmem:[#allocation2 + $0x130] sm:$0x3] %v8564_v1  ;;  %6454 = vmatprep.subr.bf16.mxu1 %v7666_v30  ;;  %v474_v54 = vpack.c.bf16 %v457_v52, %v456_v51  ;;  %v442_v55 = vld [vmem:[%s8716_s20 + $0x70] sm:$0xff]  ;;  %v443_v56 = vld [vmem:[%s8716_s20 + $0x78] sm:$0xff] }
  0x4b   : > { %413 = vst [vmem:[#allocation2 + $0x138] sm:$0xff] %v8564_v1  ;;  %414 = vst [vmem:[#allocation2 + $0x140] sm:$0xff] %v8564_v1  ;;  %v458_v57 = vld [vmem:[%s8716_s20 + $0xf0] sm:$0xff]  ;;  %v459_v58 = vld [vmem:[%s8716_s20 + $0xf8] sm:$0xff]  ;;  %v467_v59 = vpack.c.bf16 %v443_v56, %v442_v55  ;;  %s6171_s20 = sshll.u32 %s11120_s27, 4  ;;  %s11301_s20 = int_to_ptr.vmem [resolvable:$true] %s6171_s20 }
  0x4c   : > { %415 = vst [vmem:[#allocation2 + $0x148] sm:$0x3] %v8564_v1  ;;  %416 = vst [vmem:[#allocation2 + $0x150] sm:$0xff] %v8564_v1  ;;  %v475_v60 = vpack.c.bf16 %v459_v58, %v458_v57  ;;  %v7667_v4 = vld [vmem:[#allocation3 + $0x18] sm:$0xff]   ;;  %v7673_v6 = vld [vmem:[#allocation3 + $0x80] sm:$0xff]   ;;  %s8492_s17 = scalar_lea.vmem %s11301_s20, 4096  ;;  %p8499_p2 = scmp.lt.s32.totalorder %s11301_s20, %s8497_s18 }
  0x4d   : > { %417 = vst [vmem:[#allocation2 + $0x158] sm:$0xff] %v8564_v1  ;;  %418 = vst [vmem:[#allocation2 + $0x160] sm:$0x3] %v8564_v1  ;;  %6455 = vmatpush3.bf16.msra.mxu1 %v7667_v4  ;;  %v7668_v7 = vld [vmem:[#allocation3 + $0x60] sm:$0xff]   ;;  %6561 = vmatpush3.bf16.msra.mxu0 %v7673_v6  ;;  %v7674_v9 = vld [vmem:[#allocation3 + $0xc8] sm:$0xff]   ;;  %p8493_p6 = scmp.ne.s32.totalorder %s11301_s20, %s8492_s17  ;;  %p8500_p3 = scmp.lt.s32.totalorder %s8498_s25, %s8492_s17 }
  0x4e   : > { %419 = vst [vmem:[#allocation2 + $0x168] sm:$0xff] %v8564_v1  ;;  %420 = vst [vmem:[#allocation2 + $0x170] sm:$0xff] %v8564_v1  ;;  %v7669_v8 = vld [vmem:[#allocation3 + $0x20] sm:$0xff]   ;;  %6456 = vmatprep.subr.bf16.mxu1 %v7668_v7  ;;  %v7675_v10 = vld [vmem:[#allocation3 + $0x88] sm:$0xff]   ;;  %6562 = vmatprep.subr.bf16.mxu0 %v7674_v9 }
  0x4f   : > { %421 = vst [vmem:[#allocation2 + $0x178] sm:$0x3] %v8564_v1  ;;  %422 = vst [vmem:[#allocation2 + $0x180] sm:$0xff] %v8564_v1  ;;  %6259 = vmatmul.mubr.msk.bf16.gmra.mrb[8].mxu0 %vm482_vm1, %v462_v28  ;;  %v7670_v11 = vld [vmem:[#allocation3 + $0x68] sm:$0xff]   ;;  %v7678_v12 = vld [vmem:[#allocation3 + $0xd0] sm:$0xff]   ;;  %p8494_p10 = pnand %p8493_p6, %p11689_p9  ;;  %p8501_p4 = por %p8500_p3, %p8499_p2 }
  0x50   : > { %423 = vst [vmem:[#allocation2 + $0x188] sm:$0xff] %v8564_v1  ;;  %424 = vst [vmem:[#allocation2 + $0x190] sm:$0x3] %v8564_v1  ;;  %6267 = vmatmul.mubr.msk.bf16.gmra.mrb[8].mxu1 %vm482_vm1, %v470_v29  ;;  %600 = vmatprep.mubr.bf16.mxu0 %v8563_v0  ;;  %v7671_v13 = vld [vmem:[#allocation3 + $0x28] sm:$0xff]   ;;  %v7679_v14 = vld [vmem:[#allocation3 + $0x90] sm:$0xff]  }
  0x51   : > { %425 = vst [vmem:[#allocation2 + $0x198] sm:$0xff] %v8564_v1  ;;  %426 = vst [vmem:[#allocation2 + $0x1a0] sm:$0xff] %v8564_v1  ;;  %680 = vmatprep.mubr.bf16.mxu1 %v8563_v0  ;;  %6457 = vmatpush3.bf16.msra.mxu1 %v7669_v8  ;;  %v7676_v15 = vld [vmem:[#allocation3 + $0x70] sm:$0xff]   ;;  %v7680_v16 = vld [vmem:[#allocation3 + $0xd8] sm:$0xff]   ;;  %p8495_p12 = pneg %p8494_p10 }
  0x52   : > { %427 = vst [vmem:[#allocation2 + $0x1a8] sm:$0x3] %v8564_v1  ;;  %v739_v1 = vsub.s32 1, %v8783_v62  ;;  %6563 = vmatpush3.bf16.msra.mxu0 %v7675_v10  ;;  %6458 = vmatprep.subr.bf16.mxu1 %v7670_v11  ;;  %v7677_v17 = vld [vmem:[#allocation3 + $0x30] sm:$0xff]   ;;  %v7681_v18 = vld [vmem:[#allocation3 + $0x98] sm:$0xff]   ;;  %v7684_v20 = vld [vmem:[#allocation3 + $0xe0] sm:$0xff]  }
  0x53   : > { %6564 = vmatprep.subr.bf16.mxu0 %v7678_v12  ;;  %v7682_v19 = vld [vmem:[#allocation3 + $0x78] sm:$0xff]   ;;  %v7685_v22 = vld [vmem:[#allocation3 + $0xa0] sm:$0xff]   ;;  %v7686_v26 = vld [vmem:[#allocation3 + $0xe8] sm:$0xff]   ;;  %p8502_p7 = pnand %p8501_p4, %p8495_p12 }
  0x54   : > { %v8797_v2 = vrot.slane %v8788_v63, %v739_v1  ;;  %v7683_v21 = vld [vmem:[#allocation3 + $0x38] sm:$0xff]   ;;  %v8460_v27 = vld [vmem:[#allocation2 + $0x18] sm:$0xff]  ;;  %v7689_v30 = vld [vmem:[#allocation3 + $0xf0] sm:$0xff]  }
  0x55   : > { %6459 = vmatpush3.bf16.msra.mxu1 %v7671_v13  ;;  %v1478_v23 = vld [vmem:[#allocation2 + $0x1] sm:$0xff]  ;;  %v1479_v24 = vld [vmem:[#allocation2 + $0x9] sm:$0xff]  ;;  %v1735_v28 = vpack.c.bf16 %v8460_v27, %v8460_v27  ;;  %v7687_v29 = vld [vmem:[#allocation3 + $0xa8] sm:$0xff]  }
  0x56   : > { %11460 = vst [vmem:[#allocation9_spill] sm:$0xff] %v8797_v2  ;;  %6565 = vmatpush3.bf16.msra.mxu0 %v7679_v14  ;;  %6460 = vmatprep.subr.bf16.mxu1 %v7676_v15  ;;  %v1736_v25 = vpack.c.bf16 %v1479_v24, %v1478_v23  ;;  %v7691_v31 = vld [vmem:[#allocation3 + $0xb0] sm:$0xff]   ;;  %v7692_v32 = vld [vmem:[#allocation3 + $0xf8] sm:$0xff]   ;;  %v7688_v34 = vld [vmem:[#allocation3 + $0x140] sm:$0xff]  }
  0x57   : > { %6260 = vmatmul.mubr.msk.bf16.gmra.mrb[12].mxu0 %vm482_vm1, %v463_v35  ;;  %6566 = vmatprep.subr.bf16.mxu0 %v7680_v16  ;;  %v7693_v33 = vld [vmem:[#allocation3 + $0xb8] sm:$0xff]   ;;  %v7690_v35 = vld [vmem:[#allocation3 + $0x100] sm:$0xff]   ;;  %v7695_v37 = vld [vmem:[#allocation3 + $0x108] sm:$0xff]  }
  0x58   : > { %6268 = vmatmul.mubr.msk.bf16.gmra.mrb[12].mxu1 %vm482_vm1, %v471_v36  ;;  %610 = vmatprep.mubr.bf16.mxu0 %v8563_v0  ;;  %v7694_v36 = vld [vmem:[#allocation3 + $0x148] sm:$0xff]  }
  0x59   : > { %690 = vmatprep.mubr.bf16.mxu1 %v8563_v0  ;;  %6461 = vmatpush3.bf16.msra.mxu1 %v7677_v17 }
  0x5a   : > { %6567 = vmatpush3.bf16.msra.mxu0 %v7681_v18  ;;  %6462 = vmatprep.subr.bf16.mxu1 %v7682_v19 }
  0x5b   : > { %6568 = vmatprep.subr.bf16.mxu0 %v7684_v20 }
  0x5d   : > { %6463 = vmatpush3.bf16.msra.mxu1 %v7683_v21 }
  0x5e   : > { %6569 = vmatpush3.bf16.msra.mxu0 %v7685_v22  ;;  %6672 = vmatprep.subr.bf16.mxu1 %v7688_v34 }
  0x5f   : > { %6261 = vmatmul.mubr.msk.bf16.gmra.mrb[16].mxu0 %vm482_vm1, %v464_v41  ;;  %6570 = vmatprep.subr.bf16.mxu0 %v7686_v26 }
  0x60   : > { %6269 = vmatmul.mubr.msk.bf16.gmra.mrb[16].mxu1 %vm482_vm1, %v472_v42  ;;  %620 = vmatprep.mubr.bf16.mxu0 %v8563_v0 }
  0x61   : > { %700 = vmatprep.mubr.bf16.mxu1 %v8563_v0 }
  0x62   : > { %6571 = vmatpush3.bf16.msra.mxu0 %v7687_v29 }
  0x63   : > { %6572 = vmatprep.subr.bf16.mxu0 %v7689_v30 }
  0x66   : > { %6573 = vmatpush3.bf16.msra.mxu0 %v7691_v31 }
  0x67   : > { %6262 = vmatmul.mubr.msk.bf16.gmra.mrb[20].mxu0 %vm482_vm1, %v465_v47  ;;  %6574 = vmatprep.subr.bf16.mxu0 %v7692_v32  ;;  %v7696_v47 = vld [vmem:[#allocation3 + $0x150] sm:$0xff]  }
  0x68   : > { %6270 = vmatmul.mubr.msk.bf16.gmra.mrb[20].mxu1 %vm482_vm1, %v473_v48  ;;  %630 = vmatprep.mubr.bf16.mxu0 %v8563_v0  ;;  %v7697_v48 = vld [vmem:[#allocation3 + $0x110] sm:$0xff]  }
  0x69   : > { %710 = vmatprep.mubr.bf16.mxu1 %v8563_v0 }
  0x6a   : > { %6575 = vmatpush3.bf16.msra.mxu0 %v7693_v33 }
  0x6f   : > { %6263 = vmatmul.mubr.msk.bf16.gmra.mrb[24].mxu0 %vm482_vm1, %v466_v53 }
  0x70   : > { %6271 = vmatmul.mubr.msk.bf16.gmra.mrb[24].mxu1 %vm482_vm1, %v474_v54  ;;  %640 = vmatprep.mubr.bf16.mxu0 %v8563_v0 }
  0x71   : > { %720 = vmatprep.mubr.bf16.mxu1 %v8563_v0  ;;  %v8794_v0 = vld [vmem:[%s11351_s3] sm:$0x3] }
  0x72   : > { %v8800_v3 = vrot.slane %v8794_v0, %v739_v1  ;;  %v8807_v40 = vrot.slane %v8794_v0, %v735_v38 }
  0x77   : > { %6264 = vmatmul.mubr.msk.bf16.gmra.mrb[28].mxu0 %vm482_vm1, %v467_v59 }
  0x78   : > { %6272 = vmatmul.mubr.msk.bf16.gmra.mrb[28].mxu1 %vm482_vm1, %v475_v60 }
  0x79   : > { %2343 = vmatprep.mubr.bf16.mxu1 %v1736_v25 }
  0x80   : > { %2344 = vmatmul.mubr.bf16.vlgmr.msra.gmra.mrb[32].mxu1 %v1735_v28 }
  0x81   : > { %6673 = vmatpush3.bf16.msra.mxu1 %v7690_v35 }
  0x82   : > { %6674 = vmatprep.subr.bf16.mxu1 %v7694_v36 }
  0x85   : > { %6675 = vmatpush3.bf16.msra.mxu1 %v7695_v37 }
  0x86   : > { %6676 = vmatprep.subr.bf16.mxu1 %v7696_v47 }
  0x89   : > { %6677 = vmatpush3.bf16.msra.mxu1 %v7697_v48 }
 0x112   : > { %v572_v41 = vpop.f32.mrb[0].mxu0 }
 0x113   : > { %v652_v42 = vpop.f32.mrb[0].mxu1  ;;  %v743_v43 = vmul.f32 %v8804_v39, %v572_v41  ;;  %v574_v44 = vpop.f32.mrb[1].mxu0 }
 0x114   : > { %v775_v45 = vmul.f32 %v8804_v39, %v652_v42  ;;  %v654_v46 = vpop.f32.mrb[1].mxu1  ;;  %v744_v49 = vmul.f32 %v8797_v2, %v574_v44  ;;  %v576_v50 = vpop.f32.mrb[2].mxu0 }
 0x115   : > { %v776_v51 = vmul.f32 %v8797_v2, %v654_v46  ;;  %v656_v52 = vpop.f32.mrb[2].mxu1  ;;  %v8814_v53 = vadd.f32 %v8807_v40, %v743_v43  ;;  %v745_v54 = vmul.f32 %v8804_v39, %v576_v50  ;;  %v578_v55 = vpop.f32.mrb[3].mxu0  ;;  %v7698_v50 = vld [vmem:[#allocation3 + $0x158] sm:$0xff]  }
 0x116   : > { %v8818_v56 = vadd.f32 %v8807_v40, %v775_v45  ;;  %v777_v57 = vmul.f32 %v8804_v39, %v656_v52  ;;  %v658_v58 = vpop.f32.mrb[3].mxu1  ;;  %v8822_v59 = vadd.f32 %v8800_v3, %v744_v49  ;;  %v746_v60 = vmul.f32 %v8797_v2, %v578_v55  ;;  %6678 = vmatprep.subr.bf16.mxu1 %v7698_v50 }
 0x117   : > { %v8826_v61 = vadd.f32 %v8800_v3, %v776_v51  ;;  %v778_v62 = vmul.f32 %v8797_v2, %v658_v58  ;;  %v883_v63 = vsub.f32 0.0, %v8814_v53  ;;  %v8831_v1 = vadd.f32 %v8807_v40, %v745_v54 }
 0x118   : > { %11461 = vst [vmem:[#allocation10_spill] sm:$0xff] %v8822_v59  ;;  %v915_v0 = vsub.f32 0.0, %v8818_v56  ;;  %v8835_v4 = vadd.f32 %v8807_v40, %v777_v57  ;;  %v884_v5 = vsub.f32 0.0, %v8822_v59  ;;  %v8839_v6 = vadd.f32 %v8800_v3, %v746_v60 }
 0x119   : > { %11462 = vst [vmem:[#allocation11_spill] sm:$0xff] %v8826_v61  ;;  %v916_v7 = vsub.f32 0.0, %v8826_v61  ;;  %v8843_v8 = vadd.f32 %v8800_v3, %v778_v62  ;;  %v947_v9 = vmul.f32 1.442695, %v883_v63  ;;  %v885_v10 = vsub.f32 0.0, %v8831_v1  ;;  %v7699_v63 = vld [vmem:[#allocation3 + $0x118] sm:$0xff]  }
 0x11a   : > { %11463 = vst [vmem:[#allocation12_spill] sm:$0xff] %v8839_v6  ;;  %v1011_v11 = vmul.f32 1.442695, %v915_v0  ;;  %v949_v12 = vmul.f32 1.442695, %v884_v5  ;;  %v886_v13 = vsub.f32 0.0, %v8839_v6  ;;  %6679 = vmatpush3.bf16.msra.mxu1 %v7699_v63 }
 0x11b   : > { %11464 = vst [vmem:[#allocation13_spill] sm:$0xff] %v8843_v8  ;;  %v582_v14 = vpop.f32.mrb[4].mxu0  ;;  %v917_v15 = vsub.f32 0.0, %v8835_v4  ;;  %7820 = vpow2.f32 %v947_v9  ;;  %v951_v16 = vmul.f32 1.442695, %v885_v10  ;;  %v662_v20 = vpop.f32.mrb[4].mxu1 }
 0x11c   : > { %v747_v17 = vmul.f32 %v8804_v39, %v582_v14  ;;  %v584_v18 = vpop.f32.mrb[5].mxu0  ;;  %v1013_v19 = vmul.f32 1.442695, %v916_v7  ;;  %7822 = vpow2.f32 %v949_v12  ;;  %v953_v21 = vmul.f32 1.442695, %v886_v13  ;;  %v8851_v25 = vpop.f32.mrb[5].mxu1 }
 0x11d   : > { %v748_v22 = vmul.f32 %v8797_v2, %v584_v18  ;;  %v586_v23 = vpop.f32.mrb[6].mxu0  ;;  %v918_v24 = vsub.f32 0.0, %v8843_v8  ;;  %7824 = vpow2.f32 %v951_v16  ;;  %v779_v29 = vmul.f32 %v8804_v39, %v662_v20  ;;  %v8858_v30 = vpop.f32.mrb[6].mxu1  ;;  %v7700_v12 = vld [vmem:[#allocation3 + $0x160] sm:$0xff]  }
 0x11e   : > { %v8854_v26 = vadd.f32 %v8807_v40, %v747_v17  ;;  %v749_v27 = vmul.f32 %v8804_v39, %v586_v23  ;;  %v588_v28 = vpop.f32.mrb[7].mxu0  ;;  %v1015_v33 = vmul.f32 1.442695, %v917_v15  ;;  %v8864_v34 = vpop.f32.mrb[7].mxu1  ;;  %7826 = vpow2.f32 %v953_v21  ;;  %v7701_v17 = vld [vmem:[#allocation3 + $0x120] sm:$0xff]   ;;  %6680 = vmatprep.subr.bf16.mxu1 %v7700_v12 }
 0x11f   : > { %v8861_v31 = vadd.f32 %v8800_v3, %v748_v22  ;;  %v750_v32 = vmul.f32 %v8797_v2, %v588_v28  ;;  %v8871_v37 = vadd.f32 %v8807_v40, %v779_v29  ;;  %7828 = vpow2.f32 %v1011_v11  ;;  %v7702_v22 = vld [vmem:[#allocation3 + $0x168] sm:$0xff]   ;;  %6681 = vmatpush3.bf16.msra.mxu1 %v7701_v17 }
 0x120   : > { %v887_v35 = vsub.f32 0.0, %v8854_v26  ;;  %v8868_v36 = vadd.f32 %v8807_v40, %v749_v27  ;;  %v1017_v42 = vmul.f32 1.442695, %v918_v24  ;;  %7830 = vpow2.f32 %v1013_v19  ;;  %6682 = vmatprep.subr.bf16.mxu1 %v7702_v22 }
 0x121   : > { %11465 = vst [vmem:[#allocation14_spill] sm:$0xff] %v8861_v31  ;;  %v888_v38 = vsub.f32 0.0, %v8861_v31  ;;  %v8875_v41 = vadd.f32 %v8800_v3, %v750_v32  ;;  %v919_v45 = vsub.f32 0.0, %v8871_v37  ;;  %7832 = vpow2.f32 %v1015_v33 }
 0x122   : > { %v955_v43 = vmul.f32 1.442695, %v887_v35  ;;  %v889_v44 = vsub.f32 0.0, %v8868_v36  ;;  %v592_v48 = vpop.f32.mrb[8].mxu0 }
 0x123   : > { %11466 = vst [vmem:[#allocation15_spill] sm:$0xff] %v8875_v41  ;;  %v957_v46 = vmul.f32 1.442695, %v888_v38  ;;  %v890_v47 = vsub.f32 0.0, %v8875_v41  ;;  %v8880_v49 = vpop.f32.mrb[8].mxu1  ;;  %v751_v52 = vmul.f32 %v8804_v39, %v592_v48  ;;  %v594_v54 = vpop.f32.mrb[9].mxu0 }
 0x124   : > { %7834 = vpow2.f32 %v955_v43  ;;  %v959_v51 = vmul.f32 1.442695, %v889_v44  ;;  %v8883_v55 = vpop.f32.mrb[9].mxu1  ;;  %v752_v58 = vmul.f32 %v8797_v2, %v594_v54  ;;  %v596_v60 = vpop.f32.mrb[10].mxu0  ;;  %v1019_v10 = vmul.f32 1.442695, %v919_v45 }
 0x125   : > { %7836 = vpow2.f32 %v957_v46  ;;  %v961_v57 = vmul.f32 1.442695, %v890_v47  ;;  %v8886_v62 = vpop.f32.mrb[10].mxu1  ;;  %v7821_v0 = vpop.eup %7820  ;;  %v8889_v5 = vadd.f32 %v8807_v40, %v751_v52  ;;  %v753_v7 = vmul.f32 %v8804_v39, %v596_v60  ;;  %v7703_v44 = vld [vmem:[#allocation3 + $0x128] sm:$0xff]  }
 0x126   : > { %7838 = vpow2.f32 %v959_v51  ;;  %v598_v9 = vpop.f32.mrb[11].mxu0  ;;  %v8892_v11 = vpop.f32.mrb[11].mxu1  ;;  %v1075_v14 = vadd.f32 1.0, %v7821_v0  ;;  %v8895_v15 = vadd.f32 %v8800_v3, %v752_v58  ;;  %v7704_v51 = vld [vmem:[#allocation3 + $0x170] sm:$0xff]   ;;  %v780_v60 = vmul.f32 %v8797_v2, %v8851_v25  ;;  %6683 = vmatpush3.bf16.msra.mxu1 %v7703_v44 }
 0x127   : > { %v7823_v13 = vpop.eup %7822  ;;  %v754_v16 = vmul.f32 %v8797_v2, %v598_v9  ;;  %7840 = vpow2.f32 %v1017_v42  ;;  %v891_v20 = vsub.f32 0.0, %v8889_v5  ;;  %v8900_v21 = vadd.f32 %v8807_v40, %v753_v7  ;;  %6684 = vmatprep.subr.bf16.mxu1 %v7704_v51 }
 0x128   : > { %11467 = vst [vmem:[#allocation16_spill] sm:$0xff] %v8895_v15  ;;  %v7825_v18 = vpop.eup %7824  ;;  %v1076_v19 = vadd.f32 1.0, %v7823_v13  ;;  %7842 = vpow2.f32 %v961_v57  ;;  %v892_v24 = vsub.f32 0.0, %v8895_v15  ;;  %v8947_v51 = vadd.f32 %v8800_v3, %v780_v60 }
 0x129   : > { %7844 = vrcp.f32 %v1075_v14  ;;  %v1077_v23 = vadd.f32 1.0, %v7825_v18  ;;  %v8904_v27 = vadd.f32 %v8800_v3, %v754_v16  ;;  %v7827_v28 = vpop.eup %7826  ;;  %v963_v29 = vmul.f32 1.442695, %v891_v20 }
 0x12a   : > { %v893_v32 = vsub.f32 0.0, %v8900_v21  ;;  %7846 = vpow2.f32 %v1019_v10  ;;  %v8907_v33 = vpop.eup %7828  ;;  %v965_v35 = vmul.f32 1.442695, %v892_v24  ;;  %v602_v42 = vpop.f32.mrb[12].mxu0  ;;  %v1078_v7 = vadd.f32 1.0, %v7827_v28  ;;  %11471 = vst [vmem:[#allocation20_spill] sm:$0xff] %v8947_v51 }
 0x12b   : > { %11468 = vst [vmem:[#allocation17_spill] sm:$0xff] %v8904_v27  ;;  %7848 = vrcp.f32 %v1077_v23  ;;  %v894_v38 = vsub.f32 0.0, %v8904_v27  ;;  %v8910_v43 = vpop.f32.mrb[12].mxu1  ;;  %v8912_v45 = vpop.eup %7830  ;;  %v755_v47 = vmul.f32 %v8804_v39, %v602_v42 }
 0x12c   : > { %7850 = vrcp.f32 %v1076_v19  ;;  %v967_v46 = vmul.f32 1.442695, %v893_v32  ;;  %v604_v48 = vpop.f32.mrb[13].mxu0  ;;  %v8915_v50 = vpop.f32.mrb[13].mxu1  ;;  %v7705_v32 = vld [vmem:[#allocation3 + $0x130] sm:$0xff]  }
 0x12d   : > { %v8917_v52 = vpop.eup %7832  ;;  %7852 = vpow2.f32 %v963_v29  ;;  %v969_v54 = vmul.f32 1.442695, %v894_v38  ;;  %v756_v57 = vmul.f32 %v8797_v2, %v604_v48  ;;  %v606_v58 = vpop.f32.mrb[14].mxu0  ;;  %v8925_v9 = vadd.f32 %v8807_v40, %v755_v47  ;;  %6685 = vmatpush3.bf16.msra.mxu1 %v7705_v32 }
 0x12e   : > { %v8922_v63 = vpop.f32.mrb[14].mxu1  ;;  %v7835_v0 = vpop.eup %7834  ;;  %7854 = vpow2.f32 %v965_v35  ;;  %v757_v10 = vmul.f32 %v8804_v39, %v606_v58 }
 0x12f   : > { %v608_v12 = vpop.f32.mrb[15].mxu0  ;;  %v8928_v13 = vpop.f32.mrb[15].mxu1  ;;  %v1079_v16 = vadd.f32 1.0, %v7835_v0  ;;  %7856 = vpow2.f32 %v967_v46  ;;  %v8931_v17 = vadd.f32 %v8800_v3, %v756_v57  ;;  %v895_v20 = vsub.f32 0.0, %v8925_v9 }
 0x130   : > { %v7837_v14 = vpop.eup %7836  ;;  %v758_v25 = vmul.f32 %v8797_v2, %v608_v12  ;;  %7858 = vpow2.f32 %v969_v54  ;;  %v8936_v22 = vadd.f32 %v8807_v40, %v757_v10 }
 0x131   : > { %11469 = vst [vmem:[#allocation18_spill] sm:$0xff] %v8931_v17  ;;  %v7839_v18 = vpop.eup %7838  ;;  %v1080_v19 = vadd.f32 1.0, %v7837_v14  ;;  %7860 = vrcp.f32 %v1079_v16  ;;  %v896_v28 = vsub.f32 0.0, %v8931_v17  ;;  %v971_v38 = vmul.f32 1.442695, %v895_v20 }
 0x132   : > { %v8938_v23 = vpop.eup %7840  ;;  %v1081_v24 = vadd.f32 1.0, %v7839_v18  ;;  %v8942_v29 = vadd.f32 %v8800_v3, %v758_v25  ;;  %7862 = vrcp.f32 %v1078_v7  ;;  %v897_v42 = vsub.f32 0.0, %v8936_v22  ;;  %v612_v48 = vpop.f32.mrb[16].mxu0 }
 0x133   : > { %v7843_v35 = vpop.eup %7842  ;;  %v973_v46 = vmul.f32 1.442695, %v896_v28  ;;  %v8949_v54 = vpop.f32.mrb[16].mxu1  ;;  %v759_v7 = vmul.f32 %v8804_v39, %v612_v48  ;;  %v1107_v25 = vadd.f32 1.0, %v8907_v33 }
 0x134   : > { %11470 = vst [vmem:[#allocation19_spill] sm:$0xff] %v8942_v29  ;;  %v7845_v44 = vpop.eup %7844  ;;  %7864 = vrcp.f32 %v1081_v24  ;;  %v898_v47 = vsub.f32 0.0, %v8942_v29  ;;  %v975_v0 = vmul.f32 1.442695, %v897_v42  ;;  %v614_v10 = vpop.f32.mrb[17].mxu0  ;;  %v1082_v42 = vadd.f32 1.0, %v7843_v35 }
 0x135   : > { %v8951_v57 = vpop.eup %7846  ;;  %v8954_v58 = vmul.f32 %v7845_v44, %v8814_v53  ;;  %7866 = vrcp.f32 %v1080_v19  ;;  %v8957_v12 = vpop.f32.mrb[17].mxu1  ;;  %v760_v60 = vmul.f32 %v8797_v2, %v614_v10  ;;  %v8970_v19 = vadd.f32 %v8807_v40, %v759_v7  ;;  %v8984_v10 = vld [vmem:[#allocation2 + $0x2] sm:$0xff] }
 0x136   : > { %v7849_v14 = vpop.eup %7848  ;;  %7868 = vpow2.f32 %v971_v38  ;;  %v977_v16 = vmul.f32 1.442695, %v898_v47  ;;  %v616_v18 = vpop.f32.mrb[18].mxu0 }
 0x137   : > { %11472 = vst [vmem:[#allocation21_spill] sm:$0xff] %v8954_v58  ;;  %v8961_v20 = vpop.f32.mrb[18].mxu1  ;;  %v8963_v24 = vpop.eup %7850  ;;  %1414 = vst [vmem:[#allocation2 + $0x19] sm:$0xff] %v8954_v58  ;;  %v8967_v53 = vmul.f32 %v7849_v14, %v8831_v1  ;;  %7870 = vpow2.f32 %v973_v46  ;;  %v761_v28 = vmul.f32 %v8804_v39, %v616_v18  ;;  %v8976_v44 = vadd.f32 %v8800_v3, %v760_v60  ;;  %v8986_v14 = vld [vmem:[#allocation2 + $0xa] sm:$0xff] }
 0x138   : > { %11473 = vst [vmem:[#allocation22_spill] sm:$0xff] %v8963_v24  ;;  %v618_v32 = vpop.f32.mrb[19].mxu0  ;;  %v8973_v38 = vpop.f32.mrb[19].mxu1  ;;  %7872 = vpow2.f32 %v975_v0  ;;  %v899_v46 = vsub.f32 0.0, %v8970_v19 }
 0x139   : > { %11474 = vst [vmem:[#allocation23_spill] sm:$0xff] %v8967_v53  ;;  %v7853_v33 = vpop.eup %7852  ;;  %11475 = vst [vmem:[#allocation24_spill] sm:$0xff] %v8976_v44  ;;  %v762_v47 = vmul.f32 %v8797_v2, %v618_v32  ;;  %7874 = vpow2.f32 %v977_v16  ;;  %v8982_v7 = vadd.f32 %v8807_v40, %v761_v28  ;;  %v900_v60 = vsub.f32 0.0, %v8976_v44  ;;  %v7706_v32 = vld [vmem:[#allocation3 + $0x1c0] sm:$0xff]   ;;  %v7710_v44 = vld [vmem:[#allocation3 + $0x178] sm:$0xff]  }
 0x13a   : > { %v7855_v48 = vpop.eup %7854  ;;  %1415 = vst [vmem:[#allocation2 + $0x21] sm:$0xff] %v8967_v53  ;;  %v1083_v1 = vadd.f32 1.0, %v7853_v33  ;;  %7876 = vrcp.f32 %v1107_v25  ;;  %v979_v8 = vmul.f32 1.442695, %v899_v46  ;;  %v622_v17 = vpop.f32.mrb[20].mxu0  ;;  %6784 = vmatprep.subr.bf16.mxu0 %v7706_v32  ;;  %v781_v32 = vmul.f32 %v8804_v39, %v8858_v30  ;;  %6686 = vmatprep.subr.bf16.mxu1 %v7710_v44 }
 0x13b   : > { %v7857_v35 = vpop.eup %7856  ;;  %v1084_v0 = vadd.f32 1.0, %v7855_v48  ;;  %v8990_v18 = vadd.f32 %v8800_v3, %v762_v47  ;;  %v901_v28 = vsub.f32 0.0, %v8982_v7  ;;  %v981_v29 = vmul.f32 1.442695, %v900_v60  ;;  %v8996_v25 = vpop.f32.mrb[20].mxu1 }
 0x13c   : > { %v7859_v33 = vpop.eup %7858  ;;  %7878 = vrcp.f32 %v1083_v1  ;;  %v1085_v16 = vadd.f32 1.0, %v7857_v35  ;;  %v763_v35 = vmul.f32 %v8804_v39, %v622_v17  ;;  %v9004_v60 = vpop.f32.mrb[21].mxu1 }
 0x13d   : > { %11476 = vst [vmem:[#allocation25_spill] sm:$0xff] %v8990_v18  ;;  %v7861_v61 = vpop.eup %7860  ;;  %7880 = vrcp.f32 %v1082_v42  ;;  %v983_v46 = vmul.f32 1.442695, %v901_v28  ;;  %v624_v42 = vpop.f32.mrb[21].mxu0  ;;  %v1086_v15 = vadd.f32 1.0, %v7859_v33  ;;  %v902_v17 = vsub.f32 0.0, %v8990_v18 }
 0x13e   : > { %v8998_v47 = vpop.eup %7862  ;;  %v9001_v1 = vmul.f32 %v7861_v61, %v8854_v26  ;;  %7882 = vrcp.f32 %v1085_v16  ;;  %v764_v48 = vmul.f32 %v8797_v2, %v624_v42  ;;  %v626_v31 = vpop.f32.mrb[22].mxu0  ;;  %v1108_v28 = vadd.f32 1.0, %v8912_v45 }
 0x13f   : > { %11477 = vst [vmem:[#allocation26_spill] sm:$0xff] %v8998_v47  ;;  %v7865_v27 = vpop.eup %7864  ;;  %7884 = vrcp.f32 %v1084_v0  ;;  %v9009_v41 = vpop.f32.mrb[22].mxu1  ;;  %v9019_v0 = vadd.f32 %v8807_v40, %v763_v35  ;;  %v1109_v35 = vadd.f32 1.0, %v8917_v52  ;;  %v985_v6 = vmul.f32 1.442695, %v902_v17 }
 0x140   : > { %11478 = vst [vmem:[#allocation27_spill] sm:$0xff] %v9001_v1  ;;  %v9011_v61 = vpop.eup %7866  ;;  %1416 = vst [vmem:[#allocation2 + $0x31] sm:$0xff] %v9001_v1  ;;  %v9015_v26 = vmul.f32 %v7865_v27, %v8868_v36  ;;  %7886 = vpow2.f32 %v979_v8  ;;  %v628_v33 = vpop.f32.mrb[23].mxu0  ;;  %v9025_v42 = vadd.f32 %v8800_v3, %v764_v48  ;;  %v765_v36 = vmul.f32 %v8804_v39, %v626_v31  ;;  %v7711_v48 = vld [vmem:[#allocation3 + $0x138] sm:$0xff]  }
 0x141   : > { %11479 = vst [vmem:[#allocation28_spill] sm:$0xff] %v9011_v61  ;;  %v9021_v16 = vpop.f32.mrb[23].mxu1  ;;  %v7869_v30 = vpop.eup %7868  ;;  %7888 = vpow2.f32 %v981_v29  ;;  %v766_v18 = vmul.f32 %v8797_v2, %v628_v33  ;;  %v9032_v29 = vadd.f32 1.0, %v8938_v23  ;;  %v903_v45 = vsub.f32 0.0, %v9019_v0  ;;  %v1543_v33 = vld [vmem:[#allocation2 + $0x20] sm:$0xff]  ;;  %6687 = vmatpush3.bf16.msra.mxu1 %v7711_v48 }
 0x142   : > { %11480 = vst [vmem:[#allocation29_spill] sm:$0xff] %v9015_v26  ;;  %11481 = vst [vmem:[#allocation30_spill] sm:$0xff] %v9025_v42  ;;  %v7871_v27 = vpop.eup %7870  ;;  %v1087_v8 = vadd.f32 1.0, %v7869_v30  ;;  %7890 = vpow2.f32 %v983_v46  ;;  %v9036_v30 = vadd.f32 1.0, %v8951_v57  ;;  %v904_v52 = vsub.f32 0.0, %v9025_v42 }
 0x143   : > { %1417 = vst [vmem:[#allocation2 + $0x39] sm:$0xff] %v9015_v26  ;;  %v7873_v61 = vpop.eup %7872  ;;  %7892 = vrcp.f32 %v1086_v15  ;;  %v1088_v44 = vadd.f32 1.0, %v7871_v27  ;;  %v9040_v15 = vadd.f32 %v8807_v40, %v765_v36  ;;  %v9043_v23 = vadd.f32 %v8807_v40, %v781_v32  ;;  %v632_v27 = vpop.f32.mrb[24].mxu0 }
 0x144   : > { %v7875_v47 = vpop.eup %7874  ;;  %7894 = vrcp.f32 %v1087_v8  ;;  %v1089_v31 = vadd.f32 1.0, %v7873_v61  ;;  %v9045_v24 = vpop.f32.mrb[24].mxu1  ;;  %v987_v59 = vmul.f32 1.442695, %v903_v45  ;;  %v1745_v48 = vpack.c.bf16 %v8967_v53, %v8954_v58  ;;  %v7707_v45 = vld [vmem:[#allocation3 + $0x180] sm:$0xff]  }
 0x145   : > { %v7877_v46 = vpop.eup %7876  ;;  %7896 = vrcp.f32 %v1108_v28  ;;  %v1090_v17 = vadd.f32 1.0, %v7875_v47  ;;  %v9051_v28 = vadd.f32 %v8800_v3, %v766_v18  ;;  %v634_v8 = vpop.f32.mrb[25].mxu0  ;;  %v1542_v47 = vld [vmem:[#allocation2 + $0x18] sm:$0xff]  ;;  %v782_v18 = vmul.f32 %v8797_v2, %v8864_v34 }
 0x146   : > { %v7879_v61 = vpop.eup %7878  ;;  %7898 = vrcp.f32 %v1089_v31  ;;  %v9048_v57 = vmul.f32 %v7877_v46, %v8818_v56  ;;  %v9053_v36 = vpop.f32.mrb[25].mxu1  ;;  %2351 = vmatprep.mubr.bf16.mxu1 %v1745_v48  ;;  %v768_v34 = vmul.f32 %v8797_v2, %v634_v8 }
 0x147   : > { %11483 = vst [vmem:[#allocation32_spill] sm:$0xff] %v9051_v28  ;;  %11484 = vst [vmem:[#allocation33_spill] sm:$0xff] %v9053_v36  ;;  %v9055_v42 = vpop.eup %7880  ;;  %v9058_v32 = vmul.f32 %v7879_v61, %v8889_v5  ;;  %7900 = vrcp.f32 %v1088_v44  ;;  %v636_v31 = vpop.f32.mrb[26].mxu0  ;;  %v767_v5 = vmul.f32 %v8804_v39, %v632_v27  ;;  %v9096_v8 = vadd.f32 %v8800_v3, %v782_v18 }
 0x148   : > { %11482 = vst [vmem:[#allocation31_spill] sm:$0xff] %v9048_v57  ;;  %11485 = vst [vmem:[#allocation34_spill] sm:$0xff] %v9055_v42  ;;  %v9062_v56 = vpop.f32.mrb[26].mxu1  ;;  %v7883_v46 = vpop.eup %7882  ;;  %7902 = vpow2.f32 %v985_v6  ;;  %v1738_v42 = vpack.c.bf16 %v1543_v33, %v1542_v47  ;;  %v905_v6 = vsub.f32 0.0, %v9040_v15  ;;  %v7708_v33 = vld [vmem:[#allocation3 + $0x1c8] sm:$0xff]  }
 0x149   : > { %11486 = vst [vmem:[#allocation35_spill] sm:$0xff] %v9058_v32  ;;  %11487 = vst [vmem:[#allocation36_spill] sm:$0xff] %v9062_v56  ;;  %v9068_v61 = vpop.f32.mrb[27].mxu0  ;;  %v9070_v44 = vpop.f32.mrb[27].mxu1  ;;  %v9076_v58 = vmul.f32 %v7883_v46, %v8900_v21  ;;  %7904 = vrcp.f32 %v1109_v35  ;;  %v989_v47 = vmul.f32 1.442695, %v904_v52  ;;  %v9086_v48 = vadd.f32 %v8807_v40, %v767_v5 }
 0x14a   : > { %1430 = vst [vmem:[#allocation2 + $0xd9] sm:$0xff] %v9048_v57  ;;  %11488 = vst [vmem:[#allocation37_spill] sm:$0xff] %v9070_v44  ;;  %v9072_v53 = vpop.eup %7884  ;;  %7906 = vrcp.f32 %v1090_v17  ;;  %v11491_v57 = vsub.f32 0.0, %v8947_v51  ;;  %2504 = vmatprep.mubr.bf16.mxu0 %v1738_v42  ;;  %2352 = vmatmul.mubr.bf16.gmra.mrb[36].mxu1 %v1738_v42  ;;  %v11492_v17 = vpack.c.bf16 %v8986_v14, %v8984_v10  ;;  %v906_v42 = vsub.f32 0.0, %v9051_v28  ;;  %v7720_v46 = vld [vmem:[#allocation3 + $0x200] sm:$0xff]   ;;  %v1513_v56 = vld [vmem:[#allocation2 + $0x22] sm:$0xff] }
 0x14b   : > { %11489 = vst [vmem:[#allocation38_spill] sm:$0xff] %v9072_v53  ;;  %1418 = vst [vmem:[#allocation2 + $0x49] sm:$0xff] %v9058_v32  ;;  %v7887_v27 = vpop.eup %7886  ;;  %v783_v53 = vmul.f32 %v8804_v39, %v8880_v49  ;;  %7908 = vpow2.f32 %v987_v59  ;;  %v769_v52 = vmul.f32 %v8804_v39, %v636_v31  ;;  %v921_v49 = vsub.f32 0.0, %v9043_v23  ;;  %v7709_v59 = vld [vmem:[#allocation3 + $0x188] sm:$0xff]   ;;  %7504 = vmatprep.subr.bf16.mxu1 %v7720_v46 }
 0x14c   : > { %11490 = vst [vmem:[#allocation39_spill] sm:$0xff] %v9076_v58  ;;  %v1021_v44 = vmul.f32 1.442695, %v11491_v57  ;;  %v7889_v21 = vpop.eup %7888  ;;  %1419 = vst [vmem:[#allocation2 + $0x51] sm:$0xff] %v9076_v58  ;;  %v1091_v35 = vadd.f32 1.0, %v7887_v27  ;;  %2505 = vmatmul.mubr.bf16.vlgmr.msra.gmra.mrb[32].mxu0 %v11492_v17  ;;  %7910 = vrcp.f32 %v9032_v29  ;;  %v9101_v31 = vadd.f32 %v8800_v3, %v768_v34  ;;  %v9103_v27 = vpop.f32.mrb[28].mxu0 }
 0x14d   : > { %v7891_v57 = vpop.eup %7890  ;;  %11493 = vst [vmem:[#allocation40_spill] sm:$0xff] %v9096_v8  ;;  %6785 = vmatpush3.bf16.msra.mxu0 %v7707_v45  ;;  %v991_v14 = vmul.f32 1.442695, %v905_v6  ;;  %v9105_v29 = vpop.f32.mrb[28].mxu1  ;;  %v7712_v17 = vld [vmem:[#allocation3 + $0x1d0] sm:$0xff]   ;;  %v1092_v18 = vadd.f32 1.0, %v7889_v21  ;;  %v9108_v45 = vadd.f32 %v8807_v40, %v783_v53 }
 0x14e   : > { %v9098_v5 = vpop.eup %7892  ;;  %7912 = vrcp.f32 %v1091_v35  ;;  %v1093_v10 = vadd.f32 1.0, %v7891_v57  ;;  %11495 = vst [vmem:[#allocation42_spill] sm:$0xff] %v9101_v31  ;;  %11496 = vst [vmem:[#allocation43_spill] sm:$0xff] %v9105_v29  ;;  %6786 = vmatprep.subr.bf16.mxu0 %v7708_v33  ;;  %v784_v35 = vmul.f32 %v8797_v2, %v8883_v55  ;;  %v9112_v57 = vpop.f32.mrb[29].mxu0  ;;  %v907_v33 = vsub.f32 0.0, %v9086_v48 }
 0x14f   : > { %11494 = vst [vmem:[#allocation41_spill] sm:$0xff] %v9098_v5  ;;  %v7895_v51 = vpop.eup %7894  ;;  %7914 = vpow2.f32 %v989_v47  ;;  %v9114_v6 = vpop.f32.mrb[29].mxu1  ;;  %v9123_v47 = vadd.f32 %v8807_v40, %v769_v52  ;;  %v1023_v55 = vmul.f32 1.442695, %v921_v49  ;;  %v1754_v29 = vpack.c.bf16 %v9015_v26, %v9001_v1 }
 0x150   : > { %11497 = vst [vmem:[#allocation44_spill] sm:$0xff] %v9114_v6  ;;  %v9116_v34 = vpop.eup %7896  ;;  %v9119_v28 = vmul.f32 %v7895_v51, %v8925_v9  ;;  %7916 = vrcp.f32 %v1093_v10  ;;  %v9125_v53 = vpop.f32.mrb[30].mxu0  ;;  %v922_v6 = vsub.f32 0.0, %v9096_v8  ;;  %v7713_v9 = vld [vmem:[#allocation3 + $0x190] sm:$0xff]   ;;  %v993_v10 = vmul.f32 1.442695, %v906_v42 }
 0x151   : > { %11498 = vst [vmem:[#allocation45_spill] sm:$0xff] %v9116_v34  ;;  %v7899_v21 = vpop.eup %7898  ;;  %7918 = vrcp.f32 %v9036_v30  ;;  %v9129_v46 = vpop.f32.mrb[31].mxu0  ;;  %6787 = vmatpush3.bf16.msra.mxu0 %v7709_v59  ;;  %v7714_v30 = vld [vmem:[#allocation3 + $0x1d8] sm:$0xff]   ;;  %v908_v8 = vsub.f32 0.0, %v9101_v31  ;;  %v9141_v5 = vadd.f32 %v8800_v3, %v784_v35  ;;  %v770_v59 = vmul.f32 %v8797_v2, %v9068_v61  ;;  %v1512_v31 = vld [vmem:[#allocation2 + $0x1a] sm:$0xff]  ;;  %2359 = vmatprep.mubr.bf16.mxu1 %v1754_v29  ;;  %v7717_v29 = vld [vmem:[#allocation3 + $0x1a0] sm:$0xff]  }
 0x152   : > { %11499 = vst [vmem:[#allocation46_spill] sm:$0xff] %v9119_v28  ;;  %v9131_v34 = vpop.f32.mrb[30].mxu1  ;;  %v9133_v51 = vpop.eup %7900  ;;  %1420 = vst [vmem:[#allocation2 + $0x61] sm:$0xff] %v9119_v28  ;;  %v9137_v52 = vmul.f32 %v7899_v21, %v8936_v22  ;;  %7920 = vpow2.f32 %v991_v14  ;;  %6788 = vmatprep.subr.bf16.mxu0 %v7712_v17  ;;  %v995_v22 = vmul.f32 1.442695, %v907_v33  ;;  %v923_v14 = vsub.f32 0.0, %v9108_v45 }
 0x153   : > { %11500 = vst [vmem:[#allocation47_spill] sm:$0xff] %v9131_v34  ;;  %11501 = vst [vmem:[#allocation48_spill] sm:$0xff] %v9133_v51  ;;  %v7903_v49 = vpop.eup %7902  ;;  %7922 = vpow2.f32 %v1021_v44  ;;  %v909_v42 = vsub.f32 0.0, %v9123_v47  ;;  %v1545_v17 = vld [vmem:[#allocation2 + $0x38] sm:$0xff]  ;;  %v1025_v35 = vmul.f32 1.442695, %v922_v6  ;;  %v785_v61 = vmul.f32 %v8804_v39, %v8886_v62 }
 0x154   : > { %11502 = vst [vmem:[#allocation49_spill] sm:$0xff] %v9137_v52  ;;  %v7905_v51 = vpop.eup %7904  ;;  %1421 = vst [vmem:[#allocation2 + $0x69] sm:$0xff] %v9137_v52  ;;  %7924 = vrcp.f32 %v1092_v18  ;;  %v1094_v18 = vadd.f32 1.0, %v7903_v49  ;;  %v786_v33 = vmul.f32 %v8797_v2, %v8892_v11  ;;  %v924_v6 = vsub.f32 0.0, %v9141_v5 }
 0x155   : > { %v9148_v21 = vpop.eup %7906  ;;  %v9151_v44 = vmul.f32 %v7905_v51, %v8835_v4  ;;  %7926 = vpow2.f32 %v1023_v55  ;;  %6789 = vmatpush3.bf16.msra.mxu0 %v7713_v9  ;;  %v7715_v4 = vld [vmem:[#allocation3 + $0x198] sm:$0xff]   ;;  %v9164_v9 = vadd.f32 %v8800_v3, %v770_v59  ;;  %v997_v49 = vmul.f32 1.442695, %v908_v8 }
 0x156   : > { %11503 = vst [vmem:[#allocation50_spill] sm:$0xff] %v9148_v21  ;;  %v7909_v34 = vpop.eup %7908  ;;  %7928 = vpow2.f32 %v993_v10  ;;  %v1544_v21 = vld [vmem:[#allocation2 + $0x30] sm:$0xff]  ;;  %6790 = vmatprep.subr.bf16.mxu0 %v7714_v30  ;;  %v1027_v26 = vmul.f32 1.442695, %v923_v14  ;;  %v999_v1 = vmul.f32 1.442695, %v909_v42  ;;  %v9171_v59 = vpack.c.bf16 %v1513_v56, %v1512_v31 }
 0x157   : > { %11504 = vst [vmem:[#allocation51_spill] sm:$0xff] %v9151_v44  ;;  %v9159_v55 = vpop.eup %7910  ;;  %1431 = vst [vmem:[#allocation2 + $0xe1] sm:$0xff] %v9151_v44  ;;  %v1095_v62 = vadd.f32 1.0, %v7909_v34  ;;  %v1747_v51 = vpack.c.bf16 %v1545_v17, %v1544_v21  ;;  %v7716_v10 = vld [vmem:[#allocation3 + $0x1e0] sm:$0xff]   ;;  %7930 = vpow2.f32 %v995_v22  ;;  %v771_v34 = vmul.f32 %v8804_v39, %v9103_v27  ;;  %v7718_v42 = vld [vmem:[#allocation3 + $0x1e8] sm:$0xff]  }
 0x158   : > { %v7913_v11 = vpop.eup %7912  ;;  %11506 = vst [vmem:[#allocation53_spill] sm:$0xff] %v9171_v59  ;;  %v9174_v22 = vadd.f32 %v8807_v40, %v785_v61  ;;  %v9177_v8 = vadd.f32 %v8800_v3, %v786_v33  ;;  %v1029_v56 = vmul.f32 1.442695, %v924_v6  ;;  %v910_v31 = vsub.f32 0.0, %v9164_v9 }
 0x159   : > { %v7915_v30 = vpop.eup %7914  ;;  %v9167_v36 = vmul.f32 %v7913_v11, %v8970_v19  ;;  %7932 = vrcp.f32 %v1095_v62  ;;  %2512 = vmatprep.mubr.bf16.mxu0 %v1747_v51  ;;  %2360 = vmatmul.mubr.bf16.gmra.mrb[40].mxu1 %v1747_v51  ;;  %v787_v19 = vmul.f32 %v8804_v39, %v8910_v43 }
 0x15a   : > { %v7917_v17 = vpop.eup %7916  ;;  %7934 = vrcp.f32 %v1094_v18  ;;  %6791 = vmatpush3.bf16.msra.mxu0 %v7715_v4  ;;  %v1096_v61 = vadd.f32 1.0, %v7915_v30  ;;  %v773_v18 = vmul.f32 %v8804_v39, %v9125_v53  ;;  %v772_v4 = vmul.f32 %v8797_v2, %v9112_v57  ;;  %v7719_v53 = vld [vmem:[#allocation3 + $0x1a8] sm:$0xff]  }
 0x15b   : > { %11505 = vst [vmem:[#allocation52_spill] sm:$0xff] %v9167_v36  ;;  %v7919_v14 = vpop.eup %7918  ;;  %1422 = vst [vmem:[#allocation2 + $0x79] sm:$0xff] %v9167_v36  ;;  %v9183_v27 = vmul.f32 %v7917_v17, %v8982_v7  ;;  %7936 = vpow2.f32 %v1025_v35  ;;  %2513 = vmatmul.mubr.bf16.gmra.mrb[36].mxu0 %v9171_v59  ;;  %6792 = vmatprep.subr.bf16.mxu0 %v7716_v10  ;;  %v9194_v35 = vadd.f32 %v8807_v40, %v771_v34  ;;  %v7721_v10 = vld [vmem:[#allocation3 + $0x1f0] sm:$0xff]  }
 0x15c   : > { %v7921_v21 = vpop.eup %7920  ;;  %v9188_v43 = vmul.f32 %v7919_v14, %v8871_v37  ;;  %7938 = vpow2.f32 %v1027_v26  ;;  %v925_v37 = vsub.f32 0.0, %v9174_v22  ;;  %v9203_v26 = vadd.f32 %v8807_v40, %v787_v19 }
 0x15d   : > { %11507 = vst [vmem:[#allocation54_spill] sm:$0xff] %v9183_v27  ;;  %v7923_v33 = vpop.eup %7922  ;;  %1423 = vst [vmem:[#allocation2 + $0x81] sm:$0xff] %v9183_v27  ;;  %v1097_v7 = vadd.f32 1.0, %v7921_v21  ;;  %7940 = vpow2.f32 %v999_v1  ;;  %v1001_v1 = vmul.f32 1.442695, %v910_v31  ;;  %v926_v51 = vsub.f32 0.0, %v9177_v8 }
 0x15e   : > { %11508 = vst [vmem:[#allocation55_spill] sm:$0xff] %v9188_v43  ;;  %v9198_v62 = vpop.eup %7924  ;;  %1432 = vst [vmem:[#allocation2 + $0xf1] sm:$0xff] %v9188_v43  ;;  %7942 = vpow2.f32 %v997_v49  ;;  %6793 = vmatpush3.bf16.msra.mxu0 %v7717_v29  ;;  %v1112_v11 = vadd.f32 1.0, %v7923_v33  ;;  %v9207_v49 = vadd.f32 %v8807_v40, %v773_v18  ;;  %v911_v34 = vsub.f32 0.0, %v9194_v35  ;;  %v7723_v33 = vld [vmem:[#allocation3 + $0x1f8] sm:$0xff]  }
 0x15f   : > { %v7927_v6 = vpop.eup %7926  ;;  %7944 = vrcp.f32 %v1097_v7  ;;  %6794 = vmatprep.subr.bf16.mxu0 %v7718_v42  ;;  %v9211_v17 = vadd.f32 %v8800_v3, %v772_v4  ;;  %v1031_v29 = vmul.f32 1.442695, %v925_v37  ;;  %v927_v14 = vsub.f32 0.0, %v9203_v26  ;;  %v7722_v42 = vld [vmem:[#allocation3 + $0x1b0] sm:$0xff]  }
 0x160   : > { %v7929_v57 = vpop.eup %7928  ;;  %v1113_v30 = vadd.f32 1.0, %v7927_v6  ;;  %7946 = vpow2.f32 %v1029_v56  ;;  %v788_v31 = vmul.f32 %v8797_v2, %v8915_v50  ;;  %v913_v37 = vsub.f32 0.0, %v9207_v49 }
 0x161   : > { %7948 = vrcp.f32 %v1096_v61  ;;  %v7931_v19 = vpop.eup %7930  ;;  %v1098_v21 = vadd.f32 1.0, %v7929_v57  ;;  %v1033_v61 = vmul.f32 1.442695, %v926_v51  ;;  %v789_v50 = vmul.f32 %v8804_v39, %v8922_v63 }
 0x162   : > { %7950 = vrcp.f32 %v1113_v30  ;;  %6795 = vmatpush3.bf16.msra.mxu0 %v7719_v53  ;;  %v1099_v18 = vadd.f32 1.0, %v7931_v19  ;;  %v1547_v53 = vld [vmem:[#allocation2 + $0x50] sm:$0xff]  ;;  %v1003_v57 = vmul.f32 1.442695, %v911_v34  ;;  %v1763_v51 = vpack.c.bf16 %v9076_v58, %v9058_v32  ;;  %v1546_v19 = vld [vmem:[#allocation2 + $0x48] sm:$0xff] }
 0x163   : > { %v7933_v56 = vpop.eup %7932  ;;  %7952 = vpow2.f32 %v1001_v1  ;;  %6796 = vmatprep.subr.bf16.mxu0 %v7721_v10  ;;  %v912_v1 = vsub.f32 0.0, %v9211_v17  ;;  %v1514_v10 = vld [vmem:[#allocation2 + $0x32] sm:$0xff]  ;;  %v774_v63 = vmul.f32 %v8797_v2, %v9129_v46  ;;  %v7724_v34 = vld [vmem:[#allocation3 + $0x1b8] sm:$0xff]   ;;  %v790_v58 = vmul.f32 %v8797_v2, %v8928_v13 }
 0x164   : > { %v9216_v7 = vpop.eup %7934  ;;  %v9219_v4 = vmul.f32 %v7933_v56, %v9019_v0  ;;  %7954 = vrcp.f32 %v1112_v11  ;;  %v1035_v0 = vmul.f32 1.442695, %v927_v14  ;;  %v9229_v11 = vadd.f32 %v8800_v3, %v788_v31  ;;  %v1515_v56 = vld [vmem:[#allocation2 + $0x3a] sm:$0xff]  ;;  %2367 = vmatprep.mubr.bf16.mxu1 %v1763_v51 }
 0x165   : > { %v7937_v6 = vpop.eup %7936  ;;  %7956 = vrcp.f32 %v1099_v18  ;;  %v9235_v32 = vpack.c.bf16 %v1547_v53, %v1546_v19  ;;  %v1007_v31 = vmul.f32 1.442695, %v913_v37  ;;  %v9238_v46 = vadd.f32 %v8807_v40, %v789_v50  ;;  %v1548_v51 = vld [vmem:[#allocation2 + $0x60] sm:$0xff] }
 0x166   : > { %11509 = vst [vmem:[#allocation56_spill] sm:$0xff] %v9219_v4  ;;  %v7939_v30 = vpop.eup %7938  ;;  %1424 = vst [vmem:[#allocation2 + $0x91] sm:$0xff] %v9219_v4  ;;  %7958 = vpow2.f32 %v1031_v29  ;;  %6797 = vmatpush3.bf16.msra.mxu0 %v7722_v42  ;;  %v1114_v42 = vadd.f32 1.0, %v7937_v6  ;;  %v791_v13 = vmul.f32 %v8804_v39, %v8949_v54  ;;  %v928_v37 = vsub.f32 0.0, %v9229_v11 }
 0x167   : > { %v7941_v18 = vpop.eup %7940  ;;  %7960 = vrcp.f32 %v1098_v21  ;;  %v1115_v44 = vadd.f32 1.0, %v7939_v30  ;;  %11510 = vst [vmem:[#allocation57_spill] sm:$0xff] %v9235_v32  ;;  %6798 = vmatprep.subr.bf16.mxu0 %v7723_v33  ;;  %2520 = vmatprep.mubr.bf16.mxu0 %v9235_v32  ;;  %v9242_v21 = vpack.c.bf16 %v1515_v56, %v1514_v10  ;;  %v1549_v33 = vld [vmem:[#allocation2 + $0x68] sm:$0xff]  ;;  %v9251_v50 = vadd.f32 %v8800_v3, %v774_v63 }
 0x168   : > { %v7943_v29 = vpop.eup %7942  ;;  %v1101_v14 = vadd.f32 1.0, %v7941_v18  ;;  %7962 = vpow2.f32 %v1033_v61  ;;  %2368 = vmatmul.mubr.bf16.gmra.mrb[44].mxu1 %v9235_v32  ;;  %v9256_v6 = vadd.f32 %v8800_v3, %v790_v58  ;;  %v9260_v54 = vadd.f32 %v8807_v40, %v791_v13 }
 0x169   : > { %v7945_v59 = vpop.eup %7944  ;;  %7964 = vrcp.f32 %v1115_v44  ;;  %11511 = vst [vmem:[#allocation58_spill] sm:$0xff] %v9242_v21  ;;  %2521 = vmatmul.mubr.bf16.gmra.mrb[40].mxu0 %v9242_v21  ;;  %v1100_v30 = vadd.f32 1.0, %v7943_v29  ;;  %v929_v58 = vsub.f32 0.0, %v9238_v46  ;;  %v9268_v63 = vpack.c.bf16 %v1549_v33, %v1548_v51  ;;  %v1516_v29 = vld [vmem:[#allocation2 + $0x4a] sm:$0xff]  ;;  %v1517_v33 = vld [vmem:[#allocation2 + $0x52] sm:$0xff] }
 0x16a   : > { %v7947_v53 = vpop.eup %7946  ;;  %v9247_v61 = vmul.f32 %v7945_v59, %v9040_v15  ;;  %7966 = vrcp.f32 %v1101_v14  ;;  %6799 = vmatpush3.bf16.msra.mxu0 %v7724_v34  ;;  %v793_v15 = vmul.f32 %v8804_v39, %v8961_v20  ;;  %v1772_v59 = vpack.c.bf16 %v9137_v52, %v9119_v28 }
 0x16b   : > { %v9253_v44 = vpop.eup %7948  ;;  %7968 = vpow2.f32 %v1003_v57  ;;  %11513 = vst [vmem:[#allocation60_spill] sm:$0xff] %v9268_v63  ;;  %v1116_v34 = vadd.f32 1.0, %v7947_v53  ;;  %v1005_v20 = vmul.f32 1.442695, %v912_v1  ;;  %v1037_v14 = vmul.f32 1.442695, %v928_v37  ;;  %2528 = vmatprep.mubr.bf16.mxu0 %v9268_v63 }
 0x16c   : > { %11512 = vst [vmem:[#allocation59_spill] sm:$0xff] %v9247_v61  ;;  %v7951_v10 = vpop.eup %7950  ;;  %1425 = vst [vmem:[#allocation2 + $0x99] sm:$0xff] %v9247_v61  ;;  %7970 = vrcp.f32 %v1114_v42  ;;  %2375 = vmatprep.mubr.bf16.mxu1 %v1772_v59  ;;  %v914_v13 = vsub.f32 0.0, %v9251_v50  ;;  %v792_v57 = vmul.f32 %v8797_v2, %v8957_v12  ;;  %v931_v1 = vsub.f32 0.0, %v9260_v54 }
 0x16d   : > { %v7953_v19 = vpop.eup %7952  ;;  %v9271_v56 = vmul.f32 %v7951_v10, %v9043_v23  ;;  %7972 = vpow2.f32 %v1035_v0  ;;  %v930_v23 = vsub.f32 0.0, %v9256_v6  ;;  %v9283_v0 = vadd.f32 %v8807_v40, %v793_v15 }
 0x16e   : > { %v9273_v18 = vpop.eup %7954  ;;  %7974 = vpow2.f32 %v1007_v31  ;;  %v1102_v12 = vadd.f32 1.0, %v7953_v19  ;;  %v1039_v37 = vmul.f32 1.442695, %v929_v58  ;;  %v9291_v31 = vpack.c.bf16 %v1517_v33, %v1516_v29  ;;  %v1551_v33 = vld [vmem:[#allocation2 + $0x80] sm:$0xff] }
 0x16f   : > { %11514 = vst [vmem:[#allocation61_spill] sm:$0xff] %v9271_v56  ;;  %v7957_v51 = vpop.eup %7956  ;;  %1433 = vst [vmem:[#allocation2 + $0xf9] sm:$0xff] %v9271_v56  ;;  %7976 = vrcp.f32 %v1100_v30  ;;  %v795_v52 = vmul.f32 %v8804_v39, %v8996_v25  ;;  %v9297_v30 = vadd.f32 %v8800_v3, %v792_v57  ;;  %v794_v58 = vmul.f32 %v8797_v2, %v8973_v38 }
 0x170   : > { %v7959_v42 = vpop.eup %7958  ;;  %v9286_v53 = vmul.f32 %v7957_v51, %v9086_v48  ;;  %7978 = vrcp.f32 %v1116_v34  ;;  %2376 = vmatmul.mubr.bf16.gmra.mrb[48].mxu1 %v9268_v63  ;;  %11516 = vst [vmem:[#allocation63_spill] sm:$0xff] %v9291_v31  ;;  %v1009_v48 = vmul.f32 1.442695, %v914_v13  ;;  %v1043_v34 = vmul.f32 1.442695, %v931_v1 }
 0x171   : > { %v9288_v59 = vpop.eup %7960  ;;  %v1117_v10 = vadd.f32 1.0, %v7959_v42  ;;  %7980 = vpow2.f32 %v1005_v20  ;;  %v933_v29 = vsub.f32 0.0, %v9283_v0  ;;  %2529 = vmatmul.mubr.bf16.gmra.mrb[44].mxu0 %v9291_v31  ;;  %v1781_v25 = vpack.c.bf16 %v9183_v27, %v9167_v36  ;;  %v9318_v27 = vpop.f32.mrb[31].mxu1 }
 0x172   : > { %11515 = vst [vmem:[#allocation62_spill] sm:$0xff] %v9286_v53  ;;  %v7963_v15 = vpop.eup %7962  ;;  %1426 = vst [vmem:[#allocation2 + $0xa9] sm:$0xff] %v9286_v53  ;;  %v796_v13 = vmul.f32 %v8797_v2, %v9004_v60  ;;  %v797_v38 = vmul.f32 %v8804_v39, %v9009_v41  ;;  %v1041_v1 = vmul.f32 1.442695, %v930_v23  ;;  %v9316_v42 = vadd.f32 %v8807_v40, %v795_v52 }
 0x173   : > { %v7965_v19 = vpop.eup %7964  ;;  %7982 = vrcp.f32 %v1117_v10  ;;  %2383 = vmatprep.mubr.bf16.mxu1 %v1781_v25  ;;  %v1550_v10 = vld [vmem:[#allocation2 + $0x78] sm:$0xff]  ;;  %11519 = vst [vmem:[#allocation66_spill] sm:$0xff] %v9318_v27  ;;  %v9322_v60 = vadd.f32 %v8800_v3, %v794_v58  ;;  %v1047_v25 = vmul.f32 1.442695, %v933_v29  ;;  %v798_v58 = vmul.f32 %v8797_v2, %v9021_v16 }
 0x174   : > { %v7967_v51 = vpop.eup %7966  ;;  %v9306_v20 = vmul.f32 %v7965_v19, %v9108_v45  ;;  %7984 = vrcp.f32 %v1102_v12  ;;  %v1118_v12 = vadd.f32 1.0, %v7963_v15  ;;  %v9324_v41 = vpack.c.bf16 %v1551_v33, %v1550_v10 }
 0x175   : > { %v9313_v57 = vmul.f32 %v7967_v51, %v9123_v47  ;;  %7986 = vpow2.f32 %v1039_v37  ;;  %v7969_v45 = vpop.eup %7968  ;;  %v1518_v47 = vld [vmem:[#allocation2 + $0x62] sm:$0xff]  ;;  %v1519_v37 = vld [vmem:[#allocation2 + $0x6a] sm:$0xff]  ;;  %v932_v19 = vsub.f32 0.0, %v9297_v30  ;;  %v9334_v15 = vadd.f32 %v8807_v40, %v797_v38 }
 0x176   : > { %11517 = vst [vmem:[#allocation64_spill] sm:$0xff] %v9306_v20  ;;  %1434 = vst [vmem:[#allocation2 + $0x109] sm:$0xff] %v9306_v20  ;;  %7988 = vpow2.f32 %v1037_v14  ;;  %v9326_v23 = vpop.eup %7970  ;;  %v1103_v52 = vadd.f32 1.0, %v7969_v45  ;;  %v9331_v14 = vadd.f32 %v8800_v3, %v796_v13  ;;  %2536 = vmatprep.mubr.bf16.mxu0 %v9324_v41  ;;  %v9341_v29 = vpack.c.bf16 %v1519_v37, %v1518_v47 }
 0x177   : > { %11518 = vst [vmem:[#allocation65_spill] sm:$0xff] %v9313_v57  ;;  %11520 = vst [vmem:[#allocation67_spill] sm:$0xff] %v9324_v41  ;;  %7990 = vpow2.f32 %v1043_v34  ;;  %v7973_v51 = vpop.eup %7972  ;;  %v935_v34 = vsub.f32 0.0, %v9316_v42  ;;  %v934_v38 = vsub.f32 0.0, %v9322_v60  ;;  %v799_v16 = vmul.f32 %v8804_v39, %v9045_v24  ;;  %v11524_v24 = vld [vmem:[#allocation36_spill] sm:$0xff] }
 0x178   : > { %1427 = vst [vmem:[#allocation2 + $0xb1] sm:$0xff] %v9313_v57  ;;  %7992 = vpow2.f32 %v1009_v48  ;;  %v7975_v33 = vpop.eup %7974  ;;  %v1119_v10 = vadd.f32 1.0, %v7973_v51  ;;  %2384 = vmatmul.mubr.bf16.gmra.mrb[52].mxu1 %v9324_v41  ;;  %11521 = vst [vmem:[#allocation68_spill] sm:$0xff] %v9341_v29  ;;  %v11522_v51 = vld [vmem:[#allocation33_spill] sm:$0xff]  ;;  %v1790_v47 = vpack.c.bf16 %v9247_v61, %v9219_v4  ;;  %v801_v28 = vmul.f32 %v8804_v39, %v11524_v24 }
 0x179   : > { %7994 = vrcp.f32 %v1103_v52  ;;  %v9343_v48 = vpop.eup %7976  ;;  %v1105_v13 = vadd.f32 1.0, %v7975_v33  ;;  %v1045_v52 = vmul.f32 1.442695, %v932_v19  ;;  %2537 = vmatmul.mubr.bf16.gmra.mrb[48].mxu0 %v9341_v29  ;;  %v800_v36 = vmul.f32 %v8797_v2, %v11522_v51  ;;  %v1552_v4 = vld [vmem:[#allocation2 + $0x90] sm:$0xff] }
 0x17a   : > { %7996 = vrcp.f32 %v1118_v12  ;;  %v9348_v45 = vpop.eup %7978  ;;  %v936_v12 = vsub.f32 0.0, %v9331_v14  ;;  %v9357_v33 = vadd.f32 %v8800_v3, %v798_v58  ;;  %v1051_v41 = vmul.f32 1.442695, %v935_v34  ;;  %2391 = vmatprep.mubr.bf16.mxu1 %v1790_v47  ;;  %v1521_v47 = vld [vmem:[#allocation2 + $0x82] sm:$0xff] }
 0x17b   : > { %7998 = vrcp.f32 %v1119_v10  ;;  %v7981_v37 = vpop.eup %7980  ;;  %v1553_v10 = vld [vmem:[#allocation2 + $0x98] sm:$0xff]  ;;  %v937_v63 = vsub.f32 0.0, %v9334_v15  ;;  %v9363_v51 = vadd.f32 %v8807_v40, %v799_v16  ;;  %v1049_v58 = vmul.f32 1.442695, %v934_v38 }
 0x17c   : > { %8000 = vrcp.f32 %v1105_v13  ;;  %11523 = vst [vmem:[#allocation33_spill] sm:$0xff] %v9357_v33  ;;  %v1104_v24 = vadd.f32 1.0, %v7981_v37  ;;  %v9371_v32 = vadd.f32 %v8800_v3, %v800_v36  ;;  %v9375_v31 = vpack.c.bf16 %v1553_v10, %v1552_v4  ;;  %v1520_v16 = vld [vmem:[#allocation2 + $0x7a] sm:$0xff] }
 0x17d   : > { %v7983_v19 = vpop.eup %7982  ;;  %8002 = vpow2.f32 %v1047_v25  ;;  %v11526_v25 = vld [vmem:[#allocation37_spill] sm:$0xff]  ;;  %v9380_v38 = vadd.f32 %v8807_v40, %v801_v28  ;;  %v1055_v27 = vmul.f32 1.442695, %v937_v63  ;;  %v939_v4 = vsub.f32 0.0, %v9363_v51 }
 0x17e   : > { %v9365_v61 = vpop.eup %7984  ;;  %v9368_v13 = vmul.f32 %v7983_v19, %v9174_v22  ;;  %8004 = vpow2.f32 %v1041_v1  ;;  %v802_v34 = vmul.f32 %v8797_v2, %v11526_v25  ;;  %11527 = vst [vmem:[#allocation37_spill] sm:$0xff] %v9375_v31  ;;  %v938_v1 = vsub.f32 0.0, %v9357_v33  ;;  %2544 = vmatprep.mubr.bf16.mxu0 %v9375_v31  ;;  %v1554_v25 = vld [vmem:[#allocation2 + $0xa8] sm:$0xff] }
 0x17f   : > { %v7987_v29 = vpop.eup %7986  ;;  %8006 = vpow2.f32 %v1045_v52  ;;  %v1555_v37 = vld [vmem:[#allocation2 + $0xb0] sm:$0xff]  ;;  %v1053_v19 = vmul.f32 1.442695, %v936_v12  ;;  %v9385_v52 = vpack.c.bf16 %v1521_v47, %v1520_v16  ;;  %v1799_v28 = vpack.c.bf16 %v9313_v57, %v9286_v53 }
 0x180   : > { %11525 = vst [vmem:[#allocation36_spill] sm:$0xff] %v9368_v13  ;;  %v7989_v21 = vpop.eup %7988  ;;  %1435 = vst [vmem:[#allocation2 + $0x111] sm:$0xff] %v9368_v13  ;;  %v1121_v22 = vadd.f32 1.0, %v7987_v29  ;;  %8008 = vpow2.f32 %v1051_v41  ;;  %2392 = vmatmul.mubr.bf16.gmra.mrb[56].mxu1 %v9375_v31  ;;  %v940_v41 = vsub.f32 0.0, %v9371_v32  ;;  %v9391_v63 = vadd.f32 %v8800_v3, %v802_v34 }
 0x181   : > { %v7991_v36 = vpop.eup %7990  ;;  %v9393_v12 = vpack.c.bf16 %v1555_v37, %v1554_v25  ;;  %v1057_v16 = vmul.f32 1.442695, %v938_v1  ;;  %v941_v47 = vsub.f32 0.0, %v9380_v38  ;;  %2545 = vmatmul.mubr.bf16.gmra.mrb[52].mxu0 %v9385_v52  ;;  %2399 = vmatprep.mubr.bf16.mxu1 %v1799_v28  ;;  %v1523_v25 = vld [vmem:[#allocation2 + $0x9a] sm:$0xff] }
 0x182   : > { %v7993_v10 = vpop.eup %7992  ;;  %8010 = vrcp.f32 %v1121_v22  ;;  %v1123_v29 = vadd.f32 1.0, %v7991_v36  ;;  %v1059_v36 = vmul.f32 1.442695, %v939_v4  ;;  %v1061_v28 = vmul.f32 1.442695, %v940_v41  ;;  %v1522_v4 = vld [vmem:[#allocation2 + $0x92] sm:$0xff] }
 0x183   : > { %v7995_v2 = vpop.eup %7994  ;;  %8012 = vrcp.f32 %v1104_v24  ;;  %11528 = vst [vmem:[#allocation69_spill] sm:$0xff] %v9393_v12  ;;  %2552 = vmatprep.mubr.bf16.mxu0 %v9393_v12 }
 0x184   : > { %v9395_v33 = vpop.eup %7996  ;;  %v9398_v22 = vmul.f32 %v7995_v2, %v9194_v35  ;;  %8014 = vrcp.f32 %v1123_v29  ;;  %v11530_v2 = vld [vmem:[#allocation43_spill] sm:$0xff] }
 0x185   : > { %v7999_v24 = vpop.eup %7998  ;;  %8016 = vpow2.f32 %v1049_v58  ;;  %v803_v35 = vmul.f32 %v8804_v39, %v11530_v2  ;;  %v942_v58 = vsub.f32 0.0, %v9391_v63  ;;  %v9423_v2 = vpack.c.bf16 %v1523_v25, %v1522_v4  ;;  %v1496_v25 = vld [vmem:[#allocation2 + $0xd9] sm:$0xff] }
 0x186   : > { %11529 = vst [vmem:[#allocation70_spill] sm:$0xff] %v9398_v22  ;;  %v8001_v34 = vpop.eup %8000  ;;  %1428 = vst [vmem:[#allocation2 + $0xc1] sm:$0xff] %v9398_v22  ;;  %v9405_v37 = vmul.f32 %v7999_v24, %v9203_v26  ;;  %8018 = vpow2.f32 %v1053_v19  ;;  %v1063_v26 = vmul.f32 1.442695, %v941_v47  ;;  %v1120_v24 = vadd.f32 1.0, %v7989_v21 }
 0x187   : > { %v8003_v1 = vpop.eup %8002  ;;  %v9410_v29 = vmul.f32 %v8001_v34, %v9207_v49  ;;  %8020 = vpow2.f32 %v1055_v27  ;;  %v9415_v19 = vadd.f32 %v8807_v40, %v803_v35  ;;  %v11532_v49 = vld [vmem:[#allocation47_spill] sm:$0xff]  ;;  %v1065_v35 = vmul.f32 1.442695, %v942_v58 }
 0x188   : > { %v8005_v57 = vpop.eup %8004  ;;  %1436 = vst [vmem:[#allocation2 + $0x121] sm:$0xff] %v9405_v37  ;;  %v1125_v53 = vadd.f32 1.0, %v8003_v1  ;;  %8022 = vpow2.f32 %v1057_v16  ;;  %2400 = vmatmul.mubr.bf16.gmra.mrb[60].mxu1 %v9393_v12  ;;  %v805_v41 = vmul.f32 %v8804_v39, %v11532_v49  ;;  %11533 = vst [vmem:[#allocation47_spill] sm:$0xff] %v9423_v2 }
 0x189   : > { %11531 = vst [vmem:[#allocation43_spill] sm:$0xff] %v9410_v29  ;;  %1429 = vst [vmem:[#allocation2 + $0xc9] sm:$0xff] %v9410_v29  ;;  %8024 = vpow2.f32 %v1059_v36  ;;  %v1808_v27 = vpack.c.bf16 %v9410_v29, %v9398_v22  ;;  %v8007_v34 = vpop.eup %8006  ;;  %v943_v16 = vsub.f32 0.0, %v9415_v19  ;;  %2553 = vmatmul.mubr.bf16.gmra.mrb[56].mxu0 %v9423_v2  ;;  %v1559_v22 = vld [vmem:[#allocation2 + $0xe0] sm:$0xff] }
 0x18a   : > { %8026 = vrcp.f32 %v1125_v53  ;;  %v8009_v47 = vpop.eup %8008  ;;  %v9427_v21 = vadd.f32 %v8807_v40, %v805_v41  ;;  %v1106_v53 = vadd.f32 1.0, %v7993_v10  ;;  %v1558_v40 = vld [vmem:[#allocation2 + $0xd8] sm:$0xff]  ;;  %v1524_v41 = vld [vmem:[#allocation2 + $0xaa] sm:$0xff]  ;;  %v1497_v10 = vld [vmem:[#allocation2 + $0xe1] sm:$0xff]  ;;  %v1124_v12 = vadd.f32 1.0, %v8007_v34 }
 0x18b   : > { %8028 = vpow2.f32 %v1061_v28  ;;  %2407 = vmatprep.mubr.bf16.mxu1 %v1808_v27  ;;  %v1127_v1 = vadd.f32 1.0, %v8009_v47  ;;  %v1067_v29 = vmul.f32 1.442695, %v943_v16 }
 0x18c   : > { %v8011_v36 = vpop.eup %8010  ;;  %8030 = vpow2.f32 %v1063_v26  ;;  %v945_v28 = vsub.f32 0.0, %v9427_v21  ;;  %v1122_v26 = vadd.f32 1.0, %v8005_v57 }
 0x18d   : > { %v9430_v39 = vpop.eup %8012  ;;  %8032 = vrcp.f32 %v1120_v24  ;;  %v9433_v4 = vmul.f32 %v8011_v36, %v9238_v46  ;;  %v1525_v24 = vld [vmem:[#allocation2 + $0xb2] sm:$0xff]  ;;  %v1556_v47 = vld [vmem:[#allocation2 + $0xc0] sm:$0xff] }
 0x18e   : > { %v8015_v58 = vpop.eup %8014  ;;  %8034 = vrcp.f32 %v1127_v1  ;;  %v1071_v16 = vmul.f32 1.442695, %v945_v28 }
 0x18f   : > { %v8017_v27 = vpop.eup %8016  ;;  %1437 = vst [vmem:[#allocation2 + $0x129] sm:$0xff] %v9433_v4  ;;  %v9438_v49 = vmul.f32 %v8015_v58, %v9260_v54  ;;  %8036 = vpow2.f32 %v1065_v35  ;;  %v9443_v58 = vpack.c.bf16 %v1525_v24, %v1524_v41  ;;  %v9445_v35 = vpack.c.bf16 %v1497_v10, %v1496_v25 }
 0x190   : > { %v8019_v46 = vpop.eup %8018  ;;  %v1557_v36 = vld [vmem:[#allocation2 + $0xc8] sm:$0xff]  ;;  %8038 = vpow2.f32 %v1067_v29  ;;  %v1126_v2 = vadd.f32 1.0, %v8017_v27  ;;  %v9449_v29 = vpack.c.bf16 %v1559_v22, %v1558_v40 }
 0x191   : > { %11534 = vst [vmem:[#allocation71_spill] sm:$0xff] %v9438_v49  ;;  %v8021_v1 = vpop.eup %8020  ;;  %8040 = vrcp.f32 %v1106_v53  ;;  %1438 = vst [vmem:[#allocation2 + $0x139] sm:$0xff] %v9438_v49  ;;  %v9441_v31 = vpack.c.bf16 %v1557_v36, %v1556_v47  ;;  %v1128_v34 = vadd.f32 1.0, %v8019_v46  ;;  %v1526_v10 = vld [vmem:[#allocation2 + $0xc2] sm:$0xff]  ;;  %v1561_v36 = vld [vmem:[#allocation2 + $0xf8] sm:$0xff] }
 0x192   : > { %v8023_v57 = vpop.eup %8022  ;;  %v1129_v54 = vadd.f32 1.0, %v8021_v1  ;;  %11536 = vst [vmem:[#allocation73_spill] sm:$0xff] %v9445_v35  ;;  %8042 = vpow2.f32 %v1071_v16  ;;  %11537 = vst [vmem:[#allocation74_spill] sm:$0xff] %v9449_v29  ;;  %v1527_v16 = vld [vmem:[#allocation2 + $0xca] sm:$0xff] }
 0x193   : > { %11535 = vst [vmem:[#allocation72_spill] sm:$0xff] %v9441_v31  ;;  %v8025_v28 = vpop.eup %8024  ;;  %8044 = vrcp.f32 %v1122_v26  ;;  %2560 = vmatprep.mubr.bf16.mxu0 %v9441_v31  ;;  %2408 = vmatmul.mubr.bf16.gmra.mrb[64].mxu1 %v9441_v31  ;;  %v1130_v26 = vadd.f32 1.0, %v8023_v57  ;;  %v11556_v31 = vld [vmem:[#allocation41_spill] sm:$0xff] }
 0x194   : > { %v8027_v53 = vpop.eup %8026  ;;  %8046 = vrcp.f32 %v1129_v54  ;;  %v1131_v47 = vadd.f32 1.0, %v8025_v28  ;;  %2561 = vmatmul.mubr.bf16.gmra.mrb[60].mxu0 %v9443_v58  ;;  %2415 = vmatprep.mubr.bf16.mxu1 %v9445_v35  ;;  %v9463_v28 = vpack.c.bf16 %v1527_v16, %v1526_v10  ;;  %v11545_v10 = vld [vmem:[#allocation26_spill] sm:$0xff] }
 0x195   : > { %v8029_v25 = vpop.eup %8028  ;;  %8048 = vrcp.f32 %v1124_v12  ;;  %v9454_v41 = vmul.f32 %v8027_v53, %v9283_v0  ;;  %2568 = vmatprep.mubr.bf16.mxu0 %v9449_v29  ;;  %v1560_v12 = vld [vmem:[#allocation2 + $0xf0] sm:$0xff] }
 0x196   : > { %v8031_v27 = vpop.eup %8030  ;;  %8050 = vrcp.f32 %v1131_v47  ;;  %v1132_v40 = vadd.f32 1.0, %v8029_v25  ;;  %11540 = vst [vmem:[#allocation77_spill] sm:$0xff] %v9463_v28  ;;  %v11541_v25 = vld [vmem:[#allocation10_spill] sm:$0xff] }
 0x197   : > { %11538 = vst [vmem:[#allocation75_spill] sm:$0xff] %v9454_v41  ;;  %v9457_v22 = vpop.eup %8032  ;;  %1439 = vst [vmem:[#allocation2 + $0x141] sm:$0xff] %v9454_v41  ;;  %8052 = vrcp.f32 %v1126_v2  ;;  %v1133_v24 = vadd.f32 1.0, %v8031_v27  ;;  %v1826_v2 = vpack.c.bf16 %v9271_v56, %v9188_v43  ;;  %v11542_v27 = vld [vmem:[#allocation22_spill] sm:$0xff]  ;;  %v11552_v43 = vld [vmem:[#allocation16_spill] sm:$0xff] }
 0x198   : > { %v8035_v46 = vpop.eup %8034  ;;  %8054 = vrcp.f32 %v1128_v34  ;;  %v9471_v34 = vpack.c.bf16 %v1561_v36, %v1560_v12  ;;  %v1529_v12 = vld [vmem:[#allocation2 + $0xe2] sm:$0xff] }
 0x199   : > { %v8037_v0 = vpop.eup %8036  ;;  %v9461_v1 = vmul.f32 %v8035_v46, %v9316_v42  ;;  %8056 = vrcp.f32 %v1133_v24  ;;  %v11544_v24 = vld [vmem:[#allocation12_spill] sm:$0xff] }
 0x19a   : > { %v8039_v57 = vpop.eup %8038  ;;  %8058 = vrcp.f32 %v1130_v26  ;;  %v1134_v54 = vadd.f32 1.0, %v8037_v0  ;;  %v9476_v26 = vmul.f32 %v11542_v27, %v11541_v25  ;;  %v9480_v16 = vmul.f32 %v11545_v10, %v11544_v24  ;;  %v6464_v0 = vpop.f32.mrb[32].mxu1  ;;  %v11549_v27 = vld [vmem:[#allocation14_spill] sm:$0xff]  ;;  %v11550_v24 = vld [vmem:[#allocation28_spill] sm:$0xff] }
 0x19b   : > { %11539 = vst [vmem:[#allocation76_spill] sm:$0xff] %v9461_v1  ;;  %v9467_v53 = vpop.eup %8040  ;;  %1440 = vst [vmem:[#allocation2 + $0x151] sm:$0xff] %v9461_v1  ;;  %8060 = vrcp.f32 %v1132_v40  ;;  %2416 = vmatmul.mubr.bf16.gmra.mrb[68].mxu1 %v9449_v29  ;;  %v1135_v42 = vadd.f32 1.0, %v8039_v57  ;;  %v1528_v40 = vld [vmem:[#allocation2 + $0xda] sm:$0xff]  ;;  %v9493_v10 = vmul.f32 %v11550_v24, %v11549_v27  ;;  %v1563_v27 = vld [vmem:[#allocation2 + $0x110] sm:$0xff] }
 0x19c   : > { %v8043_v47 = vpop.eup %8042  ;;  %8062 = vrcp.f32 %v1134_v54  ;;  %2569 = vmatmul.mubr.bf16.gmra.mrb[64].mxu0 %v9463_v28  ;;  %2423 = vmatprep.mubr.bf16.mxu1 %v1826_v2  ;;  %11543 = vst [vmem:[#allocation10_spill] sm:$0xff] %v9476_v26  ;;  %11546 = vst [vmem:[#allocation22_spill] sm:$0xff] %v9480_v16  ;;  %v11547_v57 = vld [vmem:[#allocation15_spill] sm:$0xff]  ;;  %v11548_v54 = vld [vmem:[#allocation34_spill] sm:$0xff]  ;;  %v9508_v25 = vpack.c.bf16 %v1529_v12, %v1528_v40 }
 0x19d   : > { %v9482_v46 = vpop.eup %8044  ;;  %2576 = vmatprep.mubr.bf16.mxu0 %v9471_v34  ;;  %8064 = vrcp.f32 %v1135_v42  ;;  %v1137_v36 = vadd.f32 1.0, %v8043_v47  ;;  %v9487_v2 = vmul.f32 %v11548_v54, %v11547_v57  ;;  %11551 = vst [vmem:[#allocation12_spill] sm:$0xff] %v9493_v10  ;;  %v11553_v29 = vld [vmem:[#allocation38_spill] sm:$0xff]  ;;  %v11555_v42 = vld [vmem:[#allocation17_spill] sm:$0xff]  ;;  %v1562_v26 = vld [vmem:[#allocation2 + $0x108] sm:$0xff] }
 0x19e   : > { %v8047_v56 = vpop.eup %8046  ;;  %v9497_v35 = vmul.f32 %v11553_v29, %v11552_v43  ;;  %v9501_v47 = vmul.f32 %v11556_v31, %v11555_v42  ;;  %v11560_v40 = vld [vmem:[#allocation48_spill] sm:$0xff]  ;;  %v11562_v42 = vld [vmem:[#allocation50_spill] sm:$0xff] }
 0x19f   : > { %v9503_v28 = vpop.eup %8048  ;;  %v9506_v57 = vmul.f32 %v8047_v56, %v9334_v15  ;;  %8066 = vrcp.f32 %v1137_v36  ;;  %v1835_v56 = vpack.c.bf16 %v9368_v13, %v9306_v20  ;;  %v11559_v15 = vld [vmem:[#allocation18_spill] sm:$0xff]  ;;  %v11561_v36 = vld [vmem:[#allocation19_spill] sm:$0xff]  ;;  %v11563_v10 = vld [vmem:[#allocation24_spill] sm:$0xff] }
 0x1a0   : > { %11554 = vst [vmem:[#allocation26_spill] sm:$0xff] %v9497_v35  ;;  %v8051_v54 = vpop.eup %8050  ;;  %v9522_v12 = vmul.f32 %v11560_v40, %v11559_v15  ;;  %v9526_v16 = vmul.f32 %v11562_v42, %v11561_v36  ;;  %v9530_v43 = vmul.f32 %v9198_v62, %v11563_v10  ;;  %v11564_v35 = vld [vmem:[#allocation25_spill] sm:$0xff]  ;;  %v11567_v20 = vld [vmem:[#allocation32_spill] sm:$0xff]  ;;  %v9546_v36 = vpack.c.bf16 %v1563_v27, %v1562_v26  ;;  %v6465_v26 = vpop.f32.mrb[33].mxu1 }
 0x1a1   : > { %11557 = vst [vmem:[#allocation15_spill] sm:$0xff] %v9506_v57  ;;  %v8053_v29 = vpop.eup %8052  ;;  %1441 = vst [vmem:[#allocation2 + $0x159] sm:$0xff] %v9506_v57  ;;  %v9516_v31 = vmul.f32 %v8051_v54, %v9363_v51  ;;  %v9534_v51 = vmul.f32 %v9216_v7, %v11564_v35  ;;  %v11565_v54 = vld [vmem:[#allocation30_spill] sm:$0xff]  ;;  %v9542_v15 = vmul.f32 %v9288_v59, %v11567_v20  ;;  %v11578_v62 = vld [vmem:[#allocation13_spill] sm:$0xff] }
 0x1a2   : > { %v8055_v24 = vpop.eup %8054  ;;  %v9538_v13 = vmul.f32 %v9253_v44, %v11565_v54  ;;  %v11569_v7 = vld [vmem:[#allocation42_spill] sm:$0xff]  ;;  %v9556_v44 = vmul.f32 %v9365_v61, %v9164_v9  ;;  %v9567_v42 = vadd.f32 %v6465_v26, %v6464_v0  ;;  %v6467_v9 = vpop.f32.mrb[34].mxu1  ;;  %v11575_v0 = vld [vmem:[#allocation11_spill] sm:$0xff]  ;;  %v11576_v26 = vld [vmem:[#allocation45_spill] sm:$0xff]  ;;  %v9586_v61 = vmul.f32 %v9159_v55, %v11578_v62 }
 0x1a3   : > { %11558 = vst [vmem:[#allocation34_spill] sm:$0xff] %v9516_v31  ;;  %11568 = vst [vmem:[#allocation28_spill] sm:$0xff] %v9542_v15  ;;  %v8057_v40 = vpop.eup %8056  ;;  %2424 = vmatmul.mubr.bf16.gmra.mrb[72].mxu1 %v9471_v34  ;;  %v9552_v35 = vmul.f32 %v9343_v48, %v11569_v7  ;;  %v1531_v7 = vld [vmem:[#allocation2 + $0xfa] sm:$0xff]  ;;  %v6468_v27 = vpop.f32.mrb[35].mxu1  ;;  %v9582_v10 = vmul.f32 %v11576_v26, %v11575_v0  ;;  %v11582_v15 = vld [vmem:[#allocation40_spill] sm:$0xff]  ;;  %v9611_v62 = vmul.f32 %v9395_v33, %v9177_v8 }
 0x1a4   : > { %11566 = vst [vmem:[#allocation14_spill] sm:$0xff] %v9538_v13  ;;  %1442 = vst [vmem:[#allocation2 + $0x169] sm:$0xff] %v9516_v31  ;;  %v8059_v59 = vpop.eup %8058  ;;  %v9559_v20 = vmul.f32 %v8057_v40, %v9380_v38  ;;  %2577 = vmatmul.mubr.bf16.gmra.mrb[68].mxu0 %v9508_v25  ;;  %2431 = vmatprep.mubr.bf16.mxu1 %v1835_v56  ;;  %v9573_v38 = vmul.f32 %v9430_v39, %v9211_v17  ;;  %v1530_v40 = vld [vmem:[#allocation2 + $0xf2] sm:$0xff]  ;;  %v11580_v17 = vld [vmem:[#allocation20_spill] sm:$0xff] }
 0x1a5   : > { %11570 = vst [vmem:[#allocation16_spill] sm:$0xff] %v9552_v35  ;;  %11571 = vst [vmem:[#allocation38_spill] sm:$0xff] %v9556_v44  ;;  %v8061_v48 = vpop.eup %8060  ;;  %2584 = vmatprep.mubr.bf16.mxu0 %v9546_v36  ;;  %v9577_v56 = vmul.f32 %v9467_v53, %v9251_v50  ;;  %v9590_v39 = vmul.f32 %v9273_v18, %v11580_v17  ;;  %v1564_v53 = vld [vmem:[#allocation2 + $0x120] sm:$0xff]  ;;  %v1565_v35 = vld [vmem:[#allocation2 + $0x128] sm:$0xff]  ;;  %v9592_v44 = vadd.f32 %v6468_v27, %v6467_v9 }
 0x1a6   : > { %11572 = vst [vmem:[#allocation17_spill] sm:$0xff] %v9559_v20  ;;  %11573 = vst [vmem:[#allocation41_spill] sm:$0xff] %v9573_v38  ;;  %v8063_v54 = vpop.eup %8062  ;;  %v9598_v0 = vmul.f32 %v9326_v23, %v11582_v15  ;;  %v9607_v18 = vmul.f32 %v9348_v45, %v9141_v5  ;;  %v9613_v9 = vpack.c.bf16 %v1531_v7, %v1530_v40  ;;  %v1534_v7 = vld [vmem:[#allocation2 + $0x122] sm:$0xff]  ;;  %v1535_v17 = vld [vmem:[#allocation2 + $0x12a] sm:$0xff] }
 0x1a7   : > { %11574 = vst [vmem:[#allocation18_spill] sm:$0xff] %v9577_v56  ;;  %1443 = vst [vmem:[#allocation2 + $0x171] sm:$0xff] %v9559_v20  ;;  %v8065_v50 = vpop.eup %8064  ;;  %v1844_v5 = vpack.c.bf16 %v9433_v4, %v9405_v37  ;;  %v9627_v8 = vpack.c.bf16 %v1565_v35, %v1564_v53  ;;  %v9634_v33 = vmul.f32 %v9482_v46, %v9256_v6  ;;  %v11593_v35 = vld [vmem:[#allocation33_spill] sm:$0xff]  ;;  %v1537_v46 = vld [vmem:[#allocation2 + $0x142] sm:$0xff] }
 0x1a8   : > { %11577 = vst [vmem:[#allocation48_spill] sm:$0xff] %v9582_v10  ;;  %11579 = vst [vmem:[#allocation19_spill] sm:$0xff] %v9586_v61  ;;  %v9601_v26 = vmul.f32 %v8065_v50, %v9415_v19  ;;  %v9619_v19 = vmul.f32 %v9457_v22, %v9229_v11  ;;  %v9638_v11 = vmul.f32 %v9503_v28, %v9297_v30  ;;  %v1568_v50 = vld [vmem:[#allocation2 + $0x150] sm:$0xff]  ;;  %v1569_v53 = vld [vmem:[#allocation2 + $0x158] sm:$0xff] }
 0x1a9   : > { %11581 = vst [vmem:[#allocation50_spill] sm:$0xff] %v9590_v39  ;;  %11583 = vst [vmem:[#allocation24_spill] sm:$0xff] %v9598_v0  ;;  %v8067_v27 = vpop.eup %8066  ;;  %v9644_v22 = vmul.f32 %v8055_v24, %v9331_v14  ;;  %v9649_v40 = vmul.f32 %v8059_v59, %v11593_v35  ;;  %v9652_v6 = vmul.f32 %v8061_v48, %v9371_v32  ;;  %v1532_v24 = vld [vmem:[#allocation2 + $0x10a] sm:$0xff]  ;;  %v1533_v32 = vld [vmem:[#allocation2 + $0x112] sm:$0xff] }
 0x1aa   : > { %11584 = vst [vmem:[#allocation25_spill] sm:$0xff] %v9601_v26  ;;  %11585 = vst [vmem:[#allocation30_spill] sm:$0xff] %v9607_v18  ;;  %v9623_v15 = vmul.f32 %v8067_v27, %v9427_v21  ;;  %v9641_v21 = vmul.f32 %v8053_v29, %v9322_v60  ;;  %v9655_v30 = vmul.f32 %v8063_v54, %v9391_v63  ;;  %v1566_v29 = vld [vmem:[#allocation2 + $0x138] sm:$0xff]  ;;  %v1567_v59 = vld [vmem:[#allocation2 + $0x140] sm:$0xff] }
 0x1ab   : > { %11586 = vst [vmem:[#allocation32_spill] sm:$0xff] %v9611_v62  ;;  %11587 = vst [vmem:[#allocation42_spill] sm:$0xff] %v9619_v19  ;;  %2432 = vmatmul.mubr.bf16.gmra.mrb[76].mxu1 %v9546_v36  ;;  %v9666_v63 = vpack.c.bf16 %v1533_v32, %v1532_v24  ;;  %v1853_v48 = vpack.c.bf16 %v9454_v41, %v9438_v49  ;;  %v9671_v54 = vpack.c.bf16 %v1567_v59, %v1566_v29  ;;  %v11597_v35 = vld [vmem:[#allocation44_spill] sm:$0xff]  ;;  %v11598_v24 = vld [vmem:[#allocation9_spill] sm:$0xff] }
 0x1ac   : > { %1444 = vst [vmem:[#allocation2 + $0x181] sm:$0xff] %v9601_v26  ;;  %11588 = vst [vmem:[#allocation11_spill] sm:$0xff] %v9623_v15  ;;  %2585 = vmatmul.mubr.bf16.gmra.mrb[72].mxu0 %v9613_v9  ;;  %2439 = vmatprep.mubr.bf16.mxu1 %v1844_v5  ;;  %v9675_v27 = vpack.c.bf16 %v1535_v17, %v1534_v7  ;;  %v1862_v5 = vpack.c.bf16 %v9506_v57, %v9461_v1  ;;  %v11599_v59 = vld [vmem:[#allocation66_spill] sm:$0xff]  ;;  %v1570_v28 = vld [vmem:[#allocation2 + $0x168] sm:$0xff] }
 0x1ad   : > { %11589 = vst [vmem:[#allocation45_spill] sm:$0xff] %v9634_v33  ;;  %11590 = vst [vmem:[#allocation13_spill] sm:$0xff] %v9638_v11  ;;  %2592 = vmatprep.mubr.bf16.mxu0 %v9627_v8  ;;  %v804_v32 = vmul.f32 %v11598_v24, %v11597_v35  ;;  %v9682_v29 = vpack.c.bf16 %v1569_v53, %v1568_v50  ;;  %v1536_v17 = vld [vmem:[#allocation2 + $0x13a] sm:$0xff]  ;;  %v1871_v53 = vpack.c.bf16 %v9559_v20, %v9516_v31  ;;  %v1714_v19 = vld [vmem:[#allocation2 + $0xb2] sm:$0xff] }
 0x1ae   : > { %11591 = vst [vmem:[#allocation20_spill] sm:$0xff] %v9641_v21  ;;  %11592 = vst [vmem:[#allocation40_spill] sm:$0xff] %v9644_v22  ;;  %v1571_v14 = vld [vmem:[#allocation2 + $0x170] sm:$0xff]  ;;  %v9694_v50 = vpack.c.bf16 %v1537_v46, %v1536_v17  ;;  %v1539_v17 = vld [vmem:[#allocation2 + $0x15a] sm:$0xff] }
 0x1af   : > { %1445 = vst [vmem:[#allocation2 + $0x189] sm:$0xff] %v9623_v15  ;;  %11594 = vst [vmem:[#allocation33_spill] sm:$0xff] %v9649_v40  ;;  %v9689_v7 = vadd.f32 %v8800_v3, %v804_v32  ;;  %v1574_v55 = vld [vmem:[#allocation2 + $0x19] sm:$0xff]  ;;  %v1713_v21 = vld [vmem:[#allocation2 + $0xaa] sm:$0xff] }
 0x1b0   : > { %11595 = vst [vmem:[#allocation78_spill] sm:$0xff] %v9652_v6  ;;  %11596 = vst [vmem:[#allocation79_spill] sm:$0xff] %v9655_v30  ;;  %v1672_v13 = vld [vmem:[#allocation2 + $0x39] sm:$0xff]  ;;  %v1723_v20 = vld [vmem:[#allocation2 + $0x122] sm:$0xff] }
 0x1b1   : > { %v7726_v6 = vld [vmem:[#allocation3 + $0x210] sm:$0xff]   ;;  %v1640_v22 = vld [vmem:[#allocation2 + $0x38] sm:$0xff] }
 0x1b2   : > { %v7729_v11 = vld [vmem:[#allocation3 + $0x228] sm:$0xff]   ;;  %v7736_v57 = vld [vmem:[#allocation3 + $0x290] sm:$0xff]  }
 0x1b3   : > { %2440 = vmatmul.mubr.bf16.gmra.mrb[80].mxu1 %v9627_v8  ;;  %v1719_v18 = vld [vmem:[#allocation2 + $0xf2] sm:$0xff]  ;;  %v1720_v62 = vld [vmem:[#allocation2 + $0xfa] sm:$0xff] }
 0x1b4   : > { %2593 = vmatmul.mubr.bf16.gmra.mrb[76].mxu0 %v9666_v63  ;;  %2447 = vmatprep.mubr.bf16.mxu1 %v1853_v48  ;;  %v806_v48 = vmul.f32 %v11598_v24, %v11599_v59  ;;  %v9700_v24 = vpack.c.bf16 %v1571_v14, %v1570_v28  ;;  %v11600_v14 = vld [vmem:[#allocation53_spill] sm:$0xff]  ;;  %v1575_v28 = vld [vmem:[#allocation2 + $0x21] sm:$0xff]  ;;  %v7734_v41 = vld [vmem:[#allocation3 + $0x288] sm:$0xff]  }
 0x1b5   : > { %2600 = vmatprep.mubr.bf16.mxu0 %v9671_v54 }
 0x1b6   : > { %v9692_v35 = vadd.f32 %v8800_v3, %v806_v48  ;;  %v1572_v3 = vld [vmem:[#allocation2 + $0x180] sm:$0xff]  ;;  %v1573_v59 = vld [vmem:[#allocation2 + $0x188] sm:$0xff]  ;;  %v1538_v48 = vld [vmem:[#allocation2 + $0x152] sm:$0xff] }
 0x1b7   : > { %v9705_v45 = vpack.c.bf16 %v1573_v59, %v1572_v3  ;;  %v9707_v23 = vpack.c.bf16 %v1539_v17, %v1538_v48  ;;  %v1671_v59 = vld [vmem:[#allocation2 + $0x31] sm:$0xff] }
 0x1b8   : > { %v946_v32 = vsub.f32 0.0, %v9692_v35  ;;  %v7725_v48 = vld [vmem:[#allocation3 + $0x208] sm:$0xff]   ;;  %v8461_v17 = vld [vmem:[#allocation3 + $0x200] sm:$0xff]  }
 0x1ba   : > { %v1073_v60 = vmul.f32 1.442695, %v946_v32  ;;  %v1739_v32 = vpack.c.bf16 %v1575_v28, %v1574_v55  ;;  %v1674_v55 = vld [vmem:[#allocation2 + $0x51] sm:$0xff] }
 0x1bb   : > { %2448 = vmatmul.mubr.bf16.gmra.mrb[84].mxu1 %v9671_v54  ;;  %v1639_v28 = vld [vmem:[#allocation2 + $0x30] sm:$0xff] }
 0x1bc   : > { %2601 = vmatmul.mubr.bf16.gmra.mrb[80].mxu0 %v9675_v27  ;;  %2455 = vmatprep.mubr.bf16.mxu1 %v1862_v5  ;;  %v944_v5 = vsub.f32 0.0, %v9689_v7 }
 0x1bd   : > { %2608 = vmatprep.mubr.bf16.mxu0 %v9682_v29 }
 0x1be   : > { %v1069_v46 = vmul.f32 1.442695, %v944_v5  ;;  %v1541_v5 = vld [vmem:[#allocation2 + $0x172] sm:$0xff] }
 0x1c0   : > { %8068 = vpow2.f32 %v1069_v46  ;;  %v1742_v46 = vpack.c.bf16 %v1672_v13, %v1671_v59  ;;  %v1673_v13 = vld [vmem:[#allocation2 + $0x49] sm:$0xff] }
 0x1c1   : > { %8070 = vpow2.f32 %v1073_v60  ;;  %v11601_v60 = vld [vmem:[#allocation58_spill] sm:$0xff]  ;;  %v1751_v59 = vpack.c.bf16 %v1674_v55, %v1673_v13  ;;  %v7730_v55 = vld [vmem:[#allocation3 + $0x230] sm:$0xff]  }
 0x1c3   : > { %2456 = vmatmul.mubr.bf16.gmra.mrb[88].mxu1 %v9682_v29 }
 0x1c4   : > { %2609 = vmatmul.mubr.bf16.gmra.mrb[84].mxu0 %v9694_v50  ;;  %2463 = vmatprep.mubr.bf16.mxu1 %v1871_v53  ;;  %v1540_v53 = vld [vmem:[#allocation2 + $0x16a] sm:$0xff] }
 0x1c5   : > { %2616 = vmatprep.mubr.bf16.mxu0 %v9700_v24  ;;  %v9713_v3 = vpack.c.bf16 %v1541_v5, %v1540_v53  ;;  %v1741_v5 = vpack.c.bf16 %v1640_v22, %v1639_v28  ;;  %v1678_v28 = vld [vmem:[#allocation2 + $0x81] sm:$0xff] }
 0x1cb   : > { %2464 = vmatmul.mubr.bf16.gmra.mrb[92].mxu1 %v9700_v24 }
 0x1cc   : > { %2617 = vmatmul.mubr.bf16.gmra.mrb[88].mxu0 %v9707_v23  ;;  %2665 = vmatprep.mubr.bf16.mxu1 %v11600_v14  ;;  %v8069_v14 = vpop.eup %8068 }
 0x1cd   : > { %2624 = vmatprep.mubr.bf16.mxu0 %v9705_v45  ;;  %v8071_v30 = vpop.eup %8070  ;;  %v1136_v40 = vadd.f32 1.0, %v8069_v14  ;;  %v1676_v14 = vld [vmem:[#allocation2 + $0x69] sm:$0xff] }
 0x1ce   : > { %v1138_v53 = vadd.f32 1.0, %v8071_v30  ;;  %v11603_v30 = vld [vmem:[#allocation57_spill] sm:$0xff] }
 0x1cf   : > { %8072 = vrcp.f32 %v1136_v40 }
 0x1d0   : > { %8074 = vrcp.f32 %v1138_v53  ;;  %v1677_v53 = vld [vmem:[#allocation2 + $0x79] sm:$0xff] }
 0x1d3   : > { %2666 = vmatmul.mubr.bf16.vlgmr.msra.gmra.mrb[96].mxu1 %v1739_v32  ;;  %v7727_v32 = vld [vmem:[#allocation3 + $0x218] sm:$0xff]  }
 0x1d4   : > { %2625 = vmatmul.mubr.bf16.gmra.mrb[92].mxu0 %v9713_v3  ;;  %7505 = vmatpush3.bf16.msra.mxu1 %v8461_v17  ;;  %v11602_v17 = vld [vmem:[#allocation63_spill] sm:$0xff] }
 0x1d5   : > { %2673 = vmatprep.mubr.bf16.mxu1 %v11601_v60  ;;  %2826 = vmatprep.mubr.bf16.mxu0 %v1742_v46  ;;  %v7728_v60 = vld [vmem:[#allocation3 + $0x220] sm:$0xff]  }
 0x1d6   : > { %7506 = vmatprep.subr.bf16.mxu1 %v7725_v48 }
 0x1d8   : > { %7507 = vmatpush3.bf16.msra.mxu1 %v7725_v48  ;;  %v1675_v48 = vld [vmem:[#allocation2 + $0x61] sm:$0xff] }
 0x1d9   : > { %7508 = vmatprep.subr.bf16.mxu1 %v7726_v6  ;;  %v1760_v22 = vpack.c.bf16 %v1676_v14, %v1675_v48  ;;  %v8073_v40 = vpop.eup %8072  ;;  %v1679_v14 = vld [vmem:[#allocation2 + $0x91] sm:$0xff]  ;;  %v11608_v48 = vld [vmem:[#allocation67_spill] sm:$0xff] }
 0x1da   : > { %v9721_v13 = vmul.f32 %v8073_v40, %v9689_v7  ;;  %v1684_v40 = vld [vmem:[#allocation2 + $0xc9] sm:$0xff] }
 0x1db   : > { %2674 = vmatmul.mubr.bf16.gmra.mrb[100].mxu1 %v1742_v46  ;;  %v11604_v46 = vld [vmem:[#allocation68_spill] sm:$0xff] }
 0x1dc   : > { %2827 = vmatmul.mubr.bf16.vlgmr.msra.gmra.mrb[96].mxu0 %v1741_v5  ;;  %2681 = vmatprep.mubr.bf16.mxu1 %v11602_v17  ;;  %v7731_v5 = vld [vmem:[#allocation3 + $0x238] sm:$0xff]   ;;  %11605 = vst [vmem:[#allocation44_spill] sm:$0xff] %v9721_v13  ;;  %v1711_v13 = vld [vmem:[#allocation2 + $0x92] sm:$0xff] }
 0x1dd   : > { %2834 = vmatprep.mubr.bf16.mxu0 %v1751_v59  ;;  %7509 = vmatpush3.bf16.msra.mxu1 %v7726_v6  ;;  %v8075_v6 = vpop.eup %8074  ;;  %v11607_v17 = vld [vmem:[#allocation60_spill] sm:$0xff] }
 0x1de   : > { %7510 = vmatprep.subr.bf16.mxu1 %v7727_v32 }
 0x1e1   : > { %7511 = vmatpush3.bf16.msra.mxu1 %v7727_v32  ;;  %v9724_v32 = vmul.f32 %v8075_v6, %v9692_v35  ;;  %v11609_v35 = vld [vmem:[#allocation47_spill] sm:$0xff] }
 0x1e2   : > { %7512 = vmatprep.subr.bf16.mxu1 %v7728_v60 }
 0x1e3   : > { %2682 = vmatmul.mubr.bf16.gmra.mrb[104].mxu1 %v1751_v59  ;;  %11606 = vst [vmem:[#allocation9_spill] sm:$0xff] %v9724_v32  ;;  %v1769_v59 = vpack.c.bf16 %v1678_v28, %v1677_v53  ;;  %v11611_v28 = vld [vmem:[#allocation69_spill] sm:$0xff] }
 0x1e4   : > { %2835 = vmatmul.mubr.bf16.gmra.mrb[100].mxu0 %v11603_v30  ;;  %2689 = vmatprep.mubr.bf16.mxu1 %v11604_v46  ;;  %v1681_v30 = vld [vmem:[#allocation2 + $0xa9] sm:$0xff] }
 0x1e5   : > { %2842 = vmatprep.mubr.bf16.mxu0 %v1760_v22  ;;  %7513 = vmatpush3.bf16.msra.mxu1 %v7728_v60  ;;  %v11610_v46 = vld [vmem:[#allocation37_spill] sm:$0xff] }
 0x1e6   : > { %7514 = vmatprep.subr.bf16.mxu1 %v7729_v11  ;;  %v11612_v53 = vld [vmem:[#allocation77_spill] sm:$0xff] }
 0x1e9   : > { %7515 = vmatpush3.bf16.msra.mxu1 %v7729_v11  ;;  %v1680_v11 = vld [vmem:[#allocation2 + $0x99] sm:$0xff] }
 0x1ea   : > { %7516 = vmatprep.subr.bf16.mxu1 %v7730_v55  ;;  %v1778_v7 = vpack.c.bf16 %v1680_v11, %v1679_v14  ;;  %v1688_v11 = vld [vmem:[#allocation2 + $0xf9] sm:$0xff] }
 0x1eb   : > { %2690 = vmatmul.mubr.bf16.gmra.mrb[108].mxu1 %v1760_v22  ;;  %v1682_v22 = vld [vmem:[#allocation2 + $0xb1] sm:$0xff] }
 0x1ec   : > { %2843 = vmatmul.mubr.bf16.gmra.mrb[104].mxu0 %v11607_v17  ;;  %2697 = vmatprep.mubr.bf16.mxu1 %v9385_v52  ;;  %v1787_v52 = vpack.c.bf16 %v1682_v22, %v1681_v30  ;;  %v1687_v17 = vld [vmem:[#allocation2 + $0xf1] sm:$0xff] }
 0x1ed   : > { %2850 = vmatprep.mubr.bf16.mxu0 %v1769_v59  ;;  %7517 = vmatpush3.bf16.msra.mxu1 %v7730_v55  ;;  %v1683_v55 = vld [vmem:[#allocation2 + $0xc1] sm:$0xff]  ;;  %v11615_v14 = vld [vmem:[#allocation74_spill] sm:$0xff] }
 0x1ee   : > { %7518 = vmatprep.subr.bf16.mxu1 %v7731_v5  ;;  %v1796_v6 = vpack.c.bf16 %v1684_v40, %v1683_v55 }
 0x1f1   : > { %7519 = vmatpush3.bf16.msra.mxu1 %v7731_v5  ;;  %v11613_v5 = vld [vmem:[#allocation72_spill] sm:$0xff] }
 0x1f3   : > { %2698 = vmatmul.mubr.bf16.gmra.mrb[112].mxu1 %v1769_v59  ;;  %v11614_v59 = vld [vmem:[#allocation73_spill] sm:$0xff] }
 0x1f4   : > { %2851 = vmatmul.mubr.bf16.gmra.mrb[108].mxu0 %v11608_v48  ;;  %2705 = vmatprep.mubr.bf16.mxu1 %v11609_v35  ;;  %v1690_v48 = vld [vmem:[#allocation2 + $0x111] sm:$0xff] }
 0x1f5   : > { %2858 = vmatprep.mubr.bf16.mxu0 %v1778_v7 }
 0x1fb   : > { %2706 = vmatmul.mubr.bf16.gmra.mrb[116].mxu1 %v1778_v7  ;;  %v1689_v7 = vld [vmem:[#allocation2 + $0x109] sm:$0xff] }
 0x1fc   : > { %2859 = vmatmul.mubr.bf16.gmra.mrb[112].mxu0 %v11610_v46  ;;  %2713 = vmatprep.mubr.bf16.mxu1 %v9443_v58  ;;  %v1814_v58 = vpack.c.bf16 %v1688_v11, %v1687_v17  ;;  %v1823_v35 = vpack.c.bf16 %v1690_v48, %v1689_v7  ;;  %v1692_v46 = vld [vmem:[#allocation2 + $0x129] sm:$0xff] }
 0x1fd   : > { %2866 = vmatprep.mubr.bf16.mxu0 %v1787_v52 }
 0x203   : > { %2714 = vmatmul.mubr.bf16.gmra.mrb[120].mxu1 %v1787_v52  ;;  %v1691_v52 = vld [vmem:[#allocation2 + $0x121] sm:$0xff] }
 0x204   : > { %2867 = vmatmul.mubr.bf16.gmra.mrb[116].mxu0 %v11611_v28  ;;  %2721 = vmatprep.mubr.bf16.mxu1 %v11612_v53  ;;  %v1832_v17 = vpack.c.bf16 %v1692_v46, %v1691_v52  ;;  %v1696_v52 = vld [vmem:[#allocation2 + $0x159] sm:$0xff] }
 0x205   : > { %2874 = vmatprep.mubr.bf16.mxu0 %v1796_v6 }
 0x20b   : > { %2722 = vmatmul.mubr.bf16.gmra.mrb[124].mxu1 %v1796_v6 }
 0x20c   : > { %2875 = vmatmul.mubr.bf16.gmra.mrb[120].mxu0 %v11613_v5  ;;  %2729 = vmatprep.mubr.bf16.mxu1 %v9508_v25 }
 0x20d   : > { %2882 = vmatprep.mubr.bf16.mxu0 %v11614_v59 }
 0x213   : > { %2730 = vmatmul.mubr.bf16.gmra.mrb[128].mxu1 %v11614_v59 }
 0x214   : > { %2883 = vmatmul.mubr.bf16.gmra.mrb[124].mxu0 %v11615_v14  ;;  %2737 = vmatprep.mubr.bf16.mxu1 %v9613_v9  ;;  %v1694_v14 = vld [vmem:[#allocation2 + $0x141] sm:$0xff] }
 0x215   : > { %2890 = vmatprep.mubr.bf16.mxu0 %v1814_v58 }
 0x21b   : > { %2738 = vmatmul.mubr.bf16.gmra.mrb[132].mxu1 %v1814_v58  ;;  %v1693_v58 = vld [vmem:[#allocation2 + $0x139] sm:$0xff] }
 0x21c   : > { %2891 = vmatmul.mubr.bf16.gmra.mrb[128].mxu0 %v9471_v34  ;;  %2745 = vmatprep.mubr.bf16.mxu1 %v9666_v63  ;;  %v1841_v7 = vpack.c.bf16 %v1694_v14, %v1693_v58 }
 0x21d   : > { %2898 = vmatprep.mubr.bf16.mxu0 %v1823_v35  ;;  %v6470_v25 = vpop.f32.mrb[36].mxu1 }
 0x21e   : > { %v6471_v30 = vpop.f32.mrb[37].mxu1 }
 0x21f   : > { %v6576_v22 = vpop.f32.mrb[32].mxu0  ;;  %v6472_v40 = vadd.f32 %v6471_v30, %v6470_v25  ;;  %v6473_v6 = vpop.f32.mrb[38].mxu1  ;;  %v1695_v30 = vld [vmem:[#allocation2 + $0x151] sm:$0xff] }
 0x220   : > { %v6577_v55 = vpop.f32.mrb[33].mxu0  ;;  %v6474_v53 = vpop.f32.mrb[39].mxu1 }
 0x221   : > { %v6578_v28 = vadd.f32 %v6577_v55, %v6576_v22  ;;  %v6579_v9 = vpop.f32.mrb[34].mxu0  ;;  %v6475_v5 = vadd.f32 %v6474_v53, %v6473_v6  ;;  %v1697_v53 = vld [vmem:[#allocation2 + $0x169] sm:$0xff] }
 0x222   : > { %v6580_v59 = vpop.f32.mrb[35].mxu0 }
 0x223   : > { %2746 = vmatmul.mubr.bf16.gmra.mrb[136].mxu1 %v1823_v35  ;;  %v6581_v11 = vadd.f32 %v6580_v59, %v6579_v9  ;;  %v9745_v34 = vadd.f32 %v6578_v28, %v9567_v42  ;;  %v1698_v59 = vld [vmem:[#allocation2 + $0x171] sm:$0xff] }
 0x224   : > { %2899 = vmatmul.mubr.bf16.gmra.mrb[132].mxu0 %v9546_v36  ;;  %2753 = vmatprep.mubr.bf16.mxu1 %v9675_v27 }
 0x225   : > { %2906 = vmatprep.mubr.bf16.mxu0 %v1832_v17  ;;  %v9750_v63 = vadd.f32 %v6581_v11, %v9592_v44 }
 0x22b   : > { %2754 = vmatmul.mubr.bf16.gmra.mrb[140].mxu1 %v1832_v17  ;;  %v1859_v17 = vpack.c.bf16 %v1698_v59, %v1697_v53 }
 0x22c   : > { %2907 = vmatmul.mubr.bf16.gmra.mrb[136].mxu0 %v9627_v8  ;;  %2761 = vmatprep.mubr.bf16.mxu1 %v9694_v50  ;;  %v6476_v48 = vpop.f32.mrb[40].mxu1  ;;  %v1850_v8 = vpack.c.bf16 %v1696_v52, %v1695_v30 }
 0x22d   : > { %2914 = vmatprep.mubr.bf16.mxu0 %v1841_v7  ;;  %v6477_v42 = vpop.f32.mrb[41].mxu1 }
 0x22e   : > { %v6582_v35 = vpop.f32.mrb[36].mxu0  ;;  %v6478_v25 = vadd.f32 %v6477_v42, %v6476_v48  ;;  %v6479_v36 = vpop.f32.mrb[42].mxu1 }
 0x22f   : > { %v6583_v22 = vpop.f32.mrb[37].mxu0  ;;  %v6480_v27 = vpop.f32.mrb[43].mxu1 }
 0x230   : > { %v6584_v44 = vadd.f32 %v6583_v22, %v6582_v35  ;;  %v6585_v46 = vpop.f32.mrb[38].mxu0  ;;  %v6481_v55 = vadd.f32 %v6480_v27, %v6479_v36  ;;  %v1699_v22 = vld [vmem:[#allocation2 + $0x181] sm:$0xff] }
 0x231   : > { %v6586_v6 = vpop.f32.mrb[39].mxu0 }
 0x232   : > { %v6587_v28 = vadd.f32 %v6586_v6, %v6585_v46  ;;  %v9754_v9 = vadd.f32 %v6584_v44, %v6472_v40  ;;  %v1868_v44 = vpack.c.bf16 %v9623_v15, %v1699_v22  ;;  %v1727_v15 = vld [vmem:[#allocation2 + $0x152] sm:$0xff] }
 0x233   : > { %2762 = vmatmul.mubr.bf16.gmra.mrb[144].mxu1 %v1841_v7 }
 0x234   : > { %2915 = vmatmul.mubr.bf16.gmra.mrb[140].mxu0 %v9671_v54  ;;  %2769 = vmatprep.mubr.bf16.mxu1 %v9707_v23  ;;  %v9758_v50 = vadd.f32 %v6587_v28, %v6475_v5  ;;  %v1636_v23 = vld [vmem:[#allocation2 + $0x182] sm:$0xff]  ;;  %v1637_v5 = vld [vmem:[#allocation2 + $0x18a] sm:$0xff] }
 0x235   : > { %2922 = vmatprep.mubr.bf16.mxu0 %v1850_v8  ;;  %v9762_v52 = vpack.c.bf16 %v1637_v5, %v1636_v23 }
 0x23b   : > { %2770 = vmatmul.mubr.bf16.gmra.mrb[148].mxu1 %v1850_v8  ;;  %v6482_v11 = vpop.f32.mrb[44].mxu1 }
 0x23c   : > { %2923 = vmatmul.mubr.bf16.gmra.mrb[144].mxu0 %v9682_v29  ;;  %2777 = vmatprep.mubr.bf16.mxu1 %v9713_v3  ;;  %v6483_v40 = vpop.f32.mrb[45].mxu1  ;;  %v6588_v58 = vpop.f32.mrb[40].mxu0 }
 0x23d   : > { %2930 = vmatprep.mubr.bf16.mxu0 %v1859_v17  ;;  %v6484_v14 = vadd.f32 %v6483_v40, %v6482_v11  ;;  %v6485_v7 = vpop.f32.mrb[46].mxu1  ;;  %v6589_v54 = vpop.f32.mrb[41].mxu0  ;;  %v1701_v11 = vld [vmem:[#allocation2 + $0x199] sm:$0xff]  ;;  %v1702_v40 = vld [vmem:[#allocation2 + $0x1a1] sm:$0xff] }
 0x23e   : > { %v6486_v48 = vpop.f32.mrb[47].mxu1  ;;  %v6590_v42 = vadd.f32 %v6589_v54, %v6588_v58  ;;  %v6591_v35 = vpop.f32.mrb[42].mxu0  ;;  %v1877_v5 = vpack.c.bf16 %v1702_v40, %v1701_v11  ;;  %v1707_v40 = vld [vmem:[#allocation2 + $0x62] sm:$0xff] }
 0x23f   : > { %v6487_v36 = vadd.f32 %v6486_v48, %v6485_v7  ;;  %v6592_v27 = vpop.f32.mrb[43].mxu0  ;;  %v1703_v7 = vld [vmem:[#allocation2 + $0x32] sm:$0xff] }
 0x240   : > { %v6593_v30 = vadd.f32 %v6592_v27, %v6591_v35  ;;  %v9764_v29 = vadd.f32 %v6590_v42, %v6478_v25 }
 0x242   : > { %v9769_v6 = vadd.f32 %v6593_v30, %v6481_v55 }
 0x243   : > { %2778 = vmatmul.mubr.bf16.gmra.mrb[152].mxu1 %v1859_v17  ;;  %v6488_v46 = vpop.f32.mrb[48].mxu1  ;;  %v1704_v17 = vld [vmem:[#allocation2 + $0x3a] sm:$0xff] }
 0x244   : > { %2931 = vmatmul.mubr.bf16.gmra.mrb[148].mxu0 %v9700_v24  ;;  %2785 = vmatprep.mubr.bf16.mxu1 %v9762_v52  ;;  %v6489_v28 = vpop.f32.mrb[49].mxu1  ;;  %v6594_v8 = vpop.f32.mrb[44].mxu0  ;;  %v1743_v35 = vpack.c.bf16 %v1704_v17, %v1703_v7  ;;  %v1708_v7 = vld [vmem:[#allocation2 + $0x6a] sm:$0xff] }
 0x245   : > { %2938 = vmatprep.mubr.bf16.mxu0 %v1868_v44  ;;  %v6490_v53 = vadd.f32 %v6489_v28, %v6488_v46  ;;  %v6491_v59 = vpop.f32.mrb[50].mxu1  ;;  %v6595_v58 = vpop.f32.mrb[45].mxu0 }
 0x246   : > { %v6492_v25 = vpop.f32.mrb[51].mxu1  ;;  %v6596_v54 = vadd.f32 %v6595_v58, %v6594_v8  ;;  %v6597_v48 = vpop.f32.mrb[46].mxu0  ;;  %v1705_v58 = vld [vmem:[#allocation2 + $0x4a] sm:$0xff] }
 0x247   : > { %v6493_v23 = vadd.f32 %v6492_v25, %v6491_v59  ;;  %v6598_v24 = vpop.f32.mrb[47].mxu0  ;;  %v1706_v59 = vld [vmem:[#allocation2 + $0x52] sm:$0xff] }
 0x248   : > { %v6599_v42 = vadd.f32 %v6598_v24, %v6597_v48  ;;  %v9771_v55 = vadd.f32 %v6596_v54, %v6484_v14  ;;  %v8462_v54 = vld [vmem:[#allocation2] sm:$0xff] }
 0x24a   : > { %v9774_v27 = vadd.f32 %v6599_v42, %v6487_v36  ;;  %v1752_v36 = vpack.c.bf16 %v1706_v59, %v1705_v58  ;;  %v1761_v42 = vpack.c.bf16 %v1708_v7, %v1707_v40  ;;  %v1712_v58 = vld [vmem:[#allocation2 + $0x9a] sm:$0xff] }
 0x24b   : > { %2786 = vmatmul.mubr.bf16.gmra.mrb[156].mxu1 %v1868_v44  ;;  %v6494_v22 = vpop.f32.mrb[52].mxu1 }
 0x24c   : > { %2939 = vmatmul.mubr.bf16.gmra.mrb[152].mxu0 %v9705_v45  ;;  %7520 = vmatprep.mubr.bf16.mxu1 %v1743_v35  ;;  %v6495_v30 = vpop.f32.mrb[53].mxu1  ;;  %v6600_v46 = vpop.f32.mrb[48].mxu0  ;;  %v9776_v45 = vpack.c.bf16 %v8462_v54, %v8462_v54 }
 0x24d   : > { %2946 = vmatprep.mubr.bf16.mxu0 %v1877_v5  ;;  %v6496_v28 = vadd.f32 %v6495_v30, %v6494_v22  ;;  %v6497_v8 = vpop.f32.mrb[54].mxu1  ;;  %v6601_v25 = vpop.f32.mrb[49].mxu0 }
 0x24e   : > { %v6498_v11 = vpop.f32.mrb[55].mxu1  ;;  %v6602_v14 = vadd.f32 %v6601_v25, %v6600_v46  ;;  %v6603_v17 = vpop.f32.mrb[50].mxu0 }
 0x24f   : > { %v6499_v44 = vadd.f32 %v6498_v11, %v6497_v8  ;;  %v6604_v48 = vpop.f32.mrb[51].mxu0  ;;  %v1709_v8 = vld [vmem:[#allocation2 + $0x7a] sm:$0xff]  ;;  %v1710_v11 = vld [vmem:[#allocation2 + $0x82] sm:$0xff] }
 0x250   : > { %v6605_v24 = vadd.f32 %v6604_v48, %v6603_v17  ;;  %v9778_v5 = vadd.f32 %v6602_v14, %v6490_v53  ;;  %v1770_v14 = vpack.c.bf16 %v1710_v11, %v1709_v8  ;;  %v1779_v48 = vpack.c.bf16 %v1712_v58, %v1711_v13 }
 0x252   : > { %v9781_v22 = vadd.f32 %v6605_v24, %v6493_v23 }
 0x253   : > { %7521 = vmatmul.mubr.bf16.vlgmr.msra.gmra.mrb[160].mxu1 %v1752_v36  ;;  %v6500_v35 = vpop.f32.mrb[56].mxu1 }
 0x254   : > { %2947 = vmatmul.mubr.bf16.gmra.mrb[156].mxu0 %v9776_v45  ;;  %7524 = vmatprep.mubr.bf16.mxu1 %v1761_v42  ;;  %v6501_v30 = vpop.f32.mrb[57].mxu1  ;;  %v6606_v54 = vpop.f32.mrb[52].mxu0 }
 0x255   : > { %v6502_v46 = vadd.f32 %v6501_v30, %v6500_v35  ;;  %v6503_v25 = vpop.f32.mrb[58].mxu1  ;;  %v6607_v59 = vpop.f32.mrb[53].mxu0 }
 0x256   : > { %v6504_v60 = vpop.f32.mrb[59].mxu1  ;;  %v6608_v53 = vadd.f32 %v6607_v59, %v6606_v54  ;;  %v6609_v7 = vpop.f32.mrb[54].mxu0  ;;  %v1716_v54 = vld [vmem:[#allocation2 + $0xca] sm:$0xff]  ;;  %v1788_v59 = vpack.c.bf16 %v1714_v19, %v1713_v21 }
 0x257   : > { %v6505_v40 = vadd.f32 %v6504_v60, %v6503_v25  ;;  %v6610_v17 = vpop.f32.mrb[55].mxu0  ;;  %v1715_v25 = vld [vmem:[#allocation2 + $0xc2] sm:$0xff] }
 0x258   : > { %v6611_v36 = vadd.f32 %v6610_v17, %v6609_v7  ;;  %v9783_v23 = vadd.f32 %v6608_v53, %v6496_v28  ;;  %v1797_v53 = vpack.c.bf16 %v1716_v54, %v1715_v25 }
 0x25a   : > { %v9785_v35 = vadd.f32 %v6611_v36, %v6499_v44  ;;  %v1718_v36 = vld [vmem:[#allocation2 + $0xe2] sm:$0xff] }
 0x25b   : > { %7525 = vmatmul.mubr.bf16.gmra.mrb[164].mxu1 %v1770_v14  ;;  %v6506_v24 = vpop.f32.mrb[60].mxu1 }
 0x25c   : > { %7528 = vmatprep.mubr.bf16.mxu1 %v1779_v48  ;;  %v6507_v42 = vpop.f32.mrb[61].mxu1  ;;  %v6612_v33 = vpop.f32.mrb[56].mxu0  ;;  %v1717_v48 = vld [vmem:[#allocation2 + $0xda] sm:$0xff] }
 0x25d   : > { %v6508_v30 = vadd.f32 %v6507_v42, %v6506_v24  ;;  %v6509_v32 = vpop.f32.mrb[62].mxu1  ;;  %v6613_v8 = vpop.f32.mrb[57].mxu0  ;;  %v1806_v54 = vpack.c.bf16 %v1718_v36, %v1717_v48 }
 0x25e   : > { %v6510_v60 = vpop.f32.mrb[63].mxu1  ;;  %v6614_v13 = vadd.f32 %v6613_v8, %v6612_v33  ;;  %v6615_v58 = vpop.f32.mrb[58].mxu0 }
 0x25f   : > { %v6511_v11 = vadd.f32 %v6510_v60, %v6509_v32  ;;  %v6616_v28 = vpop.f32.mrb[59].mxu0 }
 0x260   : > { %v6617_v7 = vadd.f32 %v6616_v28, %v6615_v58  ;;  %v9787_v14 = vadd.f32 %v6614_v13, %v6502_v46  ;;  %v1815_v13 = vpack.c.bf16 %v1720_v62, %v1719_v18 }
 0x262   : > { %v9789_v44 = vadd.f32 %v6617_v7, %v6505_v40  ;;  %v1722_v7 = vld [vmem:[#allocation2 + $0x112] sm:$0xff] }
 0x263   : > { %7529 = vmatmul.mubr.bf16.gmra.mrb[168].mxu1 %v1788_v59 }
 0x264   : > { %7532 = vmatprep.mubr.bf16.mxu1 %v1797_v53  ;;  %v1721_v53 = vld [vmem:[#allocation2 + $0x10a] sm:$0xff] }
 0x265   : > { %v1824_v62 = vpack.c.bf16 %v1722_v7, %v1721_v53 }
 0x266   : > { %v6512_v17 = vpop.f32.mrb[64].mxu1 }
 0x267   : > { %v6618_v24 = vpop.f32.mrb[60].mxu0  ;;  %v6513_v42 = vpop.f32.mrb[65].mxu1 }
 0x268   : > { %v6514_v32 = vadd.f32 %v6513_v42, %v6512_v17  ;;  %v6619_v33 = vpop.f32.mrb[61].mxu0  ;;  %v6515_v60 = vpop.f32.mrb[66].mxu1 }
 0x269   : > { %v6620_v19 = vadd.f32 %v6619_v33, %v6618_v24  ;;  %v6621_v21 = vpop.f32.mrb[62].mxu0  ;;  %v6516_v25 = vpop.f32.mrb[67].mxu1  ;;  %v1724_v24 = vld [vmem:[#allocation2 + $0x12a] sm:$0xff] }
 0x26a   : > { %v6517_v8 = vadd.f32 %v6516_v25, %v6515_v60  ;;  %v6622_v46 = vpop.f32.mrb[63].mxu0 }
 0x26b   : > { %v6623_v58 = vadd.f32 %v6622_v46, %v6621_v21  ;;  %7533 = vmatmul.mubr.bf16.gmra.mrb[172].mxu1 %v1806_v54  ;;  %v9791_v40 = vadd.f32 %v6620_v19, %v6508_v30  ;;  %v1833_v19 = vpack.c.bf16 %v1724_v24, %v1723_v20 }
 0x26c   : > { %7536 = vmatprep.mubr.bf16.mxu1 %v1815_v13  ;;  %v1725_v13 = vld [vmem:[#allocation2 + $0x13a] sm:$0xff] }
 0x26d   : > { %v9793_v59 = vadd.f32 %v6623_v58, %v6511_v11  ;;  %v1726_v58 = vld [vmem:[#allocation2 + $0x142] sm:$0xff] }
 0x26e   : > { %v6518_v28 = vpop.f32.mrb[68].mxu1  ;;  %v1842_v24 = vpack.c.bf16 %v1726_v58, %v1725_v13 }
 0x26f   : > { %v6624_v17 = vpop.f32.mrb[64].mxu0  ;;  %v6519_v42 = vpop.f32.mrb[69].mxu1 }
 0x270   : > { %v6520_v33 = vadd.f32 %v6519_v42, %v6518_v28  ;;  %v6625_v31 = vpop.f32.mrb[65].mxu0  ;;  %v6521_v48 = vpop.f32.mrb[70].mxu1 }
 0x271   : > { %v6626_v36 = vadd.f32 %v6625_v31, %v6624_v17  ;;  %v6627_v60 = vpop.f32.mrb[66].mxu0  ;;  %v6522_v18 = vpop.f32.mrb[71].mxu1  ;;  %v1728_v31 = vld [vmem:[#allocation2 + $0x15a] sm:$0xff] }
 0x272   : > { %v6523_v21 = vadd.f32 %v6522_v18, %v6521_v48  ;;  %v6628_v30 = vpop.f32.mrb[67].mxu0 }
 0x273   : > { %v6629_v25 = vadd.f32 %v6628_v30, %v6627_v60  ;;  %7537 = vmatmul.mubr.bf16.gmra.mrb[176].mxu1 %v1824_v62  ;;  %v9795_v11 = vadd.f32 %v6626_v36, %v6514_v32  ;;  %v1851_v36 = vpack.c.bf16 %v1728_v31, %v1727_v15 }
 0x274   : > { %7540 = vmatprep.mubr.bf16.mxu1 %v1833_v19 }
 0x275   : > { %v9797_v54 = vadd.f32 %v6629_v25, %v6517_v8 }
 0x276   : > { %v6524_v46 = vpop.f32.mrb[72].mxu1 }
 0x277   : > { %v6630_v28 = vpop.f32.mrb[68].mxu0  ;;  %v6525_v42 = vpop.f32.mrb[73].mxu1 }
 0x278   : > { %v6526_v17 = vadd.f32 %v6525_v42, %v6524_v46  ;;  %v6631_v26 = vpop.f32.mrb[69].mxu0  ;;  %v6527_v53 = vpop.f32.mrb[74].mxu1 }
 0x279   : > { %v6632_v7 = vadd.f32 %v6631_v26, %v6630_v28  ;;  %v6633_v48 = vpop.f32.mrb[70].mxu0  ;;  %v6528_v20 = vpop.f32.mrb[75].mxu1 }
 0x27a   : > { %v6529_v60 = vadd.f32 %v6528_v20, %v6527_v53  ;;  %v6634_v32 = vpop.f32.mrb[71].mxu0 }
 0x27b   : > { %v6635_v18 = vadd.f32 %v6634_v32, %v6633_v48  ;;  %7541 = vmatmul.mubr.bf16.gmra.mrb[180].mxu1 %v1842_v24  ;;  %v9799_v8 = vadd.f32 %v6632_v7, %v6520_v33  ;;  %v1733_v33 = vld [vmem:[#allocation2 + $0x19a] sm:$0xff] }
 0x27c   : > { %7544 = vmatprep.mubr.bf16.mxu1 %v1851_v36 }
 0x27d   : > { %v9801_v62 = vadd.f32 %v6635_v18, %v6523_v21  ;;  %v1734_v21 = vld [vmem:[#allocation2 + $0x1a2] sm:$0xff] }
 0x27e   : > { %v6530_v30 = vpop.f32.mrb[76].mxu1  ;;  %v1878_v24 = vpack.c.bf16 %v1734_v21, %v1733_v33 }
 0x27f   : > { %v6636_v19 = vpop.f32.mrb[72].mxu0  ;;  %v6531_v25 = vpop.f32.mrb[77].mxu1 }
 0x280   : > { %v6532_v46 = vadd.f32 %v6531_v25, %v6530_v30  ;;  %v6637_v42 = vpop.f32.mrb[73].mxu0  ;;  %v6533_v39 = vpop.f32.mrb[78].mxu1 }
 0x281   : > { %v6638_v26 = vadd.f32 %v6637_v42, %v6636_v19  ;;  %v6639_v28 = vpop.f32.mrb[74].mxu0  ;;  %v6534_v0 = vpop.f32.mrb[79].mxu1 }
 0x282   : > { %v6535_v13 = vadd.f32 %v6534_v0, %v6533_v39  ;;  %v6640_v58 = vpop.f32.mrb[75].mxu0 }
 0x283   : > { %v6641_v53 = vadd.f32 %v6640_v58, %v6639_v28  ;;  %7545 = vmatmul.mubr.bf16.gmra.mrb[184].mxu1 %v9713_v3  ;;  %v9804_v15 = vadd.f32 %v6638_v26, %v6526_v17 }
 0x284   : > { %7548 = vmatprep.mubr.bf16.mxu1 %v9762_v52 }
 0x285   : > { %v9807_v31 = vadd.f32 %v6641_v53, %v6529_v60 }
 0x286   : > { %v6536_v7 = vpop.f32.mrb[80].mxu1 }
 0x287   : > { %v6642_v48 = vpop.f32.mrb[76].mxu0  ;;  %v6537_v20 = vpop.f32.mrb[81].mxu1 }
 0x288   : > { %v6538_v32 = vadd.f32 %v6537_v20, %v6536_v7  ;;  %v6643_v36 = vpop.f32.mrb[77].mxu0  ;;  %v6539_v18 = vpop.f32.mrb[82].mxu1 }
 0x289   : > { %v6644_v39 = vadd.f32 %v6643_v36, %v6642_v48  ;;  %v6645_v0 = vpop.f32.mrb[78].mxu0  ;;  %v6540_v30 = vpop.f32.mrb[83].mxu1  ;;  %v7732_v36 = vld [vmem:[#allocation3 + $0x280] sm:$0xff]  }
 0x28a   : > { %v6541_v19 = vadd.f32 %v6540_v30, %v6539_v18  ;;  %v6646_v3 = vpop.f32.mrb[79].mxu0  ;;  %6920 = vmatprep.subr.bf16.mxu1 %v7732_v36 }
 0x28b   : > { %v6647_v17 = vadd.f32 %v6646_v3, %v6645_v0  ;;  %7549 = vmatmul.mubr.bf16.gmra.mrb[188].mxu1 %v1878_v24  ;;  %v9809_v25 = vadd.f32 %v6644_v39, %v6532_v46  ;;  %v7733_v46 = vld [vmem:[#allocation3 + $0x240] sm:$0xff]  }
 0x28c   : > { %6921 = vmatpush3.bf16.msra.mxu1 %v7733_v46 }
 0x28d   : > { %v9811_v52 = vadd.f32 %v6647_v17, %v6535_v13  ;;  %6922 = vmatprep.subr.bf16.mxu1 %v7734_v41  ;;  %v7737_v41 = vld [vmem:[#allocation3 + $0x250] sm:$0xff]  }
 0x28e   : > { %v6542_v60 = vpop.f32.mrb[84].mxu1 }
 0x28f   : > { %v6648_v42 = vpop.f32.mrb[80].mxu0  ;;  %v6543_v26 = vpop.f32.mrb[85].mxu1 }
 0x290   : > { %v6544_v28 = vadd.f32 %v6543_v26, %v6542_v60  ;;  %v6649_v58 = vpop.f32.mrb[81].mxu0  ;;  %v6545_v53 = vpop.f32.mrb[86].mxu1 }
 0x291   : > { %v6650_v33 = vadd.f32 %v6649_v58, %v6648_v42  ;;  %v6651_v21 = vpop.f32.mrb[82].mxu0  ;;  %v6546_v7 = vpop.f32.mrb[87].mxu1 }
 0x292   : > { %v6547_v48 = vadd.f32 %v6546_v7, %v6545_v53  ;;  %v6652_v20 = vpop.f32.mrb[83].mxu0 }
 0x293   : > { %v6653_v18 = vadd.f32 %v6652_v20, %v6651_v21  ;;  %v9813_v30 = vadd.f32 %v6650_v33, %v6538_v32  ;;  %v7735_v33 = vld [vmem:[#allocation3 + $0x248] sm:$0xff]  }
 0x294   : > { %6923 = vmatpush3.bf16.msra.mxu1 %v7735_v33 }
 0x295   : > { %v9815_v24 = vadd.f32 %v6653_v18, %v6541_v19  ;;  %6924 = vmatprep.subr.bf16.mxu1 %v7736_v57 }
 0x296   : > { %v6548_v13 = vpop.f32.mrb[88].mxu1 }
 0x297   : > { %v6654_v39 = vpop.f32.mrb[84].mxu0  ;;  %v6549_v0 = vpop.f32.mrb[89].mxu1 }
 0x298   : > { %v6550_v3 = vadd.f32 %v6549_v0, %v6548_v13  ;;  %v6655_v17 = vpop.f32.mrb[85].mxu0  ;;  %v6551_v60 = vpop.f32.mrb[90].mxu1  ;;  %6925 = vmatpush3.bf16.msra.mxu1 %v7737_v41 }
 0x299   : > { %v6656_v42 = vadd.f32 %v6655_v17, %v6654_v39  ;;  %v6657_v26 = vpop.f32.mrb[86].mxu0  ;;  %v6552_v58 = vpop.f32.mrb[91].mxu1 }
 0x29a   : > { %v6553_v53 = vadd.f32 %v6552_v58, %v6551_v60  ;;  %v6658_v7 = vpop.f32.mrb[87].mxu0 }
 0x29b   : > { %v6659_v21 = vadd.f32 %v6658_v7, %v6657_v26  ;;  %v9817_v32 = vadd.f32 %v6656_v42, %v6544_v28 }
 0x29d   : > { %v9819_v19 = vadd.f32 %v6659_v21, %v6547_v48 }
 0x29e   : > { %v6554_v20 = vpop.f32.mrb[92].mxu1 }
 0x29f   : > { %v6660_v36 = vpop.f32.mrb[88].mxu0  ;;  %v6555_v18 = vpop.f32.mrb[93].mxu1 }
 0x2a0   : > { %v6556_v46 = vadd.f32 %v6555_v18, %v6554_v20  ;;  %v6661_v13 = vpop.f32.mrb[89].mxu0  ;;  %v6557_v0 = vpop.f32.mrb[94].mxu1 }
 0x2a1   : > { %v6662_v39 = vadd.f32 %v6661_v13, %v6660_v36  ;;  %v6663_v17 = vpop.f32.mrb[90].mxu0  ;;  %v6558_v49 = vpop.f32.mrb[95].mxu1 }
 0x2a2   : > { %v6559_v60 = vadd.f32 %v6558_v49, %v6557_v0  ;;  %v6664_v58 = vpop.f32.mrb[91].mxu0 }
 0x2a3   : > { %v6665_v26 = vadd.f32 %v6664_v58, %v6663_v17  ;;  %v9821_v28 = vadd.f32 %v6662_v39, %v6550_v3 }
 0x2a5   : > { %v9823_v48 = vadd.f32 %v6665_v26, %v6553_v53 }
 0x2a6   : > { %v6688_v42 = vpop.f32.mrb[96].mxu1 }
 0x2a7   : > { %v6666_v7 = vpop.f32.mrb[92].mxu0  ;;  %v6689_v21 = vpop.f32.mrb[97].mxu1 }
 0x2a8   : > { %v6667_v33 = vpop.f32.mrb[93].mxu0  ;;  %v6690_v20 = vadd.f32 %v6689_v21, %v6688_v42  ;;  %v6691_v18 = vpop.f32.mrb[98].mxu1 }
 0x2a9   : > { %v6668_v36 = vadd.f32 %v6667_v33, %v6666_v7  ;;  %v6669_v13 = vpop.f32.mrb[94].mxu0  ;;  %v6692_v1 = vpop.f32.mrb[99].mxu1 }
 0x2aa   : > { %v2668_v49 = vadd.f32 %v6690_v20, %v9745_v34  ;;  %v6670_v0 = vpop.f32.mrb[95].mxu0  ;;  %v6693_v17 = vadd.f32 %v6692_v1, %v6691_v18 }
 0x2ab   : > { %v6671_v3 = vadd.f32 %v6670_v0, %v6669_v13  ;;  %v9826_v39 = vadd.f32 %v6668_v36, %v6556_v46 }
 0x2ac   : > { %v2671_v57 = vadd.f32 %v6693_v17, %v9750_v63 }
 0x2ad   : > { %v9829_v53 = vadd.f32 %v6671_v3, %v6559_v60 }
 0x2ae   : > { %v6694_v58 = vpop.f32.mrb[100].mxu1 }
 0x2af   : > { %v6800_v26 = vpop.f32.mrb[96].mxu0  ;;  %v6695_v41 = vpop.f32.mrb[101].mxu1 }
 0x2b0   : > { %v6696_v10 = vadd.f32 %v6695_v41, %v6694_v58  ;;  %v6801_v42 = vpop.f32.mrb[97].mxu0  ;;  %v6697_v21 = vpop.f32.mrb[102].mxu1 }
 0x2b1   : > { %v6802_v7 = vadd.f32 %v6801_v42, %v6800_v26  ;;  %v6803_v33 = vpop.f32.mrb[98].mxu0  ;;  %v6698_v61 = vpop.f32.mrb[103].mxu1 }
 0x2b2   : > { %v2676_v34 = vadd.f32 %v6696_v10, %v9754_v9  ;;  %v6699_v20 = vadd.f32 %v6698_v61, %v6697_v21  ;;  %v6804_v1 = vpop.f32.mrb[99].mxu0 }
 0x2b3   : > { %v6805_v18 = vadd.f32 %v6804_v1, %v6803_v33  ;;  %v9832_v46 = vadd.f32 %v6802_v7, %v2668_v49 }
 0x2b4   : > { %v2679_v63 = vadd.f32 %v6699_v20, %v9758_v50 }
 0x2b5   : > { %v9835_v60 = vadd.f32 %v6805_v18, %v2671_v57 }
 0x2b6   : > { %v6700_v36 = vpop.f32.mrb[104].mxu1 }
 0x2b7   : > { %v6806_v13 = vpop.f32.mrb[100].mxu0  ;;  %v6701_v0 = vpop.f32.mrb[105].mxu1 }
 0x2b8   : > { %v6702_v17 = vadd.f32 %v6701_v0, %v6700_v36  ;;  %v6807_v3 = vpop.f32.mrb[101].mxu0  ;;  %v6703_v58 = vpop.f32.mrb[106].mxu1 }
 0x2b9   : > { %v6808_v26 = vadd.f32 %v6807_v3, %v6806_v13  ;;  %v6809_v41 = vpop.f32.mrb[102].mxu0  ;;  %v6704_v42 = vpop.f32.mrb[107].mxu1 }
 0x2ba   : > { %v2684_v10 = vadd.f32 %v6702_v17, %v9764_v29  ;;  %v6705_v61 = vadd.f32 %v6704_v42, %v6703_v58  ;;  %v6810_v9 = vpop.f32.mrb[103].mxu0 }
 0x2bb   : > { %v6811_v21 = vadd.f32 %v6810_v9, %v6809_v41  ;;  %v9838_v49 = vadd.f32 %v6808_v26, %v2676_v34 }
 0x2bc   : > { %v2687_v50 = vadd.f32 %v6705_v61, %v9769_v6 }
 0x2bd   : > { %v9841_v57 = vadd.f32 %v6811_v21, %v2679_v63 }
 0x2be   : > { %v6706_v7 = vpop.f32.mrb[108].mxu1 }
 0x2bf   : > { %v6812_v33 = vpop.f32.mrb[104].mxu0  ;;  %v6707_v20 = vpop.f32.mrb[109].mxu1 }
 0x2c0   : > { %v6708_v1 = vadd.f32 %v6707_v20, %v6706_v7  ;;  %v6813_v18 = vpop.f32.mrb[105].mxu0  ;;  %v6709_v36 = vpop.f32.mrb[110].mxu1 }
 0x2c1   : > { %v6814_v13 = vadd.f32 %v6813_v18, %v6812_v33  ;;  %v6815_v0 = vpop.f32.mrb[106].mxu0  ;;  %v6710_v3 = vpop.f32.mrb[111].mxu1 }
 0x2c2   : > { %v2692_v29 = vadd.f32 %v6708_v1, %v9771_v55  ;;  %v6711_v17 = vadd.f32 %v6710_v3, %v6709_v36  ;;  %v6816_v58 = vpop.f32.mrb[107].mxu0 }
 0x2c3   : > { %v6817_v41 = vadd.f32 %v6816_v58, %v6815_v0  ;;  %v9844_v34 = vadd.f32 %v6814_v13, %v2684_v10 }
 0x2c4   : > { %v2695_v6 = vadd.f32 %v6711_v17, %v9774_v27  ;;  %v7739_v17 = vld [vmem:[#allocation3 + $0x258] sm:$0xff]  }
 0x2c5   : > { %v9847_v63 = vadd.f32 %v6817_v41, %v2687_v50  ;;  %v7738_v50 = vld [vmem:[#allocation3 + $0x298] sm:$0xff]  }
 0x2c6   : > { %v6712_v26 = vpop.f32.mrb[112].mxu1  ;;  %6926 = vmatprep.subr.bf16.mxu1 %v7738_v50 }
 0x2c7   : > { %v6818_v42 = vpop.f32.mrb[108].mxu0  ;;  %v6713_v61 = vpop.f32.mrb[113].mxu1  ;;  %6927 = vmatpush3.bf16.msra.mxu1 %v7739_v17 }
 0x2c8   : > { %v6714_v9 = vadd.f32 %v6713_v61, %v6712_v26  ;;  %v6819_v21 = vpop.f32.mrb[109].mxu0  ;;  %v6715_v7 = vpop.f32.mrb[114].mxu1 }
 0x2c9   : > { %v6820_v33 = vadd.f32 %v6819_v21, %v6818_v42  ;;  %v6821_v20 = vpop.f32.mrb[110].mxu0  ;;  %v6716_v18 = vpop.f32.mrb[115].mxu1 }
 0x2ca   : > { %v2700_v55 = vadd.f32 %v6714_v9, %v9778_v5  ;;  %v6717_v1 = vadd.f32 %v6716_v18, %v6715_v7  ;;  %v6822_v36 = vpop.f32.mrb[111].mxu0  ;;  %v7740_v18 = vld [vmem:[#allocation3 + $0x2a0] sm:$0xff]  }
 0x2cb   : > { %v6823_v0 = vadd.f32 %v6822_v36, %v6821_v20  ;;  %v9850_v10 = vadd.f32 %v6820_v33, %v2692_v29  ;;  %6928 = vmatprep.subr.bf16.mxu1 %v7740_v18 }
 0x2cc   : > { %v2703_v27 = vadd.f32 %v6717_v1, %v9781_v22 }
 0x2cd   : > { %v9853_v13 = vadd.f32 %v6823_v0, %v2695_v6  ;;  %v7741_v0 = vld [vmem:[#allocation3 + $0x260] sm:$0xff]  }
 0x2ce   : > { %v6718_v3 = vpop.f32.mrb[116].mxu1  ;;  %6929 = vmatpush3.bf16.msra.mxu1 %v7741_v0  ;;  %v7744_v0 = vld [vmem:[#allocation3 + $0x300] sm:$0xff]  }
 0x2cf   : > { %v6824_v58 = vpop.f32.mrb[112].mxu0  ;;  %v6719_v41 = vpop.f32.mrb[117].mxu1  ;;  %7032 = vmatprep.subr.bf16.mxu0 %v7744_v0  ;;  %v7750_v0 = vld [vmem:[#allocation3 + $0x310] sm:$0xff]  }
 0x2d0   : > { %v6720_v26 = vadd.f32 %v6719_v41, %v6718_v3  ;;  %v6825_v42 = vpop.f32.mrb[113].mxu0  ;;  %v6721_v61 = vpop.f32.mrb[118].mxu1 }
 0x2d1   : > { %v6826_v5 = vadd.f32 %v6825_v42, %v6824_v58  ;;  %v6827_v9 = vpop.f32.mrb[114].mxu0  ;;  %v6722_v21 = vpop.f32.mrb[119].mxu1 }
 0x2d2   : > { %v2708_v29 = vadd.f32 %v6720_v26, %v9783_v23  ;;  %v6723_v7 = vadd.f32 %v6722_v21, %v6721_v61  ;;  %v6828_v33 = vpop.f32.mrb[115].mxu0 }
 0x2d3   : > { %v6829_v22 = vadd.f32 %v6828_v33, %v6827_v9  ;;  %v9856_v20 = vadd.f32 %v6826_v5, %v2700_v55  ;;  %v7742_v33 = vld [vmem:[#allocation3 + $0x2a8] sm:$0xff]  }
 0x2d4   : > { %v2711_v6 = vadd.f32 %v6723_v7, %v9785_v35  ;;  %6930 = vmatprep.subr.bf16.mxu1 %v7742_v33  ;;  %v7748_v33 = vld [vmem:[#allocation3 + $0x2b0] sm:$0xff]  }
 0x2d5   : > { %v9859_v1 = vadd.f32 %v6829_v22, %v2703_v27 }
 0x2d6   : > { %v6724_v36 = vpop.f32.mrb[120].mxu1 }
 0x2d7   : > { %v6830_v50 = vpop.f32.mrb[116].mxu0  ;;  %v6725_v3 = vpop.f32.mrb[121].mxu1 }
 0x2d8   : > { %v6726_v17 = vadd.f32 %v6725_v3, %v6724_v36  ;;  %v6831_v58 = vpop.f32.mrb[117].mxu0  ;;  %v6727_v41 = vpop.f32.mrb[122].mxu1  ;;  %v7743_v36 = vld [vmem:[#allocation3 + $0x268] sm:$0xff]  }
 0x2d9   : > { %v6832_v23 = vadd.f32 %v6831_v58, %v6830_v50  ;;  %v6833_v26 = vpop.f32.mrb[118].mxu0  ;;  %v6728_v42 = vpop.f32.mrb[123].mxu1  ;;  %v7745_v50 = vld [vmem:[#allocation3 + $0x2c0] sm:$0xff]   ;;  %6931 = vmatpush3.bf16.msra.mxu1 %v7743_v36  ;;  %v7749_v36 = vld [vmem:[#allocation3 + $0x270] sm:$0xff]  }
 0x2da   : > { %v2716_v55 = vadd.f32 %v6726_v17, %v9787_v14  ;;  %v6729_v61 = vadd.f32 %v6728_v42, %v6727_v41  ;;  %v6834_v5 = vpop.f32.mrb[119].mxu0  ;;  %v7746_v14 = vld [vmem:[#allocation3 + $0x308] sm:$0xff]   ;;  %7033 = vmatpush3.bf16.msra.mxu0 %v7745_v50  ;;  %6932 = vmatprep.subr.bf16.mxu1 %v7748_v33 }
 0x2db   : > { %v6835_v35 = vadd.f32 %v6834_v5, %v6833_v26  ;;  %v9862_v9 = vadd.f32 %v6832_v23, %v2708_v29  ;;  %7034 = vmatprep.subr.bf16.mxu0 %v7746_v14  ;;  %v7747_v5 = vld [vmem:[#allocation3 + $0x2c8] sm:$0xff]  }
 0x2dc   : > { %v2719_v27 = vadd.f32 %v6729_v61, %v9789_v44 }
 0x2dd   : > { %v9865_v21 = vadd.f32 %v6835_v35, %v2711_v6  ;;  %6933 = vmatpush3.bf16.msra.mxu1 %v7749_v36 }
 0x2de   : > { %v6730_v7 = vpop.f32.mrb[124].mxu1  ;;  %7035 = vmatpush3.bf16.msra.mxu0 %v7747_v5  ;;  %v7753_v5 = vld [vmem:[#allocation3 + $0x2d8] sm:$0xff]  }
 0x2df   : > { %v6836_v22 = vpop.f32.mrb[120].mxu0  ;;  %v6731_v18 = vpop.f32.mrb[125].mxu1  ;;  %7036 = vmatprep.subr.bf16.mxu0 %v7750_v0 }
 0x2e0   : > { %v6732_v3 = vadd.f32 %v6731_v18, %v6730_v7  ;;  %v6837_v58 = vpop.f32.mrb[121].mxu0  ;;  %v6733_v38 = vpop.f32.mrb[126].mxu1 }
 0x2e1   : > { %v6838_v17 = vadd.f32 %v6837_v58, %v6836_v22  ;;  %v6839_v41 = vpop.f32.mrb[122].mxu0  ;;  %v6734_v29 = vpop.f32.mrb[127].mxu1  ;;  %v7752_v58 = vld [vmem:[#allocation3 + $0x318] sm:$0xff]  }
 0x2e2   : > { %v2724_v44 = vadd.f32 %v6732_v3, %v9791_v40  ;;  %v6735_v6 = vadd.f32 %v6734_v29, %v6733_v38  ;;  %v6840_v23 = vpop.f32.mrb[123].mxu0  ;;  %v7751_v40 = vld [vmem:[#allocation3 + $0x2d0] sm:$0xff]  }
 0x2e3   : > { %v6841_v26 = vadd.f32 %v6840_v23, %v6839_v41  ;;  %v9868_v42 = vadd.f32 %v6838_v17, %v2716_v55  ;;  %7037 = vmatpush3.bf16.msra.mxu0 %v7751_v40 }
 0x2e4   : > { %v2727_v61 = vadd.f32 %v6735_v6, %v9793_v59  ;;  %7038 = vmatprep.subr.bf16.mxu0 %v7752_v58 }
 0x2e5   : > { %v9871_v35 = vadd.f32 %v6841_v26, %v2719_v27 }
 0x2e6   : > { %v6736_v7 = vpop.f32.mrb[128].mxu1 }
 0x2e7   : > { %v6842_v22 = vpop.f32.mrb[124].mxu0  ;;  %v6737_v18 = vpop.f32.mrb[129].mxu1  ;;  %7039 = vmatpush3.bf16.msra.mxu0 %v7753_v5  ;;  %v3597_v5 = vld [vmem:[#allocation2 + $0x1] sm:$0xff] }
 0x2e8   : > { %v6738_v38 = vadd.f32 %v6737_v18, %v6736_v7  ;;  %v6843_v3 = vpop.f32.mrb[125].mxu0  ;;  %v6739_v50 = vpop.f32.mrb[130].mxu1 }
 0x2e9   : > { %v6844_v55 = vadd.f32 %v6843_v3, %v6842_v22  ;;  %v6845_v14 = vpop.f32.mrb[126].mxu0  ;;  %v6740_v17 = vpop.f32.mrb[131].mxu1 }
 0x2ea   : > { %v2732_v59 = vadd.f32 %v6738_v38, %v9795_v11  ;;  %v6741_v27 = vadd.f32 %v6740_v17, %v6739_v50  ;;  %v6846_v41 = vpop.f32.mrb[127].mxu0  ;;  %v7754_v11 = vld [vmem:[#allocation3 + $0x2b8] sm:$0xff]  }
 0x2eb   : > { %v6847_v29 = vadd.f32 %v6846_v41, %v6845_v14  ;;  %v9874_v6 = vadd.f32 %v6844_v55, %v2724_v44  ;;  %6934 = vmatprep.subr.bf16.mxu1 %v7754_v11  ;;  %v7755_v17 = vld [vmem:[#allocation3 + $0x278] sm:$0xff]   ;;  %v7757_v41 = vld [vmem:[#allocation3 + $0x2e0] sm:$0xff]   ;;  %v7759_v11 = vld [vmem:[#allocation3 + $0x2e8] sm:$0xff]  }
 0x2ec   : > { %v2735_v23 = vadd.f32 %v6741_v27, %v9797_v54  ;;  %v7756_v27 = vld [vmem:[#allocation3 + $0x320] sm:$0xff]   ;;  %6935 = vmatpush3.bf16.msra.mxu1 %v7755_v17 }
 0x2ed   : > { %v9877_v26 = vadd.f32 %v6847_v29, %v2727_v61  ;;  %7040 = vmatprep.subr.bf16.mxu0 %v7756_v27  ;;  %v7761_v27 = vld [vmem:[#allocation3 + $0x330] sm:$0xff]  }
 0x2ee   : > { %v6742_v7 = vpop.f32.mrb[132].mxu1  ;;  %7041 = vmatpush3.bf16.msra.mxu0 %v7757_v41 }
 0x2ef   : > { %v6848_v33 = vpop.f32.mrb[128].mxu0  ;;  %v6743_v22 = vpop.f32.mrb[133].mxu1 }
 0x2f0   : > { %v6744_v18 = vadd.f32 %v6743_v22, %v6742_v7  ;;  %v6849_v36 = vpop.f32.mrb[129].mxu0  ;;  %v6745_v0 = vpop.f32.mrb[134].mxu1  ;;  %v3598_v7 = vld [vmem:[#allocation2 + $0x9] sm:$0xff] }
 0x2f1   : > { %v6850_v38 = vadd.f32 %v6849_v36, %v6848_v33  ;;  %v6851_v3 = vpop.f32.mrb[130].mxu0  ;;  %v6746_v40 = vpop.f32.mrb[135].mxu1  ;;  %v7758_v33 = vld [vmem:[#allocation3 + $0x328] sm:$0xff]  }
 0x2f2   : > { %v2740_v44 = vadd.f32 %v6744_v18, %v9799_v8  ;;  %v6747_v50 = vadd.f32 %v6746_v40, %v6745_v0  ;;  %v6852_v58 = vpop.f32.mrb[131].mxu0  ;;  %v3854_v8 = vpack.c.bf16 %v3598_v7, %v3597_v5  ;;  %7042 = vmatprep.subr.bf16.mxu0 %v7758_v33  ;;  %v7763_v5 = vld [vmem:[#allocation3 + $0x2f0] sm:$0xff]   ;;  %v7764_v33 = vld [vmem:[#allocation3 + $0x338] sm:$0xff]  }
 0x2f3   : > { %v6853_v54 = vadd.f32 %v6852_v58, %v6851_v3  ;;  %v9880_v61 = vadd.f32 %v6850_v38, %v2732_v59  ;;  %v7760_v3 = vld [vmem:[#allocation3 + $0x380] sm:$0xff]   ;;  %7043 = vmatpush3.bf16.msra.mxu0 %v7759_v11 }
 0x2f4   : > { %v2743_v55 = vadd.f32 %v6747_v50, %v9801_v62  ;;  %4461 = vmatprep.mubr.bf16.mxu1 %v3854_v8  ;;  %7144 = vmatprep.subr.bf16.mxu1 %v7760_v3 }
 0x2f5   : > { %v9883_v14 = vadd.f32 %v6853_v54, %v2735_v23  ;;  %4462 = vmatmul.mubr.bf16.vlgmr.msra.gmra.mrb[192].mxu1 %v9776_v45  ;;  %7044 = vmatprep.subr.bf16.mxu0 %v7761_v27 }
 0x2f6   : > { %v6748_v29 = vpop.f32.mrb[136].mxu1 }
 0x2f7   : > { %v6854_v22 = vpop.f32.mrb[132].mxu0  ;;  %v6749_v36 = vpop.f32.mrb[137].mxu1  ;;  %7045 = vmatpush3.bf16.msra.mxu0 %v7763_v5 }
 0x2f8   : > { %v6750_v18 = vadd.f32 %v6749_v36, %v6748_v29  ;;  %v6855_v0 = vpop.f32.mrb[133].mxu0  ;;  %v6751_v59 = vpop.f32.mrb[138].mxu1  ;;  %v7762_v29 = vld [vmem:[#allocation3 + $0x340] sm:$0xff]   ;;  %7046 = vmatprep.subr.bf16.mxu0 %v7764_v33 }
 0x2f9   : > { %v6856_v62 = vadd.f32 %v6855_v0, %v6854_v22  ;;  %v6857_v23 = vpop.f32.mrb[134].mxu0  ;;  %v6752_v38 = vpop.f32.mrb[139].mxu1  ;;  %7145 = vmatpush3.bf16.msra.mxu1 %v7762_v29 }
 0x2fa   : > { %v2748_v40 = vadd.f32 %v6750_v18, %v9804_v15  ;;  %v6753_v50 = vadd.f32 %v6752_v38, %v6751_v59  ;;  %v6858_v58 = vpop.f32.mrb[135].mxu0 }
 0x2fb   : > { %v6859_v54 = vadd.f32 %v6858_v58, %v6857_v23  ;;  %v9887_v17 = vadd.f32 %v6856_v62, %v2740_v44  ;;  %v7765_v44 = vld [vmem:[#allocation3 + $0x2f8] sm:$0xff]  }
 0x2fc   : > { %v2751_v41 = vadd.f32 %v6753_v50, %v9807_v31  ;;  %7047 = vmatpush3.bf16.msra.mxu0 %v7765_v44  ;;  %v7766_v44 = vld [vmem:[#allocation3 + $0x388] sm:$0xff]  }
 0x2fd   : > { %v9890_v7 = vadd.f32 %v6859_v54, %v2743_v55  ;;  %7146 = vmatprep.subr.bf16.mxu1 %v7766_v44  ;;  %v7772_v44 = vld [vmem:[#allocation3 + $0x3a0] sm:$0xff]  }
 0x2fe   : > { %v6754_v15 = vpop.f32.mrb[140].mxu1 }
 0x2ff   : > { %v6860_v22 = vpop.f32.mrb[136].mxu0  ;;  %v6755_v36 = vpop.f32.mrb[141].mxu1 }
 0x300   : > { %v6756_v8 = vadd.f32 %v6755_v36, %v6754_v15  ;;  %v6861_v45 = vpop.f32.mrb[137].mxu0  ;;  %v6757_v18 = vpop.f32.mrb[142].mxu1 }
 0x301   : > { %v6862_v0 = vadd.f32 %v6861_v45, %v6860_v22  ;;  %v6863_v59 = vpop.f32.mrb[138].mxu0  ;;  %v6758_v62 = vpop.f32.mrb[143].mxu1 }
 0x302   : > { %v2756_v31 = vadd.f32 %v6756_v8, %v9809_v25  ;;  %v6759_v11 = vadd.f32 %v6758_v62, %v6757_v18  ;;  %v6864_v55 = vpop.f32.mrb[139].mxu0 }
 0x303   : > { %v6865_v23 = vadd.f32 %v6864_v55, %v6863_v59  ;;  %v9893_v38 = vadd.f32 %v6862_v0, %v2748_v40  ;;  %v7768_v55 = vld [vmem:[#allocation3 + $0x390] sm:$0xff]  }
 0x304   : > { %v2759_v3 = vadd.f32 %v6759_v11, %v9811_v52  ;;  %v7767_v11 = vld [vmem:[#allocation3 + $0x348] sm:$0xff]  }
 0x305   : > { %v9896_v50 = vadd.f32 %v6865_v23, %v2751_v41  ;;  %7147 = vmatpush3.bf16.msra.mxu1 %v7767_v11 }
 0x306   : > { %v6760_v58 = vpop.f32.mrb[144].mxu1  ;;  %7148 = vmatprep.subr.bf16.mxu1 %v7768_v55 }
 0x307   : > { %v6866_v54 = vpop.f32.mrb[140].mxu0  ;;  %v6761_v27 = vpop.f32.mrb[145].mxu1 }
 0x308   : > { %v6762_v29 = vadd.f32 %v6761_v27, %v6760_v58  ;;  %v6867_v5 = vpop.f32.mrb[141].mxu0  ;;  %v6763_v15 = vpop.f32.mrb[146].mxu1 }
 0x309   : > { %v6868_v22 = vadd.f32 %v6867_v5, %v6866_v54  ;;  %v6869_v33 = vpop.f32.mrb[142].mxu0  ;;  %v6764_v36 = vpop.f32.mrb[147].mxu1 }
 0x30a   : > { %v2764_v25 = vadd.f32 %v6762_v29, %v9813_v30  ;;  %v6765_v8 = vadd.f32 %v6764_v36, %v6763_v15  ;;  %v6870_v45 = vpop.f32.mrb[143].mxu0  ;;  %v7770_v15 = vld [vmem:[#allocation3 + $0x398] sm:$0xff]  }
 0x30b   : > { %v6871_v40 = vadd.f32 %v6870_v45, %v6869_v33  ;;  %v9899_v18 = vadd.f32 %v6868_v22, %v2756_v31  ;;  %v7769_v31 = vld [vmem:[#allocation3 + $0x350] sm:$0xff]   ;;  %v7771_v45 = vld [vmem:[#allocation3 + $0x358] sm:$0xff]  }
 0x30c   : > { %v2767_v52 = vadd.f32 %v6765_v8, %v9815_v24  ;;  %7149 = vmatpush3.bf16.msra.mxu1 %v7769_v31 }
 0x30d   : > { %v9902_v41 = vadd.f32 %v6871_v40, %v2759_v3  ;;  %7150 = vmatprep.subr.bf16.mxu1 %v7770_v15 }
 0x30e   : > { %v6766_v0 = vpop.f32.mrb[148].mxu1 }
 0x30f   : > { %v6872_v59 = vpop.f32.mrb[144].mxu0  ;;  %v6767_v62 = vpop.f32.mrb[149].mxu1 }
 0x310   : > { %v6768_v23 = vadd.f32 %v6767_v62, %v6766_v0  ;;  %v6873_v58 = vpop.f32.mrb[145].mxu0  ;;  %v6769_v54 = vpop.f32.mrb[150].mxu1  ;;  %7151 = vmatpush3.bf16.msra.mxu1 %v7771_v45 }
 0x311   : > { %v6874_v30 = vadd.f32 %v6873_v58, %v6872_v59  ;;  %v6875_v27 = vpop.f32.mrb[146].mxu0  ;;  %v6770_v29 = vpop.f32.mrb[151].mxu1  ;;  %7152 = vmatprep.subr.bf16.mxu1 %v7772_v44 }
 0x312   : > { %v2772_v5 = vadd.f32 %v6768_v23, %v9817_v32  ;;  %v6771_v24 = vadd.f32 %v6770_v29, %v6769_v54  ;;  %v6876_v3 = vpop.f32.mrb[147].mxu0 }
 0x313   : > { %v6877_v22 = vadd.f32 %v6876_v3, %v6875_v27  ;;  %v9905_v33 = vadd.f32 %v6874_v30, %v2764_v25  ;;  %v7773_v27 = vld [vmem:[#allocation3 + $0x360] sm:$0xff]  }
 0x314   : > { %v2775_v36 = vadd.f32 %v6771_v24, %v9819_v19  ;;  %7153 = vmatpush3.bf16.msra.mxu1 %v7773_v27 }
 0x315   : > { %v9908_v8 = vadd.f32 %v6877_v22, %v2767_v52 }
 0x316   : > { %v6772_v40 = vpop.f32.mrb[152].mxu1 }
 0x317   : > { %v6878_v0 = vpop.f32.mrb[148].mxu0  ;;  %v6773_v59 = vpop.f32.mrb[153].mxu1 }
 0x318   : > { %v6774_v62 = vadd.f32 %v6773_v59, %v6772_v40  ;;  %v6879_v32 = vpop.f32.mrb[149].mxu0  ;;  %v6775_v11 = vpop.f32.mrb[154].mxu1 }
 0x319   : > { %v6880_v23 = vadd.f32 %v6879_v32, %v6878_v0  ;;  %v6881_v55 = vpop.f32.mrb[150].mxu0  ;;  %v6776_v58 = vpop.f32.mrb[155].mxu1 }
 0x31a   : > { %v2780_v25 = vadd.f32 %v6774_v62, %v9821_v28  ;;  %v6777_v54 = vadd.f32 %v6776_v58, %v6775_v11  ;;  %v6882_v19 = vpop.f32.mrb[151].mxu0 }
 0x31b   : > { %v6883_v52 = vadd.f32 %v6882_v19, %v6881_v55  ;;  %v9911_v30 = vadd.f32 %v6880_v23, %v2772_v5  ;;  %v9925_v55 = vld [vmem:[%s11353_s5] ss:$0 sm:$0xff] }
 0x31c   : > { %v2783_v29 = vadd.f32 %v6777_v54, %v9823_v48 }
 0x31d   : > { %v9914_v31 = vadd.f32 %v6883_v52, %v2775_v36  ;;  %v7774_v36 = vld [vmem:[#allocation3 + $0x3a8] sm:$0xff]  }
 0x31e   : > { %v6778_v24 = vpop.f32.mrb[156].mxu1  ;;  %7154 = vmatprep.subr.bf16.mxu1 %v7774_v36 }
 0x31f   : > { %v6884_v3 = vpop.f32.mrb[152].mxu0  ;;  %v6779_v15 = vpop.f32.mrb[157].mxu1 }
 0x320   : > { %v6780_v22 = vadd.f32 %v6779_v15, %v6778_v24  ;;  %v6885_v40 = vpop.f32.mrb[153].mxu0  ;;  %v6781_v45 = vpop.f32.mrb[158].mxu1 }
 0x321   : > { %v6886_v0 = vadd.f32 %v6885_v40, %v6884_v3  ;;  %v6887_v28 = vpop.f32.mrb[154].mxu0  ;;  %v6782_v59 = vpop.f32.mrb[159].mxu1 }
 0x322   : > { %v2788_v44 = vadd.f32 %v6780_v22, %v9826_v39  ;;  %v6783_v62 = vadd.f32 %v6782_v59, %v6781_v45  ;;  %v6888_v5 = vpop.f32.mrb[155].mxu0 }
 0x323   : > { %v6889_v32 = vadd.f32 %v6888_v5, %v6887_v28  ;;  %v9917_v11 = vadd.f32 %v6886_v0, %v2780_v25  ;;  %v9931_v25 = vld [vmem:[%s11354_s6] ss:$0 sm:$0xff] }
 0x324   : > { %v2791_v48 = vadd.f32 %v6783_v62, %v9829_v53  ;;  %v7775_v62 = vld [vmem:[#allocation3 + $0x368] sm:$0xff]  }
 0x325   : > { %v9920_v23 = vadd.f32 %v6889_v32, %v2783_v29  ;;  %7155 = vmatpush3.bf16.msra.mxu1 %v7775_v62 }
 0x326   : > { %v7522_v58 = vpop.f32.mrb[160].mxu1 }
 0x327   : > { %v6890_v54 = vpop.f32.mrb[156].mxu0  ;;  %v2998_v39 = vadd.f32 %v7522_v58, %v9838_v49  ;;  %v2989_v19 = vpop.f32.mrb[161].mxu1 }
 0x328   : > { %v6891_v53 = vpop.f32.mrb[157].mxu0  ;;  %v2990_v52 = vadd.f32 %v2989_v19, %v9832_v46  ;;  %v7523_v27 = vpop.f32.mrb[162].mxu1 }
 0x329   : > { %v3124_v29 = vmul.f32 %v9925_v55, %v2998_v39  ;;  %v6892_v24 = vadd.f32 %v6891_v53, %v6890_v54  ;;  %v6893_v3 = vpop.f32.mrb[158].mxu0  ;;  %v3001_v15 = vadd.f32 %v7523_v27, %v9841_v57  ;;  %v2992_v22 = vpop.f32.mrb[163].mxu1 }
 0x32a   : > { %v3122_v40 = vmul.f32 %v9925_v55, %v2990_v52  ;;  %v6894_v49 = vpop.f32.mrb[159].mxu0  ;;  %v2993_v45 = vadd.f32 %v2992_v22, %v9835_v60 }
 0x32b   : > { %v9939_v0 = vadd.f32 %v9931_v25, %v3124_v29  ;;  %v3125_v28 = vmul.f32 %v9925_v55, %v3001_v15  ;;  %v6895_v59 = vadd.f32 %v6894_v49, %v6893_v3  ;;  %v9942_v46 = vadd.f32 %v6892_v24, %v2788_v44 }
 0x32c   : > { %v9945_v5 = vadd.f32 %v9931_v25, %v3122_v40  ;;  %v3123_v57 = vmul.f32 %v9925_v55, %v2993_v45 }
 0x32d   : > { %v3194_v32 = vsub.f32 0.0, %v9939_v0  ;;  %v9950_v36 = vadd.f32 %v9931_v25, %v3125_v28  ;;  %v9952_v60 = vadd.f32 %v6895_v59, %v2791_v48 }
 0x32e   : > { %v3192_v58 = vsub.f32 0.0, %v9945_v5  ;;  %v9956_v54 = vadd.f32 %v9931_v25, %v3123_v57  ;;  %v7526_v44 = vpop.f32.mrb[164].mxu1 }
 0x32f   : > { %v3228_v39 = vmul.f32 1.442695, %v3194_v32  ;;  %v3195_v19 = vsub.f32 0.0, %v9950_v36  ;;  %v3014_v53 = vadd.f32 %v7526_v44, %v9850_v10  ;;  %v3005_v52 = vpop.f32.mrb[165].mxu1 }
 0x330   : > { %v3224_v27 = vmul.f32 1.442695, %v3192_v58  ;;  %v3193_v29 = vsub.f32 0.0, %v9956_v54  ;;  %v3006_v24 = vadd.f32 %v3005_v52, %v9844_v34  ;;  %v7527_v48 = vpop.f32.mrb[166].mxu1 }
 0x331   : > { %8076 = vpow2.f32 %v3228_v39  ;;  %v3230_v3 = vmul.f32 1.442695, %v3195_v19  ;;  %v3128_v15 = vmul.f32 %v9925_v55, %v3014_v53  ;;  %v3017_v22 = vadd.f32 %v7527_v48, %v9853_v13  ;;  %v3008_v40 = vpop.f32.mrb[167].mxu1  ;;  %v7776_v13 = vld [vmem:[#allocation3 + $0x3b0] sm:$0xff]  }
 0x332   : > { %8078 = vpow2.f32 %v3224_v27  ;;  %v3226_v49 = vmul.f32 1.442695, %v3193_v29  ;;  %v3126_v45 = vmul.f32 %v9925_v55, %v3006_v24  ;;  %v3009_v10 = vadd.f32 %v3008_v40, %v9847_v63  ;;  %7156 = vmatprep.subr.bf16.mxu1 %v7776_v13 }
 0x333   : > { %8080 = vpow2.f32 %v3230_v3  ;;  %v9967_v28 = vadd.f32 %v9931_v25, %v3128_v15  ;;  %v3129_v34 = vmul.f32 %v9925_v55, %v3017_v22 }
 0x334   : > { %8082 = vpow2.f32 %v3226_v49  ;;  %v9971_v59 = vadd.f32 %v9931_v25, %v3126_v45  ;;  %v3127_v62 = vmul.f32 %v9925_v55, %v3009_v10 }
 0x335   : > { %v3198_v57 = vsub.f32 0.0, %v9967_v28  ;;  %v9976_v32 = vadd.f32 %v9931_v25, %v3129_v34 }
 0x336   : > { %v3196_v63 = vsub.f32 0.0, %v9971_v59  ;;  %v9980_v58 = vadd.f32 %v9931_v25, %v3127_v62  ;;  %v7530_v44 = vpop.f32.mrb[168].mxu1  ;;  %v7777_v62 = vld [vmem:[#allocation3 + $0x370] sm:$0xff]  }
 0x337   : > { %v3236_v39 = vmul.f32 1.442695, %v3198_v57  ;;  %v3199_v19 = vsub.f32 0.0, %v9976_v32  ;;  %v3030_v53 = vadd.f32 %v7530_v44, %v9862_v9  ;;  %v3021_v52 = vpop.f32.mrb[169].mxu1  ;;  %7157 = vmatpush3.bf16.msra.mxu1 %v7777_v62 }
 0x338   : > { %v3232_v27 = vmul.f32 1.442695, %v3196_v63  ;;  %v3197_v29 = vsub.f32 0.0, %v9980_v58  ;;  %v3022_v24 = vadd.f32 %v3021_v52, %v9856_v20  ;;  %v7531_v48 = vpop.f32.mrb[170].mxu1 }
 0x339   : > { %8084 = vpow2.f32 %v3236_v39  ;;  %v3238_v3 = vmul.f32 1.442695, %v3199_v19  ;;  %v3132_v15 = vmul.f32 %v9925_v55, %v3030_v53  ;;  %v3033_v22 = vadd.f32 %v7531_v48, %v9865_v21  ;;  %v3024_v40 = vpop.f32.mrb[171].mxu1 }
 0x33a   : > { %8086 = vpow2.f32 %v3232_v27  ;;  %v3234_v49 = vmul.f32 1.442695, %v3197_v29  ;;  %v3130_v45 = vmul.f32 %v9925_v55, %v3022_v24  ;;  %v3025_v9 = vadd.f32 %v3024_v40, %v9859_v1 }
 0x33b   : > { %v8077_v10 = vpop.eup %8076  ;;  %8088 = vpow2.f32 %v3238_v3  ;;  %v9991_v34 = vadd.f32 %v9931_v25, %v3132_v15  ;;  %v3133_v20 = vmul.f32 %v9925_v55, %v3033_v22 }
 0x33c   : > { %v8079_v13 = vpop.eup %8078  ;;  %v3290_v57 = vadd.f32 1.0, %v8077_v10  ;;  %8090 = vpow2.f32 %v3234_v49  ;;  %v9995_v21 = vadd.f32 %v9931_v25, %v3130_v45  ;;  %v3131_v63 = vmul.f32 %v9925_v55, %v3025_v9  ;;  %v10009_v10 = vld [vmem:[#allocation2 + $0x2] sm:$0xff] }
 0x33d   : > { %v8081_v44 = vpop.eup %8080  ;;  %v3288_v39 = vadd.f32 1.0, %v8079_v13  ;;  %v3202_v1 = vsub.f32 0.0, %v9991_v34  ;;  %v10000_v19 = vadd.f32 %v9931_v25, %v3133_v20  ;;  %v10011_v20 = vld [vmem:[#allocation2 + $0xa] sm:$0xff] }
 0x33e   : > { %v8083_v53 = vpop.eup %8082  ;;  %8092 = vrcp.f32 %v3290_v57  ;;  %v3291_v52 = vadd.f32 1.0, %v8081_v44  ;;  %v3200_v27 = vsub.f32 0.0, %v9995_v21  ;;  %v10004_v29 = vadd.f32 %v9931_v25, %v3131_v63  ;;  %v7534_v24 = vpop.f32.mrb[172].mxu1 }
 0x33f   : > { %8094 = vrcp.f32 %v3288_v39  ;;  %v3289_v48 = vadd.f32 1.0, %v8083_v53  ;;  %v3244_v3 = vmul.f32 1.442695, %v3202_v1  ;;  %v3203_v15 = vsub.f32 0.0, %v10000_v19  ;;  %v3037_v22 = vpop.f32.mrb[173].mxu1 }
 0x340   : > { %8096 = vrcp.f32 %v3291_v52  ;;  %v3240_v40 = vmul.f32 1.442695, %v3200_v27  ;;  %v3201_v49 = vsub.f32 0.0, %v10004_v29  ;;  %v3046_v45 = vadd.f32 %v7534_v24, %v9874_v6  ;;  %v7535_v9 = vpop.f32.mrb[174].mxu1  ;;  %v7778_v24 = vld [vmem:[#allocation3 + $0x400] sm:$0xff]  }
 0x341   : > { %8098 = vrcp.f32 %v3289_v48  ;;  %v3246_v62 = vmul.f32 1.442695, %v3203_v15  ;;  %v3038_v13 = vadd.f32 %v3037_v22, %v9868_v42  ;;  %v3049_v57 = vadd.f32 %v7535_v9, %v9877_v26  ;;  %v3040_v63 = vpop.f32.mrb[175].mxu1  ;;  %7256 = vmatprep.subr.bf16.mxu0 %v7778_v24 }
 0x342   : > { %8100 = vpow2.f32 %v3244_v3  ;;  %v3242_v44 = vmul.f32 1.442695, %v3201_v49  ;;  %v3136_v39 = vmul.f32 %v9925_v55, %v3046_v45  ;;  %v3041_v1 = vadd.f32 %v3040_v63, %v9871_v35  ;;  %v7782_v49 = vld [vmem:[#allocation3 + $0x3b8] sm:$0xff]  }
 0x343   : > { %v8085_v53 = vpop.eup %8084  ;;  %8102 = vpow2.f32 %v3240_v40  ;;  %v3134_v6 = vmul.f32 %v9925_v55, %v3038_v13  ;;  %v3137_v52 = vmul.f32 %v9925_v55, %v3049_v57  ;;  %7158 = vmatprep.subr.bf16.mxu1 %v7782_v49 }
 0x344   : > { %v8087_v42 = vpop.eup %8086  ;;  %v3294_v48 = vadd.f32 1.0, %v8085_v53  ;;  %8104 = vpow2.f32 %v3246_v62  ;;  %v10022_v26 = vadd.f32 %v9931_v25, %v3136_v39  ;;  %v3135_v3 = vmul.f32 %v9925_v55, %v3041_v1 }
 0x345   : > { %v8089_v15 = vpop.eup %8088  ;;  %v3292_v35 = vadd.f32 1.0, %v8087_v42  ;;  %8106 = vpow2.f32 %v3242_v44  ;;  %v10026_v22 = vadd.f32 %v9931_v25, %v3134_v6  ;;  %v10029_v40 = vadd.f32 %v9931_v25, %v3137_v52 }
 0x346   : > { %v8091_v45 = vpop.eup %8090  ;;  %8108 = vrcp.f32 %v3294_v48  ;;  %v3295_v9 = vadd.f32 1.0, %v8089_v15  ;;  %v3206_v62 = vsub.f32 0.0, %v10022_v26  ;;  %v10033_v13 = vadd.f32 %v9931_v25, %v3135_v3  ;;  %v7538_v57 = vpop.f32.mrb[176].mxu1 }
 0x347   : > { %8110 = vrcp.f32 %v3292_v35  ;;  %v3293_v63 = vadd.f32 1.0, %v8091_v45  ;;  %v3204_v44 = vsub.f32 0.0, %v10026_v22  ;;  %v3207_v39 = vsub.f32 0.0, %v10029_v40  ;;  %v3053_v1 = vpop.f32.mrb[177].mxu1 }
 0x348   : > { %v8093_v53 = vpop.eup %8092  ;;  %8112 = vrcp.f32 %v3295_v9  ;;  %v3252_v6 = vmul.f32 1.442695, %v3206_v62  ;;  %v3205_v52 = vsub.f32 0.0, %v10033_v13  ;;  %v3062_v24 = vadd.f32 %v7538_v57, %v9887_v17  ;;  %v7539_v42 = vpop.f32.mrb[178].mxu1 }
 0x349   : > { %v8095_v48 = vpop.eup %8094  ;;  %v10040_v3 = vmul.f32 %v8093_v53, %v9939_v0  ;;  %8114 = vrcp.f32 %v3293_v63  ;;  %v3248_v15 = vmul.f32 1.442695, %v3204_v44  ;;  %v3254_v35 = vmul.f32 1.442695, %v3207_v39  ;;  %v3056_v45 = vpop.f32.mrb[179].mxu1  ;;  %v7783_v63 = vld [vmem:[#allocation3 + $0x378] sm:$0xff]  }
 0x34a   : > { %v8097_v27 = vpop.eup %8096  ;;  %v3352_v56 = vmul.f32 %v8095_v48, %v9945_v5  ;;  %8116 = vpow2.f32 %v3252_v6  ;;  %v3250_v49 = vmul.f32 1.442695, %v3205_v52  ;;  %v3140_v9 = vmul.f32 %v9925_v55, %v3062_v24  ;;  %7159 = vmatpush3.bf16.msra.mxu1 %v7783_v63 }
 0x34b   : > { %v8099_v62 = vpop.eup %8098  ;;  %3535 = vst [vmem:[#allocation2 + $0x31] sm:$0xff] %v10040_v3  ;;  %v10046_v17 = vmul.f32 %v8097_v27, %v9950_v36  ;;  %8118 = vpow2.f32 %v3248_v15  ;;  %v3054_v0 = vadd.f32 %v3053_v1, %v9880_v61  ;;  %v3065_v57 = vadd.f32 %v7539_v42, %v9890_v7 }
 0x34c   : > { %v8101_v44 = vpop.eup %8100  ;;  %3533 = vst [vmem:[#allocation2 + $0x19] sm:$0xff] %v3352_v56  ;;  %v3353_v5 = vmul.f32 %v8099_v62, %v9956_v54  ;;  %8120 = vpow2.f32 %v3254_v35  ;;  %v10052_v39 = vadd.f32 %v9931_v25, %v3140_v9  ;;  %v3057_v53 = vadd.f32 %v3056_v45, %v9883_v14 }
 0x34d   : > { %v8103_v6 = vpop.eup %8102  ;;  %3536 = vst [vmem:[#allocation2 + $0x39] sm:$0xff] %v10046_v17  ;;  %v3298_v36 = vadd.f32 1.0, %v8101_v44  ;;  %8122 = vpow2.f32 %v3250_v49  ;;  %v3138_v61 = vmul.f32 %v9925_v55, %v3054_v0  ;;  %v3141_v7 = vmul.f32 %v9925_v55, %v3065_v57 }
 0x34e   : > { %v8105_v27 = vpop.eup %8104  ;;  %3534 = vst [vmem:[#allocation2 + $0x21] sm:$0xff] %v3353_v5  ;;  %v3296_v1 = vadd.f32 1.0, %v8103_v6  ;;  %v3210_v54 = vsub.f32 0.0, %v10052_v39  ;;  %v3139_v52 = vmul.f32 %v9925_v55, %v3057_v53  ;;  %v7542_v24 = vpop.f32.mrb[180].mxu1  ;;  %v3863_v42 = vpack.c.bf16 %v3353_v5, %v3352_v56 }
 0x34f   : > { %v8107_v14 = vpop.eup %8106  ;;  %8124 = vrcp.f32 %v3298_v36  ;;  %v3299_v48 = vadd.f32 1.0, %v8105_v27  ;;  %v10061_v15 = vadd.f32 %v9931_v25, %v3138_v61  ;;  %v10064_v35 = vadd.f32 %v9931_v25, %v3141_v7  ;;  %v3069_v45 = vpop.f32.mrb[181].mxu1 }
 0x350   : > { %v8109_v49 = vpop.eup %8108  ;;  %8126 = vrcp.f32 %v3296_v1  ;;  %v3297_v9 = vadd.f32 1.0, %v8107_v14  ;;  %v3260_v62 = vmul.f32 1.442695, %v3210_v54  ;;  %v10067_v0 = vadd.f32 %v9931_v25, %v3139_v52  ;;  %v7543_v57 = vpop.f32.mrb[182].mxu1  ;;  %4469 = vmatprep.mubr.bf16.mxu1 %v3863_v42 }
 0x351   : > { %v8111_v56 = vpop.eup %8110  ;;  %v10070_v63 = vmul.f32 %v8109_v49, %v9967_v28  ;;  %8128 = vrcp.f32 %v3299_v48  ;;  %v3208_v44 = vsub.f32 0.0, %v10061_v15  ;;  %v3211_v5 = vsub.f32 0.0, %v10064_v35  ;;  %v3072_v53 = vpop.f32.mrb[183].mxu1 }
 0x352   : > { %v8113_v6 = vpop.eup %8112  ;;  %v10075_v36 = vmul.f32 %v8111_v56, %v9971_v59  ;;  %8130 = vrcp.f32 %v3297_v9  ;;  %v3209_v61 = vsub.f32 0.0, %v10067_v0  ;;  %v3078_v7 = vadd.f32 %v7542_v24, %v9899_v18 }
 0x353   : > { %v8115_v27 = vpop.eup %8114  ;;  %3539 = vst [vmem:[#allocation2 + $0x61] sm:$0xff] %v10070_v63  ;;  %v10081_v28 = vmul.f32 %v8113_v6, %v9976_v32  ;;  %8132 = vpow2.f32 %v3260_v62  ;;  %v3256_v1 = vmul.f32 1.442695, %v3208_v44  ;;  %v3262_v54 = vmul.f32 1.442695, %v3211_v5 }
 0x354   : > { %v8117_v52 = vpop.eup %8116  ;;  %3537 = vst [vmem:[#allocation2 + $0x49] sm:$0xff] %v10075_v36  ;;  %v10085_v59 = vmul.f32 %v8115_v27, %v9980_v58  ;;  %v3258_v42 = vmul.f32 1.442695, %v3209_v61  ;;  %v3144_v14 = vmul.f32 %v9925_v55, %v3078_v7  ;;  %v3070_v18 = vadd.f32 %v3069_v45, %v9893_v38 }
 0x355   : > { %v8119_v24 = vpop.eup %8118  ;;  %3540 = vst [vmem:[#allocation2 + $0x69] sm:$0xff] %v10081_v28  ;;  %v3302_v48 = vadd.f32 1.0, %v8117_v52  ;;  %8134 = vpow2.f32 %v3256_v1  ;;  %v3081_v32 = vadd.f32 %v7543_v57, %v9902_v41  ;;  %v3073_v49 = vadd.f32 %v3072_v53, %v9896_v50  ;;  %v10099_v50 = vld [vmem:[#allocation3 + $0x440] sm:$0xff]  }
 0x356   : > { %v8121_v9 = vpop.eup %8120  ;;  %3538 = vst [vmem:[#allocation2 + $0x51] sm:$0xff] %v10085_v59  ;;  %v3300_v62 = vadd.f32 1.0, %v8119_v24  ;;  %8136 = vpow2.f32 %v3262_v54  ;;  %v10094_v58 = vadd.f32 %v9931_v25, %v3144_v14  ;;  %v3142_v56 = vmul.f32 %v9925_v55, %v3070_v18  ;;  %v7546_v38 = vpop.f32.mrb[184].mxu1  ;;  %7552 = vmatprep.subr.bf16.mxu1 %v10099_v50 }
 0x357   : > { %v8123_v45 = vpop.eup %8122  ;;  %8138 = vrcp.f32 %v3302_v48  ;;  %v3303_v44 = vadd.f32 1.0, %v8121_v9  ;;  %v3145_v5 = vmul.f32 %v9925_v55, %v3081_v32  ;;  %v3143_v41 = vmul.f32 %v9925_v55, %v3073_v49  ;;  %v3085_v57 = vpop.f32.mrb[185].mxu1 }
 0x358   : > { %8140 = vrcp.f32 %v3300_v62  ;;  %v3301_v53 = vadd.f32 1.0, %v8123_v45  ;;  %v3214_v6 = vsub.f32 0.0, %v10094_v58  ;;  %v10103_v61 = vadd.f32 %v9931_v25, %v3142_v56  ;;  %v7547_v7 = vpop.f32.mrb[186].mxu1 }
 0x359   : > { %v8125_v27 = vpop.eup %8124  ;;  %8142 = vrcp.f32 %v3303_v44  ;;  %v10106_v1 = vadd.f32 %v9931_v25, %v3145_v5  ;;  %v10109_v54 = vadd.f32 %v9931_v25, %v3143_v41  ;;  %v3094_v52 = vadd.f32 %v7546_v38, %v9911_v30  ;;  %v3088_v14 = vpop.f32.mrb[187].mxu1  ;;  %v3662_v44 = vld [vmem:[#allocation2 + $0x20] sm:$0xff] }
 0x35a   : > { %v8127_v18 = vpop.eup %8126  ;;  %v10114_v24 = vmul.f32 %v8125_v27, %v9991_v34  ;;  %8144 = vrcp.f32 %v3301_v53  ;;  %v3268_v48 = vmul.f32 1.442695, %v3214_v6  ;;  %v3212_v32 = vsub.f32 0.0, %v10103_v61 }
 0x35b   : > { %v8129_v49 = vpop.eup %8128  ;;  %v10118_v9 = vmul.f32 %v8127_v18, %v9995_v21  ;;  %8146 = vpow2.f32 %v3258_v42  ;;  %v3215_v62 = vsub.f32 0.0, %v10106_v1  ;;  %v3213_v30 = vsub.f32 0.0, %v10109_v54 }
 0x35c   : > { %v8131_v56 = vpop.eup %8130  ;;  %3543 = vst [vmem:[#allocation2 + $0x91] sm:$0xff] %v10114_v24  ;;  %v10124_v38 = vmul.f32 %v8129_v49, %v10000_v19  ;;  %8148 = vpow2.f32 %v3268_v48  ;;  %v3264_v34 = vmul.f32 1.442695, %v3212_v32  ;;  %v3148_v45 = vmul.f32 %v9925_v55, %v3094_v52  ;;  %v3661_v52 = vld [vmem:[#allocation2 + $0x18] sm:$0xff]  ;;  %v7779_v49 = vld [vmem:[#allocation3 + $0x3c0] sm:$0xff]  }
 0x35d   : > { %v8133_v5 = vpop.eup %8132  ;;  %3541 = vst [vmem:[#allocation2 + $0x79] sm:$0xff] %v10118_v9  ;;  %v10129_v21 = vmul.f32 %v8131_v56, %v10004_v29  ;;  %v3270_v42 = vmul.f32 1.442695, %v3215_v62  ;;  %v3266_v41 = vmul.f32 1.442695, %v3213_v30  ;;  %v3086_v53 = vadd.f32 %v3085_v57, %v9905_v33 }
 0x35e   : > { %3544 = vst [vmem:[#allocation2 + $0x99] sm:$0xff] %v10124_v38  ;;  %v3306_v6 = vadd.f32 1.0, %v8133_v5  ;;  %8150 = vpow2.f32 %v3264_v34  ;;  %v10134_v19 = vadd.f32 %v9931_v25, %v3148_v45  ;;  %v3097_v27 = vadd.f32 %v7547_v7, %v9914_v31  ;;  %v7550_v18 = vpop.f32.mrb[188].mxu1  ;;  %v7780_v34 = vld [vmem:[#allocation3 + $0x408] sm:$0xff]  }
 0x35f   : > { %v8135_v48 = vpop.eup %8134  ;;  %3542 = vst [vmem:[#allocation2 + $0x81] sm:$0xff] %v10129_v21  ;;  %8152 = vpow2.f32 %v3270_v42  ;;  %v3146_v29 = vmul.f32 %v9925_v55, %v3086_v53  ;;  %v3856_v32 = vpack.c.bf16 %v3662_v44, %v3661_v52  ;;  %v3089_v33 = vadd.f32 %v3088_v14, %v9908_v8  ;;  %v3101_v57 = vpop.f32.mrb[189].mxu1  ;;  %v3664_v52 = vld [vmem:[#allocation2 + $0x38] sm:$0xff] }
 0x360   : > { %v8137_v62 = vpop.eup %8136  ;;  %8154 = vrcp.f32 %v3306_v6  ;;  %v3304_v30 = vadd.f32 1.0, %v8135_v48  ;;  %v3218_v56 = vsub.f32 0.0, %v10134_v19  ;;  %v3149_v31 = vmul.f32 %v9925_v55, %v3097_v27  ;;  %v7551_v7 = vpop.f32.mrb[190].mxu1 }
 0x361   : > { %v8139_v45 = vpop.eup %8138  ;;  %v3307_v5 = vadd.f32 1.0, %v8137_v62  ;;  %8156 = vpow2.f32 %v3266_v41  ;;  %v10143_v42 = vadd.f32 %v9931_v25, %v3146_v29  ;;  %4622 = vmatprep.mubr.bf16.mxu0 %v3856_v32  ;;  %v3147_v8 = vmul.f32 %v9925_v55, %v3089_v33  ;;  %4470 = vmatmul.mubr.bf16.gmra.mrb[196].mxu1 %v3856_v32  ;;  %v3104_v14 = vpop.f32.mrb[191].mxu1  ;;  %v7781_v33 = vld [vmem:[#allocation3 + $0x3c8] sm:$0xff]  }
 0x362   : > { %v8141_v44 = vpop.eup %8140  ;;  %v10147_v53 = vmul.f32 %v8139_v45, %v10022_v26  ;;  %8158 = vrcp.f32 %v3304_v30  ;;  %v3276_v6 = vmul.f32 1.442695, %v3218_v56  ;;  %v10150_v27 = vadd.f32 %v9931_v25, %v3149_v31  ;;  %v7784_v56 = vld [vmem:[#allocation3 + $0x410] sm:$0xff]  }
 0x363   : > { %v11616_v41 = vpack.c.bf16 %v10011_v20, %v10009_v10  ;;  %v8143_v48 = vpop.eup %8142  ;;  %v10156_v29 = vmul.f32 %v8141_v44, %v10026_v22  ;;  %8160 = vrcp.f32 %v3307_v5  ;;  %v3216_v32 = vsub.f32 0.0, %v10143_v42  ;;  %v3663_v22 = vld [vmem:[#allocation2 + $0x30] sm:$0xff] }
 0x364   : > { %v10160_v26 = vadd.f32 %v9931_v25, %v3147_v8  ;;  %v8145_v62 = vpop.eup %8144  ;;  %3547 = vst [vmem:[#allocation2 + $0xc1] sm:$0xff] %v10147_v53  ;;  %v10164_v30 = vmul.f32 %v8143_v48, %v10029_v40  ;;  %8162 = vpow2.f32 %v3276_v6  ;;  %v3219_v10 = vsub.f32 0.0, %v10150_v27 }
 0x365   : > { %4623 = vmatmul.mubr.bf16.vlgmr.msra.gmra.mrb[160].mxu0 %v11616_v41  ;;  %v3872_v20 = vpack.c.bf16 %v10046_v17, %v10040_v3  ;;  %v8147_v31 = vpop.eup %8146  ;;  %3545 = vst [vmem:[#allocation2 + $0xa9] sm:$0xff] %v10156_v29  ;;  %v3272_v45 = vmul.f32 1.442695, %v3216_v32  ;;  %v10174_v40 = vpack.c.bf16 %v3664_v52, %v3663_v22  ;;  %v3110_v3 = vadd.f32 %v7550_v18, %v9942_v46  ;;  %v3632_v41 = vld [vmem:[#allocation2 + $0x22] sm:$0xff] }
 0x366   : > { %7257 = vmatpush3.bf16.msra.mxu0 %v7779_v49  ;;  %v10171_v49 = vmul.f32 %v8145_v62, %v10033_v13  ;;  %v3217_v5 = vsub.f32 0.0, %v10160_v26  ;;  %v8149_v8 = vpop.eup %8148  ;;  %3548 = vst [vmem:[#allocation2 + $0xc9] sm:$0xff] %v10164_v30  ;;  %v3305_v44 = vadd.f32 1.0, %v8147_v31  ;;  %v3278_v6 = vmul.f32 1.442695, %v3219_v10  ;;  %v7785_v18 = vld [vmem:[#allocation3 + $0x3d0] sm:$0xff]  }
 0x367   : > { %7258 = vmatprep.subr.bf16.mxu0 %v7780_v34  ;;  %4477 = vmatprep.mubr.bf16.mxu1 %v3872_v20  ;;  %v3102_v17 = vadd.f32 %v3101_v57, %v9917_v11  ;;  %v3631_v34 = vld [vmem:[#allocation2 + $0x1a] sm:$0xff]  ;;  %v3310_v13 = vadd.f32 1.0, %v8149_v8  ;;  %8164 = vpow2.f32 %v3272_v45  ;;  %v3113_v52 = vadd.f32 %v7551_v7, %v9952_v60  ;;  %v7786_v60 = vld [vmem:[#allocation3 + $0x418] sm:$0xff]  }
 0x368   : > { %3546 = vst [vmem:[#allocation2 + $0xb1] sm:$0xff] %v10171_v49  ;;  %v3274_v48 = vmul.f32 1.442695, %v3217_v5  ;;  %4630 = vmatprep.mubr.bf16.mxu0 %v10174_v40  ;;  %v8151_v32 = vpop.eup %8150  ;;  %8166 = vrcp.f32 %v3305_v44  ;;  %v3152_v62 = vmul.f32 %v9925_v55, %v3110_v3  ;;  %v3105_v11 = vadd.f32 %v3104_v14, %v9920_v23 }
 0x369   : > { %v3150_v46 = vmul.f32 %v9925_v55, %v3102_v17  ;;  %v8153_v57 = vpop.eup %8152  ;;  %8168 = vrcp.f32 %v3310_v13  ;;  %v3308_v10 = vadd.f32 1.0, %v8151_v32  ;;  %v3153_v20 = vmul.f32 %v9925_v55, %v3113_v52  ;;  %4478 = vmatmul.mubr.bf16.gmra.mrb[200].mxu1 %v10174_v40  ;;  %v7787_v17 = vld [vmem:[#allocation3 + $0x3d8] sm:$0xff]   ;;  %v3666_v13 = vld [vmem:[#allocation2 + $0x50] sm:$0xff] }
 0x36a   : > { %7259 = vmatpush3.bf16.msra.mxu0 %v7781_v33  ;;  %v10187_v22 = vpack.c.bf16 %v3632_v41, %v3631_v34  ;;  %v8155_v7 = vpop.eup %8154  ;;  %v3311_v33 = vadd.f32 1.0, %v8153_v57  ;;  %8170 = vpow2.f32 %v3278_v6  ;;  %v10190_v31 = vadd.f32 %v9931_v25, %v3152_v62  ;;  %v7788_v52 = vld [vmem:[#allocation3 + $0x420] sm:$0xff]   ;;  %v3634_v57 = vld [vmem:[#allocation2 + $0x3a] sm:$0xff] }
 0x36b   : > { %7260 = vmatprep.subr.bf16.mxu0 %v7784_v56  ;;  %v10193_v23 = vadd.f32 %v9931_v25, %v3150_v46  ;;  %v8157_v14 = vpop.eup %8156  ;;  %v10196_v56 = vmul.f32 %v8155_v7, %v10052_v39  ;;  %8172 = vrcp.f32 %v3308_v10  ;;  %v10199_v45 = vadd.f32 %v9931_v25, %v3153_v20  ;;  %v3665_v20 = vld [vmem:[#allocation2 + $0x48] sm:$0xff] }
 0x36c   : > { %v3151_v5 = vmul.f32 %v9925_v55, %v3105_v11  ;;  %v8159_v8 = vpop.eup %8158  ;;  %8174 = vrcp.f32 %v3311_v33  ;;  %v3309_v44 = vadd.f32 1.0, %v8157_v14  ;;  %v3222_v6 = vsub.f32 0.0, %v10190_v31  ;;  %v7789_v33 = vld [vmem:[#allocation3 + $0x3e0] sm:$0xff]  }
 0x36d   : > { %4631 = vmatmul.mubr.bf16.gmra.mrb[164].mxu0 %v10187_v22  ;;  %v3220_v3 = vsub.f32 0.0, %v10193_v23  ;;  %v8161_v34 = vpop.eup %8160  ;;  %3551 = vst [vmem:[#allocation2 + $0xf1] sm:$0xff] %v10196_v56  ;;  %v10207_v39 = vmul.f32 %v8159_v8, %v10061_v15  ;;  %8176 = vpow2.f32 %v3274_v48  ;;  %v3223_v55 = vsub.f32 0.0, %v10199_v45 }
 0x36e   : > { %7261 = vmatpush3.bf16.msra.mxu0 %v7785_v18  ;;  %v10211_v41 = vadd.f32 %v9931_v25, %v3151_v5  ;;  %v8163_v32 = vpop.eup %8162  ;;  %v10214_v62 = vmul.f32 %v8161_v34, %v10064_v35  ;;  %8178 = vrcp.f32 %v3309_v44  ;;  %v3284_v46 = vmul.f32 1.442695, %v3222_v6  ;;  %v3633_v18 = vld [vmem:[#allocation2 + $0x32] sm:$0xff]  ;;  %v3667_v44 = vld [vmem:[#allocation2 + $0x60] sm:$0xff] }
 0x36f   : > { %7262 = vmatprep.subr.bf16.mxu0 %v7786_v60  ;;  %v3280_v11 = vmul.f32 1.442695, %v3220_v3  ;;  %3549 = vst [vmem:[#allocation2 + $0xd9] sm:$0xff] %v10207_v39  ;;  %v3314_v15 = vadd.f32 1.0, %v8163_v32  ;;  %v3286_v48 = vmul.f32 1.442695, %v3223_v55  ;;  %v3881_v25 = vpack.c.bf16 %v10085_v59, %v10075_v36 }
 0x370   : > { %v3221_v10 = vsub.f32 0.0, %v10211_v41  ;;  %v3668_v60 = vld [vmem:[#allocation2 + $0x68] sm:$0xff]  ;;  %3552 = vst [vmem:[#allocation2 + $0xf9] sm:$0xff] %v10214_v62  ;;  %8180 = vpow2.f32 %v3284_v46  ;;  %v10221_v35 = vpack.c.bf16 %v3666_v13, %v3665_v20  ;;  %v3890_v7 = vpack.c.bf16 %v10081_v28, %v10070_v63  ;;  %v7790_v36 = vld [vmem:[#allocation3 + $0x428] sm:$0xff]   ;;  %v7793_v32 = vld [vmem:[#allocation3 + $0x430] sm:$0xff]  }
 0x371   : > { %v8165_v14 = vpop.eup %8164  ;;  %8182 = vrcp.f32 %v3314_v15  ;;  %4485 = vmatprep.mubr.bf16.mxu1 %v3881_v25  ;;  %v10225_v8 = vpack.c.bf16 %v3634_v57, %v3633_v18  ;;  %v10229_v3 = vpack.c.bf16 %v3668_v60, %v3667_v44  ;;  %v3899_v63 = vpack.c.bf16 %v10129_v21, %v10118_v9  ;;  %v7791_v9 = vld [vmem:[#allocation3 + $0x3e8] sm:$0xff]   ;;  %v7795_v44 = vld [vmem:[#allocation3 + $0x438] sm:$0xff]  }
 0x372   : > { %7263 = vmatpush3.bf16.msra.mxu0 %v7787_v17  ;;  %v3282_v5 = vmul.f32 1.442695, %v3221_v10  ;;  %v8167_v59 = vpop.eup %8166  ;;  %v3312_v6 = vadd.f32 1.0, %v8165_v14  ;;  %8184 = vpow2.f32 %v3280_v11  ;;  %4638 = vmatprep.mubr.bf16.mxu0 %v10221_v35  ;;  %v3908_v34 = vpack.c.bf16 %v10124_v38, %v10114_v24  ;;  %v3635_v11 = vld [vmem:[#allocation2 + $0x4a] sm:$0xff]  ;;  %v3636_v18 = vld [vmem:[#allocation2 + $0x52] sm:$0xff]  ;;  %v3670_v10 = vld [vmem:[#allocation2 + $0x80] sm:$0xff] }
 0x373   : > { %7264 = vmatprep.subr.bf16.mxu0 %v7788_v52  ;;  %4486 = vmatmul.mubr.bf16.gmra.mrb[204].mxu1 %v10221_v35  ;;  %v8169_v28 = vpop.eup %8168  ;;  %v10234_v17 = vmul.f32 %v8167_v59, %v10067_v0  ;;  %8186 = vpow2.f32 %v3286_v48  ;;  %v3917_v52 = vpack.c.bf16 %v10171_v49, %v10156_v29  ;;  %v3926_v57 = vpack.c.bf16 %v10164_v30, %v10147_v53  ;;  %v3669_v14 = vld [vmem:[#allocation2 + $0x78] sm:$0xff]  ;;  %v3675_v29 = vld [vmem:[#allocation2 + $0xc0] sm:$0xff]  ;;  %v3646_v30 = vld [vmem:[#allocation2 + $0xca] sm:$0xff] }
 0x374   : > { %4493 = vmatprep.mubr.bf16.mxu1 %v3890_v7  ;;  %v8171_v55 = vpop.eup %8170  ;;  %v10240_v13 = vmul.f32 %v8169_v28, %v10094_v58  ;;  %8188 = vrcp.f32 %v3312_v6  ;;  %v7794_v7 = vld [vmem:[#allocation3 + $0x3f0] sm:$0xff]   ;;  %v10269_v59 = vpack.c.bf16 %v3670_v10, %v3669_v14  ;;  %v3671_v14 = vld [vmem:[#allocation2 + $0x90] sm:$0xff] }
 0x375   : > { %4639 = vmatmul.mubr.bf16.gmra.mrb[168].mxu0 %v10225_v8  ;;  %v8173_v21 = vpop.eup %8172  ;;  %3550 = vst [vmem:[#allocation2 + $0xe1] sm:$0xff] %v10234_v17  ;;  %v3315_v0 = vadd.f32 1.0, %v8171_v55  ;;  %8190 = vpow2.f32 %v3282_v5  ;;  %v3935_v25 = vpack.c.bf16 %v10234_v17, %v10207_v39  ;;  %v3645_v53 = vld [vmem:[#allocation2 + $0xc2] sm:$0xff] }
 0x376   : > { %4646 = vmatprep.mubr.bf16.mxu0 %v10229_v3  ;;  %7265 = vmatpush3.bf16.msra.mxu0 %v7789_v33  ;;  %v8175_v46 = vpop.eup %8174  ;;  %3555 = vst [vmem:[#allocation2 + $0x121] sm:$0xff] %v10240_v13  ;;  %v10248_v58 = vmul.f32 %v8173_v21, %v10103_v61  ;;  %v3944_v61 = vpack.c.bf16 %v10214_v62, %v10196_v56  ;;  %v7796_v21 = vld [vmem:[#allocation3 + $0x3f8] sm:$0xff]  }
 0x377   : > { %7266 = vmatprep.subr.bf16.mxu0 %v7790_v36  ;;  %v8177_v15 = vpop.eup %8176  ;;  %v10253_v48 = vmul.f32 %v8175_v46, %v10106_v1  ;;  %8192 = vrcp.f32 %v3315_v0  ;;  %v10264_v1 = vpack.c.bf16 %v3636_v18, %v3635_v11  ;;  %v3638_v18 = vld [vmem:[#allocation2 + $0x6a] sm:$0xff]  ;;  %v3649_v56 = vld [vmem:[#allocation2 + $0xf2] sm:$0xff]  ;;  %v3650_v62 = vld [vmem:[#allocation2 + $0xfa] sm:$0xff] }
 0x378   : > { %v8179_v20 = vpop.eup %8178  ;;  %3553 = vst [vmem:[#allocation2 + $0x109] sm:$0xff] %v10248_v58  ;;  %v3313_v60 = vadd.f32 1.0, %v8177_v15 }
 0x379   : > { %3556 = vst [vmem:[#allocation2 + $0x129] sm:$0xff] %v10253_v48  ;;  %v10262_v33 = vmul.f32 %v8179_v20, %v10109_v54  ;;  %v3962_v5 = vpack.c.bf16 %v10253_v48, %v10240_v13 }
 0x37a   : > { %7267 = vmatpush3.bf16.msra.mxu0 %v7791_v9  ;;  %v8181_v36 = vpop.eup %8180  ;;  %8194 = vrcp.f32 %v3313_v60 }
 0x37b   : > { %7268 = vmatprep.subr.bf16.mxu0 %v7793_v32  ;;  %4494 = vmatmul.mubr.bf16.gmra.mrb[208].mxu1 %v10229_v3  ;;  %v8183_v6 = vpop.eup %8182  ;;  %3554 = vst [vmem:[#allocation2 + $0x111] sm:$0xff] %v10262_v33  ;;  %v3318_v28 = vadd.f32 1.0, %v8181_v36  ;;  %v3953_v54 = vpack.c.bf16 %v10262_v33, %v10248_v58 }
 0x37c   : > { %4501 = vmatprep.mubr.bf16.mxu1 %v3899_v63  ;;  %v8185_v55 = vpop.eup %8184  ;;  %v10276_v9 = vmul.f32 %v8183_v6, %v10134_v19  ;;  %v3637_v63 = vld [vmem:[#allocation2 + $0x62] sm:$0xff]  ;;  %v3672_v19 = vld [vmem:[#allocation2 + $0x98] sm:$0xff] }
 0x37d   : > { %4647 = vmatmul.mubr.bf16.gmra.mrb[172].mxu0 %v10264_v1  ;;  %v8187_v0 = vpop.eup %8186  ;;  %8196 = vrcp.f32 %v3318_v28  ;;  %v3316_v32 = vadd.f32 1.0, %v8185_v55  ;;  %v10290_v36 = vpack.c.bf16 %v3672_v19, %v3671_v14  ;;  %v3639_v28 = vld [vmem:[#allocation2 + $0x7a] sm:$0xff]  ;;  %v3640_v55 = vld [vmem:[#allocation2 + $0x82] sm:$0xff] }
 0x37e   : > { %4654 = vmatprep.mubr.bf16.mxu0 %v10269_v59  ;;  %7269 = vmatpush3.bf16.msra.mxu0 %v7794_v7  ;;  %v8189_v46 = vpop.eup %8188  ;;  %3559 = vst [vmem:[#allocation2 + $0x151] sm:$0xff] %v10276_v9  ;;  %v3319_v11 = vadd.f32 1.0, %v8187_v0  ;;  %v10284_v7 = vpack.c.bf16 %v3638_v18, %v3637_v63  ;;  %v3674_v0 = vld [vmem:[#allocation2 + $0xb0] sm:$0xff]  ;;  %v3642_v19 = vld [vmem:[#allocation2 + $0x9a] sm:$0xff]  ;;  %v3648_v17 = vld [vmem:[#allocation2 + $0xe2] sm:$0xff] }
 0x37f   : > { %7270 = vmatprep.subr.bf16.mxu0 %v7795_v44  ;;  %v8191_v15 = vpop.eup %8190  ;;  %v10281_v10 = vmul.f32 %v8189_v46, %v10143_v42  ;;  %8198 = vrcp.f32 %v3316_v32  ;;  %v10307_v32 = vpack.c.bf16 %v3640_v55, %v3639_v28  ;;  %v3673_v46 = vld [vmem:[#allocation2 + $0xa8] sm:$0xff]  ;;  %v3678_v14 = vld [vmem:[#allocation2 + $0xe0] sm:$0xff]  ;;  %v3677_v28 = vld [vmem:[#allocation2 + $0xd8] sm:$0xff] }
 0x380   : > { %8200 = vrcp.f32 %v3319_v11  ;;  %v3317_v20 = vadd.f32 1.0, %v8191_v15  ;;  %v10313_v63 = vpack.c.bf16 %v3674_v0, %v3673_v46  ;;  %v3641_v15 = vld [vmem:[#allocation2 + $0x92] sm:$0xff]  ;;  %v10341_v55 = vpack.c.bf16 %v3678_v14, %v3677_v28  ;;  %v3647_v39 = vld [vmem:[#allocation2 + $0xda] sm:$0xff]  ;;  %v3681_v46 = vld [vmem:[#allocation2 + $0x108] sm:$0xff] }
 0x381   : > { %v8193_v60 = vpop.eup %8192  ;;  %3557 = vst [vmem:[#allocation2 + $0x139] sm:$0xff] %v10281_v10  ;;  %v3679_v0 = vld [vmem:[#allocation2 + $0xf0] sm:$0xff]  ;;  %v3653_v13 = vld [vmem:[#allocation2 + $0x122] sm:$0xff] }
 0x382   : > { %7271 = vmatpush3.bf16.msra.mxu0 %v7796_v21  ;;  %v10287_v44 = vmul.f32 %v8193_v60, %v10150_v27  ;;  %8202 = vrcp.f32 %v3317_v20  ;;  %v10328_v60 = vpack.c.bf16 %v3642_v19, %v3641_v15  ;;  %v3651_v58 = vld [vmem:[#allocation2 + $0x10a] sm:$0xff]  ;;  %v3652_v33 = vld [vmem:[#allocation2 + $0x112] sm:$0xff] }
 0x383   : > { %4502 = vmatmul.mubr.bf16.gmra.mrb[212].mxu1 %v10269_v59  ;;  %v10378_v19 = vpack.c.bf16 %v3652_v33, %v3651_v58  ;;  %v3654_v48 = vld [vmem:[#allocation2 + $0x12a] sm:$0xff]  ;;  %v3790_v58 = vld [vmem:[#allocation2 + $0x39] sm:$0xff] }
 0x384   : > { %4509 = vmatprep.mubr.bf16.mxu1 %v3908_v34  ;;  %v8195_v42 = vpop.eup %8194  ;;  %3560 = vst [vmem:[#allocation2 + $0x159] sm:$0xff] %v10287_v44  ;;  %v3980_v27 = vpack.c.bf16 %v10287_v44, %v10276_v9 }
 0x385   : > { %4655 = vmatmul.mubr.bf16.gmra.mrb[176].mxu0 %v10284_v7  ;;  %v10301_v6 = vmul.f32 %v8195_v42, %v10160_v26 }
 0x386   : > { %4662 = vmatprep.mubr.bf16.mxu0 %v10290_v36 }
 0x387   : > { %v8197_v21 = vpop.eup %8196  ;;  %3558 = vst [vmem:[#allocation2 + $0x141] sm:$0xff] %v10301_v6  ;;  %v3971_v24 = vpack.c.bf16 %v10301_v6, %v10281_v10 }
 0x388   : > { %v3382_v38 = vmul.f32 %v8197_v21, %v10190_v31  ;;  %v10348_v21 = vpack.c.bf16 %v3646_v30, %v3645_v53 }
 0x389   : > { %v8199_v34 = vpop.eup %8198 }
 0x38a   : > { %v8201_v11 = vpop.eup %8200  ;;  %3563 = vst [vmem:[#allocation2 + $0x181] sm:$0xff] %v3382_v38  ;;  %v10310_v26 = vmul.f32 %v8199_v34, %v10193_v23  ;;  %v10358_v34 = vpack.c.bf16 %v3648_v17, %v3647_v39 }
 0x38b   : > { %4510 = vmatmul.mubr.bf16.gmra.mrb[216].mxu1 %v10290_v36  ;;  %v3383_v18 = vmul.f32 %v8201_v11, %v10199_v45  ;;  %v3676_v45 = vld [vmem:[#allocation2 + $0xc8] sm:$0xff]  ;;  %v3657_v44 = vld [vmem:[#allocation2 + $0x152] sm:$0xff] }
 0x38c   : > { %4517 = vmatprep.mubr.bf16.mxu1 %v3917_v52  ;;  %v8203_v31 = vpop.eup %8202  ;;  %3561 = vst [vmem:[#allocation2 + $0x169] sm:$0xff] %v10310_v26  ;;  %v10331_v49 = vpack.c.bf16 %v3676_v45, %v3675_v29  ;;  %v3644_v52 = vld [vmem:[#allocation2 + $0xb2] sm:$0xff] }
 0x38d   : > { %4663 = vmatmul.mubr.bf16.gmra.mrb[180].mxu0 %v10307_v32  ;;  %3564 = vst [vmem:[#allocation2 + $0x189] sm:$0xff] %v3383_v18  ;;  %v10323_v23 = vmul.f32 %v8203_v31, %v10211_v41  ;;  %v3643_v41 = vld [vmem:[#allocation2 + $0xaa] sm:$0xff]  ;;  %v10368_v18 = vpack.c.bf16 %v3650_v62, %v3649_v56  ;;  %v3683_v31 = vld [vmem:[#allocation2 + $0x120] sm:$0xff]  ;;  %v3685_v45 = vld [vmem:[#allocation2 + $0x138] sm:$0xff] }
 0x38e   : > { %4670 = vmatprep.mubr.bf16.mxu0 %v10313_v63  ;;  %v10338_v42 = vpack.c.bf16 %v3644_v52, %v3643_v41  ;;  %v10388_v41 = vpack.c.bf16 %v3654_v48, %v3653_v13  ;;  %v3687_v52 = vld [vmem:[#allocation2 + $0x150] sm:$0xff]  ;;  %v3655_v10 = vld [vmem:[#allocation2 + $0x13a] sm:$0xff]  ;;  %v3656_v6 = vld [vmem:[#allocation2 + $0x142] sm:$0xff] }
 0x38f   : > { %3562 = vst [vmem:[#allocation2 + $0x171] sm:$0xff] %v10323_v23  ;;  %v3989_v20 = vpack.c.bf16 %v10323_v23, %v10310_v26  ;;  %v10398_v28 = vpack.c.bf16 %v3656_v6, %v3655_v10  ;;  %v3694_v23 = vld [vmem:[#allocation2 + $0x21] sm:$0xff]  ;;  %v7797_v13 = vld [vmem:[#allocation3 + $0x448] sm:$0xff]  }
 0x390   : > { %v7799_v10 = vld [vmem:[#allocation3 + $0x458] sm:$0xff]  }
 0x391   : > { %v3691_v56 = vld [vmem:[#allocation2 + $0x180] sm:$0xff] }
 0x393   : > { %4518 = vmatmul.mubr.bf16.gmra.mrb[220].mxu1 %v10313_v63  ;;  %v3689_v53 = vld [vmem:[#allocation2 + $0x168] sm:$0xff] }
 0x394   : > { %4525 = vmatprep.mubr.bf16.mxu1 %v3926_v57  ;;  %v3680_v57 = vld [vmem:[#allocation2 + $0xf8] sm:$0xff] }
 0x395   : > { %4671 = vmatmul.mubr.bf16.gmra.mrb[184].mxu0 %v10328_v60  ;;  %v10351_v38 = vpack.c.bf16 %v3680_v57, %v3679_v0  ;;  %v3692_v0 = vld [vmem:[#allocation2 + $0x188] sm:$0xff] }
 0x396   : > { %4678 = vmatprep.mubr.bf16.mxu0 %v10331_v49  ;;  %v10415_v26 = vpack.c.bf16 %v3692_v0, %v3691_v56 }
 0x39b   : > { %4526 = vmatmul.mubr.bf16.gmra.mrb[224].mxu1 %v10331_v49 }
 0x39c   : > { %4533 = vmatprep.mubr.bf16.mxu1 %v3935_v25  ;;  %v3682_v25 = vld [vmem:[#allocation2 + $0x110] sm:$0xff] }
 0x39d   : > { %4679 = vmatmul.mubr.bf16.gmra.mrb[188].mxu0 %v10338_v42  ;;  %v10361_v11 = vpack.c.bf16 %v3682_v25, %v3681_v46 }
 0x39e   : > { %4686 = vmatprep.mubr.bf16.mxu0 %v10341_v55 }
 0x3a3   : > { %4534 = vmatmul.mubr.bf16.gmra.mrb[228].mxu1 %v10341_v55 }
 0x3a4   : > { %4541 = vmatprep.mubr.bf16.mxu1 %v3944_v61  ;;  %v3684_v61 = vld [vmem:[#allocation2 + $0x128] sm:$0xff] }
 0x3a5   : > { %4687 = vmatmul.mubr.bf16.gmra.mrb[192].mxu0 %v10348_v21  ;;  %v10371_v15 = vpack.c.bf16 %v3684_v61, %v3683_v31  ;;  %v3660_v61 = vld [vmem:[#allocation2 + $0x172] sm:$0xff] }
 0x3a6   : > { %4694 = vmatprep.mubr.bf16.mxu0 %v10351_v38  ;;  %v3693_v31 = vld [vmem:[#allocation2 + $0x19] sm:$0xff] }
 0x3a7   : > { %v3857_v33 = vpack.c.bf16 %v3694_v23, %v3693_v31 }
 0x3ab   : > { %4542 = vmatmul.mubr.bf16.gmra.mrb[232].mxu1 %v10351_v38 }
 0x3ac   : > { %4549 = vmatprep.mubr.bf16.mxu1 %v3953_v54  ;;  %v3686_v54 = vld [vmem:[#allocation2 + $0x140] sm:$0xff] }
 0x3ad   : > { %4695 = vmatmul.mubr.bf16.gmra.mrb[196].mxu0 %v10358_v34  ;;  %v10381_v29 = vpack.c.bf16 %v3686_v54, %v3685_v45  ;;  %v3789_v45 = vld [vmem:[#allocation2 + $0x31] sm:$0xff] }
 0x3ae   : > { %4702 = vmatprep.mubr.bf16.mxu0 %v10361_v11  ;;  %v3860_v48 = vpack.c.bf16 %v3790_v58, %v3789_v45 }
 0x3b3   : > { %4550 = vmatmul.mubr.bf16.gmra.mrb[236].mxu1 %v10361_v11 }
 0x3b4   : > { %4557 = vmatprep.mubr.bf16.mxu1 %v3962_v5  ;;  %v3688_v5 = vld [vmem:[#allocation2 + $0x158] sm:$0xff] }
 0x3b5   : > { %4703 = vmatmul.mubr.bf16.gmra.mrb[200].mxu0 %v10368_v18  ;;  %v10391_v14 = vpack.c.bf16 %v3688_v5, %v3687_v52  ;;  %v3792_v5 = vld [vmem:[#allocation2 + $0x51] sm:$0xff]  ;;  %v3791_v52 = vld [vmem:[#allocation2 + $0x49] sm:$0xff] }
 0x3b6   : > { %4710 = vmatprep.mubr.bf16.mxu0 %v10371_v15  ;;  %v3869_v6 = vpack.c.bf16 %v3792_v5, %v3791_v52 }
 0x3bb   : > { %4558 = vmatmul.mubr.bf16.gmra.mrb[240].mxu1 %v10371_v15 }
 0x3bc   : > { %4565 = vmatprep.mubr.bf16.mxu1 %v3971_v24  ;;  %v3690_v24 = vld [vmem:[#allocation2 + $0x170] sm:$0xff] }
 0x3bd   : > { %4711 = vmatmul.mubr.bf16.gmra.mrb[204].mxu0 %v10378_v19  ;;  %v10401_v30 = vpack.c.bf16 %v3690_v24, %v3689_v53  ;;  %v3794_v24 = vld [vmem:[#allocation2 + $0x69] sm:$0xff]  ;;  %v7801_v53 = vld [vmem:[#allocation3 + $0x468] sm:$0xff]  }
 0x3be   : > { %4718 = vmatprep.mubr.bf16.mxu0 %v10381_v29 }
 0x3c3   : > { %4566 = vmatmul.mubr.bf16.gmra.mrb[244].mxu1 %v10381_v29 }
 0x3c4   : > { %4573 = vmatprep.mubr.bf16.mxu1 %v3980_v27  ;;  %v3658_v27 = vld [vmem:[#allocation2 + $0x15a] sm:$0xff] }
 0x3c5   : > { %4719 = vmatmul.mubr.bf16.gmra.mrb[208].mxu0 %v10388_v41  ;;  %v10410_v46 = vpack.c.bf16 %v3658_v27, %v3657_v44  ;;  %v3795_v44 = vld [vmem:[#allocation2 + $0x79] sm:$0xff]  ;;  %v7803_v27 = vld [vmem:[#allocation3 + $0x478] sm:$0xff]  }
 0x3c6   : > { %4726 = vmatprep.mubr.bf16.mxu0 %v10391_v14 }
 0x3c8   : > { %v6936_v9 = vpop.f32.mrb[192].mxu1 }
 0x3c9   : > { %v6937_v57 = vpop.f32.mrb[193].mxu1 }
 0x3ca   : > { %v10408_v39 = vadd.f32 %v6937_v57, %v6936_v9  ;;  %v6939_v17 = vpop.f32.mrb[194].mxu1 }
 0x3cb   : > { %4574 = vmatmul.mubr.bf16.gmra.mrb[248].mxu1 %v10391_v14  ;;  %v6940_v25 = vpop.f32.mrb[195].mxu1 }
 0x3cc   : > { %4581 = vmatprep.mubr.bf16.mxu1 %v3989_v20  ;;  %v10412_v62 = vadd.f32 %v6940_v25, %v6939_v17  ;;  %v3659_v20 = vld [vmem:[#allocation2 + $0x16a] sm:$0xff] }
 0x3cd   : > { %4727 = vmatmul.mubr.bf16.gmra.mrb[212].mxu0 %v10398_v28  ;;  %v10420_v54 = vpack.c.bf16 %v3660_v61, %v3659_v20  ;;  %v3800_v17 = vld [vmem:[#allocation2 + $0xb1] sm:$0xff]  ;;  %v3799_v25 = vld [vmem:[#allocation2 + $0xa9] sm:$0xff] }
 0x3ce   : > { %4734 = vmatprep.mubr.bf16.mxu0 %v10401_v30  ;;  %v3905_v56 = vpack.c.bf16 %v3800_v17, %v3799_v25  ;;  %v3815_v25 = vld [vmem:[#allocation2 + $0x169] sm:$0xff] }
 0x3d3   : > { %4582 = vmatmul.mubr.bf16.gmra.mrb[252].mxu1 %v10401_v30 }
 0x3d4   : > { %4783 = vmatprep.mubr.bf16.mxu1 %v10187_v22  ;;  %v7798_v22 = vld [vmem:[#allocation3 + $0x450] sm:$0xff]  }
 0x3d5   : > { %4735 = vmatmul.mubr.bf16.gmra.mrb[216].mxu0 %v10410_v46 }
 0x3d6   : > { %4742 = vmatprep.mubr.bf16.mxu0 %v10415_v26 }
 0x3db   : > { %4784 = vmatmul.mubr.bf16.vlgmr.msra.gmra.mrb[0].mxu1 %v3857_v33 }
 0x3dc   : > { %7553 = vmatpush3.bf16.msra.mxu1 %v10099_v50  ;;  %4791 = vmatprep.mubr.bf16.mxu1 %v10225_v8  ;;  %v7800_v50 = vld [vmem:[#allocation3 + $0x460] sm:$0xff]   ;;  %v3793_v8 = vld [vmem:[#allocation2 + $0x61] sm:$0xff] }
 0x3dd   : > { %4743 = vmatmul.mubr.bf16.gmra.mrb[220].mxu0 %v10420_v54  ;;  %7554 = vmatprep.subr.bf16.mxu1 %v7797_v13  ;;  %v3878_v9 = vpack.c.bf16 %v3794_v24, %v3793_v8 }
 0x3de   : > { %4944 = vmatprep.mubr.bf16.mxu0 %v3860_v48 }
 0x3e0   : > { %7555 = vmatpush3.bf16.msra.mxu1 %v7797_v13 }
 0x3e1   : > { %7556 = vmatprep.subr.bf16.mxu1 %v7798_v22 }
 0x3e3   : > { %4792 = vmatmul.mubr.bf16.gmra.mrb[4].mxu1 %v3860_v48 }
 0x3e4   : > { %4799 = vmatprep.mubr.bf16.mxu1 %v10264_v1  ;;  %7557 = vmatpush3.bf16.msra.mxu1 %v7798_v22  ;;  %v3796_v1 = vld [vmem:[#allocation2 + $0x81] sm:$0xff] }
 0x3e5   : > { %4945 = vmatmul.mubr.bf16.vlgmr.msra.gmra.mrb[224].mxu0 %v10174_v40  ;;  %7558 = vmatprep.subr.bf16.mxu1 %v7799_v10  ;;  %v7802_v40 = vld [vmem:[#allocation3 + $0x470] sm:$0xff]   ;;  %v3887_v57 = vpack.c.bf16 %v3796_v1, %v3795_v44 }
 0x3e6   : > { %4952 = vmatprep.mubr.bf16.mxu0 %v3869_v6 }
 0x3e8   : > { %7559 = vmatpush3.bf16.msra.mxu1 %v7799_v10 }
 0x3e9   : > { %7560 = vmatprep.subr.bf16.mxu1 %v7800_v50 }
 0x3eb   : > { %4800 = vmatmul.mubr.bf16.gmra.mrb[8].mxu1 %v3869_v6 }
 0x3ec   : > { %4807 = vmatprep.mubr.bf16.mxu1 %v10284_v7  ;;  %7561 = vmatpush3.bf16.msra.mxu1 %v7800_v50  ;;  %v3797_v7 = vld [vmem:[#allocation2 + $0x91] sm:$0xff] }
 0x3ed   : > { %4953 = vmatmul.mubr.bf16.gmra.mrb[228].mxu0 %v10221_v35  ;;  %7562 = vmatprep.subr.bf16.mxu1 %v7801_v53  ;;  %v3798_v35 = vld [vmem:[#allocation2 + $0x99] sm:$0xff] }
 0x3ee   : > { %4960 = vmatprep.mubr.bf16.mxu0 %v3878_v9  ;;  %v3896_v0 = vpack.c.bf16 %v3798_v35, %v3797_v7 }
 0x3f0   : > { %7563 = vmatpush3.bf16.msra.mxu1 %v7801_v53 }
 0x3f1   : > { %7564 = vmatprep.subr.bf16.mxu1 %v7802_v40 }
 0x3f3   : > { %4808 = vmatmul.mubr.bf16.gmra.mrb[12].mxu1 %v3878_v9 }
 0x3f4   : > { %4815 = vmatprep.mubr.bf16.mxu1 %v10307_v32  ;;  %7565 = vmatpush3.bf16.msra.mxu1 %v7802_v40  ;;  %v3801_v32 = vld [vmem:[#allocation2 + $0xc1] sm:$0xff] }
 0x3f5   : > { %4961 = vmatmul.mubr.bf16.gmra.mrb[232].mxu0 %v10229_v3  ;;  %7566 = vmatprep.subr.bf16.mxu1 %v7803_v27  ;;  %v3802_v3 = vld [vmem:[#allocation2 + $0xc9] sm:$0xff] }
 0x3f6   : > { %4968 = vmatprep.mubr.bf16.mxu0 %v3887_v57  ;;  %v3914_v23 = vpack.c.bf16 %v3802_v3, %v3801_v32 }
 0x3f8   : > { %7567 = vmatpush3.bf16.msra.mxu1 %v7803_v27 }
 0x3fb   : > { %4816 = vmatmul.mubr.bf16.gmra.mrb[16].mxu1 %v3887_v57  ;;  %v3816_v57 = vld [vmem:[#allocation2 + $0x171] sm:$0xff] }
 0x3fc   : > { %4823 = vmatprep.mubr.bf16.mxu1 %v10328_v60  ;;  %v3803_v60 = vld [vmem:[#allocation2 + $0xd9] sm:$0xff] }
 0x3fd   : > { %4969 = vmatmul.mubr.bf16.gmra.mrb[236].mxu0 %v10269_v59  ;;  %v3804_v59 = vld [vmem:[#allocation2 + $0xe1] sm:$0xff] }
 0x3fe   : > { %4976 = vmatprep.mubr.bf16.mxu0 %v3896_v0  ;;  %v3923_v20 = vpack.c.bf16 %v3804_v59, %v3803_v60  ;;  %v3755_v59 = vld [vmem:[#allocation2 + $0x182] sm:$0xff]  ;;  %v3756_v60 = vld [vmem:[#allocation2 + $0x18a] sm:$0xff] }
 0x403   : > { %4824 = vmatmul.mubr.bf16.gmra.mrb[20].mxu1 %v3896_v0 }
 0x404   : > { %4831 = vmatprep.mubr.bf16.mxu1 %v10338_v42  ;;  %v3805_v42 = vld [vmem:[#allocation2 + $0xf1] sm:$0xff] }
 0x405   : > { %4977 = vmatmul.mubr.bf16.gmra.mrb[240].mxu0 %v10290_v36  ;;  %v3806_v36 = vld [vmem:[#allocation2 + $0xf9] sm:$0xff] }
 0x406   : > { %4984 = vmatprep.mubr.bf16.mxu0 %v3905_v56  ;;  %v3932_v61 = vpack.c.bf16 %v3806_v36, %v3805_v42 }
 0x40b   : > { %4832 = vmatmul.mubr.bf16.gmra.mrb[24].mxu1 %v3905_v56 }
 0x40c   : > { %4839 = vmatprep.mubr.bf16.mxu1 %v10348_v21  ;;  %v3807_v21 = vld [vmem:[#allocation2 + $0x109] sm:$0xff] }
 0x40d   : > { %4985 = vmatmul.mubr.bf16.gmra.mrb[244].mxu0 %v10313_v63  ;;  %v3808_v63 = vld [vmem:[#allocation2 + $0x111] sm:$0xff] }
 0x40e   : > { %4992 = vmatprep.mubr.bf16.mxu0 %v3914_v23  ;;  %v3941_v31 = vpack.c.bf16 %v3808_v63, %v3807_v21 }
 0x413   : > { %4840 = vmatmul.mubr.bf16.gmra.mrb[28].mxu1 %v3914_v23 }
 0x414   : > { %4847 = vmatprep.mubr.bf16.mxu1 %v10358_v34  ;;  %v3809_v34 = vld [vmem:[#allocation2 + $0x121] sm:$0xff] }
 0x415   : > { %4993 = vmatmul.mubr.bf16.gmra.mrb[248].mxu0 %v10331_v49  ;;  %v3810_v49 = vld [vmem:[#allocation2 + $0x129] sm:$0xff] }
 0x416   : > { %5000 = vmatprep.mubr.bf16.mxu0 %v3923_v20  ;;  %v3950_v58 = vpack.c.bf16 %v3810_v49, %v3809_v34 }
 0x41b   : > { %4848 = vmatmul.mubr.bf16.gmra.mrb[32].mxu1 %v3923_v20 }
 0x41c   : > { %4855 = vmatprep.mubr.bf16.mxu1 %v10368_v18  ;;  %v3811_v18 = vld [vmem:[#allocation2 + $0x139] sm:$0xff] }
 0x41d   : > { %5001 = vmatmul.mubr.bf16.gmra.mrb[252].mxu0 %v10341_v55  ;;  %v3812_v55 = vld [vmem:[#allocation2 + $0x141] sm:$0xff] }
 0x41e   : > { %5008 = vmatprep.mubr.bf16.mxu0 %v3932_v61  ;;  %v3959_v33 = vpack.c.bf16 %v3812_v55, %v3811_v18 }
 0x423   : > { %4856 = vmatmul.mubr.bf16.gmra.mrb[36].mxu1 %v3932_v61  ;;  %v3818_v61 = vld [vmem:[#allocation2 + $0x189] sm:$0xff] }
 0x424   : > { %4863 = vmatprep.mubr.bf16.mxu1 %v10378_v19 }
 0x425   : > { %5009 = vmatmul.mubr.bf16.gmra.mrb[0].mxu0 %v10351_v38 }
 0x426   : > { %5016 = vmatprep.mubr.bf16.mxu0 %v3941_v31 }
 0x42b   : > { %4864 = vmatmul.mubr.bf16.gmra.mrb[40].mxu1 %v3941_v31 }
 0x42c   : > { %4871 = vmatprep.mubr.bf16.mxu1 %v10388_v41  ;;  %v3814_v41 = vld [vmem:[#allocation2 + $0x159] sm:$0xff] }
 0x42d   : > { %5017 = vmatmul.mubr.bf16.gmra.mrb[4].mxu0 %v10361_v11 }
 0x42e   : > { %5024 = vmatprep.mubr.bf16.mxu0 %v3950_v58 }
 0x433   : > { %4872 = vmatmul.mubr.bf16.gmra.mrb[44].mxu1 %v3950_v58 }
 0x434   : > { %4879 = vmatprep.mubr.bf16.mxu1 %v10398_v28  ;;  %v6942_v38 = vpop.f32.mrb[196].mxu1 }
 0x435   : > { %5025 = vmatmul.mubr.bf16.gmra.mrb[8].mxu0 %v10371_v15  ;;  %v6943_v45 = vpop.f32.mrb[197].mxu1  ;;  %v3813_v15 = vld [vmem:[#allocation2 + $0x151] sm:$0xff] }
 0x436   : > { %5032 = vmatprep.mubr.bf16.mxu0 %v3959_v33  ;;  %v6944_v13 = vadd.f32 %v6943_v45, %v6942_v38  ;;  %v6945_v22 = vpop.f32.mrb[198].mxu1  ;;  %v3968_v28 = vpack.c.bf16 %v3814_v41, %v3813_v15  ;;  %v3820_v45 = vld [vmem:[#allocation2 + $0x1a1] sm:$0xff] }
 0x437   : > { %v6946_v52 = vpop.f32.mrb[199].mxu1 }
 0x438   : > { %v7048_v19 = vpop.f32.mrb[160].mxu0  ;;  %v6947_v10 = vadd.f32 %v6946_v52, %v6945_v22  ;;  %v3821_v22 = vld [vmem:[#allocation2 + $0x32] sm:$0xff] }
 0x439   : > { %v7049_v48 = vpop.f32.mrb[161].mxu0 }
 0x43a   : > { %v7050_v5 = vadd.f32 %v7049_v48, %v7048_v19  ;;  %v7051_v11 = vpop.f32.mrb[162].mxu0  ;;  %v3819_v19 = vld [vmem:[#allocation2 + $0x199] sm:$0xff] }
 0x43b   : > { %v7052_v6 = vpop.f32.mrb[163].mxu0  ;;  %4880 = vmatmul.mubr.bf16.gmra.mrb[48].mxu1 %v3959_v33  ;;  %v3995_v15 = vpack.c.bf16 %v3820_v45, %v3819_v19 }
 0x43c   : > { %v10448_v50 = vadd.f32 %v7050_v5, %v10408_v39  ;;  %v7053_v24 = vadd.f32 %v7052_v6, %v7051_v11  ;;  %4887 = vmatprep.mubr.bf16.mxu1 %v10410_v46  ;;  %v6948_v53 = vpop.f32.mrb[200].mxu1  ;;  %v3822_v5 = vld [vmem:[#allocation2 + $0x3a] sm:$0xff] }
 0x43d   : > { %5033 = vmatmul.mubr.bf16.gmra.mrb[12].mxu0 %v10381_v29  ;;  %v6949_v9 = vpop.f32.mrb[201].mxu1  ;;  %v3977_v29 = vpack.c.bf16 %v3816_v57, %v3815_v25 }
 0x43e   : > { %v10451_v8 = vadd.f32 %v7053_v24, %v10412_v62  ;;  %5040 = vmatprep.mubr.bf16.mxu0 %v3968_v28  ;;  %v6950_v1 = vadd.f32 %v6949_v9, %v6948_v53  ;;  %v6951_v44 = vpop.f32.mrb[202].mxu1  ;;  %v3861_v53 = vpack.c.bf16 %v3822_v5, %v3821_v22 }
 0x43f   : > { %v6952_v39 = vpop.f32.mrb[203].mxu1 }
 0x440   : > { %v7054_v40 = vpop.f32.mrb[164].mxu0  ;;  %v6953_v0 = vadd.f32 %v6952_v39, %v6951_v44  ;;  %v3824_v39 = vld [vmem:[#allocation2 + $0x52] sm:$0xff] }
 0x441   : > { %v7055_v27 = vpop.f32.mrb[165].mxu0 }
 0x442   : > { %v7056_v35 = vadd.f32 %v7055_v27, %v7054_v40  ;;  %v7057_v7 = vpop.f32.mrb[166].mxu0  ;;  %v3823_v27 = vld [vmem:[#allocation2 + $0x4a] sm:$0xff] }
 0x443   : > { %v7058_v17 = vpop.f32.mrb[167].mxu0  ;;  %4888 = vmatmul.mubr.bf16.gmra.mrb[52].mxu1 %v3968_v28 }
 0x444   : > { %v10455_v62 = vadd.f32 %v7056_v35, %v6944_v13  ;;  %v7059_v56 = vadd.f32 %v7058_v17, %v7057_v7  ;;  %4895 = vmatprep.mubr.bf16.mxu1 %v10420_v54  ;;  %v3817_v54 = vld [vmem:[#allocation2 + $0x181] sm:$0xff] }
 0x445   : > { %5041 = vmatmul.mubr.bf16.gmra.mrb[16].mxu0 %v10391_v14  ;;  %v10461_v14 = vpack.c.bf16 %v3756_v60, %v3755_v59  ;;  %v3986_v18 = vpack.c.bf16 %v3818_v61, %v3817_v54  ;;  %v3825_v7 = vld [vmem:[#allocation2 + $0x62] sm:$0xff] }
 0x446   : > { %v10459_v46 = vadd.f32 %v7059_v56, %v6947_v10  ;;  %5048 = vmatprep.mubr.bf16.mxu0 %v3977_v29  ;;  %v6954_v3 = vpop.f32.mrb[204].mxu1 }
 0x447   : > { %v6955_v23 = vpop.f32.mrb[205].mxu1 }
 0x448   : > { %v7060_v32 = vpop.f32.mrb[168].mxu0  ;;  %v6956_v20 = vadd.f32 %v6955_v23, %v6954_v3  ;;  %v6957_v42 = vpop.f32.mrb[206].mxu1 }
 0x449   : > { %v7061_v36 = vpop.f32.mrb[169].mxu0  ;;  %v6958_v31 = vpop.f32.mrb[207].mxu1 }
 0x44a   : > { %v7062_v63 = vadd.f32 %v7061_v36, %v7060_v32  ;;  %v7063_v21 = vpop.f32.mrb[170].mxu0  ;;  %v6959_v49 = vadd.f32 %v6958_v31, %v6957_v42 }
 0x44b   : > { %v7064_v34 = vpop.f32.mrb[171].mxu0  ;;  %4896 = vmatmul.mubr.bf16.gmra.mrb[56].mxu1 %v3977_v29  ;;  %v8463_v29 = vld [vmem:[#allocation2] sm:$0xff] }
 0x44c   : > { %v10463_v58 = vadd.f32 %v7062_v63, %v6950_v1  ;;  %v7065_v55 = vadd.f32 %v7064_v34, %v7063_v21  ;;  %4903 = vmatprep.mubr.bf16.mxu1 %v10461_v14  ;;  %v3994_v3 = vpack.c.bf16 %v8463_v29, %v8463_v29  ;;  %v7804_v63 = vld [vmem:[%s11355_s7 + $0x40] sm:$0xff]   ;;  %v11618_v34 = vld [vmem:[#allocation10_spill] sm:$0xff] }
 0x44d   : > { %5049 = vmatmul.mubr.bf16.gmra.mrb[20].mxu0 %v10401_v30  ;;  %v7805_v21 = vld [vmem:[%s11355_s7] sm:$0xff]   ;;  %7392 = vmatprep.subr.bf16.mxu0 %v7804_v63  ;;  %v7807_v63 = vld [vmem:[%s11355_s7 + $0x8] sm:$0xff]  }
 0x44e   : > { %v10467_v33 = vadd.f32 %v7065_v55, %v6953_v0  ;;  %5056 = vmatprep.mubr.bf16.mxu0 %v3986_v18  ;;  %v6960_v38 = vpop.f32.mrb[208].mxu1  ;;  %v3826_v0 = vld [vmem:[#allocation2 + $0x6a] sm:$0xff]  ;;  %7393 = vmatpush3.bf16.msra.mxu0 %v7805_v21 }
 0x44f   : > { %v6961_v48 = vpop.f32.mrb[209].mxu1  ;;  %v3879_v36 = vpack.c.bf16 %v3826_v0, %v3825_v7  ;;  %v3833_v7 = vld [vmem:[#allocation2 + $0xc2] sm:$0xff]  ;;  %v3834_v0 = vld [vmem:[#allocation2 + $0xca] sm:$0xff] }
 0x450   : > { %v7066_v13 = vpop.f32.mrb[172].mxu0  ;;  %v6962_v11 = vadd.f32 %v6961_v48, %v6960_v38  ;;  %v6963_v41 = vpop.f32.mrb[210].mxu1  ;;  %v3828_v38 = vld [vmem:[#allocation2 + $0x82] sm:$0xff]  ;;  %v3830_v48 = vld [vmem:[#allocation2 + $0x9a] sm:$0xff] }
 0x451   : > { %v7067_v52 = vpop.f32.mrb[173].mxu0  ;;  %v6964_v24 = vpop.f32.mrb[211].mxu1 }
 0x452   : > { %v7068_v10 = vadd.f32 %v7067_v52, %v7066_v13  ;;  %v7069_v6 = vpop.f32.mrb[174].mxu0  ;;  %v6965_v30 = vadd.f32 %v6964_v24, %v6963_v41  ;;  %v3829_v13 = vld [vmem:[#allocation2 + $0x92] sm:$0xff] }
 0x453   : > { %v7070_v28 = vpop.f32.mrb[175].mxu0  ;;  %4904 = vmatmul.mubr.bf16.gmra.mrb[60].mxu1 %v3986_v18  ;;  %v3827_v18 = vld [vmem:[#allocation2 + $0x7a] sm:$0xff] }
 0x454   : > { %v10469_v9 = vadd.f32 %v7068_v10, %v6956_v20  ;;  %v7071_v40 = vadd.f32 %v7070_v28, %v7069_v6  ;;  %7568 = vmatprep.mubr.bf16.mxu1 %v3861_v53  ;;  %v3888_v6 = vpack.c.bf16 %v3828_v38, %v3827_v18  ;;  %v3837_v38 = vld [vmem:[#allocation2 + $0xf2] sm:$0xff] }
 0x455   : > { %5057 = vmatmul.mubr.bf16.gmra.mrb[24].mxu0 %v10415_v26  ;;  %v3870_v26 = vpack.c.bf16 %v3824_v39, %v3823_v27  ;;  %v3831_v27 = vld [vmem:[#allocation2 + $0xaa] sm:$0xff]  ;;  %v3832_v39 = vld [vmem:[#allocation2 + $0xb2] sm:$0xff] }
 0x456   : > { %v10472_v1 = vadd.f32 %v7071_v40, %v6959_v49  ;;  %5064 = vmatprep.mubr.bf16.mxu0 %v3995_v15  ;;  %v6966_v44 = vpop.f32.mrb[212].mxu1  ;;  %v11617_v49 = vld [vmem:[#allocation22_spill] sm:$0xff] }
 0x457   : > { %v6967_v35 = vpop.f32.mrb[213].mxu1  ;;  %v11619_v54 = vpack.c.bf16 %v11617_v49, %v11618_v34  ;;  %v3835_v34 = vld [vmem:[#allocation2 + $0xda] sm:$0xff] }
 0x458   : > { %v7072_v57 = vpop.f32.mrb[176].mxu0  ;;  %v6968_v17 = vadd.f32 %v6967_v35, %v6966_v44  ;;  %v6969_v56 = vpop.f32.mrb[214].mxu1 }
 0x459   : > { %v7073_v25 = vpop.f32.mrb[177].mxu0  ;;  %v6970_v59 = vpop.f32.mrb[215].mxu1 }
 0x45a   : > { %v7074_v32 = vadd.f32 %v7073_v25, %v7072_v57  ;;  %v7075_v23 = vpop.f32.mrb[178].mxu0  ;;  %v6971_v60 = vadd.f32 %v6970_v59, %v6969_v56 }
 0x45b   : > { %v7076_v20 = vpop.f32.mrb[179].mxu0  ;;  %7569 = vmatmul.mubr.bf16.vlgmr.msra.gmra.mrb[64].mxu1 %v3870_v26 }
 0x45c   : > { %v10474_v42 = vadd.f32 %v7074_v32, %v6962_v11  ;;  %v7077_v61 = vadd.f32 %v7076_v20, %v7075_v23  ;;  %7572 = vmatprep.mubr.bf16.mxu1 %v3879_v36  ;;  %v3915_v20 = vpack.c.bf16 %v3834_v0, %v3833_v7  ;;  %v3842_v7 = vld [vmem:[#allocation2 + $0x12a] sm:$0xff] }
 0x45d   : > { %5065 = vmatmul.mubr.bf16.gmra.mrb[28].mxu0 %v3994_v3 }
 0x45e   : > { %v10482_v31 = vadd.f32 %v7077_v61, %v6965_v30  ;;  %5726 = vmatprep.mubr.bf16.mxu0 %v11619_v54  ;;  %v6972_v55 = vpop.f32.mrb[216].mxu1  ;;  %v3897_v30 = vpack.c.bf16 %v3830_v48, %v3829_v13  ;;  %v7806_v61 = vld [vmem:[%s11355_s7 + $0x48] sm:$0xff]  }
 0x45f   : > { %v6973_v45 = vpop.f32.mrb[217].mxu1  ;;  %v3836_v54 = vld [vmem:[#allocation2 + $0xe2] sm:$0xff]  ;;  %7394 = vmatprep.subr.bf16.mxu0 %v7806_v61  ;;  %v7808_v61 = vld [vmem:[%s11355_s7 + $0x50] sm:$0xff]  }
 0x460   : > { %v7078_v19 = vpop.f32.mrb[180].mxu0  ;;  %v6974_v22 = vadd.f32 %v6973_v45, %v6972_v55  ;;  %v6975_v11 = vpop.f32.mrb[218].mxu1  ;;  %7395 = vmatpush3.bf16.msra.mxu0 %v7807_v63  ;;  %v7809_v63 = vld [vmem:[%s11355_s7 + $0x10] sm:$0xff]  }
 0x461   : > { %v7079_v5 = vpop.f32.mrb[181].mxu0  ;;  %v6976_v10 = vpop.f32.mrb[219].mxu1  ;;  %7396 = vmatprep.subr.bf16.mxu0 %v7808_v61 }
 0x462   : > { %v7080_v52 = vadd.f32 %v7079_v5, %v7078_v19  ;;  %v7081_v41 = vpop.f32.mrb[182].mxu0  ;;  %v6977_v24 = vadd.f32 %v6976_v10, %v6975_v11  ;;  %v3838_v19 = vld [vmem:[#allocation2 + $0xfa] sm:$0xff] }
 0x463   : > { %v7082_v15 = vpop.f32.mrb[183].mxu0  ;;  %7573 = vmatmul.mubr.bf16.gmra.mrb[68].mxu1 %v3888_v6  ;;  %v3933_v6 = vpack.c.bf16 %v3838_v19, %v3837_v38  ;;  %v3845_v19 = vld [vmem:[#allocation2 + $0x152] sm:$0xff] }
 0x464   : > { %v10487_v28 = vadd.f32 %v7080_v52, %v6968_v17  ;;  %v7083_v53 = vadd.f32 %v7082_v15, %v7081_v41  ;;  %7576 = vmatprep.mubr.bf16.mxu1 %v3897_v30  ;;  %v3906_v17 = vpack.c.bf16 %v3832_v39, %v3831_v27  ;;  %v3924_v52 = vpack.c.bf16 %v3836_v54, %v3835_v34  ;;  %v3840_v27 = vld [vmem:[#allocation2 + $0x112] sm:$0xff]  ;;  %v3843_v54 = vld [vmem:[#allocation2 + $0x13a] sm:$0xff] }
 0x465   : > { %7397 = vmatpush3.bf16.msra.mxu0 %v7809_v63 }
 0x466   : > { %v10489_v40 = vadd.f32 %v7083_v53, %v6971_v60  ;;  %v6978_v44 = vpop.f32.mrb[220].mxu1 }
 0x467   : > { %v6979_v35 = vpop.f32.mrb[221].mxu1 }
 0x468   : > { %v7084_v57 = vpop.f32.mrb[184].mxu0  ;;  %v6980_v25 = vadd.f32 %v6979_v35, %v6978_v44  ;;  %v6981_v29 = vpop.f32.mrb[222].mxu1  ;;  %v3839_v44 = vld [vmem:[#allocation2 + $0x10a] sm:$0xff]  ;;  %v3841_v35 = vld [vmem:[#allocation2 + $0x122] sm:$0xff] }
 0x469   : > { %v7085_v56 = vpop.f32.mrb[185].mxu0  ;;  %v6982_v23 = vpop.f32.mrb[223].mxu1 }
 0x46a   : > { %v7086_v3 = vadd.f32 %v7085_v56, %v7084_v57  ;;  %v7087_v32 = vpop.f32.mrb[186].mxu0  ;;  %v6983_v59 = vadd.f32 %v6982_v23, %v6981_v29 }
 0x46b   : > { %v7088_v26 = vpop.f32.mrb[187].mxu0  ;;  %7577 = vmatmul.mubr.bf16.gmra.mrb[72].mxu1 %v3906_v17 }
 0x46c   : > { %v10491_v36 = vadd.f32 %v7086_v3, %v6974_v22  ;;  %v7089_v60 = vadd.f32 %v7088_v26, %v7087_v32  ;;  %7580 = vmatprep.mubr.bf16.mxu1 %v3915_v20  ;;  %v3951_v20 = vpack.c.bf16 %v3842_v7, %v3841_v35  ;;  %v3848_v35 = vld [vmem:[#allocation2 + $0x172] sm:$0xff] }
 0x46e   : > { %v10499_v21 = vadd.f32 %v7089_v60, %v6977_v24  ;;  %v6984_v49 = vpop.f32.mrb[224].mxu1 }
 0x46f   : > { %v6985_v18 = vpop.f32.mrb[225].mxu1 }
 0x470   : > { %v7090_v55 = vpop.f32.mrb[188].mxu0  ;;  %v6986_v45 = vadd.f32 %v6985_v18, %v6984_v49  ;;  %v6987_v48 = vpop.f32.mrb[226].mxu1 }
 0x471   : > { %v7091_v13 = vpop.f32.mrb[189].mxu0  ;;  %v6988_v11 = vpop.f32.mrb[227].mxu1 }
 0x472   : > { %v7092_v22 = vadd.f32 %v7091_v13, %v7090_v55  ;;  %v7093_v5 = vpop.f32.mrb[190].mxu0  ;;  %v6989_v41 = vadd.f32 %v6988_v11, %v6987_v48  ;;  %v3844_v55 = vld [vmem:[#allocation2 + $0x142] sm:$0xff] }
 0x473   : > { %v7094_v10 = vpop.f32.mrb[191].mxu0  ;;  %7581 = vmatmul.mubr.bf16.gmra.mrb[76].mxu1 %v3924_v52 }
 0x474   : > { %v10501_v24 = vadd.f32 %v7092_v22, %v6980_v25  ;;  %v7095_v15 = vadd.f32 %v7094_v10, %v7093_v5  ;;  %7584 = vmatprep.mubr.bf16.mxu1 %v3933_v6  ;;  %v3942_v25 = vpack.c.bf16 %v3840_v27, %v3839_v44  ;;  %v3960_v10 = vpack.c.bf16 %v3844_v55, %v3843_v54  ;;  %v7810_v54 = vld [vmem:[%s11355_s7 + $0x58] sm:$0xff]  }
 0x475   : > { %v7811_v55 = vld [vmem:[%s11355_s7 + $0x18] sm:$0xff]   ;;  %7398 = vmatprep.subr.bf16.mxu0 %v7810_v54 }
 0x476   : > { %v10503_v30 = vadd.f32 %v7095_v15, %v6983_v59  ;;  %v6990_v53 = vpop.f32.mrb[228].mxu1  ;;  %7399 = vmatpush3.bf16.msra.mxu0 %v7811_v55 }
 0x477   : > { %v6991_v57 = vpop.f32.mrb[229].mxu1 }
 0x478   : > { %v7096_v39 = vpop.f32.mrb[192].mxu0  ;;  %v6992_v0 = vadd.f32 %v6991_v57, %v6990_v53  ;;  %v6993_v29 = vpop.f32.mrb[230].mxu1  ;;  %v3847_v57 = vld [vmem:[#allocation2 + $0x16a] sm:$0xff] }
 0x479   : > { %v7097_v56 = vpop.f32.mrb[193].mxu0  ;;  %v6994_v23 = vpop.f32.mrb[231].mxu1 }
 0x47a   : > { %v7098_v3 = vadd.f32 %v7097_v56, %v7096_v39  ;;  %v7099_v32 = vpop.f32.mrb[194].mxu0  ;;  %v6995_v17 = vadd.f32 %v6994_v23, %v6993_v29 }
 0x47b   : > { %v7100_v26 = vpop.f32.mrb[195].mxu0  ;;  %7585 = vmatmul.mubr.bf16.gmra.mrb[80].mxu1 %v3942_v25 }
 0x47c   : > { %v10505_v60 = vadd.f32 %v7098_v3, %v6986_v45  ;;  %v7101_v59 = vadd.f32 %v7100_v26, %v7099_v32  ;;  %7588 = vmatprep.mubr.bf16.mxu1 %v3951_v20  ;;  %v3846_v45 = vld [vmem:[#allocation2 + $0x15a] sm:$0xff]  ;;  %v3978_v20 = vpack.c.bf16 %v3848_v35, %v3847_v57 }
 0x47e   : > { %v10513_v49 = vadd.f32 %v7101_v59, %v6989_v41  ;;  %v6996_v34 = vpop.f32.mrb[232].mxu1  ;;  %v3969_v41 = vpack.c.bf16 %v3846_v45, %v3845_v19 }
 0x47f   : > { %v6997_v38 = vpop.f32.mrb[233].mxu1 }
 0x480   : > { %v7102_v18 = vpop.f32.mrb[196].mxu0  ;;  %v6998_v13 = vadd.f32 %v6997_v38, %v6996_v34  ;;  %v6999_v22 = vpop.f32.mrb[234].mxu1  ;;  %v3852_v34 = vld [vmem:[#allocation2 + $0x1a2] sm:$0xff] }
 0x481   : > { %v7103_v48 = vpop.f32.mrb[197].mxu0  ;;  %v7000_v52 = vpop.f32.mrb[235].mxu1 }
 0x482   : > { %v7104_v5 = vadd.f32 %v7103_v48, %v7102_v18  ;;  %v7105_v11 = vpop.f32.mrb[198].mxu0  ;;  %v7001_v6 = vadd.f32 %v7000_v52, %v6999_v22 }
 0x483   : > { %v7106_v15 = vpop.f32.mrb[199].mxu0  ;;  %7589 = vmatmul.mubr.bf16.gmra.mrb[84].mxu1 %v3960_v10 }
 0x484   : > { %v10515_v53 = vadd.f32 %v7104_v5, %v6992_v0  ;;  %v7107_v44 = vadd.f32 %v7106_v15, %v7105_v11  ;;  %7592 = vmatprep.mubr.bf16.mxu1 %v3969_v41 }
 0x486   : > { %v10517_v27 = vadd.f32 %v7107_v44, %v6995_v17  ;;  %v7002_v39 = vpop.f32.mrb[236].mxu1  ;;  %v3851_v17 = vld [vmem:[#allocation2 + $0x19a] sm:$0xff] }
 0x487   : > { %v7003_v56 = vpop.f32.mrb[237].mxu1 }
 0x488   : > { %v7108_v7 = vpop.f32.mrb[200].mxu0  ;;  %v7004_v29 = vadd.f32 %v7003_v56, %v7002_v39  ;;  %v7005_v32 = vpop.f32.mrb[238].mxu1 }
 0x489   : > { %v7109_v3 = vpop.f32.mrb[201].mxu0  ;;  %v7006_v26 = vpop.f32.mrb[239].mxu1 }
 0x48a   : > { %v7110_v23 = vadd.f32 %v7109_v3, %v7108_v7  ;;  %v7111_v25 = vpop.f32.mrb[202].mxu0  ;;  %v7007_v59 = vadd.f32 %v7006_v26, %v7005_v32 }
 0x48b   : > { %v7112_v0 = vpop.f32.mrb[203].mxu0  ;;  %7593 = vmatmul.mubr.bf16.gmra.mrb[88].mxu1 %v3978_v20 }
 0x48c   : > { %v10519_v61 = vadd.f32 %v7110_v23, %v6998_v13  ;;  %v7113_v63 = vadd.f32 %v7112_v0, %v7111_v25  ;;  %7596 = vmatprep.mubr.bf16.mxu1 %v10461_v14  ;;  %v3996_v13 = vpack.c.bf16 %v3852_v34, %v3851_v17 }
 0x48e   : > { %v10528_v18 = vadd.f32 %v7113_v63, %v7001_v6  ;;  %v7008_v38 = vpop.f32.mrb[240].mxu1 }
 0x48f   : > { %v7009_v45 = vpop.f32.mrb[241].mxu1 }
 0x490   : > { %v7114_v19 = vpop.f32.mrb[204].mxu0  ;;  %v7010_v48 = vadd.f32 %v7009_v45, %v7008_v38  ;;  %v7011_v14 = vpop.f32.mrb[242].mxu1 }
 0x491   : > { %v7115_v22 = vpop.f32.mrb[205].mxu0  ;;  %v7012_v52 = vpop.f32.mrb[243].mxu1 }
 0x492   : > { %v7116_v5 = vadd.f32 %v7115_v22, %v7114_v19  ;;  %v7117_v11 = vpop.f32.mrb[206].mxu0  ;;  %v7013_v10 = vadd.f32 %v7012_v52, %v7011_v14 }
 0x493   : > { %v7118_v15 = vpop.f32.mrb[207].mxu0  ;;  %7597 = vmatmul.mubr.bf16.gmra.mrb[92].mxu1 %v3996_v13 }
 0x494   : > { %v10530_v41 = vadd.f32 %v7116_v5, %v7004_v29  ;;  %v7119_v44 = vadd.f32 %v7118_v15, %v7117_v11  ;;  %v7812_v29 = vld [vmem:[%s11355_s7 + $0x60] sm:$0xff]  }
 0x495   : > { %7400 = vmatprep.subr.bf16.mxu0 %v7812_v29 }
 0x496   : > { %v10532_v6 = vadd.f32 %v7119_v44, %v7007_v59  ;;  %v7014_v39 = vpop.f32.mrb[244].mxu1  ;;  %v7813_v59 = vld [vmem:[%s11355_s7 + $0x20] sm:$0xff]  }
 0x497   : > { %v7015_v35 = vpop.f32.mrb[245].mxu1  ;;  %7401 = vmatpush3.bf16.msra.mxu0 %v7813_v59 }
 0x498   : > { %v7120_v57 = vpop.f32.mrb[208].mxu0  ;;  %v7016_v7 = vadd.f32 %v7015_v35, %v7014_v39  ;;  %v7017_v3 = vpop.f32.mrb[246].mxu1 }
 0x499   : > { %v7121_v56 = vpop.f32.mrb[209].mxu0  ;;  %v7018_v25 = vpop.f32.mrb[247].mxu1 }
 0x49a   : > { %v7122_v32 = vadd.f32 %v7121_v56, %v7120_v57  ;;  %v7123_v23 = vpop.f32.mrb[210].mxu0  ;;  %v7019_v26 = vadd.f32 %v7018_v25, %v7017_v3 }
 0x49b   : > { %v7124_v20 = vpop.f32.mrb[211].mxu0 }
 0x49c   : > { %v10534_v0 = vadd.f32 %v7122_v32, %v7010_v48  ;;  %v7125_v63 = vadd.f32 %v7124_v20, %v7123_v23 }
 0x49e   : > { %v10542_v17 = vadd.f32 %v7125_v63, %v7013_v10  ;;  %v7020_v34 = vpop.f32.mrb[248].mxu1 }
 0x49f   : > { %v7021_v55 = vpop.f32.mrb[249].mxu1 }
 0x4a0   : > { %v7126_v54 = vpop.f32.mrb[212].mxu0  ;;  %v7022_v38 = vadd.f32 %v7021_v55, %v7020_v34  ;;  %v7023_v45 = vpop.f32.mrb[250].mxu1 }
 0x4a1   : > { %v7127_v19 = vpop.f32.mrb[213].mxu0  ;;  %v7024_v22 = vpop.f32.mrb[251].mxu1 }
 0x4a2   : > { %v7128_v13 = vadd.f32 %v7127_v19, %v7126_v54  ;;  %v7129_v48 = vpop.f32.mrb[214].mxu0  ;;  %v7025_v14 = vadd.f32 %v7024_v22, %v7023_v45 }
 0x4a3   : > { %v7130_v5 = vpop.f32.mrb[215].mxu0 }
 0x4a4   : > { %v10544_v11 = vadd.f32 %v7128_v13, %v7016_v7  ;;  %v7131_v52 = vadd.f32 %v7130_v5, %v7129_v48  ;;  %v7814_v7 = vld [vmem:[%s11355_s7 + $0x68] sm:$0xff]  }
 0x4a5   : > { %7402 = vmatprep.subr.bf16.mxu0 %v7814_v7 }
 0x4a6   : > { %v10546_v15 = vadd.f32 %v7131_v52, %v7019_v26  ;;  %v7026_v10 = vpop.f32.mrb[252].mxu1  ;;  %v7815_v26 = vld [vmem:[%s11355_s7 + $0x28] sm:$0xff]  }
 0x4a7   : > { %v7027_v39 = vpop.f32.mrb[253].mxu1  ;;  %7403 = vmatpush3.bf16.msra.mxu0 %v7815_v26 }
 0x4a8   : > { %v7132_v44 = vpop.f32.mrb[216].mxu0  ;;  %v7028_v57 = vadd.f32 %v7027_v39, %v7026_v10  ;;  %v7029_v56 = vpop.f32.mrb[254].mxu1 }
 0x4a9   : > { %v7133_v35 = vpop.f32.mrb[217].mxu0  ;;  %v7030_v23 = vpop.f32.mrb[255].mxu1 }
 0x4aa   : > { %v7134_v3 = vadd.f32 %v7133_v35, %v7132_v44  ;;  %v7135_v32 = vpop.f32.mrb[218].mxu0  ;;  %v7031_v25 = vadd.f32 %v7030_v23, %v7029_v56 }
 0x4ab   : > { %v7136_v20 = vpop.f32.mrb[219].mxu0 }
 0x4ac   : > { %v10548_v63 = vadd.f32 %v7134_v3, %v7022_v38  ;;  %v7137_v29 = vadd.f32 %v7136_v20, %v7135_v32 }
 0x4ae   : > { %v10556_v59 = vadd.f32 %v7137_v29, %v7025_v14  ;;  %v7160_v34 = vpop.f32.mrb[0].mxu1 }
 0x4af   : > { %v7161_v55 = vpop.f32.mrb[1].mxu1 }
 0x4b0   : > { %v7138_v54 = vpop.f32.mrb[220].mxu0  ;;  %v7162_v45 = vadd.f32 %v7161_v55, %v7160_v34  ;;  %v7163_v38 = vpop.f32.mrb[2].mxu1 }
 0x4b1   : > { %v7139_v19 = vpop.f32.mrb[221].mxu0  ;;  %v7164_v22 = vpop.f32.mrb[3].mxu1 }
 0x4b2   : > { %v7140_v13 = vadd.f32 %v7139_v19, %v7138_v54  ;;  %v7141_v48 = vpop.f32.mrb[222].mxu0  ;;  %v4786_v5 = vadd.f32 %v7162_v45, %v10448_v50  ;;  %v7165_v10 = vadd.f32 %v7164_v22, %v7163_v38 }
 0x4b3   : > { %v7142_v52 = vpop.f32.mrb[223].mxu0 }
 0x4b4   : > { %v10559_v44 = vadd.f32 %v7140_v13, %v7028_v57  ;;  %v7143_v39 = vadd.f32 %v7142_v52, %v7141_v48  ;;  %v4789_v14 = vadd.f32 %v7165_v10, %v10451_v8 }
 0x4b6   : > { %v10562_v35 = vadd.f32 %v7143_v39, %v7031_v25  ;;  %v7166_v56 = vpop.f32.mrb[4].mxu1 }
 0x4b7   : > { %v7167_v32 = vpop.f32.mrb[5].mxu1 }
 0x4b8   : > { %v7272_v3 = vpop.f32.mrb[224].mxu0  ;;  %v7168_v23 = vadd.f32 %v7167_v32, %v7166_v56  ;;  %v7169_v29 = vpop.f32.mrb[6].mxu1 }
 0x4b9   : > { %v7273_v20 = vpop.f32.mrb[225].mxu0  ;;  %v7170_v34 = vpop.f32.mrb[7].mxu1 }
 0x4ba   : > { %v7274_v7 = vadd.f32 %v7273_v20, %v7272_v3  ;;  %v7275_v26 = vpop.f32.mrb[226].mxu0  ;;  %v4794_v50 = vadd.f32 %v7168_v23, %v10455_v62  ;;  %v7171_v54 = vadd.f32 %v7170_v34, %v7169_v29 }
 0x4bb   : > { %v7276_v55 = vpop.f32.mrb[227].mxu0 }
 0x4bc   : > { %v7277_v57 = vadd.f32 %v7276_v55, %v7275_v26  ;;  %v10565_v19 = vadd.f32 %v7274_v7, %v4786_v5  ;;  %v4797_v8 = vadd.f32 %v7171_v54, %v10459_v46 }
 0x4be   : > { %v10568_v25 = vadd.f32 %v7277_v57, %v4789_v14  ;;  %v7172_v45 = vpop.f32.mrb[8].mxu1 }
 0x4bf   : > { %v7173_v13 = vpop.f32.mrb[9].mxu1 }
 0x4c0   : > { %v7278_v38 = vpop.f32.mrb[228].mxu0  ;;  %v7174_v48 = vadd.f32 %v7173_v13, %v7172_v45  ;;  %v7175_v52 = vpop.f32.mrb[10].mxu1 }
 0x4c1   : > { %v7279_v22 = vpop.f32.mrb[229].mxu0  ;;  %v7176_v56 = vpop.f32.mrb[11].mxu1 }
 0x4c2   : > { %v7280_v10 = vadd.f32 %v7279_v22, %v7278_v38  ;;  %v7281_v39 = vpop.f32.mrb[230].mxu0  ;;  %v4802_v62 = vadd.f32 %v7174_v48, %v10463_v58  ;;  %v7177_v3 = vadd.f32 %v7176_v56, %v7175_v52 }
 0x4c3   : > { %v7282_v32 = vpop.f32.mrb[231].mxu0 }
 0x4c4   : > { %v7283_v23 = vadd.f32 %v7282_v32, %v7281_v39  ;;  %v10571_v5 = vadd.f32 %v7280_v10, %v4794_v50  ;;  %v4805_v46 = vadd.f32 %v7177_v3, %v10467_v33 }
 0x4c6   : > { %v10574_v14 = vadd.f32 %v7283_v23, %v4797_v8  ;;  %v7178_v20 = vpop.f32.mrb[12].mxu1 }
 0x4c7   : > { %v7179_v7 = vpop.f32.mrb[13].mxu1 }
 0x4c8   : > { %v7284_v29 = vpop.f32.mrb[232].mxu0  ;;  %v7180_v26 = vadd.f32 %v7179_v7, %v7178_v20  ;;  %v7181_v54 = vpop.f32.mrb[14].mxu1 }
 0x4c9   : > { %v7285_v34 = vpop.f32.mrb[233].mxu0  ;;  %v7182_v45 = vpop.f32.mrb[15].mxu1 }
 0x4ca   : > { %v7286_v55 = vadd.f32 %v7285_v34, %v7284_v29  ;;  %v7287_v57 = vpop.f32.mrb[234].mxu0  ;;  %v4810_v58 = vadd.f32 %v7180_v26, %v10469_v9  ;;  %v7183_v38 = vadd.f32 %v7182_v45, %v7181_v54 }
 0x4cb   : > { %v7288_v13 = vpop.f32.mrb[235].mxu0 }
 0x4cc   : > { %v7289_v48 = vadd.f32 %v7288_v13, %v7287_v57  ;;  %v10577_v50 = vadd.f32 %v7286_v55, %v4802_v62  ;;  %v4813_v33 = vadd.f32 %v7183_v38, %v10472_v1 }
 0x4ce   : > { %v10580_v8 = vadd.f32 %v7289_v48, %v4805_v46  ;;  %v7184_v22 = vpop.f32.mrb[16].mxu1 }
 0x4cf   : > { %v7185_v10 = vpop.f32.mrb[17].mxu1 }
 0x4d0   : > { %v7290_v52 = vpop.f32.mrb[236].mxu0  ;;  %v7186_v39 = vadd.f32 %v7185_v10, %v7184_v22  ;;  %v7187_v3 = vpop.f32.mrb[18].mxu1 }
 0x4d1   : > { %v7291_v56 = vpop.f32.mrb[237].mxu0  ;;  %v7188_v20 = vpop.f32.mrb[19].mxu1 }
 0x4d2   : > { %v7292_v32 = vadd.f32 %v7291_v56, %v7290_v52  ;;  %v7293_v23 = vpop.f32.mrb[238].mxu0  ;;  %v4818_v9 = vadd.f32 %v7186_v39, %v10474_v42  ;;  %v7189_v29 = vadd.f32 %v7188_v20, %v7187_v3 }
 0x4d3   : > { %v7294_v7 = vpop.f32.mrb[239].mxu0 }
 0x4d4   : > { %v7295_v26 = vadd.f32 %v7294_v7, %v7293_v23  ;;  %v10583_v62 = vadd.f32 %v7292_v32, %v4810_v58  ;;  %v4821_v1 = vadd.f32 %v7189_v29, %v10482_v31  ;;  %v7816_v7 = vld [vmem:[%s11355_s7 + $0x70] sm:$0xff]  }
 0x4d5   : > { %7404 = vmatprep.subr.bf16.mxu0 %v7816_v7 }
 0x4d6   : > { %v10586_v46 = vadd.f32 %v7295_v26, %v4813_v33  ;;  %v7190_v34 = vpop.f32.mrb[20].mxu1 }
 0x4d7   : > { %v7191_v55 = vpop.f32.mrb[21].mxu1 }
 0x4d8   : > { %v7296_v54 = vpop.f32.mrb[240].mxu0  ;;  %v7192_v57 = vadd.f32 %v7191_v55, %v7190_v34  ;;  %v7193_v38 = vpop.f32.mrb[22].mxu1 }
 0x4d9   : > { %v7297_v45 = vpop.f32.mrb[241].mxu0  ;;  %v7194_v22 = vpop.f32.mrb[23].mxu1 }
 0x4da   : > { %v7298_v13 = vadd.f32 %v7297_v45, %v7296_v54  ;;  %v7299_v48 = vpop.f32.mrb[242].mxu0  ;;  %v4826_v42 = vadd.f32 %v7192_v57, %v10487_v28  ;;  %v7195_v52 = vadd.f32 %v7194_v22, %v7193_v38  ;;  %v7817_v28 = vld [vmem:[%s11355_s7 + $0x30] sm:$0xff]  }
 0x4db   : > { %v7300_v10 = vpop.f32.mrb[243].mxu0  ;;  %7405 = vmatpush3.bf16.msra.mxu0 %v7817_v28 }
 0x4dc   : > { %v7301_v39 = vadd.f32 %v7300_v10, %v7299_v48  ;;  %v10589_v58 = vadd.f32 %v7298_v13, %v4818_v9  ;;  %v4829_v31 = vadd.f32 %v7195_v52, %v10489_v40 }
 0x4de   : > { %v10592_v33 = vadd.f32 %v7301_v39, %v4821_v1  ;;  %v7196_v56 = vpop.f32.mrb[24].mxu1 }
 0x4df   : > { %v7197_v32 = vpop.f32.mrb[25].mxu1 }
 0x4e0   : > { %v7302_v3 = vpop.f32.mrb[244].mxu0  ;;  %v7198_v23 = vadd.f32 %v7197_v32, %v7196_v56  ;;  %v7199_v29 = vpop.f32.mrb[26].mxu1 }
 0x4e1   : > { %v7303_v20 = vpop.f32.mrb[245].mxu0  ;;  %v7200_v34 = vpop.f32.mrb[27].mxu1 }
 0x4e2   : > { %v7304_v9 = vadd.f32 %v7303_v20, %v7302_v3  ;;  %v7305_v26 = vpop.f32.mrb[246].mxu0  ;;  %v4834_v40 = vadd.f32 %v7198_v23, %v10491_v36  ;;  %v7201_v1 = vadd.f32 %v7200_v34, %v7199_v29 }
 0x4e3   : > { %v7306_v54 = vpop.f32.mrb[247].mxu0 }
 0x4e4   : > { %v7307_v55 = vadd.f32 %v7306_v54, %v7305_v26  ;;  %v10601_v57 = vadd.f32 %v7304_v9, %v4826_v42  ;;  %v4837_v45 = vadd.f32 %v7201_v1, %v10499_v21 }
 0x4e6   : > { %v10604_v38 = vadd.f32 %v7307_v55, %v4829_v31  ;;  %v7202_v13 = vpop.f32.mrb[28].mxu1 }
 0x4e7   : > { %v7203_v22 = vpop.f32.mrb[29].mxu1 }
 0x4e8   : > { %v7308_v48 = vpop.f32.mrb[248].mxu0  ;;  %v7204_v52 = vadd.f32 %v7203_v22, %v7202_v13  ;;  %v7205_v39 = vpop.f32.mrb[30].mxu1 }
 0x4e9   : > { %v7309_v10 = vpop.f32.mrb[249].mxu0  ;;  %v7206_v36 = vpop.f32.mrb[31].mxu1 }
 0x4ea   : > { %v7310_v56 = vadd.f32 %v7309_v10, %v7308_v48  ;;  %v7311_v3 = vpop.f32.mrb[250].mxu0  ;;  %v4842_v32 = vadd.f32 %v7204_v52, %v10501_v24  ;;  %v7207_v23 = vadd.f32 %v7206_v36, %v7205_v39  ;;  %v7818_v24 = vld [vmem:[%s11355_s7 + $0x78] sm:$0xff]  }
 0x4eb   : > { %v7312_v20 = vpop.f32.mrb[251].mxu0  ;;  %7406 = vmatprep.subr.bf16.mxu0 %v7818_v24 }
 0x4ec   : > { %v7313_v29 = vadd.f32 %v7312_v20, %v7311_v3  ;;  %v10607_v42 = vadd.f32 %v7310_v56, %v4834_v40  ;;  %v4845_v21 = vadd.f32 %v7207_v23, %v10503_v30  ;;  %v7819_v40 = vld [vmem:[%s11355_s7 + $0x38] sm:$0xff]  }
 0x4ed   : > { %7407 = vmatpush3.bf16.msra.mxu0 %v7819_v40 }
 0x4ee   : > { %v10610_v31 = vadd.f32 %v7313_v29, %v4837_v45  ;;  %v7208_v7 = vpop.f32.mrb[32].mxu1 }
 0x4ef   : > { %v7209_v9 = vpop.f32.mrb[33].mxu1 }
 0x4f0   : > { %v7314_v28 = vpop.f32.mrb[252].mxu0  ;;  %v7210_v26 = vadd.f32 %v7209_v9, %v7208_v7  ;;  %v7211_v1 = vpop.f32.mrb[34].mxu1 }
 0x4f1   : > { %v7315_v34 = vpop.f32.mrb[253].mxu0  ;;  %v7212_v13 = vpop.f32.mrb[35].mxu1 }
 0x4f2   : > { %v7316_v54 = vadd.f32 %v7315_v34, %v7314_v28  ;;  %v7317_v55 = vpop.f32.mrb[254].mxu0  ;;  %v4850_v30 = vadd.f32 %v7210_v26, %v10505_v60  ;;  %v7213_v45 = vadd.f32 %v7212_v13, %v7211_v1 }
 0x4f3   : > { %v7318_v48 = vpop.f32.mrb[255].mxu0 }
 0x4f4   : > { %v7319_v22 = vadd.f32 %v7318_v48, %v7317_v55  ;;  %v10619_v52 = vadd.f32 %v7316_v54, %v4842_v32  ;;  %v4853_v10 = vadd.f32 %v7213_v45, %v10513_v49 }
 0x4f6   : > { %v10622_v39 = vadd.f32 %v7319_v22, %v4845_v21  ;;  %v7214_v56 = vpop.f32.mrb[36].mxu1 }
 0x4f7   : > { %v7215_v36 = vpop.f32.mrb[37].mxu1 }
 0x4f8   : > { %v7320_v3 = vpop.f32.mrb[0].mxu0  ;;  %v7216_v23 = vadd.f32 %v7215_v36, %v7214_v56  ;;  %v7217_v29 = vpop.f32.mrb[38].mxu1 }
 0x4f9   : > { %v7321_v20 = vpop.f32.mrb[1].mxu0  ;;  %v7218_v60 = vpop.f32.mrb[39].mxu1 }
 0x4fa   : > { %v7322_v7 = vadd.f32 %v7321_v20, %v7320_v3  ;;  %v7323_v28 = vpop.f32.mrb[2].mxu0  ;;  %v4858_v9 = vadd.f32 %v7216_v23, %v10515_v53  ;;  %v7219_v26 = vadd.f32 %v7218_v60, %v7217_v29 }
 0x4fb   : > { %v7324_v32 = vpop.f32.mrb[3].mxu0 }
 0x4fc   : > { %v7325_v34 = vadd.f32 %v7324_v32, %v7323_v28  ;;  %v10625_v1 = vadd.f32 %v7322_v7, %v4850_v30  ;;  %v4861_v49 = vadd.f32 %v7219_v26, %v10517_v27 }
 0x4fe   : > { %v10628_v21 = vadd.f32 %v7325_v34, %v4853_v10  ;;  %v7220_v54 = vpop.f32.mrb[40].mxu1 }
 0x4ff   : > { %v7221_v13 = vpop.f32.mrb[41].mxu1 }
 0x500   : > { %v7326_v55 = vpop.f32.mrb[4].mxu0  ;;  %v7222_v24 = vadd.f32 %v7221_v13, %v7220_v54  ;;  %v7223_v45 = vpop.f32.mrb[42].mxu1 }
 0x501   : > { %v7327_v40 = vpop.f32.mrb[5].mxu0  ;;  %v7224_v56 = vpop.f32.mrb[43].mxu1 }
 0x502   : > { %v7328_v48 = vadd.f32 %v7327_v40, %v7326_v55  ;;  %v7329_v22 = vpop.f32.mrb[6].mxu0  ;;  %v4866_v53 = vadd.f32 %v7222_v24, %v10519_v61  ;;  %v7225_v3 = vadd.f32 %v7224_v56, %v7223_v45 }
 0x503   : > { %v7330_v36 = vpop.f32.mrb[7].mxu0 }
 0x504   : > { %v7331_v23 = vadd.f32 %v7330_v36, %v7329_v22  ;;  %v10631_v30 = vadd.f32 %v7328_v48, %v4858_v9  ;;  %v4869_v27 = vadd.f32 %v7225_v3, %v10528_v18 }
 0x506   : > { %v10634_v10 = vadd.f32 %v7331_v23, %v4861_v49  ;;  %v7226_v20 = vpop.f32.mrb[44].mxu1 }
 0x507   : > { %v7227_v7 = vpop.f32.mrb[45].mxu1 }
 0x508   : > { %v7332_v29 = vpop.f32.mrb[8].mxu0  ;;  %v7228_v28 = vadd.f32 %v7227_v7, %v7226_v20  ;;  %v7229_v26 = vpop.f32.mrb[46].mxu1 }
 0x509   : > { %v7333_v60 = vpop.f32.mrb[9].mxu0  ;;  %v7230_v54 = vpop.f32.mrb[47].mxu1 }
 0x50a   : > { %v7334_v32 = vadd.f32 %v7333_v60, %v7332_v29  ;;  %v7335_v34 = vpop.f32.mrb[10].mxu0  ;;  %v4874_v61 = vadd.f32 %v7228_v28, %v10530_v41  ;;  %v7231_v55 = vadd.f32 %v7230_v54, %v7229_v26 }
 0x50b   : > { %v7336_v13 = vpop.f32.mrb[11].mxu0 }
 0x50c   : > { %v7337_v24 = vadd.f32 %v7336_v13, %v7335_v34  ;;  %v10637_v9 = vadd.f32 %v7334_v32, %v4866_v53  ;;  %v4877_v18 = vadd.f32 %v7231_v55, %v10532_v6 }
 0x50e   : > { %v10640_v49 = vadd.f32 %v7337_v24, %v4869_v27  ;;  %v7232_v40 = vpop.f32.mrb[48].mxu1 }
 0x50f   : > { %v7233_v48 = vpop.f32.mrb[49].mxu1 }
 0x510   : > { %v7338_v45 = vpop.f32.mrb[12].mxu0  ;;  %v7234_v22 = vadd.f32 %v7233_v48, %v7232_v40  ;;  %v7235_v3 = vpop.f32.mrb[50].mxu1 }
 0x511   : > { %v7339_v56 = vpop.f32.mrb[13].mxu0  ;;  %v7236_v20 = vpop.f32.mrb[51].mxu1 }
 0x512   : > { %v7340_v36 = vadd.f32 %v7339_v56, %v7338_v45  ;;  %v7341_v23 = vpop.f32.mrb[14].mxu0  ;;  %v4882_v41 = vadd.f32 %v7234_v22, %v10534_v0  ;;  %v7237_v29 = vadd.f32 %v7236_v20, %v7235_v3 }
 0x513   : > { %v7342_v7 = vpop.f32.mrb[15].mxu0 }
 0x514   : > { %v7343_v28 = vadd.f32 %v7342_v7, %v7341_v23  ;;  %v10643_v53 = vadd.f32 %v7340_v36, %v4874_v61  ;;  %v4885_v6 = vadd.f32 %v7237_v29, %v10542_v17 }
 0x516   : > { %v10646_v27 = vadd.f32 %v7343_v28, %v4877_v18  ;;  %v7238_v60 = vpop.f32.mrb[52].mxu1 }
 0x517   : > { %v7239_v32 = vpop.f32.mrb[53].mxu1 }
 0x518   : > { %v7344_v26 = vpop.f32.mrb[16].mxu0  ;;  %v7240_v34 = vadd.f32 %v7239_v32, %v7238_v60  ;;  %v7241_v55 = vpop.f32.mrb[54].mxu1 }
 0x519   : > { %v7345_v54 = vpop.f32.mrb[17].mxu0  ;;  %v7242_v40 = vpop.f32.mrb[55].mxu1 }
 0x51a   : > { %v7346_v13 = vadd.f32 %v7345_v54, %v7344_v26  ;;  %v7347_v24 = vpop.f32.mrb[18].mxu0  ;;  %v4890_v0 = vadd.f32 %v7240_v34, %v10544_v11  ;;  %v7243_v45 = vadd.f32 %v7242_v40, %v7241_v55 }
 0x51b   : > { %v7348_v48 = vpop.f32.mrb[19].mxu0 }
 0x51c   : > { %v7349_v22 = vadd.f32 %v7348_v48, %v7347_v24  ;;  %v10649_v61 = vadd.f32 %v7346_v13, %v4882_v41  ;;  %v4893_v17 = vadd.f32 %v7243_v45, %v10546_v15 }
 0x51e   : > { %v10652_v18 = vadd.f32 %v7349_v22, %v4885_v6  ;;  %v7244_v56 = vpop.f32.mrb[56].mxu1 }
 0x51f   : > { %v7245_v36 = vpop.f32.mrb[57].mxu1 }
 0x520   : > { %v7350_v3 = vpop.f32.mrb[20].mxu0  ;;  %v7246_v23 = vadd.f32 %v7245_v36, %v7244_v56  ;;  %v7247_v29 = vpop.f32.mrb[58].mxu1 }
 0x521   : > { %v7351_v20 = vpop.f32.mrb[21].mxu0  ;;  %v7248_v60 = vpop.f32.mrb[59].mxu1 }
 0x522   : > { %v7352_v7 = vadd.f32 %v7351_v20, %v7350_v3  ;;  %v7353_v28 = vpop.f32.mrb[22].mxu0  ;;  %v4898_v11 = vadd.f32 %v7246_v23, %v10548_v63  ;;  %v7249_v26 = vadd.f32 %v7248_v60, %v7247_v29  ;;  %v10669_v20 = vld [vmem:[%s11353_s5 + $0x1] ss:$0 sm:$0xff] }
 0x523   : > { %v7354_v32 = vpop.f32.mrb[23].mxu0 }
 0x524   : > { %v7355_v34 = vadd.f32 %v7354_v32, %v7353_v28  ;;  %v10655_v41 = vadd.f32 %v7352_v7, %v4890_v0  ;;  %v4901_v15 = vadd.f32 %v7249_v26, %v10556_v59 }
 0x526   : > { %v10658_v6 = vadd.f32 %v7355_v34, %v4893_v17  ;;  %v7250_v54 = vpop.f32.mrb[60].mxu1 }
 0x527   : > { %v7251_v13 = vpop.f32.mrb[61].mxu1 }
 0x528   : > { %v7356_v55 = vpop.f32.mrb[24].mxu0  ;;  %v7252_v24 = vadd.f32 %v7251_v13, %v7250_v54  ;;  %v7253_v45 = vpop.f32.mrb[62].mxu1 }
 0x529   : > { %v7357_v40 = vpop.f32.mrb[25].mxu0  ;;  %v7254_v56 = vpop.f32.mrb[63].mxu1 }
 0x52a   : > { %v7358_v48 = vadd.f32 %v7357_v40, %v7356_v55  ;;  %v7359_v22 = vpop.f32.mrb[26].mxu0  ;;  %v4906_v63 = vadd.f32 %v7252_v24, %v10559_v44  ;;  %v7255_v3 = vadd.f32 %v7254_v56, %v7253_v45  ;;  %v10675_v44 = vld [vmem:[%s11354_s6 + $0x1] ss:$0 sm:$0xff] }
 0x52b   : > { %v7360_v36 = vpop.f32.mrb[27].mxu0 }
 0x52c   : > { %v7361_v23 = vadd.f32 %v7360_v36, %v7359_v22  ;;  %v10661_v0 = vadd.f32 %v7358_v48, %v4898_v11  ;;  %v4909_v59 = vadd.f32 %v7255_v3, %v10562_v35 }
 0x52e   : > { %v10664_v17 = vadd.f32 %v7361_v23, %v4901_v15  ;;  %v7570_v29 = vpop.f32.mrb[64].mxu1 }
 0x52f   : > { %v5116_v28 = vadd.f32 %v7570_v29, %v10571_v5  ;;  %v5107_v60 = vpop.f32.mrb[65].mxu1 }
 0x530   : > { %v7362_v7 = vpop.f32.mrb[28].mxu0  ;;  %v5108_v35 = vadd.f32 %v5107_v60, %v10565_v19  ;;  %v7571_v26 = vpop.f32.mrb[66].mxu1 }
 0x531   : > { %v7363_v11 = vpop.f32.mrb[29].mxu0  ;;  %v5242_v32 = vmul.f32 %v10669_v20, %v5116_v28  ;;  %v5119_v54 = vadd.f32 %v7571_v26, %v10574_v14  ;;  %v5110_v55 = vpop.f32.mrb[67].mxu1 }
 0x532   : > { %v7364_v34 = vadd.f32 %v7363_v11, %v7362_v7  ;;  %v7365_v15 = vpop.f32.mrb[30].mxu0  ;;  %v5240_v13 = vmul.f32 %v10669_v20, %v5108_v35  ;;  %v5111_v24 = vadd.f32 %v5110_v55, %v10568_v25 }
 0x533   : > { %v7366_v5 = vpop.f32.mrb[31].mxu0  ;;  %v10683_v40 = vadd.f32 %v10675_v44, %v5242_v32  ;;  %v5243_v45 = vmul.f32 %v10669_v20, %v5119_v54 }
 0x534   : > { %v7367_v48 = vadd.f32 %v7366_v5, %v7365_v15  ;;  %v10686_v19 = vadd.f32 %v7364_v34, %v4906_v63  ;;  %v10689_v22 = vadd.f32 %v10675_v44, %v5240_v13  ;;  %v5241_v56 = vmul.f32 %v10669_v20, %v5111_v24 }
 0x535   : > { %v5312_v14 = vsub.f32 0.0, %v10683_v40  ;;  %v10694_v3 = vadd.f32 %v10675_v44, %v5243_v45 }
 0x536   : > { %v10696_v36 = vadd.f32 %v7367_v48, %v4909_v59  ;;  %v5310_v25 = vsub.f32 0.0, %v10689_v22  ;;  %v10700_v23 = vadd.f32 %v10675_v44, %v5241_v56  ;;  %v7574_v29 = vpop.f32.mrb[68].mxu1 }
 0x537   : > { %v5346_v63 = vmul.f32 1.442695, %v5312_v14  ;;  %v5313_v7 = vsub.f32 0.0, %v10694_v3  ;;  %v5132_v28 = vadd.f32 %v7574_v29, %v10583_v62  ;;  %v5123_v60 = vpop.f32.mrb[69].mxu1 }
 0x538   : > { %v5342_v11 = vmul.f32 1.442695, %v5310_v25  ;;  %v5311_v35 = vsub.f32 0.0, %v10700_v23  ;;  %v5124_v26 = vadd.f32 %v5123_v60, %v10577_v50  ;;  %v7575_v32 = vpop.f32.mrb[70].mxu1 }
 0x539   : > { %8204 = vpow2.f32 %v5346_v63  ;;  %v5348_v59 = vmul.f32 1.442695, %v5313_v7  ;;  %v5246_v34 = vmul.f32 %v10669_v20, %v5132_v28  ;;  %v5135_v15 = vadd.f32 %v7575_v32, %v10586_v46  ;;  %v5126_v54 = vpop.f32.mrb[71].mxu1 }
 0x53a   : > { %8206 = vpow2.f32 %v5342_v11  ;;  %v5344_v55 = vmul.f32 1.442695, %v5311_v35  ;;  %v5244_v13 = vmul.f32 %v10669_v20, %v5124_v26  ;;  %v5127_v62 = vadd.f32 %v5126_v54, %v10580_v8 }
 0x53b   : > { %8208 = vpow2.f32 %v5348_v59  ;;  %v10711_v5 = vadd.f32 %v10675_v44, %v5246_v34  ;;  %v5247_v50 = vmul.f32 %v10669_v20, %v5135_v15 }
 0x53c   : > { %8210 = vpow2.f32 %v5344_v55  ;;  %v10715_v24 = vadd.f32 %v10675_v44, %v5244_v13  ;;  %v5245_v45 = vmul.f32 %v10669_v20, %v5127_v62 }
 0x53d   : > { %v5316_v46 = vsub.f32 0.0, %v10711_v5  ;;  %v10720_v48 = vadd.f32 %v10675_v44, %v5247_v50 }
 0x53e   : > { %v5314_v56 = vsub.f32 0.0, %v10715_v24  ;;  %v10724_v8 = vadd.f32 %v10675_v44, %v5245_v45  ;;  %v7578_v14 = vpop.f32.mrb[72].mxu1 }
 0x53f   : > { %v5354_v25 = vmul.f32 1.442695, %v5316_v46  ;;  %v5317_v29 = vsub.f32 0.0, %v10720_v48  ;;  %v5148_v63 = vadd.f32 %v7578_v14, %v10601_v57  ;;  %v5139_v7 = vpop.f32.mrb[73].mxu1 }
 0x540   : > { %v5350_v28 = vmul.f32 1.442695, %v5314_v56  ;;  %v5315_v60 = vsub.f32 0.0, %v10724_v8  ;;  %v5140_v11 = vadd.f32 %v5139_v7, %v10589_v58  ;;  %v7579_v35 = vpop.f32.mrb[74].mxu1 }
 0x541   : > { %8212 = vpow2.f32 %v5354_v25  ;;  %v5356_v26 = vmul.f32 1.442695, %v5317_v29  ;;  %v5250_v32 = vmul.f32 %v10669_v20, %v5148_v63  ;;  %v5151_v59 = vadd.f32 %v7579_v35, %v10604_v38  ;;  %v5142_v34 = vpop.f32.mrb[75].mxu1 }
 0x542   : > { %8214 = vpow2.f32 %v5350_v28  ;;  %v5352_v15 = vmul.f32 1.442695, %v5315_v60  ;;  %v5248_v54 = vmul.f32 %v10669_v20, %v5140_v11  ;;  %v5143_v57 = vadd.f32 %v5142_v34, %v10592_v33 }
 0x543   : > { %v8205_v55 = vpop.eup %8204  ;;  %8216 = vpow2.f32 %v5356_v26  ;;  %v10735_v13 = vadd.f32 %v10675_v44, %v5250_v32  ;;  %v5251_v58 = vmul.f32 %v10669_v20, %v5151_v59 }
 0x544   : > { %v8207_v62 = vpop.eup %8206  ;;  %v5408_v50 = vadd.f32 1.0, %v8205_v55  ;;  %8218 = vpow2.f32 %v5352_v15  ;;  %v10739_v45 = vadd.f32 %v10675_v44, %v5248_v54  ;;  %v5249_v38 = vmul.f32 %v10669_v20, %v5143_v57 }
 0x545   : > { %v8209_v46 = vpop.eup %8208  ;;  %v5406_v56 = vadd.f32 1.0, %v8207_v62  ;;  %v5320_v14 = vsub.f32 0.0, %v10735_v13  ;;  %v10744_v33 = vadd.f32 %v10675_v44, %v5251_v58 }
 0x546   : > { %v8211_v25 = vpop.eup %8210  ;;  %8220 = vrcp.f32 %v5408_v50  ;;  %v5409_v29 = vadd.f32 1.0, %v8209_v46  ;;  %v5318_v63 = vsub.f32 0.0, %v10739_v45  ;;  %v10748_v7 = vadd.f32 %v10675_v44, %v5249_v38  ;;  %v7582_v28 = vpop.f32.mrb[76].mxu1 }
 0x547   : > { %8222 = vrcp.f32 %v5406_v56  ;;  %v5407_v60 = vadd.f32 1.0, %v8211_v25  ;;  %v5362_v11 = vmul.f32 1.442695, %v5320_v14  ;;  %v5321_v35 = vsub.f32 0.0, %v10744_v33  ;;  %v5155_v26 = vpop.f32.mrb[77].mxu1 }
 0x548   : > { %8224 = vrcp.f32 %v5409_v29  ;;  %v5358_v32 = vmul.f32 1.442695, %v5318_v63  ;;  %v5319_v59 = vsub.f32 0.0, %v10748_v7  ;;  %v5164_v34 = vadd.f32 %v7582_v28, %v10619_v52  ;;  %v7583_v15 = vpop.f32.mrb[78].mxu1 }
 0x549   : > { %8226 = vrcp.f32 %v5407_v60  ;;  %v5364_v54 = vmul.f32 1.442695, %v5321_v35  ;;  %v5156_v57 = vadd.f32 %v5155_v26, %v10607_v42  ;;  %v5167_v55 = vadd.f32 %v7583_v15, %v10622_v39  ;;  %v5158_v58 = vpop.f32.mrb[79].mxu1 }
 0x54a   : > { %8228 = vpow2.f32 %v5362_v11  ;;  %v5360_v62 = vmul.f32 1.442695, %v5319_v59  ;;  %v5254_v50 = vmul.f32 %v10669_v20, %v5164_v34  ;;  %v5159_v38 = vadd.f32 %v5158_v58, %v10610_v31 }
 0x54b   : > { %v8213_v46 = vpop.eup %8212  ;;  %8230 = vpow2.f32 %v5358_v32  ;;  %v5252_v56 = vmul.f32 %v10669_v20, %v5156_v57  ;;  %v5255_v52 = vmul.f32 %v10669_v20, %v5167_v55 }
 0x54c   : > { %v8215_v14 = vpop.eup %8214  ;;  %v5412_v25 = vadd.f32 1.0, %v8213_v46  ;;  %8232 = vpow2.f32 %v5364_v54  ;;  %v10760_v42 = vadd.f32 %v10675_v44, %v5254_v50  ;;  %v5253_v39 = vmul.f32 %v10669_v20, %v5159_v38 }
 0x54d   : > { %v8217_v29 = vpop.eup %8216  ;;  %v5410_v63 = vadd.f32 1.0, %v8215_v14  ;;  %8234 = vpow2.f32 %v5360_v62  ;;  %v10764_v28 = vadd.f32 %v10675_v44, %v5252_v56  ;;  %v10767_v31 = vadd.f32 %v10675_v44, %v5255_v52 }
 0x54e   : > { %v8219_v60 = vpop.eup %8218  ;;  %8236 = vrcp.f32 %v5412_v25  ;;  %v5413_v11 = vadd.f32 1.0, %v8217_v29  ;;  %v5324_v35 = vsub.f32 0.0, %v10760_v42  ;;  %v10771_v26 = vadd.f32 %v10675_v44, %v5253_v39  ;;  %v7586_v32 = vpop.f32.mrb[80].mxu1 }
 0x54f   : > { %8238 = vrcp.f32 %v5410_v63  ;;  %v5411_v59 = vadd.f32 1.0, %v8219_v60  ;;  %v5322_v34 = vsub.f32 0.0, %v10764_v28  ;;  %v5325_v15 = vsub.f32 0.0, %v10767_v31  ;;  %v5171_v54 = vpop.f32.mrb[81].mxu1 }
 0x550   : > { %v8221_v57 = vpop.eup %8220  ;;  %8240 = vrcp.f32 %v5413_v11  ;;  %v5370_v55 = vmul.f32 1.442695, %v5324_v35  ;;  %v5323_v58 = vsub.f32 0.0, %v10771_v26  ;;  %v5180_v62 = vadd.f32 %v7586_v32, %v10631_v30  ;;  %v7587_v50 = vpop.f32.mrb[82].mxu1  ;;  %v11620_v11 = vld [vmem:[#allocation27_spill] sm:$0xff] }
 0x551   : > { %v8223_v38 = vpop.eup %8222  ;;  %v5472_v46 = vmul.f32 %v8221_v57, %v10683_v40  ;;  %8242 = vrcp.f32 %v5411_v59  ;;  %v5366_v56 = vmul.f32 1.442695, %v5322_v34  ;;  %v5372_v52 = vmul.f32 1.442695, %v5325_v15  ;;  %v5174_v14 = vpop.f32.mrb[83].mxu1  ;;  %v11621_v59 = vld [vmem:[#allocation21_spill] sm:$0xff] }
 0x552   : > { %v8225_v25 = vpop.eup %8224  ;;  %v5470_v39 = vmul.f32 %v8223_v38, %v10689_v22  ;;  %8244 = vpow2.f32 %v5370_v55  ;;  %v5368_v29 = vmul.f32 1.442695, %v5323_v58  ;;  %v5258_v63 = vmul.f32 %v10669_v20, %v5180_v62  ;;  %v11622_v55 = vld [vmem:[#allocation29_spill] sm:$0xff] }
 0x553   : > { %v8227_v60 = vpop.eup %8226  ;;  %v10781_v35 = vadd.f32 %v5472_v46, %v11620_v11  ;;  %v5473_v30 = vmul.f32 %v8225_v25, %v10694_v3  ;;  %8246 = vpow2.f32 %v5366_v56  ;;  %v5172_v40 = vadd.f32 %v5171_v54, %v10625_v1  ;;  %v11623_v46 = vld [vmem:[#allocation23_spill] sm:$0xff] }
 0x554   : > { %v8229_v32 = vpop.eup %8228  ;;  %v5502_v34 = vadd.f32 %v5470_v39, %v11621_v59  ;;  %v5471_v15 = vmul.f32 %v8227_v60, %v10700_v23  ;;  %8248 = vpow2.f32 %v5372_v52  ;;  %v10788_v22 = vadd.f32 %v10675_v44, %v5258_v63 }
 0x555   : > { %v8231_v57 = vpop.eup %8230  ;;  %v10791_v58 = vadd.f32 %v5473_v30, %v11622_v55  ;;  %v5416_v62 = vadd.f32 1.0, %v8229_v32  ;;  %8250 = vpow2.f32 %v5368_v29  ;;  %v5256_v3 = vmul.f32 %v10669_v20, %v5172_v40 }
 0x556   : > { %v8233_v38 = vpop.eup %8232  ;;  %v5503_v1 = vadd.f32 %v5471_v15, %v11623_v46  ;;  %v5414_v54 = vadd.f32 1.0, %v8231_v57  ;;  %v5328_v56 = vsub.f32 0.0, %v10788_v22  ;;  %v5183_v23 = vadd.f32 %v7587_v50, %v10634_v10  ;;  %v7590_v52 = vpop.f32.mrb[84].mxu1 }
 0x557   : > { %v8235_v25 = vpop.eup %8234  ;;  %v5536_v39 = vpack.c.bf16 %v10791_v58, %v10781_v35  ;;  %8252 = vrcp.f32 %v5416_v62  ;;  %v5417_v63 = vadd.f32 1.0, %v8233_v38  ;;  %v10800_v60 = vadd.f32 %v10675_v44, %v5256_v3  ;;  %v5187_v29 = vpop.f32.mrb[85].mxu1 }
 0x558   : > { %v8237_v11 = vpop.eup %8236  ;;  %v5534_v30 = vpack.c.bf16 %v5503_v1, %v5502_v34  ;;  %8254 = vrcp.f32 %v5414_v54  ;;  %v5415_v40 = vadd.f32 1.0, %v8235_v25  ;;  %v5378_v32 = vmul.f32 1.442695, %v5328_v56  ;;  %v7591_v59 = vpop.f32.mrb[86].mxu1  ;;  %v11624_v1 = vld [vmem:[#allocation46_spill] sm:$0xff] }
 0x559   : > { %v8239_v15 = vpop.eup %8238  ;;  %v5476_v10 = vmul.f32 %v8237_v11, %v10711_v5  ;;  %8256 = vrcp.f32 %v5417_v63  ;;  %v5326_v50 = vsub.f32 0.0, %v10800_v60  ;;  %v5259_v57 = vmul.f32 %v10669_v20, %v5183_v23  ;;  %v5190_v55 = vpop.f32.mrb[87].mxu1  ;;  %v11625_v23 = vld [vmem:[#allocation12_spill] sm:$0xff] }
 0x55a   : > { %v8241_v62 = vpop.eup %8240  ;;  %v5474_v3 = vmul.f32 %v8239_v15, %v10715_v24  ;;  %8258 = vrcp.f32 %v5415_v40  ;;  %v5175_v38 = vadd.f32 %v5174_v14, %v10628_v21  ;;  %v5196_v34 = vadd.f32 %v7590_v52, %v10643_v53  ;;  %5727 = vmatmul.mubr.bf16.vlgmr.msra.gmra.mrb[32].mxu0 %v5534_v30  ;;  %v11627_v24 = vld [vmem:[#allocation35_spill] sm:$0xff]  ;;  %v11628_v30 = vld [vmem:[#allocation49_spill] sm:$0xff] }
 0x55b   : > { %v8243_v46 = vpop.eup %8242  ;;  %v10809_v54 = vadd.f32 %v5476_v10, %v11624_v1  ;;  %v5477_v5 = vmul.f32 %v8241_v62, %v10720_v48  ;;  %8260 = vpow2.f32 %v5378_v32  ;;  %v5374_v56 = vmul.f32 1.442695, %v5326_v50  ;;  %v11629_v15 = vld [vmem:[#allocation39_spill] sm:$0xff] }
 0x55c   : > { %v11626_v25 = vpack.c.bf16 %v9487_v2, %v11625_v23  ;;  %v8245_v63 = vpop.eup %8244  ;;  %v10816_v11 = vadd.f32 %v5474_v3, %v11627_v24  ;;  %v5475_v21 = vmul.f32 %v8243_v46, %v10724_v8  ;;  %v10820_v53 = vadd.f32 %v10675_v44, %v5259_v57 }
 0x55d   : > { %v5257_v14 = vmul.f32 %v10669_v20, %v5175_v38  ;;  %v8247_v52 = vpop.eup %8246  ;;  %v10824_v48 = vadd.f32 %v5477_v5, %v11628_v30  ;;  %v5420_v40 = vadd.f32 1.0, %v8245_v63  ;;  %8262 = vpow2.f32 %v5374_v56 }
 0x55e   : > { %5734 = vmatprep.mubr.bf16.mxu0 %v11626_v25  ;;  %v5262_v2 = vmul.f32 %v10669_v20, %v5196_v34  ;;  %v8249_v32 = vpop.eup %8248  ;;  %v10828_v10 = vadd.f32 %v5475_v21, %v11629_v15  ;;  %v5418_v50 = vadd.f32 1.0, %v8247_v52  ;;  %v5329_v8 = vsub.f32 0.0, %v10820_v53  ;;  %v7594_v62 = vpop.f32.mrb[88].mxu1 }
 0x55f   : > { %v10832_v57 = vadd.f32 %v10675_v44, %v5257_v14  ;;  %v8251_v3 = vpop.eup %8250  ;;  %v5540_v38 = vpack.c.bf16 %v10824_v48, %v10809_v54  ;;  %8264 = vrcp.f32 %v5420_v40  ;;  %v5421_v46 = vadd.f32 1.0, %v8249_v32  ;;  %v5203_v34 = vpop.f32.mrb[89].mxu1 }
 0x560   : > { %v10837_v1 = vadd.f32 %v10675_v44, %v5262_v2  ;;  %v5538_v5 = vpack.c.bf16 %v10828_v10, %v10816_v11  ;;  %8266 = vrcp.f32 %v5418_v50  ;;  %v5419_v56 = vadd.f32 1.0, %v8251_v3  ;;  %v10841_v25 = vpop.f32.mrb[90].mxu1 }
 0x561   : > { %v5380_v23 = vmul.f32 1.442695, %v5329_v8  ;;  %v8253_v63 = vpop.eup %8252  ;;  %8268 = vrcp.f32 %v5421_v46  ;;  %v5327_v24 = vsub.f32 0.0, %v10832_v57  ;;  %v5188_v14 = vadd.f32 %v5187_v29, %v10637_v9  ;;  %v10846_v52 = vpop.f32.mrb[91].mxu1  ;;  %v11630_v29 = vld [vmem:[#allocation26_spill] sm:$0xff]  ;;  %v11632_v8 = vld [vmem:[#allocation56_spill] sm:$0xff] }
 0x562   : > { %v5332_v21 = vsub.f32 0.0, %v10837_v1  ;;  %v8255_v30 = vpop.eup %8254  ;;  %v5480_v40 = vmul.f32 %v8253_v63, %v10735_v13  ;;  %8270 = vrcp.f32 %v5419_v56  ;;  %v5199_v11 = vadd.f32 %v7591_v59, %v10646_v27  ;;  %5735 = vmatmul.mubr.bf16.gmra.mrb[36].mxu0 %v5536_v39  ;;  %v11633_v39 = vld [vmem:[#allocation52_spill] sm:$0xff] }
 0x563   : > { %v5191_v2 = vadd.f32 %v5190_v55, %v10640_v49  ;;  %v8257_v32 = vpop.eup %8256  ;;  %v5478_v15 = vmul.f32 %v8255_v30, %v10739_v45  ;;  %8272 = vpow2.f32 %v5380_v23  ;;  %v5376_v10 = vmul.f32 1.442695, %v5327_v24  ;;  %v11634_v55 = vld [vmem:[#allocation59_spill] sm:$0xff]  ;;  %v11635_v24 = vld [vmem:[#allocation54_spill] sm:$0xff] }
 0x564   : > { %v5386_v9 = vmul.f32 1.442695, %v5332_v21  ;;  %v11631_v50 = vpack.c.bf16 %v9501_v47, %v11630_v29  ;;  %v8259_v13 = vpop.eup %8258  ;;  %v10859_v3 = vadd.f32 %v5480_v40, %v11632_v8  ;;  %v5481_v49 = vmul.f32 %v8257_v32, %v10744_v33 }
 0x565   : > { %v5260_v27 = vmul.f32 %v10669_v20, %v5188_v14  ;;  %v5263_v35 = vmul.f32 %v10669_v20, %v5199_v11  ;;  %v8261_v58 = vpop.eup %8260  ;;  %v10865_v45 = vadd.f32 %v5478_v15, %v11633_v39  ;;  %v5479_v59 = vmul.f32 %v8259_v13, %v10748_v7 }
 0x566   : > { %5742 = vmatprep.mubr.bf16.mxu0 %v11631_v50  ;;  %8274 = vpow2.f32 %v5376_v10  ;;  %v5261_v47 = vmul.f32 %v10669_v20, %v5191_v2  ;;  %v10870_v46 = vadd.f32 %v5481_v49, %v11634_v55  ;;  %v5424_v56 = vadd.f32 1.0, %v8261_v58  ;;  %v7598_v23 = vpop.f32.mrb[92].mxu1 }
 0x567   : > { %8276 = vpow2.f32 %v5386_v9  ;;  %v10873_v33 = vadd.f32 %v10675_v44, %v5260_v27  ;;  %v8263_v63 = vpop.eup %8262  ;;  %v10876_v21 = vadd.f32 %v5479_v59, %v11635_v24  ;;  %v10879_v14 = vadd.f32 %v10675_v44, %v5263_v35  ;;  %v5219_v40 = vpop.f32.mrb[93].mxu1 }
 0x568   : > { %v10882_v7 = vadd.f32 %v10675_v44, %v5261_v47  ;;  %v5212_v30 = vadd.f32 %v7594_v62, %v10655_v41  ;;  %v5544_v11 = vpack.c.bf16 %v10870_v46, %v10859_v3  ;;  %8278 = vrcp.f32 %v5424_v56  ;;  %v7599_v15 = vpop.f32.mrb[94].mxu1 }
 0x569   : > { %v5422_v2 = vadd.f32 1.0, %v8263_v63  ;;  %v5330_v32 = vsub.f32 0.0, %v10873_v33  ;;  %v8265_v10 = vpop.eup %8264  ;;  %v5542_v9 = vpack.c.bf16 %v10876_v21, %v10865_v45  ;;  %v5333_v29 = vsub.f32 0.0, %v10879_v14  ;;  %v5222_v41 = vpop.f32.mrb[95].mxu1  ;;  %v11637_v63 = vld [vmem:[#allocation70_spill] sm:$0xff]  ;;  %v11646_v45 = vld [vmem:[#allocation61_spill] sm:$0xff] }
 0x56a   : > { %v5331_v50 = vsub.f32 0.0, %v10882_v7  ;;  %v5266_v13 = vmul.f32 %v10669_v20, %v5212_v30  ;;  %v8267_v62 = vpop.eup %8266  ;;  %v5484_v8 = vmul.f32 %v8265_v10, %v10760_v42  ;;  %v5204_v27 = vadd.f32 %v5203_v34, %v10649_v61  ;;  %5743 = vmatmul.mubr.bf16.gmra.mrb[40].mxu0 %v5538_v5 }
 0x56b   : > { %8280 = vrcp.f32 %v5422_v2  ;;  %v5382_v49 = vmul.f32 1.442695, %v5330_v32  ;;  %v8269_v35 = vpop.eup %8268  ;;  %v5482_v58 = vmul.f32 %v8267_v62, %v10764_v28  ;;  %v5388_v39 = vmul.f32 1.442695, %v5333_v29  ;;  %v11638_v28 = vld [vmem:[#allocation62_spill] sm:$0xff]  ;;  %v11640_v29 = vld [vmem:[#allocation65_spill] sm:$0xff] }
 0x56c   : > { %v5384_v59 = vmul.f32 1.442695, %v5331_v50  ;;  %v10897_v47 = vadd.f32 %v10675_v44, %v5266_v13  ;;  %v11636_v55 = vpack.c.bf16 %v9526_v16, %v9522_v12  ;;  %v8271_v56 = vpop.eup %8270  ;;  %v10903_v42 = vadd.f32 %v5484_v8, %v11637_v63  ;;  %v11639_v16 = vld [vmem:[#allocation43_spill] sm:$0xff] }
 0x56d   : > { %v5485_v24 = vmul.f32 %v8269_v35, %v10767_v31  ;;  %8282 = vpow2.f32 %v5382_v49  ;;  %v5264_v61 = vmul.f32 %v10669_v20, %v5204_v27  ;;  %v8273_v34 = vpop.eup %8272  ;;  %v10908_v5 = vadd.f32 %v5482_v58, %v11638_v28 }
 0x56e   : > { %5750 = vmatprep.mubr.bf16.mxu0 %v11636_v55  ;;  %v5483_v30 = vmul.f32 %v8271_v56, %v10771_v26  ;;  %8284 = vpow2.f32 %v5388_v39  ;;  %v5336_v2 = vsub.f32 0.0, %v10897_v47  ;;  %v5425_v32 = vadd.f32 1.0, %v8273_v34 }
 0x56f   : > { %v10913_v12 = vadd.f32 %v5485_v24, %v11639_v16  ;;  %8286 = vpow2.f32 %v5384_v59  ;;  %v10916_v10 = vadd.f32 %v10675_v44, %v5264_v61  ;;  %v5215_v62 = vadd.f32 %v10841_v25, %v10658_v6 }
 0x570   : > { %v8275_v31 = vpop.eup %8274  ;;  %v10919_v50 = vadd.f32 %v5483_v30, %v11640_v29  ;;  %v5394_v13 = vmul.f32 1.442695, %v5336_v2  ;;  %v5207_v26 = vadd.f32 %v10846_v52, %v10652_v18  ;;  %8288 = vrcp.f32 %v5425_v32 }
 0x571   : > { %v8277_v8 = vpop.eup %8276  ;;  %v5548_v49 = vpack.c.bf16 %v10913_v12, %v10903_v42  ;;  %v5423_v27 = vadd.f32 1.0, %v8275_v31  ;;  %v5334_v35 = vsub.f32 0.0, %v10916_v10  ;;  %v5267_v59 = vmul.f32 %v10669_v20, %v5215_v62  ;;  %v11662_v42 = vld [vmem:[#allocation71_spill] sm:$0xff] }
 0x572   : > { %v5546_v58 = vpack.c.bf16 %v10919_v50, %v10908_v5  ;;  %v5428_v39 = vadd.f32 1.0, %v8277_v8  ;;  %v8279_v55 = vpop.eup %8278  ;;  %v5265_v25 = vmul.f32 %v10669_v20, %v5207_v26  ;;  %v5228_v18 = vadd.f32 %v7598_v23, %v10686_v19  ;;  %5751 = vmatmul.mubr.bf16.gmra.mrb[44].mxu0 %v5540_v38 }
 0x573   : > { %8290 = vrcp.f32 %v5423_v27  ;;  %v5390_v6 = vmul.f32 1.442695, %v5334_v35  ;;  %v10937_v52 = vadd.f32 %v10675_v44, %v5267_v59  ;;  %v5220_v56 = vadd.f32 %v5219_v40, %v10661_v0  ;;  %v11643_v59 = vld [vmem:[#allocation14_spill] sm:$0xff] }
 0x574   : > { %8292 = vpow2.f32 %v5394_v13  ;;  %v11641_v63 = vpack.c.bf16 %v9534_v51, %v9530_v43  ;;  %v10944_v61 = vadd.f32 %v10675_v44, %v5265_v25  ;;  %v5270_v19 = vmul.f32 %v10669_v20, %v5228_v18 }
 0x575   : > { %v8281_v24 = vpop.eup %8280  ;;  %8294 = vrcp.f32 %v5428_v39  ;;  %v5231_v54 = vadd.f32 %v7599_v15, %v10696_v36  ;;  %v5337_v48 = vsub.f32 0.0, %v10937_v52  ;;  %v5268_v38 = vmul.f32 %v10669_v20, %v5220_v56  ;;  %v11642_v39 = vld [vmem:[#allocation28_spill] sm:$0xff] }
 0x576   : > { %5758 = vmatprep.mubr.bf16.mxu0 %v11641_v63  ;;  %8296 = vpow2.f32 %v5390_v6  ;;  %v5335_v0 = vsub.f32 0.0, %v10944_v61  ;;  %v10952_v43 = vadd.f32 %v10675_v44, %v5270_v19  ;;  %v5223_v40 = vadd.f32 %v5222_v41, %v10664_v17 }
 0x577   : > { %v8283_v23 = vpop.eup %8282  ;;  %v5271_v51 = vmul.f32 %v10669_v20, %v5231_v54  ;;  %v5488_v28 = vmul.f32 %v8279_v55, %v10788_v22  ;;  %v5396_v36 = vmul.f32 1.442695, %v5337_v48  ;;  %v10958_v15 = vadd.f32 %v10675_v44, %v5268_v38  ;;  %v11648_v48 = vld [vmem:[#allocation51_spill] sm:$0xff] }
 0x578   : > { %v8285_v34 = vpop.eup %8284  ;;  %v5426_v30 = vadd.f32 1.0, %v8283_v23  ;;  %v5392_v32 = vmul.f32 1.442695, %v5335_v0  ;;  %v5340_v31 = vsub.f32 0.0, %v10952_v43  ;;  %v5269_v41 = vmul.f32 %v10669_v20, %v5223_v40 }
 0x579   : > { %v8287_v2 = vpop.eup %8286  ;;  %v5429_v16 = vadd.f32 1.0, %v8285_v34  ;;  %v10962_v29 = vadd.f32 %v10675_v44, %v5271_v51  ;;  %v5338_v17 = vsub.f32 0.0, %v10958_v15  ;;  %v5486_v62 = vmul.f32 %v8281_v24, %v10800_v60  ;;  %v11645_v60 = vld [vmem:[#allocation55_spill] sm:$0xff] }
 0x57a   : > { %8298 = vrcp.f32 %v5426_v30  ;;  %v5427_v13 = vadd.f32 1.0, %v8287_v2  ;;  %v8289_v22 = vpop.eup %8288  ;;  %5759 = vmatmul.mubr.bf16.gmra.mrb[48].mxu0 %v5542_v9  ;;  %v5402_v27 = vmul.f32 1.442695, %v5340_v31  ;;  %v10973_v35 = vadd.f32 %v10675_v44, %v5269_v41  ;;  %v11647_v24 = vld [vmem:[#allocation31_spill] sm:$0xff]  ;;  %v11650_v30 = vld [vmem:[#allocation16_spill] sm:$0xff] }
 0x57b   : > { %8300 = vrcp.f32 %v5429_v16  ;;  %v5341_v26 = vsub.f32 0.0, %v10962_v29  ;;  %v5489_v8 = vmul.f32 %v8289_v22, %v10820_v53  ;;  %v11644_v20 = vpack.c.bf16 %v11642_v39, %v11643_v59  ;;  %v11652_v41 = vld [vmem:[#allocation64_spill] sm:$0xff] }
 0x57c   : > { %8302 = vrcp.f32 %v5427_v13  ;;  %v10979_v6 = vadd.f32 %v5488_v28, %v11645_v60  ;;  %v5398_v25 = vmul.f32 1.442695, %v5338_v17  ;;  %v5339_v44 = vsub.f32 0.0, %v10973_v35  ;;  %v11649_v28 = vld [vmem:[#allocation38_spill] sm:$0xff] }
 0x57d   : > { %5766 = vmatprep.mubr.bf16.mxu0 %v11644_v20  ;;  %v8291_v55 = vpop.eup %8290  ;;  %8304 = vpow2.f32 %v5396_v36  ;;  %v10982_v21 = vadd.f32 %v5489_v8, %v11646_v45  ;;  %v5404_v56 = vmul.f32 1.442695, %v5341_v26  ;;  %v10987_v19 = vadd.f32 %v5486_v62, %v11647_v24  ;;  %v11653_v62 = vld [vmem:[#allocation36_spill] sm:$0xff] }
 0x57e   : > { %v8293_v18 = vpop.eup %8292  ;;  %v5487_v53 = vmul.f32 %v8291_v55, %v10832_v57  ;;  %8306 = vpow2.f32 %v5392_v32  ;;  %v5400_v23 = vmul.f32 1.442695, %v5339_v44  ;;  %v11651_v36 = vpack.c.bf16 %v11649_v28, %v11650_v30 }
 0x57f   : > { %v8295_v9 = vpop.eup %8294  ;;  %v5552_v54 = vpack.c.bf16 %v10982_v21, %v10979_v6  ;;  %8308 = vpow2.f32 %v5402_v27  ;;  %v5432_v0 = vadd.f32 1.0, %v8293_v18  ;;  %v11683_v6 = vld [vmem:[#allocation79_spill] sm:$0xff]  ;;  %v11684_v21 = vld [vmem:[#allocation78_spill] sm:$0xff] }
 0x580   : > { %v8297_v63 = vpop.eup %8296  ;;  %v10992_v38 = vadd.f32 %v5487_v53, %v11648_v48  ;;  %8310 = vpow2.f32 %v5398_v25  ;;  %v5492_v34 = vmul.f32 %v8295_v9, %v10837_v1  ;;  %v11658_v9 = vld [vmem:[#allocation48_spill] sm:$0xff] }
 0x581   : > { %v5430_v51 = vadd.f32 1.0, %v8297_v63  ;;  %8312 = vpow2.f32 %v5404_v56 }
 0x582   : > { %v5550_v57 = vpack.c.bf16 %v10992_v38, %v10987_v19  ;;  %5767 = vmatmul.mubr.bf16.gmra.mrb[52].mxu0 %v5544_v11  ;;  %8314 = vpow2.f32 %v5400_v23  ;;  %v5524_v46 = vadd.f32 %v5492_v34, %v9405_v37  ;;  %v11671_v19 = vld [vmem:[#allocation32_spill] sm:$0xff] }
 0x583   : > { %5774 = vmatprep.mubr.bf16.mxu0 %v11651_v36  ;;  %8316 = vrcp.f32 %v5432_v0  ;;  %v11660_v0 = vld [vmem:[#allocation76_spill] sm:$0xff] }
 0x584   : > { %v8299_v40 = vpop.eup %8298  ;;  %8318 = vrcp.f32 %v5430_v51 }
 0x585   : > { %v8301_v2 = vpop.eup %8300  ;;  %v5490_v16 = vmul.f32 %v8299_v40, %v10873_v33 }
 0x586   : > { %v8303_v32 = vpop.eup %8302  ;;  %v5493_v31 = vmul.f32 %v8301_v2, %v10879_v14 }
 0x587   : > { %v8305_v13 = vpop.eup %8304  ;;  %v5491_v17 = vmul.f32 %v8303_v32, %v10882_v7  ;;  %v5522_v22 = vadd.f32 %v5490_v16, %v11652_v41  ;;  %v11654_v7 = vld [vmem:[#allocation18_spill] sm:$0xff] }
 0x588   : > { %v8307_v3 = vpop.eup %8306  ;;  %v5525_v1 = vadd.f32 %v5493_v31, %v9433_v4  ;;  %v5433_v11 = vadd.f32 1.0, %v8305_v13  ;;  %v11655_v4 = vld [vmem:[#allocation41_spill] sm:$0xff]  ;;  %v11664_v31 = vld [vmem:[#allocation24_spill] sm:$0xff]  ;;  %v11665_v13 = vld [vmem:[#allocation50_spill] sm:$0xff] }
 0x589   : > { %v5523_v26 = vadd.f32 %v5491_v17, %v11653_v62  ;;  %v5431_v8 = vadd.f32 1.0, %v8307_v3  ;;  %v8309_v33 = vpop.eup %8308  ;;  %v11656_v20 = vpack.c.bf16 %v11654_v7, %v11655_v4  ;;  %v11666_v17 = vpack.c.bf16 %v11664_v31, %v11665_v13  ;;  %v11667_v3 = vld [vmem:[#allocation25_spill] sm:$0xff]  ;;  %v11681_v7 = vld [vmem:[#allocation40_spill] sm:$0xff] }
 0x58a   : > { %v5556_v27 = vpack.c.bf16 %v5525_v1, %v5524_v46  ;;  %8320 = vrcp.f32 %v5433_v11  ;;  %v8311_v14 = vpop.eup %8310  ;;  %v5436_v59 = vadd.f32 1.0, %v8309_v33  ;;  %5775 = vmatmul.mubr.bf16.gmra.mrb[56].mxu0 %v5546_v58  ;;  %v11657_v58 = vld [vmem:[#allocation19_spill] sm:$0xff]  ;;  %v11669_v11 = vld [vmem:[#allocation34_spill] sm:$0xff]  ;;  %v11677_v33 = vld [vmem:[#allocation20_spill] sm:$0xff] }
 0x58b   : > { %v5554_v39 = vpack.c.bf16 %v5523_v26, %v5522_v22  ;;  %8322 = vrcp.f32 %v5431_v8  ;;  %v5434_v37 = vadd.f32 1.0, %v8311_v14  ;;  %5782 = vmatprep.mubr.bf16.mxu0 %v11656_v20  ;;  %v8313_v55 = vpop.eup %8312  ;;  %v11659_v56 = vpack.c.bf16 %v11657_v58, %v11658_v9  ;;  %v11675_v26 = vld [vmem:[#allocation42_spill] sm:$0xff]  ;;  %v11678_v14 = vld [vmem:[#allocation13_spill] sm:$0xff]  ;;  %v11687_v20 = vld [vmem:[#allocation44_spill] sm:$0xff] }
 0x58c   : > { %8324 = vrcp.f32 %v5436_v59  ;;  %v8315_v60 = vpop.eup %8314  ;;  %v5437_v25 = vadd.f32 1.0, %v8313_v55  ;;  %v11679_v59 = vpack.c.bf16 %v11677_v33, %v11678_v14 }
 0x58d   : > { %8326 = vrcp.f32 %v5434_v37  ;;  %v5435_v18 = vadd.f32 1.0, %v8315_v60  ;;  %v8317_v45 = vpop.eup %8316  ;;  %v11680_v37 = vld [vmem:[#allocation33_spill] sm:$0xff] }
 0x58e   : > { %8328 = vrcp.f32 %v5437_v25  ;;  %v8319_v53 = vpop.eup %8318  ;;  %v5496_v44 = vmul.f32 %v8317_v45, %v10897_v47  ;;  %v11661_v47 = vld [vmem:[#allocation15_spill] sm:$0xff]  ;;  %v11682_v4 = vpack.c.bf16 %v11680_v37, %v11681_v7 }
 0x58f   : > { %8330 = vrcp.f32 %v5435_v18  ;;  %v5494_v50 = vmul.f32 %v8319_v53, %v10916_v10  ;;  %v11068_v25 = vld [vmem:[%s11356_s8] ss:$0 sm:$0xff] }
 0x590   : > { %v5528_v51 = vadd.f32 %v5496_v44, %v11660_v0  ;;  %v11073_v53 = vld [vmem:[%s11357_s9] ss:$0 sm:$0xff] }
 0x591   : > { %v5526_v12 = vadd.f32 %v5494_v50, %v11662_v42 }
 0x592   : > { %5783 = vmatmul.mubr.bf16.gmra.mrb[60].mxu0 %v5548_v49  ;;  %v11663_v49 = vld [vmem:[#allocation75_spill] sm:$0xff] }
 0x593   : > { %5790 = vmatprep.mubr.bf16.mxu0 %v11659_v56 }
 0x594   : > { %v8321_v5 = vpop.eup %8320 }
 0x595   : > { %v8323_v63 = vpop.eup %8322  ;;  %v5497_v24 = vmul.f32 %v8321_v5, %v10937_v52 }
 0x596   : > { %v5495_v48 = vmul.f32 %v8323_v63, %v10944_v61  ;;  %v8325_v23 = vpop.eup %8324 }
 0x597   : > { %v5529_v40 = vadd.f32 %v5497_v24, %v11661_v47  ;;  %v8327_v34 = vpop.eup %8326  ;;  %v5500_v30 = vmul.f32 %v8325_v23, %v10952_v43  ;;  %v11668_v43 = vld [vmem:[#allocation11_spill] sm:$0xff] }
 0x598   : > { %v5527_v28 = vadd.f32 %v5495_v48, %v11663_v49  ;;  %v8329_v36 = vpop.eup %8328  ;;  %v5498_v16 = vmul.f32 %v8327_v34, %v10958_v15  ;;  %v11670_v15 = vld [vmem:[#allocation17_spill] sm:$0xff] }
 0x599   : > { %v5560_v10 = vpack.c.bf16 %v5529_v40, %v5528_v51  ;;  %v8331_v52 = vpop.eup %8330  ;;  %v5501_v61 = vmul.f32 %v8329_v36, %v10962_v29  ;;  %v5532_v46 = vadd.f32 %v5500_v30, %v11667_v3 }
 0x59a   : > { %v5558_v2 = vpack.c.bf16 %v5527_v28, %v5526_v12  ;;  %5791 = vmatmul.mubr.bf16.gmra.mrb[64].mxu0 %v5550_v57  ;;  %v5499_v32 = vmul.f32 %v8331_v52, %v10973_v35  ;;  %v5530_v41 = vadd.f32 %v5498_v16, %v11669_v11  ;;  %v11672_v35 = vld [vmem:[#allocation30_spill] sm:$0xff]  ;;  %v11674_v57 = vld [vmem:[#allocation45_spill] sm:$0xff] }
 0x59b   : > { %5798 = vmatprep.mubr.bf16.mxu0 %v11666_v17  ;;  %v5533_v1 = vadd.f32 %v5501_v61, %v11668_v43  ;;  %v11673_v38 = vpack.c.bf16 %v11671_v19, %v11672_v35  ;;  %v11676_v8 = vpack.c.bf16 %v11674_v57, %v11675_v26 }
 0x59c   : > { %v5531_v22 = vadd.f32 %v5499_v32, %v11670_v15 }
 0x59d   : > { %v5564_v62 = vpack.c.bf16 %v5533_v1, %v5532_v46 }
 0x59e   : > { %v5562_v29 = vpack.c.bf16 %v5531_v22, %v5530_v41 }
 0x5a2   : > { %5799 = vmatmul.mubr.bf16.gmra.mrb[68].mxu0 %v5552_v54  ;;  %v11685_v54 = vpack.c.bf16 %v11683_v6, %v11684_v21 }
 0x5a3   : > { %5806 = vmatprep.mubr.bf16.mxu0 %v11673_v38 }
 0x5aa   : > { %5807 = vmatmul.mubr.bf16.gmra.mrb[72].mxu0 %v5554_v39  ;;  %v11686_v39 = vld [vmem:[#allocation9_spill] sm:$0xff] }
 0x5ab   : > { %5814 = vmatprep.mubr.bf16.mxu0 %v11676_v8  ;;  %v11688_v55 = vpack.c.bf16 %v11686_v39, %v11687_v20 }
 0x5b2   : > { %5815 = vmatmul.mubr.bf16.gmra.mrb[76].mxu0 %v5556_v27 }
 0x5b3   : > { %5822 = vmatprep.mubr.bf16.mxu0 %v11679_v59 }
 0x5ba   : > { %5823 = vmatmul.mubr.bf16.gmra.mrb[80].mxu0 %v5558_v2 }
 0x5bb   : > { %5830 = vmatprep.mubr.bf16.mxu0 %v11682_v4 }
 0x5c2   : > { %5831 = vmatmul.mubr.bf16.gmra.mrb[84].mxu0 %v5560_v10 }
 0x5c3   : > { %5838 = vmatprep.mubr.bf16.mxu0 %v11685_v54 }
 0x5ca   : > { %5839 = vmatmul.mubr.bf16.gmra.mrb[88].mxu0 %v5562_v29 }
 0x5cb   : > { %5846 = vmatprep.mubr.bf16.mxu0 %v11688_v55 }
 0x5d2   : > { %5847 = vmatmul.mubr.bf16.gmra.mrb[92].mxu0 %v5564_v62 }
 0x62d   : > { %v7408_v27 = vpop.f32.mrb[32].mxu0 }
 0x62e   : > { %v7409_v60 = vpop.f32.mrb[33].mxu0 }
 0x62f   : > { %v7410_v18 = vadd.f32 %v7409_v60, %v7408_v27  ;;  %v7411_v45 = vpop.f32.mrb[34].mxu0 }
 0x630   : > { %v7412_v44 = vpop.f32.mrb[35].mxu0 }
 0x631   : > { %v5862_v5 = vmul.f32 %v7410_v18, %v11068_v25  ;;  %v7413_v50 = vadd.f32 %v7412_v44, %v7411_v45 }
 0x633   : > { %v11077_v58 = vadd.f32 %v11073_v53, %v5862_v5  ;;  %v5863_v9 = vmul.f32 %v7413_v50, %v11068_v25 }
 0x635   : > { %v5933_v56 = vsub.f32 0.0, %v11077_v58  ;;  %v11082_v63 = vadd.f32 %v11073_v53, %v5863_v9  ;;  %v7414_v24 = vpop.f32.mrb[36].mxu0 }
 0x636   : > { %v7415_v48 = vpop.f32.mrb[37].mxu0 }
 0x637   : > { %v5965_v23 = vmul.f32 1.442695, %v5933_v56  ;;  %v5934_v0 = vsub.f32 0.0, %v11082_v63  ;;  %v7416_v51 = vadd.f32 %v7415_v48, %v7414_v24  ;;  %v7417_v47 = vpop.f32.mrb[38].mxu0 }
 0x638   : > { %v7418_v40 = vpop.f32.mrb[39].mxu0 }
 0x639   : > { %8332 = vpow2.f32 %v5965_v23  ;;  %v5967_v34 = vmul.f32 1.442695, %v5934_v0  ;;  %v5864_v42 = vmul.f32 %v7416_v51, %v11068_v25  ;;  %v7419_v12 = vadd.f32 %v7418_v40, %v7417_v47 }
 0x63b   : > { %8334 = vpow2.f32 %v5967_v34  ;;  %v11087_v49 = vadd.f32 %v11073_v53, %v5864_v42  ;;  %v5865_v28 = vmul.f32 %v7419_v12, %v11068_v25 }
 0x63d   : > { %v5935_v10 = vsub.f32 0.0, %v11087_v49  ;;  %v11092_v30 = vadd.f32 %v11073_v53, %v5865_v28  ;;  %v7420_v36 = vpop.f32.mrb[40].mxu0 }
 0x63e   : > { %v7421_v2 = vpop.f32.mrb[41].mxu0 }
 0x63f   : > { %v5969_v16 = vmul.f32 1.442695, %v5935_v10  ;;  %v5936_v52 = vsub.f32 0.0, %v11092_v30  ;;  %v7422_v61 = vadd.f32 %v7421_v2, %v7420_v36  ;;  %v7423_v32 = vpop.f32.mrb[42].mxu0 }
 0x640   : > { %v7424_v31 = vpop.f32.mrb[43].mxu0 }
 0x641   : > { %8336 = vpow2.f32 %v5969_v16  ;;  %v5971_v13 = vmul.f32 1.442695, %v5936_v52  ;;  %v5866_v17 = vmul.f32 %v7422_v61, %v11068_v25  ;;  %v7425_v3 = vadd.f32 %v7424_v31, %v7423_v32 }
 0x643   : > { %v8333_v46 = vpop.eup %8332  ;;  %8338 = vpow2.f32 %v5971_v13  ;;  %v11097_v43 = vadd.f32 %v11073_v53, %v5866_v17  ;;  %v5867_v1 = vmul.f32 %v7425_v3, %v11068_v25 }
 0x644   : > { %v6029_v11 = vadd.f32 1.0, %v8333_v46 }
 0x645   : > { %v8335_v41 = vpop.eup %8334  ;;  %v5937_v15 = vsub.f32 0.0, %v11097_v43  ;;  %v11102_v22 = vadd.f32 %v11073_v53, %v5867_v1  ;;  %v7426_v62 = vpop.f32.mrb[44].mxu0 }
 0x646   : > { %8340 = vrcp.f32 %v6029_v11  ;;  %v6030_v29 = vadd.f32 1.0, %v8335_v41  ;;  %v7427_v19 = vpop.f32.mrb[45].mxu0 }
 0x647   : > { %v5973_v35 = vmul.f32 1.442695, %v5937_v15  ;;  %v5938_v38 = vsub.f32 0.0, %v11102_v22  ;;  %v7428_v57 = vadd.f32 %v7427_v19, %v7426_v62  ;;  %v7429_v26 = vpop.f32.mrb[46].mxu0 }
 0x648   : > { %8342 = vrcp.f32 %v6030_v29  ;;  %v7430_v8 = vpop.f32.mrb[47].mxu0 }
 0x649   : > { %8344 = vpow2.f32 %v5973_v35  ;;  %v5975_v33 = vmul.f32 1.442695, %v5938_v38  ;;  %v5868_v14 = vmul.f32 %v7428_v57, %v11068_v25  ;;  %v7431_v59 = vadd.f32 %v7430_v8, %v7429_v26 }
 0x64b   : > { %v8337_v37 = vpop.eup %8336  ;;  %8346 = vpow2.f32 %v5975_v33  ;;  %v11108_v7 = vadd.f32 %v11073_v53, %v5868_v14  ;;  %v5869_v4 = vmul.f32 %v7431_v59, %v11068_v25 }
 0x64c   : > { %v6031_v6 = vadd.f32 1.0, %v8337_v37 }
 0x64d   : > { %v8339_v21 = vpop.eup %8338  ;;  %v5939_v54 = vsub.f32 0.0, %v11108_v7  ;;  %v11115_v39 = vadd.f32 %v11073_v53, %v5869_v4  ;;  %v7432_v20 = vpop.f32.mrb[48].mxu0 }
 0x64e   : > { %8348 = vrcp.f32 %v6031_v6  ;;  %v6032_v55 = vadd.f32 1.0, %v8339_v21  ;;  %v7433_v27 = vpop.f32.mrb[49].mxu0 }
 0x64f   : > { %v5977_v60 = vmul.f32 1.442695, %v5939_v54  ;;  %v5940_v18 = vsub.f32 0.0, %v11115_v39  ;;  %v7434_v45 = vadd.f32 %v7433_v27, %v7432_v20  ;;  %v7435_v44 = vpop.f32.mrb[50].mxu0 }
 0x650   : > { %v8341_v5 = vpop.eup %8340  ;;  %8350 = vrcp.f32 %v6032_v55  ;;  %v7436_v50 = vpop.f32.mrb[51].mxu0 }
 0x651   : > { %v6093_v9 = vmul.f32 %v8341_v5, %v11077_v58  ;;  %8352 = vpow2.f32 %v5977_v60  ;;  %v5979_v56 = vmul.f32 1.442695, %v5940_v18  ;;  %v5870_v24 = vmul.f32 %v7434_v45, %v11068_v25 }
 0x652   : > { %v8343_v48 = vpop.eup %8342  ;;  %v7437_v23 = vadd.f32 %v7436_v50, %v7435_v44 }
 0x653   : > { %v8345_v0 = vpop.eup %8344  ;;  %6125 = vst [vmem:[%s11120_s27] sm:$0xff] %v6093_v9  ;;  %v6094_v51 = vmul.f32 %v8343_v48, %v11082_v63  ;;  %8354 = vpow2.f32 %v5979_v56  ;;  %v11125_v47 = vadd.f32 %v11073_v53, %v5870_v24 }
 0x654   : > { %v6033_v40 = vadd.f32 1.0, %v8345_v0  ;;  %v5871_v58 = vmul.f32 %v7437_v23, %v11068_v25 }
 0x655   : > { %v8347_v34 = vpop.eup %8346  ;;  %6126 = vst [vmem:[%s11120_s27 + $0x8] sm:$0xff] %v6094_v51  ;;  %v5941_v42 = vsub.f32 0.0, %v11125_v47  ;;  %v7438_v12 = vpop.f32.mrb[52].mxu0 }
 0x656   : > { %8356 = vrcp.f32 %v6033_v40  ;;  %v6034_v28 = vadd.f32 1.0, %v8347_v34  ;;  %v11131_v10 = vadd.f32 %v11073_v53, %v5871_v58  ;;  %v7439_v36 = vpop.f32.mrb[53].mxu0 }
 0x657   : > { %v5981_v63 = vmul.f32 1.442695, %v5941_v42  ;;  %v7440_v2 = vadd.f32 %v7439_v36, %v7438_v12  ;;  %v7441_v16 = vpop.f32.mrb[54].mxu0 }
 0x658   : > { %v8349_v52 = vpop.eup %8348  ;;  %8358 = vrcp.f32 %v6034_v28  ;;  %v5942_v61 = vsub.f32 0.0, %v11131_v10  ;;  %v7442_v32 = vpop.f32.mrb[55].mxu0 }
 0x659   : > { %v6095_v31 = vmul.f32 %v8349_v52, %v11087_v49  ;;  %8360 = vpow2.f32 %v5981_v63  ;;  %v5872_v13 = vmul.f32 %v7440_v2, %v11068_v25  ;;  %v7443_v17 = vadd.f32 %v7442_v32, %v7441_v16 }
 0x65a   : > { %v8351_v3 = vpop.eup %8350  ;;  %v5983_v46 = vmul.f32 1.442695, %v5942_v61 }
 0x65b   : > { %v8353_v1 = vpop.eup %8352  ;;  %6127 = vst [vmem:[%s11120_s27 + $0x10] sm:$0xff] %v6095_v31  ;;  %v6096_v11 = vmul.f32 %v8351_v3, %v11092_v30  ;;  %v11139_v41 = vadd.f32 %v11073_v53, %v5872_v13  ;;  %v5873_v15 = vmul.f32 %v7443_v17, %v11068_v25 }
 0x65c   : > { %v6035_v62 = vadd.f32 1.0, %v8353_v1  ;;  %8362 = vpow2.f32 %v5983_v46 }
 0x65d   : > { %v8355_v29 = vpop.eup %8354  ;;  %6128 = vst [vmem:[%s11120_s27 + $0x18] sm:$0xff] %v6096_v11  ;;  %v5943_v49 = vsub.f32 0.0, %v11139_v41  ;;  %v11145_v19 = vadd.f32 %v11073_v53, %v5873_v15  ;;  %v7444_v35 = vpop.f32.mrb[56].mxu0 }
 0x65e   : > { %8364 = vrcp.f32 %v6035_v62  ;;  %v6036_v38 = vadd.f32 1.0, %v8355_v29  ;;  %v7445_v57 = vpop.f32.mrb[57].mxu0 }
 0x65f   : > { %v5985_v30 = vmul.f32 1.442695, %v5943_v49  ;;  %v5944_v26 = vsub.f32 0.0, %v11145_v19  ;;  %v7446_v8 = vadd.f32 %v7445_v57, %v7444_v35  ;;  %v7447_v33 = vpop.f32.mrb[58].mxu0 }
 0x660   : > { %v8357_v14 = vpop.eup %8356  ;;  %8366 = vrcp.f32 %v6036_v38  ;;  %v7448_v59 = vpop.f32.mrb[59].mxu0 }
 0x661   : > { %v6097_v37 = vmul.f32 %v8357_v14, %v11097_v43  ;;  %8368 = vpow2.f32 %v5985_v30  ;;  %v5987_v4 = vmul.f32 1.442695, %v5944_v26  ;;  %v5874_v6 = vmul.f32 %v7446_v8, %v11068_v25 }
 0x662   : > { %v8359_v21 = vpop.eup %8358  ;;  %v7449_v54 = vadd.f32 %v7448_v59, %v7447_v33 }
 0x663   : > { %v8361_v20 = vpop.eup %8360  ;;  %6129 = vst [vmem:[%s11120_s27 + $0x20] sm:$0xff] %v6097_v37  ;;  %v6098_v55 = vmul.f32 %v8359_v21, %v11102_v22  ;;  %8370 = vpow2.f32 %v5987_v4  ;;  %v11153_v27 = vadd.f32 %v11073_v53, %v5874_v6 }
 0x664   : > { %v6037_v60 = vadd.f32 1.0, %v8361_v20  ;;  %v5875_v18 = vmul.f32 %v7449_v54, %v11068_v25 }
 0x665   : > { %6130 = vst [vmem:[%s11120_s27 + $0x28] sm:$0xff] %v6098_v55  ;;  %v5945_v43 = vsub.f32 0.0, %v11153_v27  ;;  %v7450_v45 = vpop.f32.mrb[60].mxu0 }
 0x666   : > { %v8363_v44 = vpop.eup %8362  ;;  %8372 = vrcp.f32 %v6037_v60  ;;  %v11159_v5 = vadd.f32 %v11073_v53, %v5875_v18  ;;  %v7451_v50 = vpop.f32.mrb[61].mxu0 }
 0x667   : > { %v6038_v9 = vadd.f32 1.0, %v8363_v44  ;;  %v5989_v22 = vmul.f32 1.442695, %v5945_v43  ;;  %v7452_v56 = vadd.f32 %v7451_v50, %v7450_v45  ;;  %v7453_v24 = vpop.f32.mrb[62].mxu0 }
 0x668   : > { %v8365_v48 = vpop.eup %8364  ;;  %v5946_v23 = vsub.f32 0.0, %v11159_v5  ;;  %v7454_v0 = vpop.f32.mrb[63].mxu0 }
 0x669   : > { %v6099_v51 = vmul.f32 %v8365_v48, %v11108_v7  ;;  %8374 = vrcp.f32 %v6038_v9  ;;  %v5876_v40 = vmul.f32 %v7452_v56, %v11068_v25  ;;  %v7455_v58 = vadd.f32 %v7454_v0, %v7453_v24 }
 0x66a   : > { %v8367_v34 = vpop.eup %8366  ;;  %8376 = vpow2.f32 %v5989_v22  ;;  %v5991_v42 = vmul.f32 1.442695, %v5946_v23 }
 0x66b   : > { %v8369_v12 = vpop.eup %8368  ;;  %6131 = vst [vmem:[%s11120_s27 + $0x30] sm:$0xff] %v6099_v51  ;;  %v6100_v28 = vmul.f32 %v8367_v34, %v11115_v39  ;;  %v11167_v36 = vadd.f32 %v11073_v53, %v5876_v40  ;;  %v5877_v63 = vmul.f32 %v7455_v58, %v11068_v25 }
 0x66c   : > { %v6039_v2 = vadd.f32 1.0, %v8369_v12  ;;  %8378 = vpow2.f32 %v5991_v42 }
 0x66d   : > { %v8371_v16 = vpop.eup %8370  ;;  %6132 = vst [vmem:[%s11120_s27 + $0x38] sm:$0xff] %v6100_v28  ;;  %v5947_v7 = vsub.f32 0.0, %v11167_v36  ;;  %v11173_v52 = vadd.f32 %v11073_v53, %v5877_v63  ;;  %v7456_v61 = vpop.f32.mrb[64].mxu0 }
 0x66e   : > { %8380 = vrcp.f32 %v6039_v2  ;;  %v6040_v32 = vadd.f32 1.0, %v8371_v16  ;;  %v7457_v31 = vpop.f32.mrb[65].mxu0 }
 0x66f   : > { %v5993_v39 = vmul.f32 1.442695, %v5947_v7  ;;  %v5948_v13 = vsub.f32 0.0, %v11173_v52  ;;  %v7458_v17 = vadd.f32 %v7457_v31, %v7456_v61  ;;  %v7459_v3 = vpop.f32.mrb[66].mxu0 }
 0x670   : > { %v8373_v46 = vpop.eup %8372  ;;  %8382 = vrcp.f32 %v6040_v32  ;;  %v7460_v1 = vpop.f32.mrb[67].mxu0 }
 0x671   : > { %v6101_v11 = vmul.f32 %v8373_v46, %v11125_v47  ;;  %8384 = vpow2.f32 %v5993_v39  ;;  %v5995_v15 = vmul.f32 1.442695, %v5948_v13  ;;  %v5878_v62 = vmul.f32 %v7458_v17, %v11068_v25 }
 0x672   : > { %v7461_v29 = vadd.f32 %v7460_v1, %v7459_v3 }
 0x673   : > { %v8375_v49 = vpop.eup %8374  ;;  %6133 = vst [vmem:[%s11120_s27 + $0x40] sm:$0xff] %v6101_v11  ;;  %8386 = vpow2.f32 %v5995_v15  ;;  %v11180_v35 = vadd.f32 %v11073_v53, %v5878_v62 }
 0x674   : > { %v8377_v38 = vpop.eup %8376  ;;  %v6102_v57 = vmul.f32 %v8375_v49, %v11131_v10  ;;  %v5879_v30 = vmul.f32 %v7461_v29, %v11068_v25 }
 0x675   : > { %v6041_v26 = vadd.f32 1.0, %v8377_v38  ;;  %v5949_v47 = vsub.f32 0.0, %v11180_v35  ;;  %v7462_v8 = vpop.f32.mrb[68].mxu0 }
 0x676   : > { %v8379_v33 = vpop.eup %8378  ;;  %6134 = vst [vmem:[%s11120_s27 + $0x48] sm:$0xff] %v6102_v57  ;;  %v11187_v14 = vadd.f32 %v11073_v53, %v5879_v30  ;;  %v7463_v59 = vpop.f32.mrb[69].mxu0 }
 0x677   : > { %8388 = vrcp.f32 %v6041_v26  ;;  %v6042_v37 = vadd.f32 1.0, %v8379_v33  ;;  %v5997_v4 = vmul.f32 1.442695, %v5949_v47  ;;  %v7464_v6 = vadd.f32 %v7463_v59, %v7462_v8  ;;  %v7465_v21 = vpop.f32.mrb[70].mxu0 }
 0x678   : > { %v8381_v54 = vpop.eup %8380  ;;  %v5950_v10 = vsub.f32 0.0, %v11187_v14  ;;  %v7466_v20 = vpop.f32.mrb[71].mxu0 }
 0x679   : > { %v6103_v55 = vmul.f32 %v8381_v54, %v11139_v41  ;;  %8390 = vrcp.f32 %v6042_v37  ;;  %v5880_v60 = vmul.f32 %v7464_v6, %v11068_v25  ;;  %v7467_v18 = vadd.f32 %v7466_v20, %v7465_v21 }
 0x67a   : > { %v8383_v43 = vpop.eup %8382  ;;  %8392 = vpow2.f32 %v5997_v4  ;;  %v5999_v45 = vmul.f32 1.442695, %v5950_v10 }
 0x67b   : > { %v8385_v44 = vpop.eup %8384  ;;  %6135 = vst [vmem:[%s11120_s27 + $0x50] sm:$0xff] %v6103_v55  ;;  %v6104_v50 = vmul.f32 %v8383_v43, %v11145_v19  ;;  %v11195_v9 = vadd.f32 %v11073_v53, %v5880_v60  ;;  %v5881_v22 = vmul.f32 %v7467_v18, %v11068_v25 }
 0x67c   : > { %v6043_v56 = vadd.f32 1.0, %v8385_v44  ;;  %8394 = vpow2.f32 %v5999_v45 }
 0x67d   : > { %v8387_v24 = vpop.eup %8386  ;;  %6136 = vst [vmem:[%s11120_s27 + $0x58] sm:$0xff] %v6104_v50  ;;  %v5951_v41 = vsub.f32 0.0, %v11195_v9  ;;  %v11201_v48 = vadd.f32 %v11073_v53, %v5881_v22  ;;  %v7468_v23 = vpop.f32.mrb[72].mxu0 }
 0x67e   : > { %8396 = vrcp.f32 %v6043_v56  ;;  %v6044_v0 = vadd.f32 1.0, %v8387_v24  ;;  %v7469_v51 = vpop.f32.mrb[73].mxu0 }
 0x67f   : > { %v6001_v40 = vmul.f32 1.442695, %v5951_v41  ;;  %v5952_v19 = vsub.f32 0.0, %v11201_v48  ;;  %v7470_v58 = vadd.f32 %v7469_v51, %v7468_v23  ;;  %v7471_v34 = vpop.f32.mrb[74].mxu0 }
 0x680   : > { %8398 = vrcp.f32 %v6044_v0  ;;  %v7472_v42 = vpop.f32.mrb[75].mxu0 }
 0x681   : > { %v8389_v12 = vpop.eup %8388  ;;  %8400 = vpow2.f32 %v6001_v40  ;;  %v6003_v28 = vmul.f32 1.442695, %v5952_v19  ;;  %v5882_v63 = vmul.f32 %v7470_v58, %v11068_v25  ;;  %v7473_v2 = vadd.f32 %v7472_v42, %v7471_v34 }
 0x682   : > { %v6105_v16 = vmul.f32 %v8389_v12, %v11153_v27 }
 0x683   : > { %v8391_v7 = vpop.eup %8390  ;;  %8402 = vpow2.f32 %v6003_v28  ;;  %v11207_v61 = vadd.f32 %v11073_v53, %v5882_v63  ;;  %v5883_v32 = vmul.f32 %v7473_v2, %v11068_v25 }
 0x684   : > { %v8393_v31 = vpop.eup %8392  ;;  %6137 = vst [vmem:[%s11120_s27 + $0x60] sm:$0xff] %v6105_v16  ;;  %v6106_v39 = vmul.f32 %v8391_v7, %v11159_v5 }
 0x685   : > { %v6045_v13 = vadd.f32 1.0, %v8393_v31  ;;  %v5953_v17 = vsub.f32 0.0, %v11207_v61  ;;  %v11214_v3 = vadd.f32 %v11073_v53, %v5883_v32  ;;  %v7474_v46 = vpop.f32.mrb[76].mxu0 }
 0x686   : > { %v8395_v1 = vpop.eup %8394  ;;  %6138 = vst [vmem:[%s11120_s27 + $0x68] sm:$0xff] %v6106_v39  ;;  %v7475_v27 = vpop.f32.mrb[77].mxu0 }
 0x687   : > { %8404 = vrcp.f32 %v6045_v13  ;;  %v6046_v11 = vadd.f32 1.0, %v8395_v1  ;;  %v6005_v15 = vmul.f32 1.442695, %v5953_v17  ;;  %v5954_v62 = vsub.f32 0.0, %v11214_v3  ;;  %v7477_v29 = vpop.f32.mrb[78].mxu0 }
 0x688   : > { %v8397_v49 = vpop.eup %8396  ;;  %v7476_v38 = vadd.f32 %v7475_v27, %v7474_v46  ;;  %v7478_v5 = vpop.f32.mrb[79].mxu0 }
 0x689   : > { %v6107_v57 = vmul.f32 %v8397_v49, %v11167_v36  ;;  %8406 = vrcp.f32 %v6046_v11  ;;  %v6007_v30 = vmul.f32 1.442695, %v5954_v62  ;;  %v7479_v26 = vadd.f32 %v7478_v5, %v7477_v29 }
 0x68a   : > { %v8399_v47 = vpop.eup %8398  ;;  %8408 = vpow2.f32 %v6005_v15  ;;  %v5884_v8 = vmul.f32 %v7476_v38, %v11068_v25 }
 0x68b   : > { %v8401_v33 = vpop.eup %8400  ;;  %6139 = vst [vmem:[%s11120_s27 + $0x70] sm:$0xff] %v6107_v57  ;;  %v6108_v59 = vmul.f32 %v8399_v47, %v11173_v52  ;;  %8410 = vpow2.f32 %v6007_v30  ;;  %v5885_v37 = vmul.f32 %v7479_v26, %v11068_v25 }
 0x68c   : > { %v6047_v4 = vadd.f32 1.0, %v8401_v33  ;;  %v11224_v6 = vadd.f32 %v11073_v53, %v5884_v8 }
 0x68d   : > { %v8403_v21 = vpop.eup %8402  ;;  %6140 = vst [vmem:[%s11120_s27 + $0x78] sm:$0xff] %v6108_v59  ;;  %v11228_v36 = vadd.f32 %v11073_v53, %v5885_v37  ;;  %v7480_v54 = vpop.f32.mrb[80].mxu0 }
 0x68e   : > { %8412 = vrcp.f32 %v6047_v4  ;;  %v6048_v10 = vadd.f32 1.0, %v8403_v21  ;;  %v5955_v20 = vsub.f32 0.0, %v11224_v6  ;;  %v7481_v55 = vpop.f32.mrb[81].mxu0 }
 0x68f   : > { %v5956_v52 = vsub.f32 0.0, %v11228_v36  ;;  %v7482_v60 = vadd.f32 %v7481_v55, %v7480_v54  ;;  %v7483_v18 = vpop.f32.mrb[82].mxu0 }
 0x690   : > { %8414 = vrcp.f32 %v6048_v10  ;;  %v6009_v43 = vmul.f32 1.442695, %v5955_v20  ;;  %v7484_v45 = vpop.f32.mrb[83].mxu0 }
 0x691   : > { %v8405_v44 = vpop.eup %8404  ;;  %v6011_v50 = vmul.f32 1.442695, %v5956_v52  ;;  %v5886_v22 = vmul.f32 %v7482_v60, %v11068_v25  ;;  %v7485_v56 = vadd.f32 %v7484_v45, %v7483_v18 }
 0x692   : > { %v6109_v24 = vmul.f32 %v8405_v44, %v11180_v35  ;;  %8416 = vpow2.f32 %v6009_v43 }
 0x693   : > { %v8407_v41 = vpop.eup %8406  ;;  %8418 = vpow2.f32 %v6011_v50  ;;  %v11235_v23 = vadd.f32 %v11073_v53, %v5886_v22  ;;  %v5887_v0 = vmul.f32 %v7485_v56, %v11068_v25 }
 0x694   : > { %v8409_v51 = vpop.eup %8408  ;;  %6141 = vst [vmem:[%s11120_s27 + $0x80] sm:$0xff] %v6109_v24  ;;  %v6110_v40 = vmul.f32 %v8407_v41, %v11187_v14 }
 0x695   : > { %v8411_v19 = vpop.eup %8410  ;;  %v6049_v58 = vadd.f32 1.0, %v8409_v51  ;;  %v5957_v34 = vsub.f32 0.0, %v11235_v23  ;;  %v11242_v42 = vadd.f32 %v11073_v53, %v5887_v0  ;;  %v7486_v35 = vpop.f32.mrb[84].mxu0 }
 0x696   : > { %6142 = vst [vmem:[%s11120_s27 + $0x88] sm:$0xff] %v6110_v40  ;;  %v6050_v12 = vadd.f32 1.0, %v8411_v19  ;;  %v7487_v28 = vpop.f32.mrb[85].mxu0 }
 0x697   : > { %8420 = vrcp.f32 %v6049_v58  ;;  %v6013_v63 = vmul.f32 1.442695, %v5957_v34  ;;  %v5958_v2 = vsub.f32 0.0, %v11242_v42  ;;  %v7488_v16 = vadd.f32 %v7487_v28, %v7486_v35  ;;  %v7489_v7 = vpop.f32.mrb[86].mxu0 }
 0x698   : > { %v8413_v32 = vpop.eup %8412  ;;  %8422 = vrcp.f32 %v6050_v12  ;;  %v7490_v14 = vpop.f32.mrb[87].mxu0 }
 0x699   : > { %v6111_v31 = vmul.f32 %v8413_v32, %v11195_v9  ;;  %8424 = vpow2.f32 %v6013_v63  ;;  %v6015_v39 = vmul.f32 1.442695, %v5958_v2  ;;  %v5888_v13 = vmul.f32 %v7488_v16, %v11068_v25 }
 0x69a   : > { %v8415_v17 = vpop.eup %8414  ;;  %v7491_v46 = vadd.f32 %v7490_v14, %v7489_v7 }
 0x69b   : > { %6143 = vst [vmem:[%s11120_s27 + $0x90] sm:$0xff] %v6111_v31  ;;  %v6112_v1 = vmul.f32 %v8415_v17, %v11201_v48  ;;  %8426 = vpow2.f32 %v6015_v39  ;;  %v11251_v27 = vadd.f32 %v11073_v53, %v5888_v13 }
 0x69c   : > { %v8417_v11 = vpop.eup %8416  ;;  %v5889_v15 = vmul.f32 %v7491_v46, %v11068_v25 }
 0x69d   : > { %v8419_v62 = vpop.eup %8418  ;;  %6144 = vst [vmem:[%s11120_s27 + $0x98] sm:$0xff] %v6112_v1  ;;  %v6051_v29 = vadd.f32 1.0, %v8417_v11  ;;  %v5959_v9 = vsub.f32 0.0, %v11251_v27  ;;  %v7492_v49 = vpop.f32.mrb[88].mxu0 }
 0x69e   : > { %v6052_v38 = vadd.f32 1.0, %v8419_v62  ;;  %v11257_v5 = vadd.f32 %v11073_v53, %v5889_v15  ;;  %v7493_v57 = vpop.f32.mrb[89].mxu0 }
 0x69f   : > { %8428 = vrcp.f32 %v6051_v29  ;;  %v6017_v48 = vmul.f32 1.442695, %v5959_v9  ;;  %v7494_v30 = vadd.f32 %v7493_v57, %v7492_v49  ;;  %v7495_v26 = vpop.f32.mrb[90].mxu0 }
 0x6a0   : > { %8430 = vrcp.f32 %v6052_v38  ;;  %v5960_v47 = vsub.f32 0.0, %v11257_v5  ;;  %v7496_v8 = vpop.f32.mrb[91].mxu0 }
 0x6a1   : > { %v8421_v33 = vpop.eup %8420  ;;  %8432 = vpow2.f32 %v6017_v48  ;;  %v5890_v59 = vmul.f32 %v7494_v30, %v11068_v25  ;;  %v7497_v37 = vadd.f32 %v7496_v8, %v7495_v26 }
 0x6a2   : > { %v8423_v4 = vpop.eup %8422  ;;  %v6113_v21 = vmul.f32 %v8421_v33, %v11207_v61  ;;  %v6019_v54 = vmul.f32 1.442695, %v5960_v47 }
 0x6a3   : > { %v8425_v10 = vpop.eup %8424  ;;  %v6114_v20 = vmul.f32 %v8423_v4, %v11214_v3  ;;  %v11264_v55 = vadd.f32 %v11073_v53, %v5890_v59  ;;  %v5891_v52 = vmul.f32 %v7497_v37, %v11068_v25 }
 0x6a4   : > { %6145 = vst [vmem:[%s11120_s27 + $0xa0] sm:$0xff] %v6113_v21  ;;  %v6053_v60 = vadd.f32 1.0, %v8425_v10  ;;  %8434 = vpow2.f32 %v6019_v54 }
 0x6a5   : > { %v8427_v18 = vpop.eup %8426  ;;  %6146 = vst [vmem:[%s11120_s27 + $0xa8] sm:$0xff] %v6114_v20  ;;  %v5961_v43 = vsub.f32 0.0, %v11264_v55  ;;  %v11271_v45 = vadd.f32 %v11073_v53, %v5891_v52  ;;  %v7498_v61 = vpop.f32.mrb[92].mxu0 }
 0x6a6   : > { %8436 = vrcp.f32 %v6053_v60  ;;  %v6054_v44 = vadd.f32 1.0, %v8427_v18  ;;  %v7499_v50 = vpop.f32.mrb[93].mxu0 }
 0x6a7   : > { %v6021_v3 = vmul.f32 1.442695, %v5961_v43  ;;  %v5962_v22 = vsub.f32 0.0, %v11271_v45  ;;  %v7500_v56 = vadd.f32 %v7499_v50, %v7498_v61  ;;  %v7501_v24 = vpop.f32.mrb[94].mxu0 }
 0x6a8   : > { %8438 = vrcp.f32 %v6054_v44  ;;  %v7502_v41 = vpop.f32.mrb[95].mxu0 }
 0x6a9   : > { %v8429_v0 = vpop.eup %8428  ;;  %8440 = vpow2.f32 %v6021_v3  ;;  %v6023_v51 = vmul.f32 1.442695, %v5962_v22  ;;  %v5892_v40 = vmul.f32 %v7500_v56, %v11068_v25  ;;  %v7503_v19 = vadd.f32 %v7502_v41, %v7501_v24 }
 0x6aa   : > { %v8431_v58 = vpop.eup %8430  ;;  %v6115_v34 = vmul.f32 %v8429_v0, %v11224_v6 }
 0x6ab   : > { %v8433_v35 = vpop.eup %8432  ;;  %v6116_v12 = vmul.f32 %v8431_v58, %v11228_v36  ;;  %8442 = vpow2.f32 %v6023_v51  ;;  %v5931_v28 = vadd.f32 %v11073_v53, %v5892_v40  ;;  %v5893_v63 = vmul.f32 %v7503_v19, %v11068_v25 }
 0x6ac   : > { %6147 = vst [vmem:[%s11120_s27 + $0xb0] sm:$0xff] %v6115_v34  ;;  %v6055_v2 = vadd.f32 1.0, %v8433_v35 }
 0x6ad   : > { %6148 = vst [vmem:[%s11120_s27 + $0xb8] sm:$0xff] %v6116_v12  ;;  %v5963_v16 = vsub.f32 0.0, %v5931_v28  ;;  %v5932_v7 = vadd.f32 %v11073_v53, %v5893_v63 }
 0x6ae   : > { %v8435_v32 = vpop.eup %8434  ;;  %8444 = vrcp.f32 %v6055_v2 }
 0x6af   : > { %v6056_v14 = vadd.f32 1.0, %v8435_v32  ;;  %v6025_v6 = vmul.f32 1.442695, %v5963_v16  ;;  %v5964_v31 = vsub.f32 0.0, %v5932_v7 }
 0x6b0   : > { %v8437_v39 = vpop.eup %8436 }
 0x6b1   : > { %v6117_v36 = vmul.f32 %v8437_v39, %v11235_v23  ;;  %8446 = vrcp.f32 %v6056_v14  ;;  %v6027_v13 = vmul.f32 1.442695, %v5964_v31 }
 0x6b2   : > { %v8439_v25 = vpop.eup %8438  ;;  %8448 = vpow2.f32 %v6025_v6 }
 0x6b3   : > { %v8441_v17 = vpop.eup %8440  ;;  %6149 = vst [vmem:[%s11120_s27 + $0xc0] sm:$0xff] %v6117_v36  ;;  %v6118_v46 = vmul.f32 %v8439_v25, %v11242_v42  ;;  %8450 = vpow2.f32 %v6027_v13 }
 0x6b4   : > { %v6057_v53 = vadd.f32 1.0, %v8441_v17 }
 0x6b5   : > { %v8443_v1 = vpop.eup %8442  ;;  %6150 = vst [vmem:[%s11120_s27 + $0xc8] sm:$0xff] %v6118_v46 }
 0x6b6   : > { %8452 = vrcp.f32 %v6057_v53  ;;  %v6058_v11 = vadd.f32 1.0, %v8443_v1 }
 0x6b8   : > { %v8445_v15 = vpop.eup %8444  ;;  %8454 = vrcp.f32 %v6058_v11 }
 0x6b9   : > { %v6119_v23 = vmul.f32 %v8445_v15, %v11251_v27 }
 0x6bb   : > { %v8447_v62 = vpop.eup %8446  ;;  %6151 = vst [vmem:[%s11120_s27 + $0xd0] sm:$0xff] %v6119_v23 }
 0x6bc   : > { %v8449_v29 = vpop.eup %8448  ;;  %v6120_v42 = vmul.f32 %v8447_v62, %v11257_v5 }
 0x6bd   : > { %v8451_v9 = vpop.eup %8450  ;;  %v6059_v49 = vadd.f32 1.0, %v8449_v29 }
 0x6be   : > { %6152 = vst [vmem:[%s11120_s27 + $0xd8] sm:$0xff] %v6120_v42  ;;  %v6060_v38 = vadd.f32 1.0, %v8451_v9 }
 0x6bf   : > { %8456 = vrcp.f32 %v6059_v49 }
 0x6c0   : > { %v8453_v57 = vpop.eup %8452  ;;  %8458 = vrcp.f32 %v6060_v38 }
 0x6c1   : > { %v6121_v27 = vmul.f32 %v8453_v57, %v11264_v55 }
 0x6c2   : > { %v8455_v48 = vpop.eup %8454 }
 0x6c3   : > { %6153 = vst [vmem:[%s11120_s27 + $0xe0] sm:$0xff] %v6121_v27  ;;  %v6122_v30 = vmul.f32 %v8455_v48, %v11271_v45 }
 0x6c5   : > { %6154 = vst [vmem:[%s11120_s27 + $0xe8] sm:$0xff] %v6122_v30 }
 0x6c9   : > { %v8457_v5 = vpop.eup %8456 }
 0x6ca   : > { %v8459_v26 = vpop.eup %8458  ;;  %v6123_v47 = vmul.f32 %v8457_v5, %v5931_v28 }
 0x6cb   : > { %v6124_v8 = vmul.f32 %v8459_v26, %v5932_v7 }
 0x6cc   : > { %6155 = vst [vmem:[%s11120_s27 + $0xf0] sm:$0xff] %v6123_v47 }
 0x6cd   : > { %6156 = vst [vmem:[%s11120_s27 + $0xf8] sm:$0xff] %v6124_v8 }
 0x6ce   : > { %8505 = shalt.err (!%p8502_p7)
}
 0x6cf   : > { %s8506_s28 = scalar_lea.hbm %s11299_s29, 4096  ;;  %s8510_s21 = scalar_lea.hbm %s11358_s10, 8192 }
 0x6d0   : > { %p8507_p8 = scmp.ne.s32.totalorder %s11299_s29, %s8506_s28  ;;  %p8511_p1 = scmp.lt.u32.totalorder %s11299_s29, %s11358_s10 }
 0x6d1   : > { %p8512_p0 = scmp.lt.u32.totalorder %s8510_s21, %s8506_s28  ;;  %p8514_p6 = scmp.lt.u32.totalorder %s8506_s28, %s11299_s29 }
 0x6d2   : > { %p8508_p11 = pnand %p8507_p8, %p11689_p9 }
 0x6d3   : > { %p8513_p5 = por %p8512_p0, %p8511_p1 }
 0x6d4   : > { %p8509_p13 = pneg %p8508_p11 }
 0x6d5   : > { %p8515_p10 = por %p8514_p6, %p8513_p5 }
 0x6d7   : > { %p8516_p12 = pnand %p8515_p10, %p8509_p13 }
 0x6d9   : > { %8519 = shalt.err (!%p8516_p12)
}
 0x6da   : > { %s8566_s17 = smov 128   ;;  %s8567_s18 = smov 8  }
 0x6db   : > { %7606 = dma.vmem_to_hbm [thread:$0]  (%p11689_p9), %s11301_s20, 4096, %s11299_s29, %s11307_s30, %s8566_s17, %s8566_s17, %s8567_s18  }
 0x6dc PF: > { %p7618_p2 = scmp.ge.s32.totalorder %s8558_s16, 2  ;;  %s6186_s25 = sand.u32 1, %s8546_s13  }
 0x6dd   : > { %p11690_p3 = scmp.ne.s32.totalorder %s11454_s24, 0  ;;  %s6187_s28 = scalar_lea.sflag [#allocation5], %s6186_s25 }
 0x6df   : > { %p7613_p4 = pnand %p7618_p2, %p11690_p3 }
 0x6e1   : > { %8541 = dma.done.wait (!%p7613_p4), %s6187_s28, 4096  }
 0x6e2   : > { %8543 = vsyncadd (!%p7613_p4), %s6187_s28, 4294963200  ;;  %p21_p7 = scmp.ge.s32.totalorder %s8648_s19, 4   ;;  %s11691_s13 = smov %s8550_s14 }
 0x6e3   : > { %s11692_s14 = smov %s8554_s15  ;;  %s11693_s15 = smov %s8659_s22 }
 0x6e4   : > { %s11694_s16 = smov %s8648_s19  ;;  %23 = sbr.rel (!%p21_p7) target bundleno = 4 (0x4), region = 105 }
 0x6eb   :  { %6192 = vsyncpa [#allocation4], 1 }
 0x6ec   :  { %6194 = vsyncpa [#allocation4 + $0x1], 1 }
 0x6ed   :  { %6195 = vsyncpa [#allocation5], 1 }
 0x6ee   :  { %6197 = vsyncpa [#allocation5 + $0x1], 1 }

</bundles_post_ra>
